<compile_context>
chip_gen: v7x
topology: tpu7x:2x2x1
jax: 0.10.0
libtpu: 0.0.40
codegen_flags: <defaults>
</compile_context>

<pallas_src>
import functools

import jax
import jax.numpy as jnp
from jax.experimental import pallas as pl
from jax.experimental.pallas import tpu as pltpu

NEG_SLOPE = 0.2
BN_EPS = 1e-5
LANE = 128
TM_TARGET = 256                     # 256x256 (M,N) tiles match v6e/v7x MXU cadence
ACT_SINGLE_BUF_BYTES = 8 * 1024 * 1024   # single-buffer act blocks >= this


def _round_up(x, m):
    return (x + m - 1) // m * m


def _narrow_mxu():
    """True on chips whose MXU tile is 128 wide (<= v5); False on v6e / v7x."""
    try:
        kind = jax.devices()[0].device_kind.lower()
    except Exception:
        return False
    return any(t in kind for t in ("v2", "v3", "v4", "v5"))


_NARROW_MXU = _narrow_mxu()


# ----------------------------- Pallas kernel --------------------------------
def _conv_rows_kernel(xwf_ref, w_ref, scale_ref, shift_ref, o_ref, acc_ref, *,
                      kh, ow_pad, apply_act):
    """Fused conv-as-matmul for one (image, oc-tile, m-tile) grid cell.

    xwf_ref   : [1, Lx, Kw]  bf16  column-gathered activation (whole image,
                                   resident in VMEM across the oc/m axes)
    w_ref     : [kh, Kw, tn] bf16  weights per kernel-row offset
    scale/shift: [1, tn]     f32   folded BatchNorm (or conv bias)
    o_ref     : [1, tm, tn]        output tile (bf16 hidden / f32 last layer)
    acc_ref   : [tm, tn]     f32   VMEM scratch accumulator (no vreg spills)
    """
    tm = o_ref.shape[1]
    m0 = pl.program_id(2) * tm

    # Static loop over the kernel-row offsets; each offset is a flat shift of
    # a*ow_pad in the (H*W)-flattened activation -> contiguous 8-aligned slice.
    for a in range(kh):
        start = pl.multiple_of(m0 + a * ow_pad, 8)
        lhs = xwf_ref[0, pl.ds(start, tm), :]                 # [tm, Kw] bf16
        contrib = jnp.dot(lhs, w_ref[a], preferred_element_type=jnp.float32)
        if a == 0:
            acc_ref[...] = contrib
        else:
            acc_ref[...] += contrib

    # Epilogue (once per output tile, in f32): affine + LeakyReLU(0.2).
    acc = acc_ref[...] * scale_ref[...] + shift_ref[...]
    if apply_act:
        acc = jnp.where(acc >= 0.0, acc, NEG_SLOPE * acc)
    o_ref[0] = acc.astype(o_ref.dtype)


def fused_conv_rows(xwf, wk, scale, shift, *, kh, ow_pad, tm, tn, m_img,
                    apply_act, out_dtype):
    nb, lx, kw_cin = xwf.shape
    ocp = wk.shape[-1]
    n_ct = ocp // tn
    n_mt = m_img // tm

    kern = functools.partial(_conv_rows_kernel, kh=kh, ow_pad=ow_pad,
                             apply_act=apply_act)

    # Single-buffer the whole-image activation block when it is large (its
    # block index only changes on the outermost batch axis), so big inputs do
    # not crowd v7x's 64 MiB VMEM with two copies of it.
    act_bytes = lx * kw_cin * 2                       # bf16
    act_single = act_bytes >= ACT_SINGLE_BUF_BYTES
    if act_single:
        act_spec = pl.BlockSpec((1, lx, kw_cin), lambda b, ct, mt: (b, 0, 0),
                                pipeline_mode=pl.Buffered(1))
    else:
        act_spec = pl.BlockSpec((1, lx, kw_cin), lambda b, ct, mt: (b, 0, 0))

    # VMEM limit sized from the actual resident block footprint (double-
    # buffered where applicable), with a small floor and a cap that stays well
    # below v7x's 64 MiB physical VMEM per TensorCore.
    out_bytes = jnp.dtype(out_dtype).itemsize
    footprint = ((1 if act_single else 2) * act_bytes
                 + 2 * kh * kw_cin * tn * 2          # weight block (bf16)
                 + 2 * 2 * tn * 4                    # scale + shift (f32)
                 + 2 * tm * tn * out_bytes           # output block
                 + tm * tn * 4)                      # f32 scratch accumulator
    vmem_limit = int(min(48 * 1024 * 1024, max(4 * 1024 * 1024, 2 * footprint)))

    return pl.pallas_call(
        kern,
        out_shape=jax.ShapeDtypeStruct((nb, m_img, ocp), out_dtype),
        grid=(nb, n_ct, n_mt),
        in_specs=[
            act_spec,
            pl.BlockSpec((kh, kw_cin, tn), lambda b, ct, mt: (0, 0, ct)),
            pl.BlockSpec((1, tn), lambda b, ct, mt: (0, ct)),
            pl.BlockSpec((1, tn), lambda b, ct, mt: (0, ct)),
        ],
        out_specs=pl.BlockSpec((1, tm, tn), lambda b, ct, mt: (b, mt, ct)),
        scratch_shapes=[pltpu.VMEM((tm, tn), jnp.float32)],
        compiler_params=pltpu.CompilerParams(
            dimension_semantics=("parallel", "parallel", "parallel"),
            vmem_limit_bytes=vmem_limit,
        ),
    )(xwf, wk, scale, shift)


# ------------------------------- JAX glue ------------------------------------
def conv_block(x_nhwc, lyr):
    """One SingleConv: reflect-pad -> conv -> (BN) -> LeakyReLU (eval mode)."""
    w = lyr["w"]                               # [OC, IC, KH, KW] (PyTorch layout)
    oc, ic, kh, kw = w.shape
    stride = lyr["stride"]

    xp = jnp.pad(x_nhwc, ((0, 0), (1, 1), (1, 1), (0, 0)),
                 mode="reflect").astype(jnp.bfloat16)

    if stride == 2:
        # Fold the stride into channels (space-to-depth): stride-2 4x4 conv
        # becomes a stride-1 2x2 conv with 4*IC input channels.
        nb, hp, wp, cin = xp.shape
        assert hp % 2 == 0 and wp % 2 == 0, "stride-2 layer needs even padded H/W"
        xs = (xp.reshape(nb, hp // 2, 2, wp // 2, 2, cin)
                .transpose(0, 1, 3, 2, 4, 5)
                .reshape(nb, hp // 2, wp // 2, 4 * cin))
        w6 = w.reshape(oc, ic, 2, 2, 2, 2)                     # [o,c,p',a,q',b]
        w_eff = w6.transpose(0, 3, 5, 1, 2, 4).reshape(oc, 4 * ic, 2, 2)
        kh_e, kw_e, cin_e = 2, 2, 4 * ic
    else:
        xs = xp
        w_eff = w
        kh_e, kw_e, cin_e = kh, kw, ic

    nb, hp_e, wp_e, _ = xs.shape
    oh = hp_e - kh_e + 1
    ow = wp_e - kw_e + 1
    ow_pad = _round_up(ow, 8)
    kw_cin = kw_e * cin_e
    kw_cin_pad = _round_up(kw_cin, LANE)   # lane-dense K (layer 0: 48 -> 128)

    # Gather only the kw_e column-shifted views (JAX side); the kh_e row
    # offsets are handled inside the kernel -> no KH*KW im2col in HBM.
    # TODO(synk): for layers with Cin' >= 128 the kw gather (2-4x HBM dup)
    # could also move in-kernel via sublane-unaligned slices.
    xw = jnp.concatenate([xs[:, :, b:b + ow, :] for b in range(kw_e)], axis=3)
    if ow_pad != ow:
        xw = jnp.pad(xw, ((0, 0), (0, 0), (0, ow_pad - ow), (0, 0)))
    if kw_cin_pad != kw_cin:
        xw = jnp.pad(xw, ((0, 0), (0, 0), (0, 0), (0, kw_cin_pad - kw_cin)))
    xwf = xw.reshape(nb, hp_e * ow_pad, kw_cin_pad)

    # Tiling: lane-dense OC, 8-aligned M rows, MXU-matched tile sizes.
    ocp = _round_up(oc, LANE)
    tn = LANE if (_NARROW_MXU or ocp % 256 != 0) else 256
    m_real = oh * ow_pad
    tm = TM_TARGET if m_real >= TM_TARGET else m_real
    m_img = _round_up(m_real, tm)
    lx = m_img + (kh_e - 1) * ow_pad
    if lx > xwf.shape[1]:
        xwf = jnp.pad(xwf, ((0, 0), (0, lx - xwf.shape[1]), (0, 0)))

    # Weights reshaped to [kh_e, kw_e*Cin', OC] matching the xw channel order,
    # K-padded with zeros to stay lane-dense (zero act * zero weight = 0).
    wk = w_eff.transpose(2, 3, 1, 0).reshape(kh_e, kw_cin, oc)
    if kw_cin_pad != kw_cin:
        wk = jnp.pad(wk, ((0, 0), (0, kw_cin_pad - kw_cin), (0, 0)))
    if ocp != oc:
        wk = jnp.pad(wk, ((0, 0), (0, 0), (0, ocp - oc)))
    wk = wk.astype(jnp.bfloat16)
    scale = jnp.pad(lyr["scale"], (0, ocp - oc),
                    constant_values=1.0).reshape(1, ocp).astype(jnp.float32)
    shift = jnp.pad(lyr["shift"], (0, ocp - oc)).reshape(1, ocp).astype(jnp.float32)

    out_dtype = jnp.bfloat16 if lyr["act"] else jnp.float32
    out = fused_conv_rows(xwf, wk, scale, shift, kh=kh_e, ow_pad=ow_pad,
                          tm=tm, tn=tn, m_img=m_img, apply_act=lyr["act"],
                          out_dtype=out_dtype)

    # Strip M / W / OC padding back to the real conv output.
    out = out[:, :oh * ow_pad, :].reshape(nb, oh, ow_pad, ocp)[:, :, :ow, :oc]
    return out


def final_conv_xla(x_nhwc, lyr):
    """Final Conv2d(features[-1] -> 1, k=3, s=1, reflect pad) in plain XLA.

    Per perf review: an OC=1 conv through the 128-lane MXU path is 127/128
    padding and costs an extra kernel launch + HBM round trip.
    """
    w = lyr["w"].astype(jnp.float32)                  # [1, IC, KH, KW]
    _, _, kh, kw = w.shape
    xp = jnp.pad(x_nhwc, ((0, 0), (1, 1), (1, 1), (0, 0)),
                 mode="reflect").astype(jnp.float32)
    nb, hp, wp, _ = xp.shape
    oh, ow = hp - kh + 1, wp - kw + 1
    out = jnp.zeros((nb, oh, ow), jnp.float32)
    for a in range(kh):
        for b in range(kw):
            out = out + jnp.einsum("nhwc,c->nhw",
                                   xp[:, a:a + oh, b:b + ow, :], w[0, :, a, b])
    out = out + lyr["shift"][0]
    return out[..., None]                             # [N, OH, OW, 1]


# --------------------------- parameter construction --------------------------
def init_params(key, inchannels=6, features=(64, 128, 256, 512)):
    layers = []
    ic = inchannels
    for idx, f in enumerate(features):
        is_first = idx == 0
        is_last = idx == len(features) - 1
        use_bn = not is_first
        stride = 1 if is_last else 2
        key, kw_, kb, kg, kbe, km, kv = jax.random.split(key, 7)
        fan_in = ic * 4 * 4
        bound = 1.0 / (fan_in ** 0.5)
        w = jax.random.uniform(kw_, (f, ic, 4, 4), jnp.float32, -bound, bound)
        if use_bn:
            gamma = jax.random.uniform(kg, (f,), jnp.float32, 0.5, 1.5)
            beta = 0.1 * jax.random.normal(kbe, (f,), jnp.float32)
            rmean = 0.1 * jax.random.normal(km, (f,), jnp.float32)
            rvar = jax.random.uniform(kv, (f,), jnp.float32, 0.5, 1.5)
            inv = gamma / jnp.sqrt(rvar + BN_EPS)
            scale = inv
            shift = beta - rmean * inv
        else:
            bias = jax.random.uniform(kb, (f,), jnp.float32, -bound, bound)
            scale = jnp.ones((f,), jnp.float32)
            shift = bias
        layers.append(dict(w=w, scale=scale, shift=shift, stride=stride, act=True))
        ic = f
    # Final Conv2d(features[-1], 1, k=3, s=1, p=1, reflect), bias, no activation.
    key, kw_, kb = jax.random.split(key, 3)
    fan_in = ic * 3 * 3
    bound = 1.0 / (fan_in ** 0.5)
    w = jax.random.uniform(kw_, (1, ic, 3, 3), jnp.float32, -bound, bound)
    bias = jax.random.uniform(kb, (1,), jnp.float32, -bound, bound)
    layers.append(dict(w=w, scale=jnp.ones((1,), jnp.float32), shift=bias,
                       stride=1, act=False))
    return layers


def discriminator_forward(x_nchw, y_nchw, layers):
    h = jnp.concatenate([x_nchw, y_nchw], axis=1)   # cat along channels -> [N,6,H,W]
    h = jnp.transpose(h, (0, 2, 3, 1))              # NCHW -> NHWC
    for lyr in layers:
        if lyr["w"].shape[0] == 1 and not lyr["act"]:
            h = final_conv_xla(h, lyr)              # final OC=1 conv (XLA)
        else:
            h = conv_block(h, lyr)                  # fused Pallas conv layer
    return jnp.transpose(h, (0, 3, 1, 2)).astype(jnp.float32)   # back to NCHW


if __name__ == "__main__":
    key = jax.random.PRNGKey(0)
    kx, ky, kp = jax.random.split(key, 3)
    # Spatial size 32 so every reflect-pad is valid through all 5 layers.
    x = jax.random.normal(kx, (2, 3, 32, 32), jnp.float32)
    y = jax.random.normal(ky, (2, 3, 32, 32), jnp.float32)
    layers = init_params(kp)

    # jit the whole forward so inter-layer pad/transpose/concat glue is fused
    # by XLA instead of running as separate HBM passes between kernels.
    fwd = jax.jit(lambda a, b: discriminator_forward(a, b, layers))
    out = fwd(x, y)
    jax.block_until_ready(out)
    assert out.shape == (2, 1, 3, 3), out.shape
    assert bool(jnp.all(jnp.isfinite(out)))
    print("KERNEL_OK")
</pallas_src>

<mosaic_0001>
module attributes {stable_mosaic.version = 11 : i64} {
  func.func @_conv_rows_kernel(%arg0: i32, %arg1: i32, %arg2: i32, %arg3: memref<1x272x128xbf16, #tpu.memory_space<vmem>>, %arg4: memref<2x128x128xbf16, #tpu.memory_space<vmem>>, %arg5: memref<1x128xf32, #tpu.memory_space<vmem>>, %arg6: memref<1x128xf32, #tpu.memory_space<vmem>>, %arg7: memref<1x256x128xbf16, #tpu.memory_space<vmem>>, %arg8: memref<256x128xf32, #tpu.memory_space<vmem>>) attributes {dimension_semantics = [#tpu.dimension_semantics<parallel>, #tpu.dimension_semantics<parallel>, #tpu.dimension_semantics<parallel>], iteration_bounds = array<i64: 2, 1, 1>, scalar_prefetch = 0 : i64, scratch_operands = 1 : i64, tpu.core_type = #tpu.core_type<tc>, window_params = [{transform_indices = @transform_0, window_bounds = array<i64: 1, 272, 128>}, {transform_indices = @transform_1, window_bounds = array<i64: 2, 128, 128>}, {transform_indices = @transform_2, window_bounds = array<i64: 1, 128>}, {transform_indices = @transform_3, window_bounds = array<i64: 1, 128>}, {transform_indices = @transform_4, window_bounds = array<i64: 1, 256, 128>}]} {
    %c256_i32 = arith.constant 256 : i32
    %0 = arith.muli %arg2, %c256_i32 : i32
    %c0_i32 = arith.constant 0 : i32
    %1 = arith.addi %0, %c0_i32 : i32
    %2 = tpu.assume_multiple %1, 8 : i32
    %c0 = arith.constant 0 : index
    %3 = arith.index_cast %2 : i32 to index
    %c0_0 = arith.constant 0 : index
    %4 = vector.load %arg3[%c0, %3, %c0_0] : memref<1x272x128xbf16, #tpu.memory_space<vmem>>, vector<1x256x128xbf16>
    %5 = vector.shape_cast %4 : vector<1x256x128xbf16> to vector<256x128xbf16>
    %c0_1 = arith.constant 0 : index
    %c0_2 = arith.constant 0 : index
    %c0_3 = arith.constant 0 : index
    %6 = vector.load %arg4[%c0_1, %c0_2, %c0_3] : memref<2x128x128xbf16, #tpu.memory_space<vmem>>, vector<1x128x128xbf16>
    %7 = vector.shape_cast %6 : vector<1x128x128xbf16> to vector<128x128xbf16>
    %cst = arith.constant dense<0.000000e+00> : vector<256x128xf32>
    %8 = tpu.matmul %5, %7, %cst {dimension_numbers = #tpu.dot_dimension_numbers<[1], [0], [0], [1], [0, 0, 1, 1], [], []>} : vector<256x128xbf16>, vector<128x128xbf16>, vector<256x128xf32> -> vector<256x128xf32>
    %c0_4 = arith.constant 0 : index
    %c0_5 = arith.constant 0 : index
    %9 = vector.load %arg8[%c0_4, %c0_5] : memref<256x128xf32, #tpu.memory_space<vmem>>, vector<256x128xf32>
    tpu.vector_store %arg8[%c0_4, %c0_5], %8 {strides = array<i32>} : memref<256x128xf32, #tpu.memory_space<vmem>>, vector<256x128xf32>,
    %c16_i32 = arith.constant 16 : i32
    %10 = arith.addi %0, %c16_i32 : i32
    %11 = tpu.assume_multiple %10, 8 : i32
    %c0_6 = arith.constant 0 : index
    %12 = arith.index_cast %11 : i32 to index
    %c0_7 = arith.constant 0 : index
    %13 = vector.load %arg3[%c0_6, %12, %c0_7] : memref<1x272x128xbf16, #tpu.memory_space<vmem>>, vector<1x256x128xbf16>
    %14 = vector.shape_cast %13 : vector<1x256x128xbf16> to vector<256x128xbf16>
    %c1 = arith.constant 1 : index
    %c0_8 = arith.constant 0 : index
    %c0_9 = arith.constant 0 : index
    %15 = vector.load %arg4[%c1, %c0_8, %c0_9] : memref<2x128x128xbf16, #tpu.memory_space<vmem>>, vector<1x128x128xbf16>
    %16 = vector.shape_cast %15 : vector<1x128x128xbf16> to vector<128x128xbf16>
    %cst_10 = arith.constant dense<0.000000e+00> : vector<256x128xf32>
    %17 = tpu.matmul %14, %16, %cst_10 {dimension_numbers = #tpu.dot_dimension_numbers<[1], [0], [0], [1], [0, 0, 1, 1], [], []>} : vector<256x128xbf16>, vector<128x128xbf16>, vector<256x128xf32> -> vector<256x128xf32>
    %c0_11 = arith.constant 0 : index
    %c0_12 = arith.constant 0 : index
    %18 = vector.load %arg8[%c0_11, %c0_12] : memref<256x128xf32, #tpu.memory_space<vmem>>, vector<256x128xf32>
    %19 = arith.addf %18, %17 : vector<256x128xf32>
    %c0_13 = arith.constant 0 : index
    %c0_14 = arith.constant 0 : index
    %20 = vector.load %arg8[%c0_13, %c0_14] : memref<256x128xf32, #tpu.memory_space<vmem>>, vector<256x128xf32>
    tpu.vector_store %arg8[%c0_13, %c0_14], %19 {strides = array<i32>} : memref<256x128xf32, #tpu.memory_space<vmem>>, vector<256x128xf32>,
    %c0_15 = arith.constant 0 : index
    %c0_16 = arith.constant 0 : index
    %21 = vector.load %arg8[%c0_15, %c0_16] : memref<256x128xf32, #tpu.memory_space<vmem>>, vector<256x128xf32>
    %c0_17 = arith.constant 0 : index
    %c0_18 = arith.constant 0 : index
    %22 = vector.load %arg5[%c0_17, %c0_18] : memref<1x128xf32, #tpu.memory_space<vmem>>, vector<1x128xf32>
    %23 = vector.broadcast %22 : vector<1x128xf32> to vector<256x128xf32>
    %24 = arith.mulf %21, %23 : vector<256x128xf32>
    %c0_19 = arith.constant 0 : index
    %c0_20 = arith.constant 0 : index
    %25 = vector.load %arg6[%c0_19, %c0_20] : memref<1x128xf32, #tpu.memory_space<vmem>>, vector<1x128xf32>
    %26 = vector.broadcast %25 : vector<1x128xf32> to vector<256x128xf32>
    %27 = arith.addf %24, %26 : vector<256x128xf32>
    %cst_21 = arith.constant 0.000000e+00 : f32
    %28 = vector.broadcast %cst_21 : f32 to vector<256x128xf32>
    %29 = arith.cmpf oge, %27, %28 : vector<256x128xf32>
    %cst_22 = arith.constant 2.000000e-01 : f32
    %30 = vector.broadcast %cst_22 : f32 to vector<256x128xf32>
    %31 = arith.mulf %30, %27 : vector<256x128xf32>
    %32 = arith.select %29, %27, %31 : vector<256x128xi1>, vector<256x128xf32>
    %33 = arith.truncf %32 : vector<256x128xf32> to vector<256x128xbf16>
    %c0_23 = arith.constant 0 : index
    %c0_24 = arith.constant 0 : index
    %c0_25 = arith.constant 0 : index
    %34 = vector.load %arg7[%c0_23, %c0_24, %c0_25] : memref<1x256x128xbf16, #tpu.memory_space<vmem>>, vector<1x256x128xbf16>
    %35 = vector.shape_cast %34 : vector<1x256x128xbf16> to vector<256x128xbf16>
    %36 = vector.shape_cast %33 : vector<256x128xbf16> to vector<1x256x128xbf16>
    tpu.vector_store %arg7[%c0_23, %c0_24, %c0_25], %36 {strides = array<i32>} : memref<1x256x128xbf16, #tpu.memory_space<vmem>>, vector<1x256x128xbf16>,
    return
  }
  func.func @transform_0(%arg0: i32, %arg1: i32, %arg2: i32) -> (i32, i32, i32) {
    %c0_i32 = arith.constant 0 : i32
    %c0_i32_0 = arith.constant 0 : i32
    %c0_i32_1 = arith.constant 0 : i32
    return %arg0, %c0_i32, %c0_i32_0 : i32, i32, i32
  }
  func.func @transform_1(%arg0: i32, %arg1: i32, %arg2: i32) -> (i32, i32, i32) {
    %c0_i32 = arith.constant 0 : i32
    %c0_i32_0 = arith.constant 0 : i32
    %c0_i32_1 = arith.constant 0 : i32
    return %c0_i32, %c0_i32_0, %arg1 : i32, i32, i32
  }
  func.func @transform_2(%arg0: i32, %arg1: i32, %arg2: i32) -> (i32, i32) {
    %c0_i32 = arith.constant 0 : i32
    %c0_i32_0 = arith.constant 0 : i32
    return %c0_i32, %arg1 : i32, i32
  }
  func.func @transform_3(%arg0: i32, %arg1: i32, %arg2: i32) -> (i32, i32) {
    %c0_i32 = arith.constant 0 : i32
    %c0_i32_0 = arith.constant 0 : i32
    return %c0_i32, %arg1 : i32, i32
  }
  func.func @transform_4(%arg0: i32, %arg1: i32, %arg2: i32) -> (i32, i32, i32) {
    %c0_i32 = arith.constant 0 : i32
    return %arg0, %arg2, %arg1 : i32, i32, i32
  }
}

module attributes {stable_mosaic.version = 11 : i64} {
  func.func @_conv_rows_kernel(%arg0: i32, %arg1: i32, %arg2: i32, %arg3: memref<1x72x512xbf16, #tpu.memory_space<vmem>>, %arg4: memref<2x512x128xbf16, #tpu.memory_space<vmem>>, %arg5: memref<1x128xf32, #tpu.memory_space<vmem>>, %arg6: memref<1x128xf32, #tpu.memory_space<vmem>>, %arg7: memref<1x64x128xbf16, #tpu.memory_space<vmem>>, %arg8: memref<64x128xf32, #tpu.memory_space<vmem>>) attributes {dimension_semantics = [#tpu.dimension_semantics<parallel>, #tpu.dimension_semantics<parallel>, #tpu.dimension_semantics<parallel>], iteration_bounds = array<i64: 2, 1, 1>, scalar_prefetch = 0 : i64, scratch_operands = 1 : i64, tpu.core_type = #tpu.core_type<tc>, window_params = [{transform_indices = @transform_0, window_bounds = array<i64: 1, 72, 512>}, {transform_indices = @transform_1, window_bounds = array<i64: 2, 512, 128>}, {transform_indices = @transform_2, window_bounds = array<i64: 1, 128>}, {transform_indices = @transform_3, window_bounds = array<i64: 1, 128>}, {transform_indices = @transform_4, window_bounds = array<i64: 1, 64, 128>}]} {
    %c64_i32 = arith.constant 64 : i32
    %0 = arith.muli %arg2, %c64_i32 : i32
    %c0_i32 = arith.constant 0 : i32
    %1 = arith.addi %0, %c0_i32 : i32
    %2 = tpu.assume_multiple %1, 8 : i32
    %c0 = arith.constant 0 : index
    %3 = arith.index_cast %2 : i32 to index
    %c0_0 = arith.constant 0 : index
    %4 = vector.load %arg3[%c0, %3, %c0_0] : memref<1x72x512xbf16, #tpu.memory_space<vmem>>, vector<1x64x512xbf16>
    %5 = vector.shape_cast %4 : vector<1x64x512xbf16> to vector<64x512xbf16>
    %c0_1 = arith.constant 0 : index
    %c0_2 = arith.constant 0 : index
    %c0_3 = arith.constant 0 : index
    %6 = vector.load %arg4[%c0_1, %c0_2, %c0_3] : memref<2x512x128xbf16, #tpu.memory_space<vmem>>, vector<1x512x128xbf16>
    %7 = vector.shape_cast %6 : vector<1x512x128xbf16> to vector<512x128xbf16>
    %cst = arith.constant dense<0.000000e+00> : vector<64x128xf32>
    %8 = tpu.matmul %5, %7, %cst {dimension_numbers = #tpu.dot_dimension_numbers<[1], [0], [0], [1], [0, 0, 1, 1], [], []>} : vector<64x512xbf16>, vector<512x128xbf16>, vector<64x128xf32> -> vector<64x128xf32>
    %c0_4 = arith.constant 0 : index
    %c0_5 = arith.constant 0 : index
    %9 = vector.load %arg8[%c0_4, %c0_5] : memref<64x128xf32, #tpu.memory_space<vmem>>, vector<64x128xf32>
    tpu.vector_store %arg8[%c0_4, %c0_5], %8 {strides = array<i32>} : memref<64x128xf32, #tpu.memory_space<vmem>>, vector<64x128xf32>,
    %c8_i32 = arith.constant 8 : i32
    %10 = arith.addi %0, %c8_i32 : i32
    %11 = tpu.assume_multiple %10, 8 : i32
    %c0_6 = arith.constant 0 : index
    %12 = arith.index_cast %11 : i32 to index
    %c0_7 = arith.constant 0 : index
    %13 = vector.load %arg3[%c0_6, %12, %c0_7] : memref<1x72x512xbf16, #tpu.memory_space<vmem>>, vector<1x64x512xbf16>
    %14 = vector.shape_cast %13 : vector<1x64x512xbf16> to vector<64x512xbf16>
    %c1 = arith.constant 1 : index
    %c0_8 = arith.constant 0 : index
    %c0_9 = arith.constant 0 : index
    %15 = vector.load %arg4[%c1, %c0_8, %c0_9] : memref<2x512x128xbf16, #tpu.memory_space<vmem>>, vector<1x512x128xbf16>
    %16 = vector.shape_cast %15 : vector<1x512x128xbf16> to vector<512x128xbf16>
    %cst_10 = arith.constant dense<0.000000e+00> : vector<64x128xf32>
    %17 = tpu.matmul %14, %16, %cst_10 {dimension_numbers = #tpu.dot_dimension_numbers<[1], [0], [0], [1], [0, 0, 1, 1], [], []>} : vector<64x512xbf16>, vector<512x128xbf16>, vector<64x128xf32> -> vector<64x128xf32>
    %c0_11 = arith.constant 0 : index
    %c0_12 = arith.constant 0 : index
    %18 = vector.load %arg8[%c0_11, %c0_12] : memref<64x128xf32, #tpu.memory_space<vmem>>, vector<64x128xf32>
    %19 = arith.addf %18, %17 : vector<64x128xf32>
    %c0_13 = arith.constant 0 : index
    %c0_14 = arith.constant 0 : index
    %20 = vector.load %arg8[%c0_13, %c0_14] : memref<64x128xf32, #tpu.memory_space<vmem>>, vector<64x128xf32>
    tpu.vector_store %arg8[%c0_13, %c0_14], %19 {strides = array<i32>} : memref<64x128xf32, #tpu.memory_space<vmem>>, vector<64x128xf32>,
    %c0_15 = arith.constant 0 : index
    %c0_16 = arith.constant 0 : index
    %21 = vector.load %arg8[%c0_15, %c0_16] : memref<64x128xf32, #tpu.memory_space<vmem>>, vector<64x128xf32>
    %c0_17 = arith.constant 0 : index
    %c0_18 = arith.constant 0 : index
    %22 = vector.load %arg5[%c0_17, %c0_18] : memref<1x128xf32, #tpu.memory_space<vmem>>, vector<1x128xf32>
    %23 = vector.broadcast %22 : vector<1x128xf32> to vector<64x128xf32>
    %24 = arith.mulf %21, %23 : vector<64x128xf32>
    %c0_19 = arith.constant 0 : index
    %c0_20 = arith.constant 0 : index
    %25 = vector.load %arg6[%c0_19, %c0_20] : memref<1x128xf32, #tpu.memory_space<vmem>>, vector<1x128xf32>
    %26 = vector.broadcast %25 : vector<1x128xf32> to vector<64x128xf32>
    %27 = arith.addf %24, %26 : vector<64x128xf32>
    %cst_21 = arith.constant 0.000000e+00 : f32
    %28 = vector.broadcast %cst_21 : f32 to vector<64x128xf32>
    %29 = arith.cmpf oge, %27, %28 : vector<64x128xf32>
    %cst_22 = arith.constant 2.000000e-01 : f32
    %30 = vector.broadcast %cst_22 : f32 to vector<64x128xf32>
    %31 = arith.mulf %30, %27 : vector<64x128xf32>
    %32 = arith.select %29, %27, %31 : vector<64x128xi1>, vector<64x128xf32>
    %33 = arith.truncf %32 : vector<64x128xf32> to vector<64x128xbf16>
    %c0_23 = arith.constant 0 : index
    %c0_24 = arith.constant 0 : index
    %c0_25 = arith.constant 0 : index
    %34 = vector.load %arg7[%c0_23, %c0_24, %c0_25] : memref<1x64x128xbf16, #tpu.memory_space<vmem>>, vector<1x64x128xbf16>
    %35 = vector.shape_cast %34 : vector<1x64x128xbf16> to vector<64x128xbf16>
    %36 = vector.shape_cast %33 : vector<64x128xbf16> to vector<1x64x128xbf16>
    tpu.vector_store %arg7[%c0_23, %c0_24, %c0_25], %36 {strides = array<i32>} : memref<1x64x128xbf16, #tpu.memory_space<vmem>>, vector<1x64x128xbf16>,
    return
  }
  func.func @transform_0(%arg0: i32, %arg1: i32, %arg2: i32) -> (i32, i32, i32) {
    %c0_i32 = arith.constant 0 : i32
    %c0_i32_0 = arith.constant 0 : i32
    %c0_i32_1 = arith.constant 0 : i32
    return %arg0, %c0_i32, %c0_i32_0 : i32, i32, i32
  }
  func.func @transform_1(%arg0: i32, %arg1: i32, %arg2: i32) -> (i32, i32, i32) {
    %c0_i32 = arith.constant 0 : i32
    %c0_i32_0 = arith.constant 0 : i32
    %c0_i32_1 = arith.constant 0 : i32
    return %c0_i32, %c0_i32_0, %arg1 : i32, i32, i32
  }
  func.func @transform_2(%arg0: i32, %arg1: i32, %arg2: i32) -> (i32, i32) {
    %c0_i32 = arith.constant 0 : i32
    %c0_i32_0 = arith.constant 0 : i32
    return %c0_i32, %arg1 : i32, i32
  }
  func.func @transform_3(%arg0: i32, %arg1: i32, %arg2: i32) -> (i32, i32) {
    %c0_i32 = arith.constant 0 : i32
    %c0_i32_0 = arith.constant 0 : i32
    return %c0_i32, %arg1 : i32, i32
  }
  func.func @transform_4(%arg0: i32, %arg1: i32, %arg2: i32) -> (i32, i32, i32) {
    %c0_i32 = arith.constant 0 : i32
    return %arg0, %arg2, %arg1 : i32, i32, i32
  }
}

module attributes {stable_mosaic.version = 11 : i64} {
  func.func @_conv_rows_kernel(%arg0: i32, %arg1: i32, %arg2: i32, %arg3: memref<1x40x1024xbf16, #tpu.memory_space<vmem>>, %arg4: memref<2x1024x256xbf16, #tpu.memory_space<vmem>>, %arg5: memref<1x256xf32, #tpu.memory_space<vmem>>, %arg6: memref<1x256xf32, #tpu.memory_space<vmem>>, %arg7: memref<1x32x256xbf16, #tpu.memory_space<vmem>>, %arg8: memref<32x256xf32, #tpu.memory_space<vmem>>) attributes {dimension_semantics = [#tpu.dimension_semantics<parallel>, #tpu.dimension_semantics<parallel>, #tpu.dimension_semantics<parallel>], iteration_bounds = array<i64: 2, 1, 1>, scalar_prefetch = 0 : i64, scratch_operands = 1 : i64, tpu.core_type = #tpu.core_type<tc>, window_params = [{transform_indices = @transform_0, window_bounds = array<i64: 1, 40, 1024>}, {transform_indices = @transform_1, window_bounds = array<i64: 2, 1024, 256>}, {transform_indices = @transform_2, window_bounds = array<i64: 1, 256>}, {transform_indices = @transform_3, window_bounds = array<i64: 1, 256>}, {transform_indices = @transform_4, window_bounds = array<i64: 1, 32, 256>}]} {
    %c32_i32 = arith.constant 32 : i32
    %0 = arith.muli %arg2, %c32_i32 : i32
    %c0_i32 = arith.constant 0 : i32
    %1 = arith.addi %0, %c0_i32 : i32
    %2 = tpu.assume_multiple %1, 8 : i32
    %c0 = arith.constant 0 : index
    %3 = arith.index_cast %2 : i32 to index
    %c0_0 = arith.constant 0 : index
    %4 = vector.load %arg3[%c0, %3, %c0_0] : memref<1x40x1024xbf16, #tpu.memory_space<vmem>>, vector<1x32x1024xbf16>
    %5 = vector.shape_cast %4 : vector<1x32x1024xbf16> to vector<32x1024xbf16>
    %c0_1 = arith.constant 0 : index
    %c0_2 = arith.constant 0 : index
    %c0_3 = arith.constant 0 : index
    %6 = vector.load %arg4[%c0_1, %c0_2, %c0_3] : memref<2x1024x256xbf16, #tpu.memory_space<vmem>>, vector<1x1024x256xbf16>
    %7 = vector.shape_cast %6 : vector<1x1024x256xbf16> to vector<1024x256xbf16>
    %cst = arith.constant dense<0.000000e+00> : vector<32x256xf32>
    %8 = tpu.matmul %5, %7, %cst {dimension_numbers = #tpu.dot_dimension_numbers<[1], [0], [0], [1], [0, 0, 1, 1], [], []>} : vector<32x1024xbf16>, vector<1024x256xbf16>, vector<32x256xf32> -> vector<32x256xf32>
    %c0_4 = arith.constant 0 : index
    %c0_5 = arith.constant 0 : index
    %9 = vector.load %arg8[%c0_4, %c0_5] : memref<32x256xf32, #tpu.memory_space<vmem>>, vector<32x256xf32>
    tpu.vector_store %arg8[%c0_4, %c0_5], %8 {strides = array<i32>} : memref<32x256xf32, #tpu.memory_space<vmem>>, vector<32x256xf32>,
    %c8_i32 = arith.constant 8 : i32
    %10 = arith.addi %0, %c8_i32 : i32
    %11 = tpu.assume_multiple %10, 8 : i32
    %c0_6 = arith.constant 0 : index
    %12 = arith.index_cast %11 : i32 to index
    %c0_7 = arith.constant 0 : index
    %13 = vector.load %arg3[%c0_6, %12, %c0_7] : memref<1x40x1024xbf16, #tpu.memory_space<vmem>>, vector<1x32x1024xbf16>
    %14 = vector.shape_cast %13 : vector<1x32x1024xbf16> to vector<32x1024xbf16>
    %c1 = arith.constant 1 : index
    %c0_8 = arith.constant 0 : index
    %c0_9 = arith.constant 0 : index
    %15 = vector.load %arg4[%c1, %c0_8, %c0_9] : memref<2x1024x256xbf16, #tpu.memory_space<vmem>>, vector<1x1024x256xbf16>
    %16 = vector.shape_cast %15 : vector<1x1024x256xbf16> to vector<1024x256xbf16>
    %cst_10 = arith.constant dense<0.000000e+00> : vector<32x256xf32>
    %17 = tpu.matmul %14, %16, %cst_10 {dimension_numbers = #tpu.dot_dimension_numbers<[1], [0], [0], [1], [0, 0, 1, 1], [], []>} : vector<32x1024xbf16>, vector<1024x256xbf16>, vector<32x256xf32> -> vector<32x256xf32>
    %c0_11 = arith.constant 0 : index
    %c0_12 = arith.constant 0 : index
    %18 = vector.load %arg8[%c0_11, %c0_12] : memref<32x256xf32, #tpu.memory_space<vmem>>, vector<32x256xf32>
    %19 = arith.addf %18, %17 : vector<32x256xf32>
    %c0_13 = arith.constant 0 : index
    %c0_14 = arith.constant 0 : index
    %20 = vector.load %arg8[%c0_13, %c0_14] : memref<32x256xf32, #tpu.memory_space<vmem>>, vector<32x256xf32>
    tpu.vector_store %arg8[%c0_13, %c0_14], %19 {strides = array<i32>} : memref<32x256xf32, #tpu.memory_space<vmem>>, vector<32x256xf32>,
    %c0_15 = arith.constant 0 : index
    %c0_16 = arith.constant 0 : index
    %21 = vector.load %arg8[%c0_15, %c0_16] : memref<32x256xf32, #tpu.memory_space<vmem>>, vector<32x256xf32>
    %c0_17 = arith.constant 0 : index
    %c0_18 = arith.constant 0 : index
    %22 = vector.load %arg5[%c0_17, %c0_18] : memref<1x256xf32, #tpu.memory_space<vmem>>, vector<1x256xf32>
    %23 = vector.broadcast %22 : vector<1x256xf32> to vector<32x256xf32>
    %24 = arith.mulf %21, %23 : vector<32x256xf32>
    %c0_19 = arith.constant 0 : index
    %c0_20 = arith.constant 0 : index
    %25 = vector.load %arg6[%c0_19, %c0_20] : memref<1x256xf32, #tpu.memory_space<vmem>>, vector<1x256xf32>
    %26 = vector.broadcast %25 : vector<1x256xf32> to vector<32x256xf32>
    %27 = arith.addf %24, %26 : vector<32x256xf32>
    %cst_21 = arith.constant 0.000000e+00 : f32
    %28 = vector.broadcast %cst_21 : f32 to vector<32x256xf32>
    %29 = arith.cmpf oge, %27, %28 : vector<32x256xf32>
    %cst_22 = arith.constant 2.000000e-01 : f32
    %30 = vector.broadcast %cst_22 : f32 to vector<32x256xf32>
    %31 = arith.mulf %30, %27 : vector<32x256xf32>
    %32 = arith.select %29, %27, %31 : vector<32x256xi1>, vector<32x256xf32>
    %33 = arith.truncf %32 : vector<32x256xf32> to vector<32x256xbf16>
    %c0_23 = arith.constant 0 : index
    %c0_24 = arith.constant 0 : index
    %c0_25 = arith.constant 0 : index
    %34 = vector.load %arg7[%c0_23, %c0_24, %c0_25] : memref<1x32x256xbf16, #tpu.memory_space<vmem>>, vector<1x32x256xbf16>
    %35 = vector.shape_cast %34 : vector<1x32x256xbf16> to vector<32x256xbf16>
    %36 = vector.shape_cast %33 : vector<32x256xbf16> to vector<1x32x256xbf16>
    tpu.vector_store %arg7[%c0_23, %c0_24, %c0_25], %36 {strides = array<i32>} : memref<1x32x256xbf16, #tpu.memory_space<vmem>>, vector<1x32x256xbf16>,
    return
  }
  func.func @transform_0(%arg0: i32, %arg1: i32, %arg2: i32) -> (i32, i32, i32) {
    %c0_i32 = arith.constant 0 : i32
    %c0_i32_0 = arith.constant 0 : i32
    %c0_i32_1 = arith.constant 0 : i32
    return %arg0, %c0_i32, %c0_i32_0 : i32, i32, i32
  }
  func.func @transform_1(%arg0: i32, %arg1: i32, %arg2: i32) -> (i32, i32, i32) {
    %c0_i32 = arith.constant 0 : i32
    %c0_i32_0 = arith.constant 0 : i32
    %c0_i32_1 = arith.constant 0 : i32
    return %c0_i32, %c0_i32_0, %arg1 : i32, i32, i32
  }
  func.func @transform_2(%arg0: i32, %arg1: i32, %arg2: i32) -> (i32, i32) {
    %c0_i32 = arith.constant 0 : i32
    %c0_i32_0 = arith.constant 0 : i32
    return %c0_i32, %arg1 : i32, i32
  }
  func.func @transform_3(%arg0: i32, %arg1: i32, %arg2: i32) -> (i32, i32) {
    %c0_i32 = arith.constant 0 : i32
    %c0_i32_0 = arith.constant 0 : i32
    return %c0_i32, %arg1 : i32, i32
  }
  func.func @transform_4(%arg0: i32, %arg1: i32, %arg2: i32) -> (i32, i32, i32) {
    %c0_i32 = arith.constant 0 : i32
    return %arg0, %arg2, %arg1 : i32, i32, i32
  }
}

module attributes {stable_mosaic.version = 11 : i64} {
  func.func @_conv_rows_kernel(%arg0: i32, %arg1: i32, %arg2: i32, %arg3: memref<1x48x1024xbf16, #tpu.memory_space<vmem>>, %arg4: memref<4x1024x256xbf16, #tpu.memory_space<vmem>>, %arg5: memref<1x256xf32, #tpu.memory_space<vmem>>, %arg6: memref<1x256xf32, #tpu.memory_space<vmem>>, %arg7: memref<1x24x256xbf16, #tpu.memory_space<vmem>>, %arg8: memref<24x256xf32, #tpu.memory_space<vmem>>) attributes {dimension_semantics = [#tpu.dimension_semantics<parallel>, #tpu.dimension_semantics<parallel>, #tpu.dimension_semantics<parallel>], iteration_bounds = array<i64: 2, 2, 1>, scalar_prefetch = 0 : i64, scratch_operands = 1 : i64, tpu.core_type = #tpu.core_type<tc>, window_params = [{transform_indices = @transform_0, window_bounds = array<i64: 1, 48, 1024>}, {transform_indices = @transform_1, window_bounds = array<i64: 4, 1024, 256>}, {transform_indices = @transform_2, window_bounds = array<i64: 1, 256>}, {transform_indices = @transform_3, window_bounds = array<i64: 1, 256>}, {transform_indices = @transform_4, window_bounds = array<i64: 1, 24, 256>}]} {
    %c24_i32 = arith.constant 24 : i32
    %0 = arith.muli %arg2, %c24_i32 : i32
    %c0_i32 = arith.constant 0 : i32
    %1 = arith.addi %0, %c0_i32 : i32
    %2 = tpu.assume_multiple %1, 8 : i32
    %c0 = arith.constant 0 : index
    %3 = arith.index_cast %2 : i32 to index
    %c0_0 = arith.constant 0 : index
    %4 = vector.load %arg3[%c0, %3, %c0_0] : memref<1x48x1024xbf16, #tpu.memory_space<vmem>>, vector<1x24x1024xbf16>
    %5 = vector.shape_cast %4 : vector<1x24x1024xbf16> to vector<24x1024xbf16>
    %c0_1 = arith.constant 0 : index
    %c0_2 = arith.constant 0 : index
    %c0_3 = arith.constant 0 : index
    %6 = vector.load %arg4[%c0_1, %c0_2, %c0_3] : memref<4x1024x256xbf16, #tpu.memory_space<vmem>>, vector<1x1024x256xbf16>
    %7 = vector.shape_cast %6 : vector<1x1024x256xbf16> to vector<1024x256xbf16>
    %cst = arith.constant dense<0.000000e+00> : vector<24x256xf32>
    %8 = tpu.matmul %5, %7, %cst {dimension_numbers = #tpu.dot_dimension_numbers<[1], [0], [0], [1], [0, 0, 1, 1], [], []>} : vector<24x1024xbf16>, vector<1024x256xbf16>, vector<24x256xf32> -> vector<24x256xf32>
    %c0_4 = arith.constant 0 : index
    %c0_5 = arith.constant 0 : index
    %9 = vector.load %arg8[%c0_4, %c0_5] : memref<24x256xf32, #tpu.memory_space<vmem>>, vector<24x256xf32>
    tpu.vector_store %arg8[%c0_4, %c0_5], %8 {strides = array<i32>} : memref<24x256xf32, #tpu.memory_space<vmem>>, vector<24x256xf32>,
    %c8_i32 = arith.constant 8 : i32
    %10 = arith.addi %0, %c8_i32 : i32
    %11 = tpu.assume_multiple %10, 8 : i32
    %c0_6 = arith.constant 0 : index
    %12 = arith.index_cast %11 : i32 to index
    %c0_7 = arith.constant 0 : index
    %13 = vector.load %arg3[%c0_6, %12, %c0_7] : memref<1x48x1024xbf16, #tpu.memory_space<vmem>>, vector<1x24x1024xbf16>
    %14 = vector.shape_cast %13 : vector<1x24x1024xbf16> to vector<24x1024xbf16>
    %c1 = arith.constant 1 : index
    %c0_8 = arith.constant 0 : index
    %c0_9 = arith.constant 0 : index
    %15 = vector.load %arg4[%c1, %c0_8, %c0_9] : memref<4x1024x256xbf16, #tpu.memory_space<vmem>>, vector<1x1024x256xbf16>
    %16 = vector.shape_cast %15 : vector<1x1024x256xbf16> to vector<1024x256xbf16>
    %cst_10 = arith.constant dense<0.000000e+00> : vector<24x256xf32>
    %17 = tpu.matmul %14, %16, %cst_10 {dimension_numbers = #tpu.dot_dimension_numbers<[1], [0], [0], [1], [0, 0, 1, 1], [], []>} : vector<24x1024xbf16>, vector<1024x256xbf16>, vector<24x256xf32> -> vector<24x256xf32>
    %c0_11 = arith.constant 0 : index
    %c0_12 = arith.constant 0 : index
    %18 = vector.load %arg8[%c0_11, %c0_12] : memref<24x256xf32, #tpu.memory_space<vmem>>, vector<24x256xf32>
    %19 = arith.addf %18, %17 : vector<24x256xf32>
    %c0_13 = arith.constant 0 : index
    %c0_14 = arith.constant 0 : index
    %20 = vector.load %arg8[%c0_13, %c0_14] : memref<24x256xf32, #tpu.memory_space<vmem>>, vector<24x256xf32>
    tpu.vector_store %arg8[%c0_13, %c0_14], %19 {strides = array<i32>} : memref<24x256xf32, #tpu.memory_space<vmem>>, vector<24x256xf32>,
    %c16_i32 = arith.constant 16 : i32
    %21 = arith.addi %0, %c16_i32 : i32
    %22 = tpu.assume_multiple %21, 8 : i32
    %c0_15 = arith.constant 0 : index
    %23 = arith.index_cast %22 : i32 to index
    %c0_16 = arith.constant 0 : index
    %24 = vector.load %arg3[%c0_15, %23, %c0_16] : memref<1x48x1024xbf16, #tpu.memory_space<vmem>>, vector<1x24x1024xbf16>
    %25 = vector.shape_cast %24 : vector<1x24x1024xbf16> to vector<24x1024xbf16>
    %c2 = arith.constant 2 : index
    %c0_17 = arith.constant 0 : index
    %c0_18 = arith.constant 0 : index
    %26 = vector.load %arg4[%c2, %c0_17, %c0_18] : memref<4x1024x256xbf16, #tpu.memory_space<vmem>>, vector<1x1024x256xbf16>
    %27 = vector.shape_cast %26 : vector<1x1024x256xbf16> to vector<1024x256xbf16>
    %cst_19 = arith.constant dense<0.000000e+00> : vector<24x256xf32>
    %28 = tpu.matmul %25, %27, %cst_19 {dimension_numbers = #tpu.dot_dimension_numbers<[1], [0], [0], [1], [0, 0, 1, 1], [], []>} : vector<24x1024xbf16>, vector<1024x256xbf16>, vector<24x256xf32> -> vector<24x256xf32>
    %c0_20 = arith.constant 0 : index
    %c0_21 = arith.constant 0 : index
    %29 = vector.load %arg8[%c0_20, %c0_21] : memref<24x256xf32, #tpu.memory_space<vmem>>, vector<24x256xf32>
    %30 = arith.addf %29, %28 : vector<24x256xf32>
    %c0_22 = arith.constant 0 : index
    %c0_23 = arith.constant 0 : index
    %31 = vector.load %arg8[%c0_22, %c0_23] : memref<24x256xf32, #tpu.memory_space<vmem>>, vector<24x256xf32>
    tpu.vector_store %arg8[%c0_22, %c0_23], %30 {strides = array<i32>} : memref<24x256xf32, #tpu.memory_space<vmem>>, vector<24x256xf32>,
    %c24_i32_24 = arith.constant 24 : i32
    %32 = arith.addi %0, %c24_i32_24 : i32
    %33 = tpu.assume_multiple %32, 8 : i32
    %c0_25 = arith.constant 0 : index
    %34 = arith.index_cast %33 : i32 to index
    %c0_26 = arith.constant 0 : index
    %35 = vector.load %arg3[%c0_25, %34, %c0_26] : memref<1x48x1024xbf16, #tpu.memory_space<vmem>>, vector<1x24x1024xbf16>
    %36 = vector.shape_cast %35 : vector<1x24x1024xbf16> to vector<24x1024xbf16>
    %c3 = arith.constant 3 : index
    %c0_27 = arith.constant 0 : index
    %c0_28 = arith.constant 0 : index
    %37 = vector.load %arg4[%c3, %c0_27, %c0_28] : memref<4x1024x256xbf16, #tpu.memory_space<vmem>>, vector<1x1024x256xbf16>
    %38 = vector.shape_cast %37 : vector<1x1024x256xbf16> to vector<1024x256xbf16>
    %cst_29 = arith.constant dense<0.000000e+00> : vector<24x256xf32>
    %39 = tpu.matmul %36, %38, %cst_29 {dimension_numbers = #tpu.dot_dimension_numbers<[1], [0], [0], [1], [0, 0, 1, 1], [], []>} : vector<24x1024xbf16>, vector<1024x256xbf16>, vector<24x256xf32> -> vector<24x256xf32>
    %c0_30 = arith.constant 0 : index
    %c0_31 = arith.constant 0 : index
    %40 = vector.load %arg8[%c0_30, %c0_31] : memref<24x256xf32, #tpu.memory_space<vmem>>, vector<24x256xf32>
    %41 = arith.addf %40, %39 : vector<24x256xf32>
    %c0_32 = arith.constant 0 : index
    %c0_33 = arith.constant 0 : index
    %42 = vector.load %arg8[%c0_32, %c0_33] : memref<24x256xf32, #tpu.memory_space<vmem>>, vector<24x256xf32>
    tpu.vector_store %arg8[%c0_32, %c0_33], %41 {strides = array<i32>} : memref<24x256xf32, #tpu.memory_space<vmem>>, vector<24x256xf32>,
    %c0_34 = arith.constant 0 : index
    %c0_35 = arith.constant 0 : index
    %43 = vector.load %arg8[%c0_34, %c0_35] : memref<24x256xf32, #tpu.memory_space<vmem>>, vector<24x256xf32>
    %c0_36 = arith.constant 0 : index
    %c0_37 = arith.constant 0 : index
    %44 = vector.load %arg5[%c0_36, %c0_37] : memref<1x256xf32, #tpu.memory_space<vmem>>, vector<1x256xf32>
    %45 = vector.broadcast %44 : vector<1x256xf32> to vector<24x256xf32>
    %46 = arith.mulf %43, %45 : vector<24x256xf32>
    %c0_38 = arith.constant 0 : index
    %c0_39 = arith.constant 0 : index
    %47 = vector.load %arg6[%c0_38, %c0_39] : memref<1x256xf32, #tpu.memory_space<vmem>>, vector<1x256xf32>
    %48 = vector.broadcast %47 : vector<1x256xf32> to vector<24x256xf32>
    %49 = arith.addf %46, %48 : vector<24x256xf32>
    %cst_40 = arith.constant 0.000000e+00 : f32
    %50 = vector.broadcast %cst_40 : f32 to vector<24x256xf32>
    %51 = arith.cmpf oge, %49, %50 : vector<24x256xf32>
    %cst_41 = arith.constant 2.000000e-01 : f32
    %52 = vector.broadcast %cst_41 : f32 to vector<24x256xf32>
    %53 = arith.mulf %52, %49 : vector<24x256xf32>
    %54 = arith.select %51, %49, %53 : vector<24x256xi1>, vector<24x256xf32>
    %55 = arith.truncf %54 : vector<24x256xf32> to vector<24x256xbf16>
    %c0_42 = arith.constant 0 : index
    %c0_43 = arith.constant 0 : index
    %c0_44 = arith.constant 0 : index
    %56 = vector.load %arg7[%c0_42, %c0_43, %c0_44] : memref<1x24x256xbf16, #tpu.memory_space<vmem>>, vector<1x24x256xbf16>
    %57 = vector.shape_cast %56 : vector<1x24x256xbf16> to vector<24x256xbf16>
    %58 = vector.shape_cast %55 : vector<24x256xbf16> to vector<1x24x256xbf16>
    tpu.vector_store %arg7[%c0_42, %c0_43, %c0_44], %58 {strides = array<i32>} : memref<1x24x256xbf16, #tpu.memory_space<vmem>>, vector<1x24x256xbf16>,
    return
  }
  func.func @transform_0(%arg0: i32, %arg1: i32, %arg2: i32) -> (i32, i32, i32) {
    %c0_i32 = arith.constant 0 : i32
    %c0_i32_0 = arith.constant 0 : i32
    %c0_i32_1 = arith.constant 0 : i32
    return %arg0, %c0_i32, %c0_i32_0 : i32, i32, i32
  }
  func.func @transform_1(%arg0: i32, %arg1: i32, %arg2: i32) -> (i32, i32, i32) {
    %c0_i32 = arith.constant 0 : i32
    %c0_i32_0 = arith.constant 0 : i32
    %c0_i32_1 = arith.constant 0 : i32
    return %c0_i32, %c0_i32_0, %arg1 : i32, i32, i32
  }
  func.func @transform_2(%arg0: i32, %arg1: i32, %arg2: i32) -> (i32, i32) {
    %c0_i32 = arith.constant 0 : i32
    %c0_i32_0 = arith.constant 0 : i32
    return %c0_i32, %arg1 : i32, i32
  }
  func.func @transform_3(%arg0: i32, %arg1: i32, %arg2: i32) -> (i32, i32) {
    %c0_i32 = arith.constant 0 : i32
    %c0_i32_0 = arith.constant 0 : i32
    return %c0_i32, %arg1 : i32, i32
  }
  func.func @transform_4(%arg0: i32, %arg1: i32, %arg2: i32) -> (i32, i32, i32) {
    %c0_i32 = arith.constant 0 : i32
    return %arg0, %arg2, %arg1 : i32, i32, i32
  }
}

</mosaic_0001>

<bundles_post_ra>
// kernel: _lambda_.4
= control target key start
LH: loop header
LB: loop body
LE: loop exit
PB: predicated region body
PF: predicated region fallthrough
CT: control target
= control target key end

     0   :  { %s2199_s15 = smov 0   ;;  %s2201_s16 = smov 0   ;;  %s2417_s0 = inlined_call_operand.vmem [shape: bf16[2,272,128], index: 0, kind: input, shape index: {}]   ;;  %s2418_s1 = inlined_call_operand.vmem [shape: bf16[2,128,128], index: 1, kind: input, shape index: {}]   ;;  %s2419_s2 = inlined_call_operand.vmem [shape: f32[1,128], index: 2, kind: input, shape index: {}]   ;;  %s2420_s3 = inlined_call_operand.vmem [shape: f32[1,128], index: 3, kind: input, shape index: {}]   ;;  %s2421_s4 = inlined_call_operand.vmem [shape: bf16[2,256,128], index: 4, kind: output, shape index: {}]  }
   0x1   :  { %s2203_s17 = smov 0  }
   0x2 LB: > { %s33_s18 = sadd.s32 1, %s2168_s16  ;;  %p1637_p0 = scmp.ge.s32.totalorder %s2172_s17, 1  ;;  %s2172_s17 = sphi %s2203_s17, %s14_s17   ;;  %s2168_s16 = sphi %s2201_s16, %s2423_s16   ;;  %s2164_s15 = sphi %s2199_s15, %s2422_s15  }
   0x3   : > { %p35_p1 = scmp.ge.s32.totalorder %s33_s18, 2  ;;  %p210_p2 = scmp.lt.s32.totalorder %s2172_s17, 3 }
   0x5   : > { %s2425_s18 = smov (%p35_p1, %s33_s18), 0  ;;  %p211_p3 = pnand %p1637_p0, %p210_p2 }
   0x6   : > { %v2102_v0 = vld [vmem:[%s2418_s1] sm:$0xff] (!%p211_p3)   ;;  %p253_p4 = scmp.lt.s32.totalorder (!%p211_p3), %s2164_s15, 1  ;;  %v2104_v2 = vld [vmem:[%s2418_s1 + $0x8] sm:$0xff] (!%p211_p3)   ;;  %v2106_v4 = vld [vmem:[%s2418_s1 + $0x10] sm:$0xff] (!%p211_p3)  }
   0x7   : > { %214 = sbr.rel (%p211_p3) target bundleno = 323 (0x143), region = 36  ;;  %v2103_v1 = vld [vmem:[%s2418_s1 + $0x40] sm:$0xff] (!%p211_p3)   ;;  %1949 = vmatprep.subr.bf16.mxu1 (!%p211_p3), %v2102_v0  ;;  %v2105_v3 = vld [vmem:[%s2418_s1 + $0x48] sm:$0xff] (!%p211_p3)   ;;  %v2107_v5 = vld [vmem:[%s2418_s1 + $0x50] sm:$0xff] (!%p211_p3)  }
   0x8   : > { %1997 = vmatprep.subr.bf16.mxu0 (!%p211_p3), %v2103_v1  ;;  %1950 = vmatpush3.bf16.msra.mxu1 (!%p211_p3), %v2102_v0  ;;  %v2108_v6 = vld [vmem:[%s2418_s1 + $0x18] sm:$0xff] (!%p211_p3)   ;;  %v2110_v8 = vld [vmem:[%s2418_s1 + $0x20] sm:$0xff] (!%p211_p3)   ;;  %v2112_v10 = vld [vmem:[%s2418_s1 + $0x28] sm:$0xff] (!%p211_p3)  }
   0x9   : > { %1998 = vmatpush3.bf16.msra.mxu0 (!%p211_p3), %v2103_v1  ;;  %1951 = vmatprep.subr.bf16.mxu1 (!%p211_p3), %v2104_v2  ;;  %v2109_v7 = vld [vmem:[%s2418_s1 + $0x58] sm:$0xff] (!%p211_p3)   ;;  %v2111_v9 = vld [vmem:[%s2418_s1 + $0x60] sm:$0xff] (!%p211_p3)   ;;  %v2113_v11 = vld [vmem:[%s2418_s1 + $0x68] sm:$0xff] (!%p211_p3)  }
   0xa   : > { %1999 = vmatprep.subr.bf16.mxu0 (!%p211_p3), %v2105_v3  ;;  %v2114_v14 = vld [vmem:[%s2418_s1 + $0x30] sm:$0xff] (!%p211_p3)   ;;  %v2116_v16 = vld [vmem:[%s2418_s1 + $0x38] sm:$0xff] (!%p211_p3)   ;;  %v2308_v50 = vld [vmem:[%s2419_s2] ss:$0 sm:$0xff] (!%p211_p3) }
   0xb   : > { %v2115_v15 = vld [vmem:[%s2418_s1 + $0x70] sm:$0xff] (!%p211_p3)   ;;  %v2117_v17 = vld [vmem:[%s2418_s1 + $0x78] sm:$0xff] (!%p211_p3)   ;;  %v2313_v55 = vld [vmem:[%s2420_s3] ss:$0 sm:$0xff] (!%p211_p3) }
   0xc   : > { %1952 = vmatpush3.bf16.msra.mxu1 (!%p211_p3), %v2104_v2 }
   0xd   : > { %2000 = vmatpush3.bf16.msra.mxu0 (!%p211_p3), %v2105_v3  ;;  %1953 = vmatprep.subr.bf16.mxu1 (!%p211_p3), %v2106_v4 }
   0xe   : > { %s2427_s15 = smov (!%p253_p4, %s2164_s15), 1  ;;  %2001 = vmatprep.subr.bf16.mxu0 %v2107_v5 }
   0xf   : > { %s2077_s9 = smul.u32 136, %s2427_s15  ;;  %s1773_s11 = sshll.u32 %s2427_s15, 7 }
  0x10   : > { %1954 = vmatpush3.bf16.msra.mxu1 %v2106_v4  ;;  %s2328_s15 = scalar_lea.vmem %s2421_s4, %s1773_s11 }
  0x11   : > { %2002 = vmatpush3.bf16.msra.mxu0 %v2107_v5  ;;  %1955 = vmatprep.subr.bf16.mxu1 %v2108_v6  ;;  %s2253_s20 = scalar_lea.vmem %s2417_s0, %s2077_s9 }
  0x12   : > { %2003 = vmatprep.subr.bf16.mxu0 %v2109_v7  ;;  %v2118_v12 = vld [vmem:[%s2253_s20] sm:$0xff]   ;;  %v2119_v13 = vld [vmem:[%s2253_s20 + $0x8] sm:$0xff]   ;;  %v2121_v19 = vld [vmem:[%s2253_s20 + $0x10] sm:$0xff]  }
  0x13   : > { %1965 = vmatprep.mubr.bf16.mxu1 %v2118_v12  ;;  %2013 = vmatprep.mubr.bf16.mxu0 %v2119_v13  ;;  %v2120_v18 = vld [vmem:[%s2253_s20 + $0x8] sm:$0xff]   ;;  %v2122_v20 = vld [vmem:[%s2253_s20 + $0x10] sm:$0xff]   ;;  %v2123_v21 = vld [vmem:[%s2253_s20 + $0x18] sm:$0xff]  }
  0x14   : > { %1956 = vmatpush3.bf16.msra.mxu1 %v2108_v6  ;;  %v2124_v22 = vld [vmem:[%s2253_s20 + $0x18] sm:$0xff]   ;;  %v2125_v23 = vld [vmem:[%s2253_s20 + $0x20] sm:$0xff]   ;;  %v2127_v25 = vld [vmem:[%s2253_s20 + $0x28] sm:$0xff]  }
  0x15   : > { %2004 = vmatpush3.bf16.msra.mxu0 %v2109_v7  ;;  %1957 = vmatprep.subr.bf16.mxu1 %v2110_v8  ;;  %v2126_v24 = vld [vmem:[%s2253_s20 + $0x20] sm:$0xff]   ;;  %v2128_v26 = vld [vmem:[%s2253_s20 + $0x28] sm:$0xff]   ;;  %v2129_v27 = vld [vmem:[%s2253_s20 + $0x30] sm:$0xff]  }
  0x16   : > { %2005 = vmatprep.subr.bf16.mxu0 %v2111_v9  ;;  %v2130_v28 = vld [vmem:[%s2253_s20 + $0x30] sm:$0xff]   ;;  %v2131_v29 = vld [vmem:[%s2253_s20 + $0x38] sm:$0xff]   ;;  %v2133_v31 = vld [vmem:[%s2253_s20 + $0x40] sm:$0xff]  }
  0x17   : > { %v2132_v30 = vld [vmem:[%s2253_s20 + $0x38] sm:$0xff]   ;;  %v2134_v32 = vld [vmem:[%s2253_s20 + $0x40] sm:$0xff]   ;;  %v2135_v33 = vld [vmem:[%s2253_s20 + $0x48] sm:$0xff]  }
  0x18   : > { %1958 = vmatpush3.bf16.msra.mxu1 %v2110_v8  ;;  %v2136_v34 = vld [vmem:[%s2253_s20 + $0x48] sm:$0xff]   ;;  %v2137_v35 = vld [vmem:[%s2253_s20 + $0x50] sm:$0xff]   ;;  %v2139_v37 = vld [vmem:[%s2253_s20 + $0x58] sm:$0xff]  }
  0x19   : > { %2006 = vmatpush3.bf16.msra.mxu0 %v2111_v9  ;;  %1959 = vmatprep.subr.bf16.mxu1 %v2112_v10  ;;  %v2138_v36 = vld [vmem:[%s2253_s20 + $0x50] sm:$0xff]   ;;  %v2140_v38 = vld [vmem:[%s2253_s20 + $0x58] sm:$0xff]   ;;  %v2141_v39 = vld [vmem:[%s2253_s20 + $0x60] sm:$0xff]  }
  0x1a   : > { %2007 = vmatprep.subr.bf16.mxu0 %v2113_v11  ;;  %v2142_v40 = vld [vmem:[%s2253_s20 + $0x60] sm:$0xff]   ;;  %v2143_v41 = vld [vmem:[%s2253_s20 + $0x68] sm:$0xff]   ;;  %v2145_v43 = vld [vmem:[%s2253_s20 + $0x70] sm:$0xff]  }
  0x1b   : > { %v2144_v42 = vld [vmem:[%s2253_s20 + $0x68] sm:$0xff]   ;;  %v2146_v44 = vld [vmem:[%s2253_s20 + $0x70] sm:$0xff]   ;;  %v2147_v45 = vld [vmem:[%s2253_s20 + $0x78] sm:$0xff]  }
  0x1c   : > { %1960 = vmatpush3.bf16.msra.mxu1 %v2112_v10  ;;  %v2148_v46 = vld [vmem:[%s2253_s20 + $0x78] sm:$0xff]   ;;  %v2149_v47 = vld [vmem:[%s2253_s20 + $0x80] sm:$0xff]  }
  0x1d   : > { %2008 = vmatpush3.bf16.msra.mxu0 %v2113_v11  ;;  %1961 = vmatprep.subr.bf16.mxu1 %v2114_v14 }
  0x1e   : > { %2009 = vmatprep.subr.bf16.mxu0 %v2115_v15 }
  0x20   : > { %1962 = vmatpush3.bf16.msra.mxu1 %v2114_v14 }
  0x21   : > { %2010 = vmatpush3.bf16.msra.mxu0 %v2115_v15  ;;  %1963 = vmatprep.subr.bf16.mxu1 %v2116_v16 }
  0x22   : > { %2011 = vmatprep.subr.bf16.mxu0 %v2117_v17 }
  0x24   : > { %1964 = vmatpush3.bf16.msra.mxu1 %v2116_v16 }
  0x25   : > { %2012 = vmatpush3.bf16.msra.mxu0 %v2117_v17 }
  0x27   : > { %1966 = vmatmul.mubr.bf16.vlgmr.msra.gmra.mrb[0].mxu1 %v2120_v18 }
  0x28   : > { %2014 = vmatmul.mubr.bf16.vlgmr.msra.gmra.mrb[0].mxu0 %v2121_v19  ;;  %1969 = vmatprep.mubr.bf16.mxu1 %v2122_v20 }
  0x29   : > { %2017 = vmatprep.mubr.bf16.mxu0 %v2123_v21 }
  0x2f   : > { %1970 = vmatmul.mubr.bf16.gmra.mrb[4].mxu1 %v2124_v22 }
  0x30   : > { %2018 = vmatmul.mubr.bf16.gmra.mrb[4].mxu0 %v2125_v23  ;;  %1973 = vmatprep.mubr.bf16.mxu1 %v2126_v24 }
  0x31   : > { %2021 = vmatprep.mubr.bf16.mxu0 %v2127_v25 }
  0x37   : > { %1974 = vmatmul.mubr.bf16.gmra.mrb[8].mxu1 %v2128_v26 }
  0x38   : > { %2022 = vmatmul.mubr.bf16.gmra.mrb[8].mxu0 %v2129_v27  ;;  %1977 = vmatprep.mubr.bf16.mxu1 %v2130_v28 }
  0x39   : > { %2025 = vmatprep.mubr.bf16.mxu0 %v2131_v29 }
  0x3f   : > { %1978 = vmatmul.mubr.bf16.gmra.mrb[12].mxu1 %v2132_v30 }
  0x40   : > { %2026 = vmatmul.mubr.bf16.gmra.mrb[12].mxu0 %v2133_v31  ;;  %1981 = vmatprep.mubr.bf16.mxu1 %v2134_v32 }
  0x41   : > { %2029 = vmatprep.mubr.bf16.mxu0 %v2135_v33 }
  0x47   : > { %1982 = vmatmul.mubr.bf16.gmra.mrb[16].mxu1 %v2136_v34 }
  0x48   : > { %2030 = vmatmul.mubr.bf16.gmra.mrb[16].mxu0 %v2137_v35  ;;  %1985 = vmatprep.mubr.bf16.mxu1 %v2138_v36 }
  0x49   : > { %2033 = vmatprep.mubr.bf16.mxu0 %v2139_v37 }
  0x4f   : > { %1986 = vmatmul.mubr.bf16.gmra.mrb[20].mxu1 %v2140_v38 }
  0x50   : > { %2034 = vmatmul.mubr.bf16.gmra.mrb[20].mxu0 %v2141_v39  ;;  %1989 = vmatprep.mubr.bf16.mxu1 %v2142_v40 }
  0x51   : > { %2037 = vmatprep.mubr.bf16.mxu0 %v2143_v41 }
  0x57   : > { %1990 = vmatmul.mubr.bf16.gmra.mrb[24].mxu1 %v2144_v42 }
  0x58   : > { %2038 = vmatmul.mubr.bf16.gmra.mrb[24].mxu0 %v2145_v43  ;;  %1993 = vmatprep.mubr.bf16.mxu1 %v2146_v44 }
  0x59   : > { %2041 = vmatprep.mubr.bf16.mxu0 %v2147_v45 }
  0x5f   : > { %1994 = vmatmul.mubr.bf16.gmra.mrb[28].mxu1 %v2148_v46 }
  0x60   : > { %2042 = vmatmul.mubr.bf16.gmra.mrb[28].mxu0 %v2149_v47 }
  0xfa   : > { %v1967_v48 = vpop.f32.mrb[0].mxu1 }
  0xfb   : > { %v2015_v49 = vpop.f32.mrb[0].mxu0  ;;  %v513_v51 = vpop.f32.mrb[1].mxu1 }
  0xfc   : > { %v1065_v52 = vadd.f32 %v2015_v49, %v1967_v48  ;;  %v904_v53 = vpop.f32.mrb[1].mxu0  ;;  %v1968_v54 = vpop.f32.mrb[2].mxu1 }
  0xfd   : > { %v1063_v56 = vadd.f32 %v904_v53, %v513_v51  ;;  %v2016_v57 = vpop.f32.mrb[2].mxu0  ;;  %v516_v58 = vpop.f32.mrb[3].mxu1 }
  0xfe   : > { %v1168_v59 = vmul.f32 %v2308_v50, %v1065_v52  ;;  %v1066_v60 = vadd.f32 %v2016_v57, %v1968_v54  ;;  %v907_v61 = vpop.f32.mrb[3].mxu0 }
  0xff   : > { %v1166_v62 = vmul.f32 %v2308_v50, %v1063_v56  ;;  %v1064_v63 = vadd.f32 %v907_v61, %v516_v58 }
 0x100   : > { %v1207_v0 = vadd.f32 %v2313_v55, %v1168_v59  ;;  %v1169_v1 = vmul.f32 %v2308_v50, %v1066_v60 }
 0x101   : > { %v1205_v2 = vadd.f32 %v2313_v55, %v1166_v62  ;;  %v1167_v3 = vmul.f32 %v2308_v50, %v1064_v63 }
 0x102   : > { %vm1239_vm0 = vcmp.ge.f32.partialorder %v1207_v0, 0.0  ;;  %v1271_v4 = vmul.f32 0.2, %v1207_v0  ;;  %v1208_v5 = vadd.f32 %v2313_v55, %v1169_v1  ;;  %v1971_v6 = vpop.f32.mrb[4].mxu1 }
 0x103   : > { %vm1237_vm1 = vcmp.ge.f32.partialorder %v1205_v2, 0.0  ;;  %v1269_v7 = vmul.f32 0.2, %v1205_v2  ;;  %v1206_v8 = vadd.f32 %v2313_v55, %v1167_v3  ;;  %v2019_v9 = vpop.f32.mrb[4].mxu0  ;;  %v529_v10 = vpop.f32.mrb[5].mxu1 }
 0x104   : > { %vm1240_vm2 = vcmp.ge.f32.partialorder %v1208_v5, 0.0  ;;  %v1272_v11 = vmul.f32 0.2, %v1208_v5  ;;  %v1069_v12 = vadd.f32 %v2019_v9, %v1971_v6  ;;  %v920_v13 = vpop.f32.mrb[5].mxu0  ;;  %v1972_v14 = vpop.f32.mrb[6].mxu1  ;;  %v1303_v15 = vsel %vm1239_vm0, %v1207_v0, %v1271_v4 }
 0x105   : > { %vm1238_vm3 = vcmp.ge.f32.partialorder %v1206_v8, 0.0  ;;  %v1270_v16 = vmul.f32 0.2, %v1206_v8  ;;  %v1067_v17 = vadd.f32 %v920_v13, %v529_v10  ;;  %v2020_v18 = vpop.f32.mrb[6].mxu0  ;;  %v532_v19 = vpop.f32.mrb[7].mxu1  ;;  %v1301_v20 = vsel %vm1237_vm1, %v1205_v2, %v1269_v7 }
 0x106   : > { %v1304_v21 = vsel %vm1240_vm2, %v1208_v5, %v1272_v11  ;;  %v1172_v22 = vmul.f32 %v2308_v50, %v1069_v12  ;;  %v1070_v23 = vadd.f32 %v2020_v18, %v1972_v14  ;;  %v923_v24 = vpop.f32.mrb[7].mxu0 }
 0x107   : > { %v1814_v25 = vpack.c.bf16 %v1304_v21, %v1303_v15  ;;  %v1302_v26 = vsel %vm1238_vm3, %v1206_v8, %v1270_v16  ;;  %v1170_v27 = vmul.f32 %v2308_v50, %v1067_v17  ;;  %v1068_v28 = vadd.f32 %v923_v24, %v532_v19 }
 0x108   : > { %v1809_v29 = vpack.c.bf16 %v1302_v26, %v1301_v20  ;;  %v1211_v30 = vadd.f32 %v2313_v55, %v1172_v22  ;;  %v1173_v31 = vmul.f32 %v2308_v50, %v1070_v23 }
 0x109   : > { %1886 = vst [vmem:[%s2328_s15 + $0x8] sm:$0xff] %v1814_v25   ;;  %v1209_v32 = vadd.f32 %v2313_v55, %v1170_v27  ;;  %v1171_v33 = vmul.f32 %v2308_v50, %v1068_v28 }
 0x10a   : > { %1810 = vst [vmem:[%s2328_s15] sm:$0xff] %v1809_v29   ;;  %vm1243_vm4 = vcmp.ge.f32.partialorder %v1211_v30, 0.0  ;;  %v1275_v34 = vmul.f32 0.2, %v1211_v30  ;;  %v1212_v35 = vadd.f32 %v2313_v55, %v1173_v31  ;;  %v1975_v36 = vpop.f32.mrb[8].mxu1 }
 0x10b   : > { %vm1241_vm5 = vcmp.ge.f32.partialorder %v1209_v32, 0.0  ;;  %v1273_v37 = vmul.f32 0.2, %v1209_v32  ;;  %v1210_v38 = vadd.f32 %v2313_v55, %v1171_v33  ;;  %v2023_v39 = vpop.f32.mrb[8].mxu0  ;;  %v545_v40 = vpop.f32.mrb[9].mxu1 }
 0x10c   : > { %vm1244_vm6 = vcmp.ge.f32.partialorder %v1212_v35, 0.0  ;;  %v1276_v41 = vmul.f32 0.2, %v1212_v35  ;;  %v1073_v42 = vadd.f32 %v2023_v39, %v1975_v36  ;;  %v936_v43 = vpop.f32.mrb[9].mxu0  ;;  %v1976_v44 = vpop.f32.mrb[10].mxu1  ;;  %v1307_v45 = vsel %vm1243_vm4, %v1211_v30, %v1275_v34 }
 0x10d   : > { %vm1242_vm7 = vcmp.ge.f32.partialorder %v1210_v38, 0.0  ;;  %v1274_v46 = vmul.f32 0.2, %v1210_v38  ;;  %v1071_v47 = vadd.f32 %v936_v43, %v545_v40  ;;  %v2024_v48 = vpop.f32.mrb[10].mxu0  ;;  %v548_v49 = vpop.f32.mrb[11].mxu1  ;;  %v1305_v51 = vsel %vm1241_vm5, %v1209_v32, %v1273_v37 }
 0x10e   : > { %v1308_v52 = vsel %vm1244_vm6, %v1212_v35, %v1276_v41  ;;  %v1176_v53 = vmul.f32 %v2308_v50, %v1073_v42  ;;  %v1074_v54 = vadd.f32 %v2024_v48, %v1976_v44  ;;  %v939_v56 = vpop.f32.mrb[11].mxu0 }
 0x10f   : > { %v1824_v57 = vpack.c.bf16 %v1308_v52, %v1307_v45  ;;  %v1306_v58 = vsel %vm1242_vm7, %v1210_v38, %v1274_v46  ;;  %v1174_v59 = vmul.f32 %v2308_v50, %v1071_v47  ;;  %v1072_v60 = vadd.f32 %v939_v56, %v548_v49 }
 0x110   : > { %v1819_v61 = vpack.c.bf16 %v1306_v58, %v1305_v51  ;;  %v1215_v62 = vadd.f32 %v2313_v55, %v1176_v53  ;;  %v1177_v63 = vmul.f32 %v2308_v50, %v1074_v54 }
 0x111   : > { %1888 = vst [vmem:[%s2328_s15 + $0x18] sm:$0xff] %v1824_v57   ;;  %v1213_v0 = vadd.f32 %v2313_v55, %v1174_v59  ;;  %v1175_v1 = vmul.f32 %v2308_v50, %v1072_v60 }
 0x112   : > { %1887 = vst [vmem:[%s2328_s15 + $0x10] sm:$0xff] %v1819_v61   ;;  %vm1247_vm8 = vcmp.ge.f32.partialorder %v1215_v62, 0.0  ;;  %v1279_v2 = vmul.f32 0.2, %v1215_v62  ;;  %v1216_v3 = vadd.f32 %v2313_v55, %v1177_v63  ;;  %v1979_v4 = vpop.f32.mrb[12].mxu1 }
 0x113   : > { %vm1245_vm9 = vcmp.ge.f32.partialorder %v1213_v0, 0.0  ;;  %v1277_v5 = vmul.f32 0.2, %v1213_v0  ;;  %v1214_v6 = vadd.f32 %v2313_v55, %v1175_v1  ;;  %v2027_v7 = vpop.f32.mrb[12].mxu0  ;;  %v561_v8 = vpop.f32.mrb[13].mxu1 }
 0x114   : > { %vm1248_vm10 = vcmp.ge.f32.partialorder %v1216_v3, 0.0  ;;  %v1280_v9 = vmul.f32 0.2, %v1216_v3  ;;  %v1077_v10 = vadd.f32 %v2027_v7, %v1979_v4  ;;  %v952_v11 = vpop.f32.mrb[13].mxu0  ;;  %v1980_v12 = vpop.f32.mrb[14].mxu1  ;;  %v1311_v13 = vsel %vm1247_vm8, %v1215_v62, %v1279_v2 }
 0x115   : > { %vm1246_vm11 = vcmp.ge.f32.partialorder %v1214_v6, 0.0  ;;  %v1278_v14 = vmul.f32 0.2, %v1214_v6  ;;  %v1075_v15 = vadd.f32 %v952_v11, %v561_v8  ;;  %v2028_v16 = vpop.f32.mrb[14].mxu0  ;;  %v564_v17 = vpop.f32.mrb[15].mxu1  ;;  %v1309_v18 = vsel %vm1245_vm9, %v1213_v0, %v1277_v5 }
 0x116   : > { %v1312_v19 = vsel %vm1248_vm10, %v1216_v3, %v1280_v9  ;;  %v1180_v20 = vmul.f32 %v2308_v50, %v1077_v10  ;;  %v1078_v21 = vadd.f32 %v2028_v16, %v1980_v12  ;;  %v955_v22 = vpop.f32.mrb[15].mxu0 }
 0x117   : > { %v1834_v23 = vpack.c.bf16 %v1312_v19, %v1311_v13  ;;  %v1310_v24 = vsel %vm1246_vm11, %v1214_v6, %v1278_v14  ;;  %v1178_v25 = vmul.f32 %v2308_v50, %v1075_v15  ;;  %v1076_v26 = vadd.f32 %v955_v22, %v564_v17 }
 0x118   : > { %v1829_v27 = vpack.c.bf16 %v1310_v24, %v1309_v18  ;;  %v1219_v28 = vadd.f32 %v2313_v55, %v1180_v20  ;;  %v1181_v29 = vmul.f32 %v2308_v50, %v1078_v21 }
 0x119   : > { %1890 = vst [vmem:[%s2328_s15 + $0x28] sm:$0xff] %v1834_v23   ;;  %v1217_v30 = vadd.f32 %v2313_v55, %v1178_v25  ;;  %v1179_v31 = vmul.f32 %v2308_v50, %v1076_v26 }
 0x11a   : > { %1889 = vst [vmem:[%s2328_s15 + $0x20] sm:$0xff] %v1829_v27   ;;  %vm1251_vm12 = vcmp.ge.f32.partialorder %v1219_v28, 0.0  ;;  %v1283_v32 = vmul.f32 0.2, %v1219_v28  ;;  %v1220_v33 = vadd.f32 %v2313_v55, %v1181_v29  ;;  %v1983_v34 = vpop.f32.mrb[16].mxu1 }
 0x11b   : > { %vm1249_vm13 = vcmp.ge.f32.partialorder %v1217_v30, 0.0  ;;  %v1281_v35 = vmul.f32 0.2, %v1217_v30  ;;  %v1218_v36 = vadd.f32 %v2313_v55, %v1179_v31  ;;  %v2031_v37 = vpop.f32.mrb[16].mxu0  ;;  %v577_v38 = vpop.f32.mrb[17].mxu1 }
 0x11c   : > { %vm1252_vm14 = vcmp.ge.f32.partialorder %v1220_v33, 0.0  ;;  %v1284_v39 = vmul.f32 0.2, %v1220_v33  ;;  %v1081_v40 = vadd.f32 %v2031_v37, %v1983_v34  ;;  %v968_v41 = vpop.f32.mrb[17].mxu0  ;;  %v1984_v42 = vpop.f32.mrb[18].mxu1  ;;  %v1315_v43 = vsel %vm1251_vm12, %v1219_v28, %v1283_v32 }
 0x11d   : > { %vm1250_vm15 = vcmp.ge.f32.partialorder %v1218_v36, 0.0  ;;  %v1282_v44 = vmul.f32 0.2, %v1218_v36  ;;  %v1079_v45 = vadd.f32 %v968_v41, %v577_v38  ;;  %v2032_v46 = vpop.f32.mrb[18].mxu0  ;;  %v580_v47 = vpop.f32.mrb[19].mxu1  ;;  %v1313_v48 = vsel %vm1249_vm13, %v1217_v30, %v1281_v35 }
 0x11e   : > { %v1316_v49 = vsel %vm1252_vm14, %v1220_v33, %v1284_v39  ;;  %v1184_v51 = vmul.f32 %v2308_v50, %v1081_v40  ;;  %v1082_v52 = vadd.f32 %v2032_v46, %v1984_v42  ;;  %v971_v53 = vpop.f32.mrb[19].mxu0 }
 0x11f   : > { %v1844_v54 = vpack.c.bf16 %v1316_v49, %v1315_v43  ;;  %v1314_v56 = vsel %vm1250_vm15, %v1218_v36, %v1282_v44  ;;  %v1182_v57 = vmul.f32 %v2308_v50, %v1079_v45  ;;  %v1080_v58 = vadd.f32 %v971_v53, %v580_v47 }
 0x120   : > { %v1839_v59 = vpack.c.bf16 %v1314_v56, %v1313_v48  ;;  %v1223_v60 = vadd.f32 %v2313_v55, %v1184_v51  ;;  %v1185_v61 = vmul.f32 %v2308_v50, %v1082_v52 }
 0x121   : > { %1892 = vst [vmem:[%s2328_s15 + $0x38] sm:$0xff] %v1844_v54   ;;  %v1221_v62 = vadd.f32 %v2313_v55, %v1182_v57  ;;  %v1183_v63 = vmul.f32 %v2308_v50, %v1080_v58 }
 0x122   : > { %1891 = vst [vmem:[%s2328_s15 + $0x30] sm:$0xff] %v1839_v59   ;;  %vm1255_vm0 = vcmp.ge.f32.partialorder %v1223_v60, 0.0  ;;  %v1287_v0 = vmul.f32 0.2, %v1223_v60  ;;  %v1224_v1 = vadd.f32 %v2313_v55, %v1185_v61  ;;  %v1987_v2 = vpop.f32.mrb[20].mxu1 }
 0x123   : > { %vm1253_vm1 = vcmp.ge.f32.partialorder %v1221_v62, 0.0  ;;  %v1285_v3 = vmul.f32 0.2, %v1221_v62  ;;  %v1222_v4 = vadd.f32 %v2313_v55, %v1183_v63  ;;  %v2035_v5 = vpop.f32.mrb[20].mxu0  ;;  %v593_v6 = vpop.f32.mrb[21].mxu1 }
 0x124   : > { %vm1256_vm2 = vcmp.ge.f32.partialorder %v1224_v1, 0.0  ;;  %v1288_v7 = vmul.f32 0.2, %v1224_v1  ;;  %v1085_v8 = vadd.f32 %v2035_v5, %v1987_v2  ;;  %v984_v9 = vpop.f32.mrb[21].mxu0  ;;  %v1988_v10 = vpop.f32.mrb[22].mxu1  ;;  %v1319_v11 = vsel %vm1255_vm0, %v1223_v60, %v1287_v0 }
 0x125   : > { %vm1254_vm3 = vcmp.ge.f32.partialorder %v1222_v4, 0.0  ;;  %v1286_v12 = vmul.f32 0.2, %v1222_v4  ;;  %v1083_v13 = vadd.f32 %v984_v9, %v593_v6  ;;  %v2036_v14 = vpop.f32.mrb[22].mxu0  ;;  %v596_v15 = vpop.f32.mrb[23].mxu1  ;;  %v1317_v16 = vsel %vm1253_vm1, %v1221_v62, %v1285_v3 }
 0x126   : > { %v1320_v17 = vsel %vm1256_vm2, %v1224_v1, %v1288_v7  ;;  %v1188_v18 = vmul.f32 %v2308_v50, %v1085_v8  ;;  %v1086_v19 = vadd.f32 %v2036_v14, %v1988_v10  ;;  %v987_v20 = vpop.f32.mrb[23].mxu0 }
 0x127   : > { %v1854_v21 = vpack.c.bf16 %v1320_v17, %v1319_v11  ;;  %v1318_v22 = vsel %vm1254_vm3, %v1222_v4, %v1286_v12  ;;  %v1186_v23 = vmul.f32 %v2308_v50, %v1083_v13  ;;  %v1084_v24 = vadd.f32 %v987_v20, %v596_v15 }
 0x128   : > { %v1849_v25 = vpack.c.bf16 %v1318_v22, %v1317_v16  ;;  %v1227_v26 = vadd.f32 %v2313_v55, %v1188_v18  ;;  %v1189_v27 = vmul.f32 %v2308_v50, %v1086_v19 }
 0x129   : > { %1894 = vst [vmem:[%s2328_s15 + $0x48] sm:$0xff] %v1854_v21   ;;  %v1225_v28 = vadd.f32 %v2313_v55, %v1186_v23  ;;  %v1187_v29 = vmul.f32 %v2308_v50, %v1084_v24 }
 0x12a   : > { %1893 = vst [vmem:[%s2328_s15 + $0x40] sm:$0xff] %v1849_v25   ;;  %vm1259_vm4 = vcmp.ge.f32.partialorder %v1227_v26, 0.0  ;;  %v1291_v30 = vmul.f32 0.2, %v1227_v26  ;;  %v1228_v31 = vadd.f32 %v2313_v55, %v1189_v27  ;;  %v1991_v32 = vpop.f32.mrb[24].mxu1 }
 0x12b   : > { %vm1257_vm5 = vcmp.ge.f32.partialorder %v1225_v28, 0.0  ;;  %v1289_v33 = vmul.f32 0.2, %v1225_v28  ;;  %v1226_v34 = vadd.f32 %v2313_v55, %v1187_v29  ;;  %v2039_v35 = vpop.f32.mrb[24].mxu0  ;;  %v609_v36 = vpop.f32.mrb[25].mxu1 }
 0x12c   : > { %vm1260_vm6 = vcmp.ge.f32.partialorder %v1228_v31, 0.0  ;;  %v1292_v37 = vmul.f32 0.2, %v1228_v31  ;;  %v1089_v38 = vadd.f32 %v2039_v35, %v1991_v32  ;;  %v1000_v39 = vpop.f32.mrb[25].mxu0  ;;  %v1992_v40 = vpop.f32.mrb[26].mxu1  ;;  %v1323_v41 = vsel %vm1259_vm4, %v1227_v26, %v1291_v30 }
 0x12d   : > { %vm1258_vm7 = vcmp.ge.f32.partialorder %v1226_v34, 0.0  ;;  %v1290_v42 = vmul.f32 0.2, %v1226_v34  ;;  %v1087_v43 = vadd.f32 %v1000_v39, %v609_v36  ;;  %v2040_v44 = vpop.f32.mrb[26].mxu0  ;;  %v612_v45 = vpop.f32.mrb[27].mxu1  ;;  %v1321_v46 = vsel %vm1257_vm5, %v1225_v28, %v1289_v33 }
 0x12e   : > { %v1324_v47 = vsel %vm1260_vm6, %v1228_v31, %v1292_v37  ;;  %v1192_v48 = vmul.f32 %v2308_v50, %v1089_v38  ;;  %v1090_v49 = vadd.f32 %v2040_v44, %v1992_v40  ;;  %v1003_v51 = vpop.f32.mrb[27].mxu0 }
 0x12f   : > { %v1864_v52 = vpack.c.bf16 %v1324_v47, %v1323_v41  ;;  %v1322_v53 = vsel %vm1258_vm7, %v1226_v34, %v1290_v42  ;;  %v1190_v54 = vmul.f32 %v2308_v50, %v1087_v43  ;;  %v1088_v56 = vadd.f32 %v1003_v51, %v612_v45 }
 0x130   : > { %v1859_v57 = vpack.c.bf16 %v1322_v53, %v1321_v46  ;;  %v1231_v58 = vadd.f32 %v2313_v55, %v1192_v48  ;;  %v1193_v59 = vmul.f32 %v2308_v50, %v1090_v49 }
 0x131   : > { %1896 = vst [vmem:[%s2328_s15 + $0x58] sm:$0xff] %v1864_v52   ;;  %v1229_v60 = vadd.f32 %v2313_v55, %v1190_v54  ;;  %v1191_v61 = vmul.f32 %v2308_v50, %v1088_v56 }
 0x132   : > { %1895 = vst [vmem:[%s2328_s15 + $0x50] sm:$0xff] %v1859_v57   ;;  %vm1263_vm8 = vcmp.ge.f32.partialorder %v1231_v58, 0.0  ;;  %v1295_v62 = vmul.f32 0.2, %v1231_v58  ;;  %v1232_v63 = vadd.f32 %v2313_v55, %v1193_v59  ;;  %v1995_v0 = vpop.f32.mrb[28].mxu1 }
 0x133   : > { %vm1261_vm9 = vcmp.ge.f32.partialorder %v1229_v60, 0.0  ;;  %v1293_v1 = vmul.f32 0.2, %v1229_v60  ;;  %v1230_v2 = vadd.f32 %v2313_v55, %v1191_v61  ;;  %v2043_v3 = vpop.f32.mrb[28].mxu0  ;;  %v625_v4 = vpop.f32.mrb[29].mxu1 }
 0x134   : > { %vm1264_vm10 = vcmp.ge.f32.partialorder %v1232_v63, 0.0  ;;  %v1296_v5 = vmul.f32 0.2, %v1232_v63  ;;  %v1093_v6 = vadd.f32 %v2043_v3, %v1995_v0  ;;  %v1016_v7 = vpop.f32.mrb[29].mxu0  ;;  %v1996_v8 = vpop.f32.mrb[30].mxu1  ;;  %v1327_v9 = vsel %vm1263_vm8, %v1231_v58, %v1295_v62 }
 0x135   : > { %vm1262_vm11 = vcmp.ge.f32.partialorder %v1230_v2, 0.0  ;;  %v1294_v10 = vmul.f32 0.2, %v1230_v2  ;;  %v1091_v11 = vadd.f32 %v1016_v7, %v625_v4  ;;  %v2044_v12 = vpop.f32.mrb[30].mxu0  ;;  %v628_v13 = vpop.f32.mrb[31].mxu1  ;;  %v1325_v14 = vsel %vm1261_vm9, %v1229_v60, %v1293_v1 }
 0x136   : > { %v1328_v15 = vsel %vm1264_vm10, %v1232_v63, %v1296_v5  ;;  %v1196_v16 = vmul.f32 %v2308_v50, %v1093_v6  ;;  %v1094_v17 = vadd.f32 %v2044_v12, %v1996_v8  ;;  %v1019_v18 = vpop.f32.mrb[31].mxu0 }
 0x137   : > { %v1874_v19 = vpack.c.bf16 %v1328_v15, %v1327_v9  ;;  %v1326_v20 = vsel %vm1262_vm11, %v1230_v2, %v1294_v10  ;;  %v1194_v21 = vmul.f32 %v2308_v50, %v1091_v11  ;;  %v1092_v22 = vadd.f32 %v1019_v18, %v628_v13 }
 0x138   : > { %v1869_v23 = vpack.c.bf16 %v1326_v20, %v1325_v14  ;;  %v1235_v24 = vadd.f32 %v2313_v55, %v1196_v16  ;;  %v1197_v25 = vmul.f32 %v2308_v50, %v1094_v17 }
 0x139   : > { %1898 = vst [vmem:[%s2328_s15 + $0x68] sm:$0xff] %v1874_v19   ;;  %v1233_v26 = vadd.f32 %v2313_v55, %v1194_v21  ;;  %v1195_v27 = vmul.f32 %v2308_v50, %v1092_v22 }
 0x13a   : > { %1897 = vst [vmem:[%s2328_s15 + $0x60] sm:$0xff] %v1869_v23   ;;  %v1299_v28 = vmul.f32 0.2, %v1235_v24  ;;  %v1236_v29 = vadd.f32 %v2313_v55, %v1197_v25  ;;  %vm1267_vm12 = vcmp.ge.f32.partialorder %v1235_v24, 0.0 }
 0x13b   : > { %v1297_v30 = vmul.f32 0.2, %v1233_v26  ;;  %v1234_v31 = vadd.f32 %v2313_v55, %v1195_v27  ;;  %vm1265_vm13 = vcmp.ge.f32.partialorder %v1233_v26, 0.0 }
 0x13c   : > { %vm1268_vm14 = vcmp.ge.f32.partialorder %v1236_v29, 0.0  ;;  %v1300_v32 = vmul.f32 0.2, %v1236_v29  ;;  %v1331_v34 = vsel %vm1267_vm12, %v1235_v24, %v1299_v28 }
 0x13d   : > { %vm1266_vm15 = vcmp.ge.f32.partialorder %v1234_v31, 0.0  ;;  %v1298_v33 = vmul.f32 0.2, %v1234_v31  ;;  %v1329_v36 = vsel %vm1265_vm13, %v1233_v26, %v1297_v30 }
 0x13e   : > { %v1332_v35 = vsel %vm1268_vm14, %v1236_v29, %v1300_v32 }
 0x13f   : > { %v1884_v37 = vpack.c.bf16 %v1332_v35, %v1331_v34  ;;  %v1330_v50 = vsel %vm1266_vm15, %v1234_v31, %v1298_v33 }
 0x140   : > { %v1879_v38 = vpack.c.bf16 %v1330_v50, %v1329_v36 }
 0x141   : > { %1900 = vst [vmem:[%s2328_s15 + $0x78] sm:$0xff] %v1884_v37  }
 0x142   : > { %1899 = vst [vmem:[%s2328_s15 + $0x70] sm:$0xff] %v1879_v38  }
 0x143 PF: > { %s14_s17 = sadd.s32 1, %s2172_s17   ;;  %s2422_s15 = smov %s2168_s16 }
 0x144   : > { %p11_p5 = scmp.ge.s32.totalorder %s14_s17, 4   ;;  %s2423_s16 = smov %s2425_s18 }
 0x146   :  { %13 = sbr.rel (!%p11_p5) target bundleno = 2 (0x2), region = 78 }

// kernel: _lambda_.5
= control target key start
LH: loop header
LB: loop body
LE: loop exit
PB: predicated region body
PF: predicated region fallthrough
CT: control target
= control target key end

     0   :  { %s2091_s15 = smov 0   ;;  %s2093_s16 = smov 0   ;;  %s2454_s0 = inlined_call_operand.vmem [shape: bf16[2,72,512], index: 0, kind: input, shape index: {}]   ;;  %s2455_s1 = inlined_call_operand.vmem [shape: bf16[2,512,128], index: 1, kind: input, shape index: {}]   ;;  %s2456_s2 = inlined_call_operand.vmem [shape: f32[1,128], index: 2, kind: input, shape index: {}]   ;;  %s2457_s3 = inlined_call_operand.vmem [shape: f32[1,128], index: 3, kind: input, shape index: {}]   ;;  %s2458_s4 = inlined_call_operand.vmem [shape: bf16[2,64,128], index: 4, kind: output, shape index: {}]  }
   0x1   :  { %s2095_s17 = smov 0  }
   0x2 LB: > { %s33_s18 = sadd.s32 1, %s2060_s16  ;;  %p1537_p0 = scmp.ge.s32.totalorder %s2064_s17, 1  ;;  %s2064_s17 = sphi %s2095_s17, %s14_s17   ;;  %s2060_s16 = sphi %s2093_s16, %s2460_s16   ;;  %s2056_s15 = sphi %s2091_s15, %s2459_s15  }
   0x3   : > { %p35_p1 = scmp.ge.s32.totalorder %s33_s18, 2  ;;  %p210_p2 = scmp.lt.s32.totalorder %s2064_s17, 3 }
   0x5   : > { %s2462_s18 = smov (%p35_p1, %s33_s18), 0  ;;  %p211_p3 = pnand %p1537_p0, %p210_p2 }
   0x6   : > { %v1946_v0 = vld [vmem:[%s2455_s1 + $0x40] sm:$0xff] (!%p211_p3)   ;;  %v1950_v4 = vld [vmem:[%s2455_s1 + $0x48] sm:$0xff] (!%p211_p3)   ;;  %v1954_v8 = vld [vmem:[%s2455_s1 + $0x50] sm:$0xff] (!%p211_p3)   ;;  %p253_p4 = scmp.lt.s32.totalorder (!%p211_p3), %s2056_s15, 1 }
   0x7   : > { %214 = sbr.rel (%p211_p3) target bundleno = 329 (0x149), region = 36  ;;  %v1947_v1 = vld [vmem:[%s2455_s1 + $0xc0] sm:$0xff] (!%p211_p3)   ;;  %1761 = vmatprep.subr.bf16.mxu0 (!%p211_p3), %v1946_v0  ;;  %v1951_v5 = vld [vmem:[%s2455_s1 + $0xc8] sm:$0xff] (!%p211_p3)   ;;  %v1955_v9 = vld [vmem:[%s2455_s1 + $0xd0] sm:$0xff] (!%p211_p3)  }
   0x8   : > { %v1948_v2 = vld [vmem:[%s2455_s1] sm:$0xff] (!%p211_p3)   ;;  %1801 = vmatprep.subr.bf16.mxu1 (!%p211_p3), %v1947_v1  ;;  %v1952_v6 = vld [vmem:[%s2455_s1 + $0x8] sm:$0xff] (!%p211_p3)   ;;  %v1956_v10 = vld [vmem:[%s2455_s1 + $0x10] sm:$0xff] (!%p211_p3)  }
   0x9   : > { %v1949_v3 = vld [vmem:[%s2455_s1 + $0x80] sm:$0xff] (!%p211_p3)   ;;  %1762 = vmatpush3.bf16.msra.mxu0 (!%p211_p3), %v1948_v2  ;;  %v1953_v7 = vld [vmem:[%s2455_s1 + $0x88] sm:$0xff] (!%p211_p3)   ;;  %v1957_v11 = vld [vmem:[%s2455_s1 + $0x90] sm:$0xff] (!%p211_p3)  }
   0xa   : > { %1802 = vmatpush3.bf16.msra.mxu1 (!%p211_p3), %v1949_v3  ;;  %1763 = vmatprep.subr.bf16.mxu0 (!%p211_p3), %v1950_v4  ;;  %v1958_v12 = vld [vmem:[%s2455_s1 + $0x58] sm:$0xff] (!%p211_p3)   ;;  %v1962_v16 = vld [vmem:[%s2455_s1 + $0x60] sm:$0xff] (!%p211_p3)   ;;  %v1966_v20 = vld [vmem:[%s2455_s1 + $0x68] sm:$0xff] (!%p211_p3)  }
   0xb   : > { %1803 = vmatprep.subr.bf16.mxu1 (!%p211_p3), %v1951_v5  ;;  %v1959_v13 = vld [vmem:[%s2455_s1 + $0xd8] sm:$0xff] (!%p211_p3)   ;;  %v1963_v17 = vld [vmem:[%s2455_s1 + $0xe0] sm:$0xff] (!%p211_p3)   ;;  %v1967_v21 = vld [vmem:[%s2455_s1 + $0xe8] sm:$0xff] (!%p211_p3)  }
   0xc   : > { %v1960_v14 = vld [vmem:[%s2455_s1 + $0x18] sm:$0xff] (!%p211_p3)   ;;  %v1964_v18 = vld [vmem:[%s2455_s1 + $0x20] sm:$0xff] (!%p211_p3)   ;;  %v1968_v22 = vld [vmem:[%s2455_s1 + $0x28] sm:$0xff] (!%p211_p3)  }
   0xd   : > { %1764 = vmatpush3.bf16.msra.mxu0 (!%p211_p3), %v1952_v6  ;;  %v1961_v15 = vld [vmem:[%s2455_s1 + $0x98] sm:$0xff] (!%p211_p3)   ;;  %v1965_v19 = vld [vmem:[%s2455_s1 + $0xa0] sm:$0xff] (!%p211_p3)   ;;  %v1969_v23 = vld [vmem:[%s2455_s1 + $0xa8] sm:$0xff] (!%p211_p3)  }
   0xe   : > { %1804 = vmatpush3.bf16.msra.mxu1 %v1953_v7  ;;  %1765 = vmatprep.subr.bf16.mxu0 %v1954_v8  ;;  %s2464_s15 = smov (!%p253_p4, %s2056_s15), 1  ;;  %v1970_v24 = vld [vmem:[%s2455_s1 + $0x70] sm:$0xff]   ;;  %v1974_v28 = vld [vmem:[%s2455_s1 + $0x78] sm:$0xff]   ;;  %v1982_v40 = vld [vmem:[%s2455_s1 + $0x140] sm:$0xff]  }
   0xf   : > { %1805 = vmatprep.subr.bf16.mxu1 %v1955_v9  ;;  %v1971_v25 = vld [vmem:[%s2455_s1 + $0xf0] sm:$0xff]   ;;  %s1921_s27 = smul.u32 144, %s2464_s15  ;;  %v1975_v29 = vld [vmem:[%s2455_s1 + $0xf8] sm:$0xff]   ;;  %v1983_v41 = vld [vmem:[%s2455_s1 + $0x1c0] sm:$0xff]   ;;  %s1729_s25 = sshll.u32 %s2464_s15, 5 }
  0x10   : > { %v1972_v26 = vld [vmem:[%s2455_s1 + $0x30] sm:$0xff]   ;;  %v1976_v30 = vld [vmem:[%s2455_s1 + $0x38] sm:$0xff]   ;;  %v1984_v42 = vld [vmem:[%s2455_s1 + $0x100] sm:$0xff]   ;;  %s2422_s28 = scalar_lea.vmem %s2458_s4, %s1729_s25 }
  0x11   : > { %1766 = vmatpush3.bf16.msra.mxu0 %v1956_v10  ;;  %v1973_v27 = vld [vmem:[%s2455_s1 + $0xb0] sm:$0xff]   ;;  %s2209_s12 = scalar_lea.vmem %s2454_s0, %s1921_s27  ;;  %v1977_v31 = vld [vmem:[%s2455_s1 + $0xb8] sm:$0xff]   ;;  %v1985_v43 = vld [vmem:[%s2455_s1 + $0x180] sm:$0xff]  }
  0x12   : > { %1806 = vmatpush3.bf16.msra.mxu1 %v1957_v11  ;;  %1767 = vmatprep.subr.bf16.mxu0 %v1958_v12  ;;  %v288_v32 = vld [vmem:[%s2209_s12] sm:$0xff]  ;;  %v2219_v33 = vld [vmem:[%s2209_s12 + $0x10] sm:$0xff]  ;;  %v289_v34 = vld [vmem:[%s2209_s12 + $0x8] sm:$0xff] }
  0x13   : > { %1807 = vmatprep.subr.bf16.mxu1 %v1959_v13  ;;  %v1541_v35 = vcombine.low %v288_v32, %v2219_v33  ;;  %v1542_v36 = vcombine.high %v288_v32, %v2219_v33  ;;  %v2225_v37 = vld [vmem:[%s2209_s12 + $0x18] sm:$0xff]  ;;  %v1986_v44 = vld [vmem:[%s2455_s1 + $0x148] sm:$0xff]   ;;  %v2254_v48 = vld [vmem:[%s2209_s12 + $0x20] sm:$0xff] }
  0x14   : > { %v1543_v38 = vcombine.low %v289_v34, %v2225_v37  ;;  %v1544_v39 = vcombine.high %v289_v34, %v2225_v37  ;;  %v1987_v45 = vld [vmem:[%s2455_s1 + $0x1c8] sm:$0xff]   ;;  %v2257_v49 = vld [vmem:[%s2209_s12 + $0x30] sm:$0xff]  ;;  %v2265_v52 = vld [vmem:[%s2209_s12 + $0x38] sm:$0xff] }
  0x15   : > { %1768 = vmatpush3.bf16.msra.mxu0 %v1960_v14  ;;  %672 = vmatprep.mubr.bf16.mxu0 %v1542_v36  ;;  %v1988_v46 = vld [vmem:[%s2455_s1 + $0x108] sm:$0xff]   ;;  %v1546_v50 = vcombine.high %v2254_v48, %v2257_v49  ;;  %v1545_v53 = vcombine.low %v2254_v48, %v2257_v49  ;;  %v1994_v56 = vld [vmem:[%s2455_s1 + $0x150] sm:$0xff]   ;;  %v1998_v60 = vld [vmem:[%s2455_s1 + $0x158] sm:$0xff]  }
  0x16   : > { %1808 = vmatpush3.bf16.msra.mxu1 %v1961_v15  ;;  %1769 = vmatprep.subr.bf16.mxu0 %v1962_v16  ;;  %v1989_v47 = vld [vmem:[%s2455_s1 + $0x188] sm:$0xff]   ;;  %v1995_v57 = vld [vmem:[%s2455_s1 + $0x1d0] sm:$0xff]   ;;  %v1999_v61 = vld [vmem:[%s2455_s1 + $0x1d8] sm:$0xff]  }
  0x17   : > { %1809 = vmatprep.subr.bf16.mxu1 %v1963_v17  ;;  %737 = vmatprep.mubr.bf16.mxu1 %v1544_v39  ;;  %v2262_v51 = vld [vmem:[%s2209_s12 + $0x28] sm:$0xff]  ;;  %v1996_v58 = vld [vmem:[%s2455_s1 + $0x110] sm:$0xff]   ;;  %v2000_v62 = vld [vmem:[%s2455_s1 + $0x118] sm:$0xff]  }
  0x18   : > { %v1548_v54 = vcombine.high %v2262_v51, %v2265_v52  ;;  %v1547_v55 = vcombine.low %v2262_v51, %v2265_v52  ;;  %v1997_v59 = vld [vmem:[%s2455_s1 + $0x190] sm:$0xff]   ;;  %v2001_v63 = vld [vmem:[%s2455_s1 + $0x198] sm:$0xff]   ;;  %v2298_v0 = vld [vmem:[%s2209_s12 + $0x40] sm:$0xff]  ;;  %v1671_v36 = vcombine.low %v2225_v37, %v2262_v51 }
  0x19   : > { %1770 = vmatpush3.bf16.msra.mxu0 %v1964_v18  ;;  %v2301_v1 = vld [vmem:[%s2209_s12 + $0x50] sm:$0xff]  ;;  %v2304_v2 = vld [vmem:[%s2209_s12 + $0x48] sm:$0xff]  ;;  %v2307_v3 = vld [vmem:[%s2209_s12 + $0x58] sm:$0xff] }
  0x1a   : > { %1810 = vmatpush3.bf16.msra.mxu1 %v1965_v19  ;;  %1771 = vmatprep.subr.bf16.mxu0 %v1966_v20  ;;  %v1550_v4 = vcombine.high %v2298_v0, %v2301_v1  ;;  %v1552_v5 = vcombine.high %v2304_v2, %v2307_v3  ;;  %v1549_v6 = vcombine.low %v2298_v0, %v2301_v1  ;;  %v2006_v8 = vld [vmem:[%s2455_s1 + $0x160] sm:$0xff]   ;;  %v2010_v12 = vld [vmem:[%s2455_s1 + $0x168] sm:$0xff]   ;;  %v302_v17 = vld [vmem:[%s2209_s12 + $0x70] sm:$0xff] }
  0x1b   : > { %1811 = vmatprep.subr.bf16.mxu1 %v1967_v21  ;;  %v1551_v7 = vcombine.low %v2304_v2, %v2307_v3  ;;  %v2007_v9 = vld [vmem:[%s2455_s1 + $0x1e0] sm:$0xff]   ;;  %v2011_v13 = vld [vmem:[%s2455_s1 + $0x1e8] sm:$0xff]   ;;  %v303_v20 = vld [vmem:[%s2209_s12 + $0x78] sm:$0xff]  ;;  %v1676_v39 = vcombine.high %v2265_v52, %v2304_v2 }
  0x1c   : > { %v2008_v10 = vld [vmem:[%s2455_s1 + $0x120] sm:$0xff]   ;;  %v2012_v14 = vld [vmem:[%s2455_s1 + $0x128] sm:$0xff]   ;;  %v2024_v32 = vld [vmem:[%s2455_s1 + $0x138] sm:$0xff]  }
  0x1d   : > { %1772 = vmatpush3.bf16.msra.mxu0 %v1968_v22  ;;  %v2009_v11 = vld [vmem:[%s2455_s1 + $0x1a0] sm:$0xff]   ;;  %v2013_v15 = vld [vmem:[%s2455_s1 + $0x1a8] sm:$0xff]   ;;  %v2025_v34 = vld [vmem:[%s2455_s1 + $0x1b8] sm:$0xff]  }
  0x1e   : > { %1812 = vmatpush3.bf16.msra.mxu1 %v1969_v23  ;;  %1773 = vmatprep.subr.bf16.mxu0 %v1970_v24  ;;  %v300_v16 = vld [vmem:[%s2209_s12 + $0x60] sm:$0xff]  ;;  %v301_v18 = vld [vmem:[%s2209_s12 + $0x68] sm:$0xff]  ;;  %v2018_v24 = vld [vmem:[%s2455_s1 + $0x170] sm:$0xff]  }
  0x1f   : > { %1813 = vmatprep.subr.bf16.mxu1 %v1971_v25  ;;  %v1554_v19 = vcombine.high %v300_v16, %v302_v17  ;;  %v1553_v21 = vcombine.low %v300_v16, %v302_v17  ;;  %v1556_v22 = vcombine.high %v301_v18, %v303_v20  ;;  %v1555_v23 = vcombine.low %v301_v18, %v303_v20  ;;  %v2019_v25 = vld [vmem:[%s2455_s1 + $0x1f0] sm:$0xff]  }
  0x21   : > { %1774 = vmatpush3.bf16.msra.mxu0 %v1972_v26  ;;  %v1670_v26 = vcombine.high %v2219_v33, %v2254_v48 }
  0x22   : > { %1814 = vmatpush3.bf16.msra.mxu1 %v1973_v27  ;;  %1775 = vmatprep.subr.bf16.mxu0 %v1974_v28  ;;  %v2020_v27 = vld [vmem:[%s2455_s1 + $0x130] sm:$0xff]   ;;  %v1672_v28 = vcombine.high %v2225_v37, %v2262_v51  ;;  %v1678_v37 = vcombine.high %v2301_v1, %v300_v16 }
  0x23   : > { %1815 = vmatprep.subr.bf16.mxu1 %v1975_v29  ;;  %v2021_v29 = vld [vmem:[%s2455_s1 + $0x1b0] sm:$0xff]  }
  0x25   : > { %1776 = vmatpush3.bf16.msra.mxu0 %v1976_v30  ;;  %v2022_v30 = vld [vmem:[%s2455_s1 + $0x178] sm:$0xff]  }
  0x26   : > { %1816 = vmatpush3.bf16.msra.mxu1 %v1977_v31  ;;  %1841 = vmatprep.subr.bf16.mxu0 %v1982_v40  ;;  %v2023_v31 = vld [vmem:[%s2455_s1 + $0x1f8] sm:$0xff]   ;;  %v1675_v40 = vcombine.low %v2265_v52, %v2304_v2 }
  0x27   : > { %1881 = vmatprep.subr.bf16.mxu1 %v1983_v41  ;;  %v1680_v41 = vcombine.high %v2307_v3, %v301_v18 }
  0x28   : > { %673 = vmatmul.mubr.bf16.vlgmr.msra.gmra.mrb[0].mxu0 %v1541_v35  ;;  %v1669_v35 = vcombine.low %v2219_v33, %v2254_v48  ;;  %v1673_v33 = vcombine.low %v2257_v49, %v2298_v0 }
  0x29   : > { %738 = vmatmul.mubr.bf16.vlgmr.msra.gmra.mrb[0].mxu1 %v1543_v38  ;;  %1842 = vmatpush3.bf16.msra.mxu0 %v1984_v42  ;;  %v1674_v38 = vcombine.high %v2257_v49, %v2298_v0  ;;  %v1603_v42 = vld [vmem:[%s2209_s12 + $0x80] sm:$0xff] }
  0x2a   : > { %1882 = vmatpush3.bf16.msra.mxu1 %v1985_v43  ;;  %1843 = vmatprep.subr.bf16.mxu0 %v1986_v44  ;;  %v1604_v43 = vld [vmem:[%s2209_s12 + $0x88] sm:$0xff]  ;;  %v1677_v44 = vcombine.low %v2301_v1, %v300_v16  ;;  %v1681_v48 = vcombine.low %v302_v17, %v1603_v42 }
  0x2b   : > { %1883 = vmatprep.subr.bf16.mxu1 %v1987_v45  ;;  %680 = vmatprep.mubr.bf16.mxu0 %v1546_v50  ;;  %v1679_v45 = vcombine.low %v2307_v3, %v301_v18  ;;  %v1683_v49 = vcombine.low %v303_v20, %v1604_v43 }
  0x2c   : > { %745 = vmatprep.mubr.bf16.mxu1 %v1548_v54 }
  0x2d   : > { %1844 = vmatpush3.bf16.msra.mxu0 %v1988_v46  ;;  %v1682_v46 = vcombine.high %v302_v17, %v1603_v42 }
  0x2e   : > { %1884 = vmatpush3.bf16.msra.mxu1 %v1989_v47  ;;  %1845 = vmatprep.subr.bf16.mxu0 %v1994_v56  ;;  %v1684_v47 = vcombine.high %v303_v20, %v1604_v43 }
  0x2f   : > { %1885 = vmatprep.subr.bf16.mxu1 %v1995_v57 }
  0x30   : > { %681 = vmatmul.mubr.bf16.gmra.mrb[4].mxu0 %v1545_v53 }
  0x31   : > { %746 = vmatmul.mubr.bf16.gmra.mrb[4].mxu1 %v1547_v55  ;;  %1846 = vmatpush3.bf16.msra.mxu0 %v1996_v58 }
  0x32   : > { %1886 = vmatpush3.bf16.msra.mxu1 %v1997_v59  ;;  %1847 = vmatprep.subr.bf16.mxu0 %v1998_v60 }
  0x33   : > { %1887 = vmatprep.subr.bf16.mxu1 %v1999_v61  ;;  %688 = vmatprep.mubr.bf16.mxu0 %v1550_v4 }
  0x34   : > { %753 = vmatprep.mubr.bf16.mxu1 %v1552_v5 }
  0x35   : > { %1848 = vmatpush3.bf16.msra.mxu0 %v2000_v62 }
  0x36   : > { %1888 = vmatpush3.bf16.msra.mxu1 %v2001_v63  ;;  %1849 = vmatprep.subr.bf16.mxu0 %v2006_v8 }
  0x37   : > { %1889 = vmatprep.subr.bf16.mxu1 %v2007_v9 }
  0x38   : > { %689 = vmatmul.mubr.bf16.gmra.mrb[8].mxu0 %v1549_v6 }
  0x39   : > { %754 = vmatmul.mubr.bf16.gmra.mrb[8].mxu1 %v1551_v7  ;;  %1850 = vmatpush3.bf16.msra.mxu0 %v2008_v10 }
  0x3a   : > { %1890 = vmatpush3.bf16.msra.mxu1 %v2009_v11  ;;  %1851 = vmatprep.subr.bf16.mxu0 %v2010_v12 }
  0x3b   : > { %1891 = vmatprep.subr.bf16.mxu1 %v2011_v13  ;;  %696 = vmatprep.mubr.bf16.mxu0 %v1554_v19 }
  0x3c   : > { %761 = vmatprep.mubr.bf16.mxu1 %v1556_v22 }
  0x3d   : > { %1852 = vmatpush3.bf16.msra.mxu0 %v2012_v14 }
  0x3e   : > { %1892 = vmatpush3.bf16.msra.mxu1 %v2013_v15  ;;  %1853 = vmatprep.subr.bf16.mxu0 %v2018_v24 }
  0x3f   : > { %1893 = vmatprep.subr.bf16.mxu1 %v2019_v25 }
  0x40   : > { %697 = vmatmul.mubr.bf16.gmra.mrb[12].mxu0 %v1553_v21 }
  0x41   : > { %762 = vmatmul.mubr.bf16.gmra.mrb[12].mxu1 %v1555_v23  ;;  %1854 = vmatpush3.bf16.msra.mxu0 %v2020_v27 }
  0x42   : > { %1894 = vmatpush3.bf16.msra.mxu1 %v2021_v29  ;;  %1169 = vmatprep.mubr.bf16.mxu0 %v1670_v26 }
  0x43   : > { %1855 = vmatprep.subr.bf16.mxu0 %v2022_v30  ;;  %1234 = vmatprep.mubr.bf16.mxu1 %v1672_v28 }
  0x44   : > { %1895 = vmatprep.subr.bf16.mxu1 %v2023_v31 }
  0x45   : > { %1856 = vmatpush3.bf16.msra.mxu0 %v2024_v32 }
  0x46   : > { %1896 = vmatpush3.bf16.msra.mxu1 %v2025_v34 }
  0x48   : > { %1170 = vmatmul.mubr.bf16.vlgmr.msra.gmra.mrb[16].mxu0 %v1669_v35 }
  0x49   : > { %1235 = vmatmul.mubr.bf16.vlgmr.msra.gmra.mrb[16].mxu1 %v1671_v36  ;;  %1177 = vmatprep.mubr.bf16.mxu0 %v1674_v38 }
  0x4a   : > { %1242 = vmatprep.mubr.bf16.mxu1 %v1676_v39 }
  0x50   : > { %1178 = vmatmul.mubr.bf16.gmra.mrb[20].mxu0 %v1673_v33 }
  0x51   : > { %1243 = vmatmul.mubr.bf16.gmra.mrb[20].mxu1 %v1675_v40  ;;  %1185 = vmatprep.mubr.bf16.mxu0 %v1678_v37 }
  0x52   : > { %1250 = vmatprep.mubr.bf16.mxu1 %v1680_v41 }
  0x58   : > { %1186 = vmatmul.mubr.bf16.gmra.mrb[24].mxu0 %v1677_v44 }
  0x59   : > { %1251 = vmatmul.mubr.bf16.gmra.mrb[24].mxu1 %v1679_v45  ;;  %1193 = vmatprep.mubr.bf16.mxu0 %v1682_v46 }
  0x5a   : > { %1258 = vmatprep.mubr.bf16.mxu1 %v1684_v47 }
  0x60   : > { %1194 = vmatmul.mubr.bf16.gmra.mrb[28].mxu0 %v1681_v48 }
  0x61   : > { %1259 = vmatmul.mubr.bf16.gmra.mrb[28].mxu1 %v1683_v49 }
  0xfb   : > { %v1777_v50 = vpop.f32.mrb[0].mxu0 }
  0xfc   : > { %v1817_v51 = vpop.f32.mrb[0].mxu1  ;;  %v1778_v52 = vpop.f32.mrb[1].mxu0 }
  0xfd   : > { %v1779_v53 = vadd.f32 %v1778_v52, %v1777_v50  ;;  %v1818_v54 = vpop.f32.mrb[1].mxu1  ;;  %v1780_v55 = vpop.f32.mrb[2].mxu0 }
  0xfe   : > { %v1819_v56 = vadd.f32 %v1818_v54, %v1817_v51  ;;  %v1820_v57 = vpop.f32.mrb[2].mxu1  ;;  %v1781_v58 = vpop.f32.mrb[3].mxu0 }
  0xff   : > { %v1782_v59 = vadd.f32 %v1781_v58, %v1780_v55  ;;  %v1821_v60 = vpop.f32.mrb[3].mxu1  ;;  %v2406_v55 = vld [vmem:[%s2456_s2] ss:$0 sm:$0xff] }
 0x100   : > { %v740_v61 = vadd.f32 %v1819_v56, %v1779_v53  ;;  %v1822_v62 = vadd.f32 %v1821_v60, %v1820_v57  ;;  %v2411_v58 = vld [vmem:[%s2457_s3] ss:$0 sm:$0xff] }
 0x102   : > { %v743_v63 = vadd.f32 %v1822_v62, %v1782_v59 }
 0x103   : > { %v1783_v0 = vpop.f32.mrb[4].mxu0 }
 0x104   : > { %v1823_v1 = vpop.f32.mrb[4].mxu1  ;;  %v1784_v2 = vpop.f32.mrb[5].mxu0 }
 0x105   : > { %v1785_v3 = vadd.f32 %v1784_v2, %v1783_v0  ;;  %v1824_v4 = vpop.f32.mrb[5].mxu1  ;;  %v1786_v5 = vpop.f32.mrb[6].mxu0 }
 0x106   : > { %v1825_v6 = vadd.f32 %v1824_v4, %v1823_v1  ;;  %v1826_v7 = vpop.f32.mrb[6].mxu1  ;;  %v1787_v8 = vpop.f32.mrb[7].mxu0 }
 0x107   : > { %v1788_v9 = vadd.f32 %v1787_v8, %v1786_v5  ;;  %v1827_v10 = vpop.f32.mrb[7].mxu1 }
 0x108   : > { %v2391_v11 = vadd.f32 %v1825_v6, %v1785_v3  ;;  %v1828_v12 = vadd.f32 %v1827_v10, %v1826_v7 }
 0x10a   : > { %v2393_v13 = vadd.f32 %v1828_v12, %v1788_v9 }
 0x10b   : > { %v1789_v14 = vpop.f32.mrb[8].mxu0 }
 0x10c   : > { %v1829_v15 = vpop.f32.mrb[8].mxu1  ;;  %v1790_v16 = vpop.f32.mrb[9].mxu0 }
 0x10d   : > { %v1830_v17 = vpop.f32.mrb[9].mxu1  ;;  %v1791_v18 = vadd.f32 %v1790_v16, %v1789_v14  ;;  %v1792_v20 = vpop.f32.mrb[10].mxu0 }
 0x10e   : > { %v1831_v19 = vadd.f32 %v1830_v17, %v1829_v15  ;;  %v1832_v21 = vpop.f32.mrb[10].mxu1  ;;  %v1793_v22 = vpop.f32.mrb[11].mxu0 }
 0x10f   : > { %v1833_v23 = vpop.f32.mrb[11].mxu1  ;;  %v1794_v25 = vadd.f32 %v1793_v22, %v1792_v20 }
 0x110   : > { %v2395_v24 = vadd.f32 %v1831_v19, %v1791_v18  ;;  %v1834_v26 = vadd.f32 %v1833_v23, %v1832_v21 }
 0x112   : > { %v2397_v27 = vadd.f32 %v1834_v26, %v1794_v25 }
 0x113   : > { %v1795_v28 = vpop.f32.mrb[12].mxu0 }
 0x114   : > { %v1835_v29 = vpop.f32.mrb[12].mxu1  ;;  %v1796_v30 = vpop.f32.mrb[13].mxu0 }
 0x115   : > { %v1797_v31 = vadd.f32 %v1796_v30, %v1795_v28  ;;  %v1836_v32 = vpop.f32.mrb[13].mxu1  ;;  %v1798_v34 = vpop.f32.mrb[14].mxu0 }
 0x116   : > { %v1837_v35 = vadd.f32 %v1836_v32, %v1835_v29  ;;  %v1838_v36 = vpop.f32.mrb[14].mxu1  ;;  %v1799_v38 = vpop.f32.mrb[15].mxu0 }
 0x117   : > { %v1800_v39 = vadd.f32 %v1799_v38, %v1798_v34  ;;  %v1839_v33 = vpop.f32.mrb[15].mxu1 }
 0x118   : > { %v2399_v40 = vadd.f32 %v1837_v35, %v1797_v31  ;;  %v1840_v37 = vadd.f32 %v1839_v33, %v1838_v36 }
 0x11a   : > { %v2401_v41 = vadd.f32 %v1840_v37, %v1800_v39 }
 0x11b   : > { %v1857_v42 = vpop.f32.mrb[16].mxu0 }
 0x11c   : > { %v1897_v43 = vpop.f32.mrb[16].mxu1  ;;  %v1858_v44 = vpop.f32.mrb[17].mxu0 }
 0x11d   : > { %v1859_v45 = vadd.f32 %v1858_v44, %v1857_v42  ;;  %v1898_v46 = vpop.f32.mrb[17].mxu1  ;;  %v1860_v47 = vpop.f32.mrb[18].mxu0 }
 0x11e   : > { %v1899_v48 = vadd.f32 %v1898_v46, %v1897_v43  ;;  %v1900_v49 = vpop.f32.mrb[18].mxu1  ;;  %v1861_v50 = vpop.f32.mrb[19].mxu0 }
 0x11f   : > { %v1862_v51 = vadd.f32 %v1861_v50, %v1860_v47  ;;  %v1901_v52 = vpop.f32.mrb[19].mxu1 }
 0x120   : > { %v1237_v53 = vadd.f32 %v1899_v48, %v1859_v45  ;;  %v1902_v54 = vadd.f32 %v1901_v52, %v1900_v49 }
 0x122   : > { %v1275_v56 = vadd.f32 %v1237_v53, %v740_v61  ;;  %v1240_v57 = vadd.f32 %v1902_v54, %v1862_v51 }
 0x123   : > { %v1863_v59 = vpop.f32.mrb[20].mxu0 }
 0x124   : > { %v1306_v60 = vmul.f32 %v2406_v55, %v1275_v56  ;;  %v1276_v62 = vadd.f32 %v1240_v57, %v743_v63  ;;  %v1903_v0 = vpop.f32.mrb[20].mxu1  ;;  %v1864_v1 = vpop.f32.mrb[21].mxu0 }
 0x125   : > { %v1865_v2 = vadd.f32 %v1864_v1, %v1863_v59  ;;  %v1904_v3 = vpop.f32.mrb[21].mxu1  ;;  %v1866_v4 = vpop.f32.mrb[22].mxu0 }
 0x126   : > { %v1321_v5 = vadd.f32 %v2411_v58, %v1306_v60  ;;  %v1307_v61 = vmul.f32 %v2406_v55, %v1276_v62  ;;  %v1905_v6 = vadd.f32 %v1904_v3, %v1903_v0  ;;  %v1906_v7 = vpop.f32.mrb[22].mxu1  ;;  %v1867_v8 = vpop.f32.mrb[23].mxu0 }
 0x127   : > { %v1868_v9 = vadd.f32 %v1867_v8, %v1866_v4  ;;  %v1907_v10 = vpop.f32.mrb[23].mxu1 }
 0x128   : > { %v1337_v12 = vmul.f32 0.2, %v1321_v5  ;;  %v1322_v14 = vadd.f32 %v2411_v58, %v1307_v61  ;;  %v1245_v15 = vadd.f32 %v1905_v6, %v1865_v2  ;;  %vm1329_vm0 = vcmp.ge.f32.partialorder %v1321_v5, 0.0 }
 0x129   : > { %v1908_v63 = vadd.f32 %v1907_v10, %v1906_v7 }
 0x12a   : > { %vm1330_vm1 = vcmp.ge.f32.partialorder %v1322_v14, 0.0  ;;  %v1338_v16 = vmul.f32 0.2, %v1322_v14  ;;  %v1277_v17 = vadd.f32 %v1245_v15, %v2391_v11  ;;  %v1345_v20 = vsel %vm1329_vm0, %v1321_v5, %v1337_v12 }
 0x12b   : > { %v1248_v18 = vadd.f32 %v1908_v63, %v1868_v9  ;;  %v1869_v19 = vpop.f32.mrb[24].mxu0 }
 0x12c   : > { %v1346_v21 = vsel %vm1330_vm1, %v1322_v14, %v1338_v16  ;;  %v1308_v22 = vmul.f32 %v2406_v55, %v1277_v17  ;;  %v1909_v23 = vpop.f32.mrb[24].mxu1  ;;  %v1870_v25 = vpop.f32.mrb[25].mxu0 }
 0x12d   : > { %v1741_v26 = vpack.c.bf16 %v1346_v21, %v1345_v20  ;;  %v1278_v28 = vadd.f32 %v1248_v18, %v2393_v13  ;;  %v1871_v29 = vadd.f32 %v1870_v25, %v1869_v19  ;;  %v1910_v30 = vpop.f32.mrb[25].mxu1  ;;  %v1872_v11 = vpop.f32.mrb[26].mxu0 }
 0x12e   : > { %v1323_v31 = vadd.f32 %v2411_v58, %v1308_v22  ;;  %v1911_v32 = vadd.f32 %v1910_v30, %v1909_v23  ;;  %v1912_v34 = vpop.f32.mrb[26].mxu1  ;;  %v1873_v35 = vpop.f32.mrb[27].mxu0 }
 0x12f   : > { %1742 = vst [vmem:[%s2422_s28] sm:$0xff] %v1741_v26   ;;  %v1309_v36 = vmul.f32 %v2406_v55, %v1278_v28  ;;  %v1874_v38 = vadd.f32 %v1873_v35, %v1872_v11  ;;  %v1913_v39 = vpop.f32.mrb[27].mxu1 }
 0x130   : > { %v1253_v33 = vadd.f32 %v1911_v32, %v1871_v29  ;;  %v1914_v37 = vadd.f32 %v1913_v39, %v1912_v34  ;;  %v1339_v42 = vmul.f32 0.2, %v1323_v31  ;;  %vm1331_vm2 = vcmp.ge.f32.partialorder %v1323_v31, 0.0 }
 0x131   : > { %v1324_v43 = vadd.f32 %v2411_v58, %v1309_v36 }
 0x132   : > { %v1279_v13 = vadd.f32 %v1253_v33, %v2395_v24  ;;  %v1256_v44 = vadd.f32 %v1914_v37, %v1874_v38  ;;  %v1347_v51 = vsel %vm1331_vm2, %v1323_v31, %v1339_v42 }
 0x133   : > { %vm1332_vm3 = vcmp.ge.f32.partialorder %v1324_v43, 0.0  ;;  %v1340_v45 = vmul.f32 0.2, %v1324_v43  ;;  %v1875_v46 = vpop.f32.mrb[28].mxu0 }
 0x134   : > { %v1310_v47 = vmul.f32 %v2406_v55, %v1279_v13  ;;  %v1280_v48 = vadd.f32 %v1256_v44, %v2397_v27  ;;  %v1915_v49 = vpop.f32.mrb[28].mxu1  ;;  %v1876_v50 = vpop.f32.mrb[29].mxu0 }
 0x135   : > { %v1348_v52 = vsel %vm1332_vm3, %v1324_v43, %v1340_v45  ;;  %v1877_v53 = vadd.f32 %v1876_v50, %v1875_v46  ;;  %v1916_v54 = vpop.f32.mrb[29].mxu1  ;;  %v1878_v56 = vpop.f32.mrb[30].mxu0 }
 0x136   : > { %v1746_v57 = vpack.c.bf16 %v1348_v52, %v1347_v51  ;;  %v1325_v59 = vadd.f32 %v2411_v58, %v1310_v47  ;;  %v1311_v24 = vmul.f32 %v2406_v55, %v1280_v48  ;;  %v1917_v60 = vadd.f32 %v1916_v54, %v1915_v49  ;;  %v1918_v62 = vpop.f32.mrb[30].mxu1  ;;  %v1879_v0 = vpop.f32.mrb[31].mxu0 }
 0x137   : > { %v1880_v1 = vadd.f32 %v1879_v0, %v1878_v56  ;;  %v1919_v2 = vpop.f32.mrb[31].mxu1 }
 0x138   : > { %1758 = vst [vmem:[%s2422_s28 + $0x8] sm:$0xff] %v1746_v57   ;;  %v1341_v27 = vmul.f32 0.2, %v1325_v59  ;;  %v1326_v3 = vadd.f32 %v2411_v58, %v1311_v24  ;;  %v1261_v4 = vadd.f32 %v1917_v60, %v1877_v53  ;;  %vm1333_vm4 = vcmp.ge.f32.partialorder %v1325_v59, 0.0 }
 0x139   : > { %v1920_v5 = vadd.f32 %v1919_v2, %v1918_v62 }
 0x13a   : > { %vm1334_vm5 = vcmp.ge.f32.partialorder %v1326_v3, 0.0  ;;  %v1342_v61 = vmul.f32 0.2, %v1326_v3  ;;  %v1281_v6 = vadd.f32 %v1261_v4, %v2399_v40  ;;  %v1349_v8 = vsel %vm1333_vm4, %v1325_v59, %v1341_v27 }
 0x13b   : > { %v1264_v7 = vadd.f32 %v1920_v5, %v1880_v1 }
 0x13c   : > { %v1350_v9 = vsel %vm1334_vm5, %v1326_v3, %v1342_v61  ;;  %v1312_v10 = vmul.f32 %v2406_v55, %v1281_v6 }
 0x13d   : > { %v1751_v12 = vpack.c.bf16 %v1350_v9, %v1349_v8  ;;  %v1282_v14 = vadd.f32 %v1264_v7, %v2401_v41 }
 0x13e   : > { %v1327_v15 = vadd.f32 %v2411_v58, %v1312_v10 }
 0x13f   : > { %1759 = vst [vmem:[%s2422_s28 + $0x10] sm:$0xff] %v1751_v12   ;;  %v1313_v63 = vmul.f32 %v2406_v55, %v1282_v14 }
 0x140   : > { %v1343_v16 = vmul.f32 0.2, %v1327_v15  ;;  %vm1335_vm6 = vcmp.ge.f32.partialorder %v1327_v15, 0.0 }
 0x141   : > { %v1328_v17 = vadd.f32 %v2411_v58, %v1313_v63 }
 0x142   : > { %v1351_v18 = vsel %vm1335_vm6, %v1327_v15, %v1343_v16 }
 0x143   : > { %vm1336_vm7 = vcmp.ge.f32.partialorder %v1328_v17, 0.0  ;;  %v1344_v40 = vmul.f32 0.2, %v1328_v17 }
 0x145   : > { %v1352_v19 = vsel %vm1336_vm7, %v1328_v17, %v1344_v40 }
 0x146   : > { %v1756_v20 = vpack.c.bf16 %v1352_v19, %v1351_v18 }
 0x148   : > { %1760 = vst [vmem:[%s2422_s28 + $0x18] sm:$0xff] %v1756_v20  }
 0x149 PF: > { %s14_s17 = sadd.s32 1, %s2064_s17   ;;  %s2459_s15 = smov %s2060_s16 }
 0x14a   : > { %p11_p5 = scmp.ge.s32.totalorder %s14_s17, 4   ;;  %s2460_s16 = smov %s2462_s18 }
 0x14c   :  { %13 = sbr.rel (!%p11_p5) target bundleno = 2 (0x2), region = 78 }

// kernel: _lambda_.6
= control target key start
LH: loop header
LB: loop body
LE: loop exit
PB: predicated region body
PF: predicated region fallthrough
CT: control target
= control target key end

     0   :  { %s3712_s15 = smov 0   ;;  %s3714_s16 = smov 0   ;;  %s4609_s0 = inlined_call_operand.vmem [shape: bf16[2,40,1024], index: 0, kind: input, shape index: {}]   ;;  %s4610_s1 = inlined_call_operand.vmem [shape: bf16[2,1024,256], index: 1, kind: input, shape index: {}]   ;;  %s4611_s2 = inlined_call_operand.vmem [shape: f32[1,256], index: 2, kind: input, shape index: {}]   ;;  %s4612_s3 = inlined_call_operand.vmem [shape: f32[1,256], index: 3, kind: input, shape index: {}]   ;;  %s4613_s4 = inlined_call_operand.vmem [shape: bf16[2,32,256], index: 4, kind: output, shape index: {}]  }
   0x1   :  { %s3716_s17 = smov 0  }
   0x2 LB: > { %s33_s18 = sadd.s32 1, %s3681_s16  ;;  %p2751_p0 = scmp.ge.s32.totalorder %s3685_s17, 1  ;;  %s3685_s17 = sphi %s3716_s17, %s14_s17   ;;  %s3681_s16 = sphi %s3714_s16, %s4615_s16   ;;  %s3677_s15 = sphi %s3712_s15, %s4614_s15  }
   0x3   : > { %p35_p1 = scmp.ge.s32.totalorder %s33_s18, 2  ;;  %p216_p2 = scmp.lt.s32.totalorder %s3685_s17, 3 }
   0x5   : > { %s4617_s18 = smov (%p35_p1, %s33_s18), 0  ;;  %p217_p3 = pnand %p2751_p0, %p216_p2 }
   0x6   : > { %v3279_v0 = vld [vmem:[%s4610_s1 + $0x4] ss:$8 sps:$4 sm:$0xff] (!%p217_p3)   ;;  %v3283_v2 = vld [vmem:[%s4610_s1] ss:$8 sps:$4 sm:$0xff] (!%p217_p3)   ;;  %v3285_v4 = vld [vmem:[%s4610_s1 + $0x14] ss:$8 sps:$4 sm:$0xff] (!%p217_p3)  }
   0x7   : > { %220 = sbr.rel (%p217_p3) target bundleno = 499 (0x1f3), region = 36  ;;  %v3281_v1 = vld [vmem:[%s4610_s1 + $0x404] ss:$8 sps:$4 sm:$0xff] (!%p217_p3)   ;;  %1171 = vmatprep.subr.bf16.mxu1 (!%p217_p3), %v3279_v0  ;;  %v3284_v3 = vld [vmem:[%s4610_s1 + $0x400] ss:$8 sps:$4 sm:$0xff] (!%p217_p3)   ;;  %p264_p4 = scmp.lt.s32.totalorder (!%p217_p3), %s3677_s15, 1 }
   0x8   : > { %2262 = vmatprep.subr.bf16.mxu0 (!%p217_p3), %v3281_v1  ;;  %1172 = vmatpush1.bf16.msra.mxu1 (!%p217_p3), %v3283_v2  ;;  %v3287_v5 = vld [vmem:[%s4610_s1 + $0x414] ss:$8 sps:$4 sm:$0xff] (!%p217_p3)   ;;  %v3289_v6 = vld [vmem:[%s4610_s1 + $0x10] ss:$8 sps:$4 sm:$0xff] (!%p217_p3)   ;;  %v3291_v8 = vld [vmem:[%s4610_s1 + $0x24] ss:$8 sps:$4 sm:$0xff] (!%p217_p3)  }
   0x9   : > { %2263 = vmatpush1.bf16.msra.mxu0 (!%p217_p3), %v3284_v3  ;;  %1173 = vmatprep.subr.bf16.mxu1 (!%p217_p3), %v3285_v4  ;;  %v3290_v7 = vld [vmem:[%s4610_s1 + $0x410] ss:$8 sps:$4 sm:$0xff] (!%p217_p3)   ;;  %v3293_v9 = vld [vmem:[%s4610_s1 + $0x424] ss:$8 sps:$4 sm:$0xff] (!%p217_p3)   ;;  %v3295_v10 = vld [vmem:[%s4610_s1 + $0x20] ss:$8 sps:$4 sm:$0xff] (!%p217_p3)  }
   0xa   : > { %2264 = vmatprep.subr.bf16.mxu0 (!%p217_p3), %v3287_v5  ;;  %v3296_v11 = vld [vmem:[%s4610_s1 + $0x420] ss:$8 sps:$4 sm:$0xff] (!%p217_p3)   ;;  %v3297_v12 = vld [vmem:[%s4610_s1 + $0x34] ss:$8 sps:$4 sm:$0xff] (!%p217_p3)   ;;  %v3301_v14 = vld [vmem:[%s4610_s1 + $0x30] ss:$8 sps:$4 sm:$0xff] (!%p217_p3)  }
   0xb   : > { %v3299_v13 = vld [vmem:[%s4610_s1 + $0x434] ss:$8 sps:$4 sm:$0xff] (!%p217_p3)   ;;  %v3302_v15 = vld [vmem:[%s4610_s1 + $0x430] ss:$8 sps:$4 sm:$0xff] (!%p217_p3)   ;;  %v3303_v16 = vld [vmem:[%s4610_s1 + $0x44] ss:$8 sps:$4 sm:$0xff] (!%p217_p3)  }
   0xc   : > { %1174 = vmatpush1.bf16.msra.mxu1 (!%p217_p3), %v3289_v6  ;;  %v3305_v17 = vld [vmem:[%s4610_s1 + $0x444] ss:$8 sps:$4 sm:$0xff] (!%p217_p3)   ;;  %v3307_v18 = vld [vmem:[%s4610_s1 + $0x40] ss:$8 sps:$4 sm:$0xff] (!%p217_p3)   ;;  %v3309_v20 = vld [vmem:[%s4610_s1 + $0x54] ss:$8 sps:$4 sm:$0xff] (!%p217_p3)  }
   0xd   : > { %2265 = vmatpush1.bf16.msra.mxu0 (!%p217_p3), %v3290_v7  ;;  %1175 = vmatprep.subr.bf16.mxu1 (!%p217_p3), %v3291_v8  ;;  %v3308_v19 = vld [vmem:[%s4610_s1 + $0x440] ss:$8 sps:$4 sm:$0xff] (!%p217_p3)   ;;  %v3311_v21 = vld [vmem:[%s4610_s1 + $0x454] ss:$8 sps:$4 sm:$0xff] (!%p217_p3)   ;;  %v3313_v22 = vld [vmem:[%s4610_s1 + $0x50] ss:$8 sps:$4 sm:$0xff] (!%p217_p3)  }
   0xe   : > { %2266 = vmatprep.subr.bf16.mxu0 %v3293_v9  ;;  %v3314_v23 = vld [vmem:[%s4610_s1 + $0x450] ss:$8 sps:$4 sm:$0xff]   ;;  %v3315_v24 = vld [vmem:[%s4610_s1 + $0x64] ss:$8 sps:$4 sm:$0xff]   ;;  %v3319_v26 = vld [vmem:[%s4610_s1 + $0x60] ss:$8 sps:$4 sm:$0xff]  }
   0xf   : > { %v3317_v25 = vld [vmem:[%s4610_s1 + $0x464] ss:$8 sps:$4 sm:$0xff]   ;;  %v3320_v27 = vld [vmem:[%s4610_s1 + $0x460] ss:$8 sps:$4 sm:$0xff]   ;;  %v3321_v28 = vld [vmem:[%s4610_s1 + $0x74] ss:$8 sps:$4 sm:$0xff]  }
  0x10   : > { %1176 = vmatpush1.bf16.msra.mxu1 %v3295_v10  ;;  %v3323_v29 = vld [vmem:[%s4610_s1 + $0x474] ss:$8 sps:$4 sm:$0xff]   ;;  %v3325_v30 = vld [vmem:[%s4610_s1 + $0x70] ss:$8 sps:$4 sm:$0xff]   ;;  %v3327_v32 = vld [vmem:[%s4610_s1 + $0x84] ss:$8 sps:$4 sm:$0xff]  }
  0x11   : > { %2267 = vmatpush1.bf16.msra.mxu0 %v3296_v11  ;;  %1177 = vmatprep.subr.bf16.mxu1 %v3297_v12  ;;  %v3326_v31 = vld [vmem:[%s4610_s1 + $0x470] ss:$8 sps:$4 sm:$0xff]   ;;  %v3329_v33 = vld [vmem:[%s4610_s1 + $0x484] ss:$8 sps:$4 sm:$0xff]   ;;  %v3331_v34 = vld [vmem:[%s4610_s1 + $0x80] ss:$8 sps:$4 sm:$0xff]  }
  0x12   : > { %2268 = vmatprep.subr.bf16.mxu0 %v3299_v13  ;;  %v3332_v35 = vld [vmem:[%s4610_s1 + $0x480] ss:$8 sps:$4 sm:$0xff]   ;;  %s4619_s15 = smov (!%p264_p4, %s3677_s15), 1  ;;  %v3333_v36 = vld [vmem:[%s4610_s1 + $0x94] ss:$8 sps:$4 sm:$0xff]  }
  0x13   : > { %v3335_v37 = vld [vmem:[%s4610_s1 + $0x494] ss:$8 sps:$4 sm:$0xff]   ;;  %v3337_v38 = vld [vmem:[%s4610_s1 + $0x90] ss:$8 sps:$4 sm:$0xff]   ;;  %s3254_s5 = smul.u32 160, %s4619_s15  ;;  %s3193_s30 = sshll.u32 %s4619_s15, 5 }
  0x14   : > { %1178 = vmatpush1.bf16.msra.mxu1 %v3301_v14  ;;  %v3338_v39 = vld [vmem:[%s4610_s1 + $0x490] ss:$8 sps:$4 sm:$0xff]   ;;  %v3339_v40 = vld [vmem:[%s4610_s1 + $0xa4] ss:$8 sps:$4 sm:$0xff]   ;;  %v3343_v42 = vld [vmem:[%s4610_s1 + $0xa0] ss:$8 sps:$4 sm:$0xff]   ;;  %s4594_s7 = scalar_lea.vmem %s4613_s4, %s3193_s30 }
  0x15   : > { %2269 = vmatpush1.bf16.msra.mxu0 %v3302_v15  ;;  %1179 = vmatprep.subr.bf16.mxu1 %v3303_v16  ;;  %v3341_v41 = vld [vmem:[%s4610_s1 + $0x4a4] ss:$8 sps:$4 sm:$0xff]   ;;  %v3344_v43 = vld [vmem:[%s4610_s1 + $0x4a0] ss:$8 sps:$4 sm:$0xff]   ;;  %s3872_s22 = scalar_lea.vmem %s4609_s0, %s3254_s5  ;;  %v3345_v44 = vld [vmem:[%s4610_s1 + $0xb4] ss:$8 sps:$4 sm:$0xff]  }
  0x16   : > { %2270 = vmatprep.subr.bf16.mxu0 %v3305_v17  ;;  %v3347_v45 = vld [vmem:[%s4610_s1 + $0x4b4] ss:$8 sps:$4 sm:$0xff]   ;;  %v3349_v46 = vld [vmem:[%s4610_s1 + $0xb0] ss:$8 sps:$4 sm:$0xff]   ;;  %v307_v47 = vld [vmem:[%s3872_s22] sm:$0xff] }
  0x17   : > { %v311_v48 = vld [vmem:[%s3872_s22 + $0x20] sm:$0xff]  ;;  %v3350_v49 = vld [vmem:[%s4610_s1 + $0x4b0] ss:$8 sps:$4 sm:$0xff]   ;;  %v3357_v57 = vld [vmem:[%s4610_s1 + $0xd4] ss:$8 sps:$4 sm:$0xff]  }
  0x18   : > { %1180 = vmatpush1.bf16.msra.mxu1 %v3307_v18  ;;  %v3351_v50 = vld [vmem:[%s4610_s1 + $0xc4] ss:$8 sps:$4 sm:$0xff]   ;;  %v2756_v51 = vcombine.high %v307_v47, %v311_v48  ;;  %v3355_v55 = vld [vmem:[%s4610_s1 + $0xc0] ss:$8 sps:$4 sm:$0xff]   ;;  %v3359_v58 = vld [vmem:[%s4610_s1 + $0x4d4] ss:$8 sps:$4 sm:$0xff]   ;;  %v2755_v7 = vcombine.low %v307_v47, %v311_v48 }
  0x19   : > { %2271 = vmatpush1.bf16.msra.mxu0 %v3308_v19  ;;  %1181 = vmatprep.subr.bf16.mxu1 %v3309_v20  ;;  %v3892_v52 = vld [vmem:[%s3872_s22 + $0x40] sm:$0xff]  ;;  %v3361_v59 = vld [vmem:[%s4610_s1 + $0xd0] ss:$8 sps:$4 sm:$0xff]   ;;  %v3369_v1 = vld [vmem:[%s4610_s1 + $0xf4] ss:$8 sps:$4 sm:$0xff]  }
  0x1a   : > { %2272 = vmatprep.subr.bf16.mxu0 %v3311_v21  ;;  %v3353_v53 = vld [vmem:[%s4610_s1 + $0x4c4] ss:$8 sps:$4 sm:$0xff]   ;;  %v3044_v54 = vcombine.high %v311_v48, %v3892_v52  ;;  %1203 = vmatprep.mubr.bf16.mxu1 %v2756_v51  ;;  %v3356_v56 = vld [vmem:[%s4610_s1 + $0x4c0] ss:$8 sps:$4 sm:$0xff]   ;;  %v3362_v60 = vld [vmem:[%s4610_s1 + $0x4d0] ss:$8 sps:$4 sm:$0xff]   ;;  %v3043_v9 = vcombine.low %v311_v48, %v3892_v52 }
  0x1b   : > { %v3363_v61 = vld [vmem:[%s4610_s1 + $0xe4] ss:$8 sps:$4 sm:$0xff]   ;;  %v3367_v63 = vld [vmem:[%s4610_s1 + $0xe0] ss:$8 sps:$4 sm:$0xff]   ;;  %v3371_v2 = vld [vmem:[%s4610_s1 + $0x4f4] ss:$8 sps:$4 sm:$0xff]  }
  0x1c   : > { %1182 = vmatpush1.bf16.msra.mxu1 %v3313_v22  ;;  %2294 = vmatprep.mubr.bf16.mxu0 %v3044_v54  ;;  %v3365_v62 = vld [vmem:[%s4610_s1 + $0x4e4] ss:$8 sps:$4 sm:$0xff]   ;;  %v3368_v0 = vld [vmem:[%s4610_s1 + $0x4e0] ss:$8 sps:$4 sm:$0xff]   ;;  %v3373_v3 = vld [vmem:[%s4610_s1 + $0xf0] ss:$8 sps:$4 sm:$0xff]  }
  0x1d   : > { %2273 = vmatpush1.bf16.msra.mxu0 %v3314_v23  ;;  %1183 = vmatprep.subr.bf16.mxu1 %v3315_v24  ;;  %v3374_v4 = vld [vmem:[%s4610_s1 + $0x4f0] ss:$8 sps:$4 sm:$0xff]   ;;  %v3377_v5 = vld [vmem:[%s4610_s1 + $0x104] ss:$8 sps:$4 sm:$0xff]   ;;  %v3375_v8 = vld [vmem:[%s4610_s1 + $0x100] ss:$8 sps:$4 sm:$0xff]  }
  0x1e   : > { %2274 = vmatprep.subr.bf16.mxu0 %v3317_v25  ;;  %v3380_v6 = vld [vmem:[%s4610_s1 + $0x504] ss:$8 sps:$4 sm:$0xff]   ;;  %v3378_v10 = vld [vmem:[%s4610_s1 + $0x500] ss:$8 sps:$4 sm:$0xff]   ;;  %v3383_v11 = vld [vmem:[%s4610_s1 + $0x114] ss:$8 sps:$4 sm:$0xff]  }
  0x1f   : > { %v3386_v12 = vld [vmem:[%s4610_s1 + $0x514] ss:$8 sps:$4 sm:$0xff]   ;;  %v3381_v13 = vld [vmem:[%s4610_s1 + $0x110] ss:$8 sps:$4 sm:$0xff]   ;;  %v3389_v15 = vld [vmem:[%s4610_s1 + $0x124] ss:$8 sps:$4 sm:$0xff]  }
  0x20   : > { %1184 = vmatpush1.bf16.msra.mxu1 %v3319_v26  ;;  %v3384_v14 = vld [vmem:[%s4610_s1 + $0x510] ss:$8 sps:$4 sm:$0xff]   ;;  %v3392_v16 = vld [vmem:[%s4610_s1 + $0x524] ss:$8 sps:$4 sm:$0xff]   ;;  %v3387_v17 = vld [vmem:[%s4610_s1 + $0x120] ss:$8 sps:$4 sm:$0xff]  }
  0x21   : > { %2275 = vmatpush1.bf16.msra.mxu0 %v3320_v27  ;;  %1185 = vmatprep.subr.bf16.mxu1 %v3321_v28  ;;  %v3390_v18 = vld [vmem:[%s4610_s1 + $0x520] ss:$8 sps:$4 sm:$0xff]   ;;  %v3395_v19 = vld [vmem:[%s4610_s1 + $0x134] ss:$8 sps:$4 sm:$0xff]   ;;  %v3393_v21 = vld [vmem:[%s4610_s1 + $0x130] ss:$8 sps:$4 sm:$0xff]  }
  0x22   : > { %2276 = vmatprep.subr.bf16.mxu0 %v3323_v29  ;;  %v3398_v20 = vld [vmem:[%s4610_s1 + $0x534] ss:$8 sps:$4 sm:$0xff]   ;;  %v3396_v22 = vld [vmem:[%s4610_s1 + $0x530] ss:$8 sps:$4 sm:$0xff]   ;;  %v3401_v23 = vld [vmem:[%s4610_s1 + $0x144] ss:$8 sps:$4 sm:$0xff]  }
  0x23   : > { %v3404_v24 = vld [vmem:[%s4610_s1 + $0x544] ss:$8 sps:$4 sm:$0xff]   ;;  %v3399_v25 = vld [vmem:[%s4610_s1 + $0x140] ss:$8 sps:$4 sm:$0xff]   ;;  %v3407_v27 = vld [vmem:[%s4610_s1 + $0x154] ss:$8 sps:$4 sm:$0xff]  }
  0x24   : > { %1186 = vmatpush1.bf16.msra.mxu1 %v3325_v30  ;;  %v3402_v26 = vld [vmem:[%s4610_s1 + $0x540] ss:$8 sps:$4 sm:$0xff]   ;;  %v3410_v28 = vld [vmem:[%s4610_s1 + $0x554] ss:$8 sps:$4 sm:$0xff]   ;;  %v3417_v48 = vld [vmem:[%s4610_s1 + $0x170] ss:$8 sps:$4 sm:$0xff]  }
  0x25   : > { %2277 = vmatpush1.bf16.msra.mxu0 %v3326_v31  ;;  %1187 = vmatprep.subr.bf16.mxu1 %v3327_v32  ;;  %v319_v29 = vld [vmem:[%s3872_s22 + $0x60] sm:$0xff]  ;;  %v3405_v32 = vld [vmem:[%s4610_s1 + $0x150] ss:$8 sps:$4 sm:$0xff]   ;;  %v3431_v54 = vld [vmem:[%s4610_s1 + $0x194] ss:$8 sps:$4 sm:$0xff]  }
  0x26   : > { %2278 = vmatprep.subr.bf16.mxu0 %v3329_v33  ;;  %v2764_v30 = vcombine.high %v3892_v52, %v319_v29  ;;  %v2911_v31 = vld [vmem:[%s3872_s22 + $0x80] sm:$0xff] }
  0x27   : > { %v3052_v33 = vcombine.high %v319_v29, %v2911_v31  ;;  %v3428_v51 = vld [vmem:[%s4610_s1 + $0x584] ss:$8 sps:$4 sm:$0xff]  }
  0x28   : > { %1188 = vmatpush1.bf16.msra.mxu1 %v3331_v34  ;;  %v2763_v34 = vcombine.low %v3892_v52, %v319_v29  ;;  %v3423_v52 = vld [vmem:[%s4610_s1 + $0x180] ss:$8 sps:$4 sm:$0xff]  }
  0x29   : > { %2279 = vmatpush1.bf16.msra.mxu0 %v3332_v35  ;;  %1189 = vmatprep.subr.bf16.mxu1 %v3333_v36  ;;  %v3051_v35 = vcombine.low %v319_v29, %v2911_v31  ;;  %v3408_v36 = vld [vmem:[%s4610_s1 + $0x550] ss:$8 sps:$4 sm:$0xff]  }
  0x2a   : > { %2280 = vmatprep.subr.bf16.mxu0 %v3335_v37  ;;  %v3413_v37 = vld [vmem:[%s4610_s1 + $0x164] ss:$8 sps:$4 sm:$0xff]   ;;  %v3480_v31 = vld [vmem:[%s4610_s1 + $0x610] ss:$8 sps:$4 sm:$0xff]  }
  0x2c   : > { %1190 = vmatpush1.bf16.msra.mxu1 %v3337_v38  ;;  %v3416_v38 = vld [vmem:[%s4610_s1 + $0x564] ss:$8 sps:$4 sm:$0xff]  }
  0x2d   : > { %2281 = vmatpush1.bf16.msra.mxu0 %v3338_v39  ;;  %1191 = vmatprep.subr.bf16.mxu1 %v3339_v40  ;;  %v3411_v39 = vld [vmem:[%s4610_s1 + $0x160] ss:$8 sps:$4 sm:$0xff]  }
  0x2e   : > { %2282 = vmatprep.subr.bf16.mxu0 %v3341_v41  ;;  %v3414_v40 = vld [vmem:[%s4610_s1 + $0x560] ss:$8 sps:$4 sm:$0xff]  }
  0x2f   : > { %v4030_v41 = vld [vmem:[%s3872_s22 + $0x8] sm:$0xff] }
  0x30   : > { %1192 = vmatpush1.bf16.msra.mxu1 %v3343_v42  ;;  %v4033_v42 = vld [vmem:[%s3872_s22 + $0x28] sm:$0xff] }
  0x31   : > { %2283 = vmatpush1.bf16.msra.mxu0 %v3344_v43  ;;  %1193 = vmatprep.subr.bf16.mxu1 %v3345_v44  ;;  %v3419_v43 = vld [vmem:[%s4610_s1 + $0x174] ss:$8 sps:$4 sm:$0xff]  }
  0x32   : > { %2284 = vmatprep.subr.bf16.mxu0 %v3347_v45  ;;  %v3422_v44 = vld [vmem:[%s4610_s1 + $0x574] ss:$8 sps:$4 sm:$0xff]   ;;  %v2758_v45 = vcombine.high %v4030_v41, %v4033_v42 }
  0x34   : > { %1194 = vmatpush1.bf16.msra.mxu1 %v3349_v46  ;;  %v4044_v46 = vld [vmem:[%s3872_s22 + $0x48] sm:$0xff] }
  0x35   : > { %2285 = vmatpush1.bf16.msra.mxu0 %v3350_v49  ;;  %1195 = vmatprep.subr.bf16.mxu1 %v3351_v50  ;;  %v3046_v47 = vcombine.high %v4033_v42, %v4044_v46  ;;  %v3420_v49 = vld [vmem:[%s4610_s1 + $0x570] ss:$8 sps:$4 sm:$0xff]   ;;  %v3425_v50 = vld [vmem:[%s4610_s1 + $0x184] ss:$8 sps:$4 sm:$0xff]  }
  0x36   : > { %2286 = vmatprep.subr.bf16.mxu0 %v3353_v53  ;;  %v3426_v53 = vld [vmem:[%s4610_s1 + $0x580] ss:$8 sps:$4 sm:$0xff]  }
  0x38   : > { %1196 = vmatpush1.bf16.msra.mxu1 %v3355_v55  ;;  %v3434_v55 = vld [vmem:[%s4610_s1 + $0x594] ss:$8 sps:$4 sm:$0xff]  }
  0x39   : > { %2287 = vmatpush1.bf16.msra.mxu0 %v3356_v56  ;;  %1197 = vmatprep.subr.bf16.mxu1 %v3357_v57  ;;  %v3429_v56 = vld [vmem:[%s4610_s1 + $0x190] ss:$8 sps:$4 sm:$0xff]  }
  0x3a   : > { %2288 = vmatprep.subr.bf16.mxu0 %v3359_v58  ;;  %v3432_v57 = vld [vmem:[%s4610_s1 + $0x590] ss:$8 sps:$4 sm:$0xff]   ;;  %v3437_v58 = vld [vmem:[%s4610_s1 + $0x1a4] ss:$8 sps:$4 sm:$0xff]  }
  0x3c   : > { %1198 = vmatpush1.bf16.msra.mxu1 %v3361_v59  ;;  %v3440_v59 = vld [vmem:[%s4610_s1 + $0x5a4] ss:$8 sps:$4 sm:$0xff]  }
  0x3d   : > { %2289 = vmatpush1.bf16.msra.mxu0 %v3362_v60  ;;  %1199 = vmatprep.subr.bf16.mxu1 %v3363_v61  ;;  %v3435_v60 = vld [vmem:[%s4610_s1 + $0x1a0] ss:$8 sps:$4 sm:$0xff]  }
  0x3e   : > { %2290 = vmatprep.subr.bf16.mxu0 %v3365_v62  ;;  %v3438_v61 = vld [vmem:[%s4610_s1 + $0x5a0] ss:$8 sps:$4 sm:$0xff]   ;;  %v3443_v62 = vld [vmem:[%s4610_s1 + $0x1b4] ss:$8 sps:$4 sm:$0xff]  }
  0x40   : > { %1200 = vmatpush1.bf16.msra.mxu1 %v3367_v63  ;;  %v3446_v63 = vld [vmem:[%s4610_s1 + $0x5b4] ss:$8 sps:$4 sm:$0xff]  }
  0x41   : > { %2291 = vmatpush1.bf16.msra.mxu0 %v3368_v0  ;;  %1201 = vmatprep.subr.bf16.mxu1 %v3369_v1  ;;  %v3441_v0 = vld [vmem:[%s4610_s1 + $0x1b0] ss:$8 sps:$4 sm:$0xff]  }
  0x42   : > { %2292 = vmatprep.subr.bf16.mxu0 %v3371_v2  ;;  %v3444_v1 = vld [vmem:[%s4610_s1 + $0x5b0] ss:$8 sps:$4 sm:$0xff]   ;;  %v3449_v2 = vld [vmem:[%s4610_s1 + $0x1c4] ss:$8 sps:$4 sm:$0xff]  }
  0x44   : > { %1202 = vmatpush1.bf16.msra.mxu1 %v3373_v3  ;;  %v3452_v3 = vld [vmem:[%s4610_s1 + $0x5c4] ss:$8 sps:$4 sm:$0xff]  }
  0x45   : > { %2293 = vmatpush1.bf16.msra.mxu0 %v3374_v4  ;;  %1224 = vmatprep.subr.bf16.mxu1 %v3377_v5  ;;  %v3447_v4 = vld [vmem:[%s4610_s1 + $0x1c0] ss:$8 sps:$4 sm:$0xff]  }
  0x46   : > { %2315 = vmatprep.subr.bf16.mxu0 %v3380_v6  ;;  %v3450_v5 = vld [vmem:[%s4610_s1 + $0x5c0] ss:$8 sps:$4 sm:$0xff]   ;;  %v3455_v6 = vld [vmem:[%s4610_s1 + $0x1d4] ss:$8 sps:$4 sm:$0xff]  }
  0x47   : > { %1204 = vmatmul.mubr.bf16.vlgmr.msra.gmra.mrb[0].mxu1 %v2755_v7  ;;  %v3458_v7 = vld [vmem:[%s4610_s1 + $0x5d4] ss:$8 sps:$4 sm:$0xff]  }
  0x48   : > { %2295 = vmatmul.mubr.bf16.vlgmr.msra.gmra.mrb[0].mxu0 %v3043_v9  ;;  %1225 = vmatpush1.bf16.msra.mxu1 %v3375_v8  ;;  %v3453_v8 = vld [vmem:[%s4610_s1 + $0x1d0] ss:$8 sps:$4 sm:$0xff]  }
  0x49   : > { %2316 = vmatpush1.bf16.msra.mxu0 %v3378_v10  ;;  %1226 = vmatprep.subr.bf16.mxu1 %v3383_v11  ;;  %v3456_v9 = vld [vmem:[%s4610_s1 + $0x5d0] ss:$8 sps:$4 sm:$0xff]   ;;  %v3461_v10 = vld [vmem:[%s4610_s1 + $0x1e4] ss:$8 sps:$4 sm:$0xff]  }
  0x4a   : > { %2317 = vmatprep.subr.bf16.mxu0 %v3386_v12  ;;  %1213 = vmatprep.mubr.bf16.mxu1 %v2764_v30  ;;  %v3464_v11 = vld [vmem:[%s4610_s1 + $0x5e4] ss:$8 sps:$4 sm:$0xff]   ;;  %v3459_v12 = vld [vmem:[%s4610_s1 + $0x1e0] ss:$8 sps:$4 sm:$0xff]   ;;  %v3477_v30 = vld [vmem:[%s4610_s1 + $0x210] ss:$8 sps:$4 sm:$0xff]  }
  0x4b   : > { %2304 = vmatprep.mubr.bf16.mxu0 %v3052_v33  ;;  %v3488_v33 = vld [vmem:[%s4610_s1 + $0x624] ss:$8 sps:$4 sm:$0xff]  }
  0x4c   : > { %1227 = vmatpush1.bf16.msra.mxu1 %v3381_v13  ;;  %v3462_v13 = vld [vmem:[%s4610_s1 + $0x5e0] ss:$8 sps:$4 sm:$0xff]  }
  0x4d   : > { %2318 = vmatpush1.bf16.msra.mxu0 %v3384_v14  ;;  %1228 = vmatprep.subr.bf16.mxu1 %v3389_v15  ;;  %v3467_v14 = vld [vmem:[%s4610_s1 + $0x1f4] ss:$8 sps:$4 sm:$0xff]  }
  0x4e   : > { %2319 = vmatprep.subr.bf16.mxu0 %v3392_v16  ;;  %v3470_v15 = vld [vmem:[%s4610_s1 + $0x5f4] ss:$8 sps:$4 sm:$0xff]   ;;  %v3465_v16 = vld [vmem:[%s4610_s1 + $0x1f0] ss:$8 sps:$4 sm:$0xff]  }
  0x4f   : > { %1214 = vmatmul.mubr.bf16.gmra.mrb[4].mxu1 %v2763_v34  ;;  %v3483_v34 = vld [vmem:[%s4610_s1 + $0x220] ss:$8 sps:$4 sm:$0xff]  }
  0x50   : > { %1229 = vmatpush1.bf16.msra.mxu1 %v3387_v17  ;;  %2305 = vmatmul.mubr.bf16.gmra.mrb[4].mxu0 %v3051_v35  ;;  %v3468_v17 = vld [vmem:[%s4610_s1 + $0x5f0] ss:$8 sps:$4 sm:$0xff]  }
  0x51   : > { %2320 = vmatpush1.bf16.msra.mxu0 %v3390_v18  ;;  %1230 = vmatprep.subr.bf16.mxu1 %v3395_v19  ;;  %v3473_v18 = vld [vmem:[%s4610_s1 + $0x204] ss:$8 sps:$4 sm:$0xff]   ;;  %v4191_v35 = vld [vmem:[%s3872_s22 + $0x10] sm:$0xff] }
  0x52   : > { %2321 = vmatprep.subr.bf16.mxu0 %v3398_v20  ;;  %1256 = vmatprep.mubr.bf16.mxu1 %v2758_v45  ;;  %v3476_v19 = vld [vmem:[%s4610_s1 + $0x604] ss:$8 sps:$4 sm:$0xff]   ;;  %v3489_v45 = vld [vmem:[%s4610_s1 + $0x230] ss:$8 sps:$4 sm:$0xff]  }
  0x53   : > { %2347 = vmatprep.mubr.bf16.mxu0 %v3046_v47  ;;  %v320_v20 = vld [vmem:[%s3872_s22 + $0x68] sm:$0xff] }
  0x54   : > { %1231 = vmatpush1.bf16.msra.mxu1 %v3393_v21  ;;  %v2757_v21 = vcombine.low %v4030_v41, %v4033_v42  ;;  %v3491_v41 = vld [vmem:[%s4610_s1 + $0x234] ss:$8 sps:$4 sm:$0xff]   ;;  %v3497_v47 = vld [vmem:[%s4610_s1 + $0x244] ss:$8 sps:$4 sm:$0xff]  }
  0x55   : > { %2322 = vmatpush1.bf16.msra.mxu0 %v3396_v22  ;;  %1232 = vmatprep.subr.bf16.mxu1 %v3401_v23  ;;  %v3045_v22 = vcombine.low %v4033_v42, %v4044_v46  ;;  %v2912_v23 = vld [vmem:[%s3872_s22 + $0x88] sm:$0xff]  ;;  %v3494_v42 = vld [vmem:[%s4610_s1 + $0x634] ss:$8 sps:$4 sm:$0xff]  }
  0x56   : > { %2323 = vmatprep.subr.bf16.mxu0 %v3404_v24  ;;  %v3471_v24 = vld [vmem:[%s4610_s1 + $0x200] ss:$8 sps:$4 sm:$0xff]   ;;  %v3054_v29 = vcombine.high %v320_v20, %v2912_v23 }
  0x58   : > { %1233 = vmatpush1.bf16.msra.mxu1 %v3399_v25  ;;  %v3474_v25 = vld [vmem:[%s4610_s1 + $0x600] ss:$8 sps:$4 sm:$0xff]  }
  0x59   : > { %2324 = vmatpush1.bf16.msra.mxu0 %v3402_v26  ;;  %1234 = vmatprep.subr.bf16.mxu1 %v3407_v27  ;;  %v3479_v26 = vld [vmem:[%s4610_s1 + $0x214] ss:$8 sps:$4 sm:$0xff]  }
  0x5a   : > { %2325 = vmatprep.subr.bf16.mxu0 %v3410_v28  ;;  %v3482_v27 = vld [vmem:[%s4610_s1 + $0x614] ss:$8 sps:$4 sm:$0xff]   ;;  %v2766_v28 = vcombine.high %v4044_v46, %v320_v20 }
  0x5c   : > { %1235 = vmatpush1.bf16.msra.mxu1 %v3405_v32  ;;  %v3485_v32 = vld [vmem:[%s4610_s1 + $0x224] ss:$8 sps:$4 sm:$0xff]  }
  0x5d   : > { %2326 = vmatpush1.bf16.msra.mxu0 %v3408_v36  ;;  %1236 = vmatprep.subr.bf16.mxu1 %v3413_v37  ;;  %v4194_v36 = vld [vmem:[%s3872_s22 + $0x30] sm:$0xff]  ;;  %v2765_v37 = vcombine.low %v4044_v46, %v320_v20 }
  0x5e   : > { %2327 = vmatprep.subr.bf16.mxu0 %v3416_v38  ;;  %v3053_v38 = vcombine.low %v320_v20, %v2912_v23  ;;  %v3492_v46 = vld [vmem:[%s4610_s1 + $0x630] ss:$8 sps:$4 sm:$0xff]   ;;  %v3554_v20 = vld [vmem:[%s4610_s1 + $0x6d4] ss:$8 sps:$4 sm:$0xff]   ;;  %v3557_v23 = vld [vmem:[%s4610_s1 + $0x2e4] ss:$8 sps:$4 sm:$0xff]  }
  0x60   : > { %1237 = vmatpush1.bf16.msra.mxu1 %v3411_v39  ;;  %v4198_v39 = vld [vmem:[%s3872_s22 + $0x50] sm:$0xff] }
  0x61   : > { %2328 = vmatpush1.bf16.msra.mxu0 %v3414_v40  ;;  %1238 = vmatprep.subr.bf16.mxu1 %v3419_v43  ;;  %v3486_v40 = vld [vmem:[%s4610_s1 + $0x620] ss:$8 sps:$4 sm:$0xff]   ;;  %v2760_v43 = vcombine.high %v4191_v35, %v4194_v36 }
  0x62   : > { %2329 = vmatprep.subr.bf16.mxu0 %v3422_v44  ;;  %v3048_v44 = vcombine.high %v4194_v36, %v4198_v39 }
  0x64   : > { %1239 = vmatpush1.bf16.msra.mxu1 %v3417_v48  ;;  %v3500_v48 = vld [vmem:[%s4610_s1 + $0x644] ss:$8 sps:$4 sm:$0xff]  }
  0x65   : > { %2330 = vmatpush1.bf16.msra.mxu0 %v3420_v49  ;;  %1240 = vmatprep.subr.bf16.mxu1 %v3425_v50  ;;  %v3495_v49 = vld [vmem:[%s4610_s1 + $0x240] ss:$8 sps:$4 sm:$0xff]  }
  0x66   : > { %2331 = vmatprep.subr.bf16.mxu0 %v3428_v51  ;;  %v3498_v50 = vld [vmem:[%s4610_s1 + $0x640] ss:$8 sps:$4 sm:$0xff]   ;;  %v3503_v51 = vld [vmem:[%s4610_s1 + $0x254] ss:$8 sps:$4 sm:$0xff]  }
  0x68   : > { %1241 = vmatpush1.bf16.msra.mxu1 %v3423_v52  ;;  %v3506_v52 = vld [vmem:[%s4610_s1 + $0x654] ss:$8 sps:$4 sm:$0xff]  }
  0x69   : > { %2332 = vmatpush1.bf16.msra.mxu0 %v3426_v53  ;;  %1242 = vmatprep.subr.bf16.mxu1 %v3431_v54  ;;  %v3501_v53 = vld [vmem:[%s4610_s1 + $0x250] ss:$8 sps:$4 sm:$0xff]  }
  0x6a   : > { %2333 = vmatprep.subr.bf16.mxu0 %v3434_v55  ;;  %v3504_v54 = vld [vmem:[%s4610_s1 + $0x650] ss:$8 sps:$4 sm:$0xff]   ;;  %v3509_v55 = vld [vmem:[%s4610_s1 + $0x264] ss:$8 sps:$4 sm:$0xff]  }
  0x6c   : > { %1243 = vmatpush1.bf16.msra.mxu1 %v3429_v56  ;;  %v3512_v56 = vld [vmem:[%s4610_s1 + $0x664] ss:$8 sps:$4 sm:$0xff]  }
  0x6d   : > { %2334 = vmatpush1.bf16.msra.mxu0 %v3432_v57  ;;  %1244 = vmatprep.subr.bf16.mxu1 %v3437_v58  ;;  %v3507_v57 = vld [vmem:[%s4610_s1 + $0x260] ss:$8 sps:$4 sm:$0xff]  }
  0x6e   : > { %2335 = vmatprep.subr.bf16.mxu0 %v3440_v59  ;;  %v3510_v58 = vld [vmem:[%s4610_s1 + $0x660] ss:$8 sps:$4 sm:$0xff]   ;;  %v3515_v59 = vld [vmem:[%s4610_s1 + $0x274] ss:$8 sps:$4 sm:$0xff]  }
  0x70   : > { %1245 = vmatpush1.bf16.msra.mxu1 %v3435_v60  ;;  %v3518_v60 = vld [vmem:[%s4610_s1 + $0x674] ss:$8 sps:$4 sm:$0xff]  }
  0x71   : > { %2336 = vmatpush1.bf16.msra.mxu0 %v3438_v61  ;;  %1246 = vmatprep.subr.bf16.mxu1 %v3443_v62  ;;  %v3513_v61 = vld [vmem:[%s4610_s1 + $0x270] ss:$8 sps:$4 sm:$0xff]  }
  0x72   : > { %2337 = vmatprep.subr.bf16.mxu0 %v3446_v63  ;;  %v3516_v62 = vld [vmem:[%s4610_s1 + $0x670] ss:$8 sps:$4 sm:$0xff]   ;;  %v3521_v63 = vld [vmem:[%s4610_s1 + $0x284] ss:$8 sps:$4 sm:$0xff]  }
  0x74   : > { %1247 = vmatpush1.bf16.msra.mxu1 %v3441_v0  ;;  %v3524_v0 = vld [vmem:[%s4610_s1 + $0x684] ss:$8 sps:$4 sm:$0xff]  }
  0x75   : > { %2338 = vmatpush1.bf16.msra.mxu0 %v3444_v1  ;;  %1248 = vmatprep.subr.bf16.mxu1 %v3449_v2  ;;  %v3519_v1 = vld [vmem:[%s4610_s1 + $0x280] ss:$8 sps:$4 sm:$0xff]  }
  0x76   : > { %2339 = vmatprep.subr.bf16.mxu0 %v3452_v3  ;;  %v3522_v2 = vld [vmem:[%s4610_s1 + $0x680] ss:$8 sps:$4 sm:$0xff]   ;;  %v3527_v3 = vld [vmem:[%s4610_s1 + $0x294] ss:$8 sps:$4 sm:$0xff]  }
  0x78   : > { %1249 = vmatpush1.bf16.msra.mxu1 %v3447_v4  ;;  %v3530_v4 = vld [vmem:[%s4610_s1 + $0x694] ss:$8 sps:$4 sm:$0xff]  }
  0x79   : > { %2340 = vmatpush1.bf16.msra.mxu0 %v3450_v5  ;;  %1250 = vmatprep.subr.bf16.mxu1 %v3455_v6  ;;  %v3525_v5 = vld [vmem:[%s4610_s1 + $0x290] ss:$8 sps:$4 sm:$0xff]  }
  0x7a   : > { %2341 = vmatprep.subr.bf16.mxu0 %v3458_v7  ;;  %v3528_v6 = vld [vmem:[%s4610_s1 + $0x690] ss:$8 sps:$4 sm:$0xff]   ;;  %v3533_v7 = vld [vmem:[%s4610_s1 + $0x2a4] ss:$8 sps:$4 sm:$0xff]  }
  0x7c   : > { %1251 = vmatpush1.bf16.msra.mxu1 %v3453_v8  ;;  %v3536_v8 = vld [vmem:[%s4610_s1 + $0x6a4] ss:$8 sps:$4 sm:$0xff]  }
  0x7d   : > { %2342 = vmatpush1.bf16.msra.mxu0 %v3456_v9  ;;  %1252 = vmatprep.subr.bf16.mxu1 %v3461_v10  ;;  %v3531_v9 = vld [vmem:[%s4610_s1 + $0x2a0] ss:$8 sps:$4 sm:$0xff]  }
  0x7e   : > { %2343 = vmatprep.subr.bf16.mxu0 %v3464_v11  ;;  %v3534_v10 = vld [vmem:[%s4610_s1 + $0x6a0] ss:$8 sps:$4 sm:$0xff]   ;;  %v3539_v11 = vld [vmem:[%s4610_s1 + $0x2b4] ss:$8 sps:$4 sm:$0xff]  }
  0x80   : > { %1253 = vmatpush1.bf16.msra.mxu1 %v3459_v12  ;;  %v3542_v12 = vld [vmem:[%s4610_s1 + $0x6b4] ss:$8 sps:$4 sm:$0xff]  }
  0x81   : > { %2344 = vmatpush1.bf16.msra.mxu0 %v3462_v13  ;;  %1254 = vmatprep.subr.bf16.mxu1 %v3467_v14  ;;  %v3537_v13 = vld [vmem:[%s4610_s1 + $0x2b0] ss:$8 sps:$4 sm:$0xff]  }
  0x82   : > { %2345 = vmatprep.subr.bf16.mxu0 %v3470_v15  ;;  %v3540_v14 = vld [vmem:[%s4610_s1 + $0x6b0] ss:$8 sps:$4 sm:$0xff]   ;;  %v3545_v15 = vld [vmem:[%s4610_s1 + $0x2c4] ss:$8 sps:$4 sm:$0xff]  }
  0x84   : > { %1255 = vmatpush1.bf16.msra.mxu1 %v3465_v16  ;;  %v3548_v16 = vld [vmem:[%s4610_s1 + $0x6c4] ss:$8 sps:$4 sm:$0xff]  }
  0x85   : > { %2346 = vmatpush1.bf16.msra.mxu0 %v3468_v17  ;;  %1277 = vmatprep.subr.bf16.mxu1 %v3473_v18  ;;  %v3543_v17 = vld [vmem:[%s4610_s1 + $0x2c0] ss:$8 sps:$4 sm:$0xff]  }
  0x86   : > { %2368 = vmatprep.subr.bf16.mxu0 %v3476_v19  ;;  %v3546_v18 = vld [vmem:[%s4610_s1 + $0x6c0] ss:$8 sps:$4 sm:$0xff]   ;;  %v3551_v19 = vld [vmem:[%s4610_s1 + $0x2d4] ss:$8 sps:$4 sm:$0xff]  }
  0x87   : > { %1257 = vmatmul.mubr.bf16.vlgmr.msra.gmra.mrb[0].mxu1 %v2757_v21  ;;  %v3549_v21 = vld [vmem:[%s4610_s1 + $0x2d0] ss:$8 sps:$4 sm:$0xff]  }
  0x88   : > { %2348 = vmatmul.mubr.bf16.vlgmr.msra.gmra.mrb[0].mxu0 %v3045_v22  ;;  %1278 = vmatpush1.bf16.msra.mxu1 %v3471_v24  ;;  %v3552_v22 = vld [vmem:[%s4610_s1 + $0x6d0] ss:$8 sps:$4 sm:$0xff]   ;;  %v3560_v24 = vld [vmem:[%s4610_s1 + $0x6e4] ss:$8 sps:$4 sm:$0xff]  }
  0x89   : > { %2369 = vmatpush1.bf16.msra.mxu0 %v3474_v25  ;;  %1279 = vmatprep.subr.bf16.mxu1 %v3479_v26  ;;  %v3555_v25 = vld [vmem:[%s4610_s1 + $0x2e0] ss:$8 sps:$4 sm:$0xff]  }
  0x8a   : > { %2370 = vmatprep.subr.bf16.mxu0 %v3482_v27  ;;  %1266 = vmatprep.mubr.bf16.mxu1 %v2766_v28  ;;  %v3558_v26 = vld [vmem:[%s4610_s1 + $0x6e0] ss:$8 sps:$4 sm:$0xff]   ;;  %v3563_v27 = vld [vmem:[%s4610_s1 + $0x2f4] ss:$8 sps:$4 sm:$0xff]  }
  0x8b   : > { %2357 = vmatprep.mubr.bf16.mxu0 %v3054_v29  ;;  %v3566_v28 = vld [vmem:[%s4610_s1 + $0x6f4] ss:$8 sps:$4 sm:$0xff]   ;;  %v3561_v29 = vld [vmem:[%s4610_s1 + $0x2f0] ss:$8 sps:$4 sm:$0xff]  }
  0x8c   : > { %1280 = vmatpush1.bf16.msra.mxu1 %v3477_v30  ;;  %v3564_v30 = vld [vmem:[%s4610_s1 + $0x6f0] ss:$8 sps:$4 sm:$0xff]  }
  0x8d   : > { %2371 = vmatpush1.bf16.msra.mxu0 %v3480_v31  ;;  %1281 = vmatprep.subr.bf16.mxu1 %v3485_v32  ;;  %v3569_v31 = vld [vmem:[%s4610_s1 + $0x304] ss:$8 sps:$4 sm:$0xff]  }
  0x8e   : > { %2372 = vmatprep.subr.bf16.mxu0 %v3488_v33  ;;  %v3572_v32 = vld [vmem:[%s4610_s1 + $0x704] ss:$8 sps:$4 sm:$0xff]   ;;  %v2759_v33 = vcombine.low %v4191_v35, %v4194_v36  ;;  %v3575_v35 = vld [vmem:[%s4610_s1 + $0x314] ss:$8 sps:$4 sm:$0xff]  }
  0x8f   : > { %1267 = vmatmul.mubr.bf16.gmra.mrb[4].mxu1 %v2765_v37  ;;  %v321_v37 = vld [vmem:[%s3872_s22 + $0x70] sm:$0xff] }
  0x90   : > { %2358 = vmatmul.mubr.bf16.gmra.mrb[4].mxu0 %v3053_v38  ;;  %1282 = vmatpush1.bf16.msra.mxu1 %v3483_v34  ;;  %v3047_v34 = vcombine.low %v4194_v36, %v4198_v39  ;;  %v2913_v38 = vld [vmem:[%s3872_s22 + $0x90] sm:$0xff] }
  0x91   : > { %2373 = vmatpush1.bf16.msra.mxu0 %v3486_v40  ;;  %1283 = vmatprep.subr.bf16.mxu1 %v3491_v41  ;;  %v3567_v40 = vld [vmem:[%s4610_s1 + $0x300] ss:$8 sps:$4 sm:$0xff]   ;;  %v3578_v36 = vld [vmem:[%s4610_s1 + $0x714] ss:$8 sps:$4 sm:$0xff]  }
  0x92   : > { %2374 = vmatprep.subr.bf16.mxu0 %v3494_v42  ;;  %1309 = vmatprep.mubr.bf16.mxu1 %v2760_v43  ;;  %v3570_v41 = vld [vmem:[%s4610_s1 + $0x700] ss:$8 sps:$4 sm:$0xff]   ;;  %v2768_v42 = vcombine.high %v4198_v39, %v321_v37  ;;  %v3056_v43 = vcombine.high %v321_v37, %v2913_v38 }
  0x93   : > { %2400 = vmatprep.mubr.bf16.mxu0 %v3048_v44  ;;  %v3573_v44 = vld [vmem:[%s4610_s1 + $0x310] ss:$8 sps:$4 sm:$0xff]  }
  0x94   : > { %1284 = vmatpush1.bf16.msra.mxu1 %v3489_v45  ;;  %v3576_v45 = vld [vmem:[%s4610_s1 + $0x710] ss:$8 sps:$4 sm:$0xff]  }
  0x95   : > { %2375 = vmatpush1.bf16.msra.mxu0 %v3492_v46  ;;  %1285 = vmatprep.subr.bf16.mxu1 %v3497_v47  ;;  %v3581_v46 = vld [vmem:[%s4610_s1 + $0x324] ss:$8 sps:$4 sm:$0xff]  }
  0x96   : > { %2376 = vmatprep.subr.bf16.mxu0 %v3500_v48  ;;  %v3584_v47 = vld [vmem:[%s4610_s1 + $0x724] ss:$8 sps:$4 sm:$0xff]   ;;  %v2767_v48 = vcombine.low %v4198_v39, %v321_v37  ;;  %v3587_v39 = vld [vmem:[%s4610_s1 + $0x334] ss:$8 sps:$4 sm:$0xff]  }
  0x98   : > { %1286 = vmatpush1.bf16.msra.mxu1 %v3495_v49  ;;  %v3055_v49 = vcombine.low %v321_v37, %v2913_v38  ;;  %v3648_v37 = vld [vmem:[%s4610_s1 + $0x7d0] ss:$8 sps:$4 sm:$0xff]   ;;  %v3653_v38 = vld [vmem:[%s4610_s1 + $0x3e4] ss:$8 sps:$4 sm:$0xff]  }
  0x99   : > { %2377 = vmatpush1.bf16.msra.mxu0 %v3498_v50  ;;  %1287 = vmatprep.subr.bf16.mxu1 %v3503_v51  ;;  %v4402_v50 = vld [vmem:[%s3872_s22 + $0x18] sm:$0xff] }
  0x9a   : > { %2378 = vmatprep.subr.bf16.mxu0 %v3506_v52  ;;  %v4405_v51 = vld [vmem:[%s3872_s22 + $0x38] sm:$0xff] }
  0x9b   : > { %v4408_v52 = vld [vmem:[%s3872_s22 + $0x58] sm:$0xff] }
  0x9c   : > { %1288 = vmatpush1.bf16.msra.mxu1 %v3501_v53  ;;  %v3579_v53 = vld [vmem:[%s4610_s1 + $0x320] ss:$8 sps:$4 sm:$0xff]  }
  0x9d   : > { %2379 = vmatpush1.bf16.msra.mxu0 %v3504_v54  ;;  %1289 = vmatprep.subr.bf16.mxu1 %v3509_v55  ;;  %v3582_v54 = vld [vmem:[%s4610_s1 + $0x720] ss:$8 sps:$4 sm:$0xff]   ;;  %v3590_v55 = vld [vmem:[%s4610_s1 + $0x734] ss:$8 sps:$4 sm:$0xff]  }
  0x9e   : > { %2380 = vmatprep.subr.bf16.mxu0 %v3512_v56  ;;  %v2762_v56 = vcombine.high %v4402_v50, %v4405_v51 }
  0xa0   : > { %1290 = vmatpush1.bf16.msra.mxu1 %v3507_v57  ;;  %v3050_v57 = vcombine.high %v4405_v51, %v4408_v52 }
  0xa1   : > { %2381 = vmatpush1.bf16.msra.mxu0 %v3510_v58  ;;  %1291 = vmatprep.subr.bf16.mxu1 %v3515_v59  ;;  %v3585_v58 = vld [vmem:[%s4610_s1 + $0x330] ss:$8 sps:$4 sm:$0xff]  }
  0xa2   : > { %2382 = vmatprep.subr.bf16.mxu0 %v3518_v60  ;;  %v3588_v59 = vld [vmem:[%s4610_s1 + $0x730] ss:$8 sps:$4 sm:$0xff]   ;;  %v3593_v60 = vld [vmem:[%s4610_s1 + $0x344] ss:$8 sps:$4 sm:$0xff]  }
  0xa4   : > { %1292 = vmatpush1.bf16.msra.mxu1 %v3513_v61  ;;  %v3596_v61 = vld [vmem:[%s4610_s1 + $0x744] ss:$8 sps:$4 sm:$0xff]  }
  0xa5   : > { %2383 = vmatpush1.bf16.msra.mxu0 %v3516_v62  ;;  %1293 = vmatprep.subr.bf16.mxu1 %v3521_v63  ;;  %v3591_v62 = vld [vmem:[%s4610_s1 + $0x340] ss:$8 sps:$4 sm:$0xff]  }
  0xa6   : > { %2384 = vmatprep.subr.bf16.mxu0 %v3524_v0  ;;  %v3594_v63 = vld [vmem:[%s4610_s1 + $0x740] ss:$8 sps:$4 sm:$0xff]   ;;  %v3599_v0 = vld [vmem:[%s4610_s1 + $0x354] ss:$8 sps:$4 sm:$0xff]  }
  0xa8   : > { %1294 = vmatpush1.bf16.msra.mxu1 %v3519_v1  ;;  %v3602_v1 = vld [vmem:[%s4610_s1 + $0x754] ss:$8 sps:$4 sm:$0xff]  }
  0xa9   : > { %2385 = vmatpush1.bf16.msra.mxu0 %v3522_v2  ;;  %1295 = vmatprep.subr.bf16.mxu1 %v3527_v3  ;;  %v3597_v2 = vld [vmem:[%s4610_s1 + $0x350] ss:$8 sps:$4 sm:$0xff]  }
  0xaa   : > { %2386 = vmatprep.subr.bf16.mxu0 %v3530_v4  ;;  %v3600_v3 = vld [vmem:[%s4610_s1 + $0x750] ss:$8 sps:$4 sm:$0xff]   ;;  %v3605_v4 = vld [vmem:[%s4610_s1 + $0x364] ss:$8 sps:$4 sm:$0xff]  }
  0xac   : > { %1296 = vmatpush1.bf16.msra.mxu1 %v3525_v5  ;;  %v3608_v5 = vld [vmem:[%s4610_s1 + $0x764] ss:$8 sps:$4 sm:$0xff]  }
  0xad   : > { %2387 = vmatpush1.bf16.msra.mxu0 %v3528_v6  ;;  %1297 = vmatprep.subr.bf16.mxu1 %v3533_v7  ;;  %v3603_v6 = vld [vmem:[%s4610_s1 + $0x360] ss:$8 sps:$4 sm:$0xff]  }
  0xae   : > { %2388 = vmatprep.subr.bf16.mxu0 %v3536_v8  ;;  %v3606_v7 = vld [vmem:[%s4610_s1 + $0x760] ss:$8 sps:$4 sm:$0xff]   ;;  %v3611_v8 = vld [vmem:[%s4610_s1 + $0x374] ss:$8 sps:$4 sm:$0xff]  }
  0xb0   : > { %1298 = vmatpush1.bf16.msra.mxu1 %v3531_v9  ;;  %v3614_v9 = vld [vmem:[%s4610_s1 + $0x774] ss:$8 sps:$4 sm:$0xff]  }
  0xb1   : > { %2389 = vmatpush1.bf16.msra.mxu0 %v3534_v10  ;;  %1299 = vmatprep.subr.bf16.mxu1 %v3539_v11  ;;  %v3609_v10 = vld [vmem:[%s4610_s1 + $0x370] ss:$8 sps:$4 sm:$0xff]  }
  0xb2   : > { %2390 = vmatprep.subr.bf16.mxu0 %v3542_v12  ;;  %v3612_v11 = vld [vmem:[%s4610_s1 + $0x770] ss:$8 sps:$4 sm:$0xff]   ;;  %v3617_v12 = vld [vmem:[%s4610_s1 + $0x384] ss:$8 sps:$4 sm:$0xff]  }
  0xb4   : > { %1300 = vmatpush1.bf16.msra.mxu1 %v3537_v13  ;;  %v3620_v13 = vld [vmem:[%s4610_s1 + $0x784] ss:$8 sps:$4 sm:$0xff]  }
  0xb5   : > { %2391 = vmatpush1.bf16.msra.mxu0 %v3540_v14  ;;  %1301 = vmatprep.subr.bf16.mxu1 %v3545_v15  ;;  %v3615_v14 = vld [vmem:[%s4610_s1 + $0x380] ss:$8 sps:$4 sm:$0xff]  }
  0xb6   : > { %2392 = vmatprep.subr.bf16.mxu0 %v3548_v16  ;;  %v3618_v15 = vld [vmem:[%s4610_s1 + $0x780] ss:$8 sps:$4 sm:$0xff]   ;;  %v3623_v16 = vld [vmem:[%s4610_s1 + $0x394] ss:$8 sps:$4 sm:$0xff]  }
  0xb8   : > { %1302 = vmatpush1.bf16.msra.mxu1 %v3543_v17  ;;  %v3626_v17 = vld [vmem:[%s4610_s1 + $0x794] ss:$8 sps:$4 sm:$0xff]  }
  0xb9   : > { %2393 = vmatpush1.bf16.msra.mxu0 %v3546_v18  ;;  %1303 = vmatprep.subr.bf16.mxu1 %v3551_v19  ;;  %v3621_v18 = vld [vmem:[%s4610_s1 + $0x390] ss:$8 sps:$4 sm:$0xff]  }
  0xba   : > { %2394 = vmatprep.subr.bf16.mxu0 %v3554_v20  ;;  %v3624_v19 = vld [vmem:[%s4610_s1 + $0x790] ss:$8 sps:$4 sm:$0xff]   ;;  %v3629_v20 = vld [vmem:[%s4610_s1 + $0x3a4] ss:$8 sps:$4 sm:$0xff]  }
  0xbc   : > { %1304 = vmatpush1.bf16.msra.mxu1 %v3549_v21  ;;  %v3632_v21 = vld [vmem:[%s4610_s1 + $0x7a4] ss:$8 sps:$4 sm:$0xff]  }
  0xbd   : > { %2395 = vmatpush1.bf16.msra.mxu0 %v3552_v22  ;;  %1305 = vmatprep.subr.bf16.mxu1 %v3557_v23  ;;  %v3627_v22 = vld [vmem:[%s4610_s1 + $0x3a0] ss:$8 sps:$4 sm:$0xff]  }
  0xbe   : > { %2396 = vmatprep.subr.bf16.mxu0 %v3560_v24  ;;  %v3630_v23 = vld [vmem:[%s4610_s1 + $0x7a0] ss:$8 sps:$4 sm:$0xff]   ;;  %v3635_v24 = vld [vmem:[%s4610_s1 + $0x3b4] ss:$8 sps:$4 sm:$0xff]  }
  0xc0   : > { %1306 = vmatpush1.bf16.msra.mxu1 %v3555_v25  ;;  %v3638_v25 = vld [vmem:[%s4610_s1 + $0x7b4] ss:$8 sps:$4 sm:$0xff]  }
  0xc1   : > { %2397 = vmatpush1.bf16.msra.mxu0 %v3558_v26  ;;  %1307 = vmatprep.subr.bf16.mxu1 %v3563_v27  ;;  %v3633_v26 = vld [vmem:[%s4610_s1 + $0x3b0] ss:$8 sps:$4 sm:$0xff]  }
  0xc2   : > { %2398 = vmatprep.subr.bf16.mxu0 %v3566_v28  ;;  %v3636_v27 = vld [vmem:[%s4610_s1 + $0x7b0] ss:$8 sps:$4 sm:$0xff]   ;;  %v3641_v28 = vld [vmem:[%s4610_s1 + $0x3c4] ss:$8 sps:$4 sm:$0xff]  }
  0xc4   : > { %1308 = vmatpush1.bf16.msra.mxu1 %v3561_v29  ;;  %v3644_v29 = vld [vmem:[%s4610_s1 + $0x7c4] ss:$8 sps:$4 sm:$0xff]  }
  0xc5   : > { %2399 = vmatpush1.bf16.msra.mxu0 %v3564_v30  ;;  %1330 = vmatprep.subr.bf16.mxu1 %v3569_v31  ;;  %v3639_v30 = vld [vmem:[%s4610_s1 + $0x3c0] ss:$8 sps:$4 sm:$0xff]  }
  0xc6   : > { %2421 = vmatprep.subr.bf16.mxu0 %v3572_v32  ;;  %v3642_v31 = vld [vmem:[%s4610_s1 + $0x7c0] ss:$8 sps:$4 sm:$0xff]   ;;  %v3647_v32 = vld [vmem:[%s4610_s1 + $0x3d4] ss:$8 sps:$4 sm:$0xff]  }
  0xc7   : > { %1310 = vmatmul.mubr.bf16.vlgmr.msra.gmra.mrb[0].mxu1 %v2759_v33  ;;  %v3650_v33 = vld [vmem:[%s4610_s1 + $0x7d4] ss:$8 sps:$4 sm:$0xff]  }
  0xc8   : > { %2401 = vmatmul.mubr.bf16.vlgmr.msra.gmra.mrb[0].mxu0 %v3047_v34  ;;  %1331 = vmatpush1.bf16.msra.mxu1 %v3567_v40  ;;  %v3645_v34 = vld [vmem:[%s4610_s1 + $0x3d0] ss:$8 sps:$4 sm:$0xff]   ;;  %v3656_v40 = vld [vmem:[%s4610_s1 + $0x7e4] ss:$8 sps:$4 sm:$0xff]  }
  0xc9   : > { %2422 = vmatpush1.bf16.msra.mxu0 %v3570_v41  ;;  %1332 = vmatprep.subr.bf16.mxu1 %v3575_v35  ;;  %v3651_v41 = vld [vmem:[%s4610_s1 + $0x3e0] ss:$8 sps:$4 sm:$0xff]  }
  0xca   : > { %2423 = vmatprep.subr.bf16.mxu0 %v3578_v36  ;;  %1319 = vmatprep.mubr.bf16.mxu1 %v2768_v42  ;;  %v3654_v35 = vld [vmem:[%s4610_s1 + $0x7e0] ss:$8 sps:$4 sm:$0xff]   ;;  %v3659_v36 = vld [vmem:[%s4610_s1 + $0x3f4] ss:$8 sps:$4 sm:$0xff]  }
  0xcb   : > { %2410 = vmatprep.mubr.bf16.mxu0 %v3056_v43  ;;  %v3662_v42 = vld [vmem:[%s4610_s1 + $0x7f4] ss:$8 sps:$4 sm:$0xff]   ;;  %v3657_v43 = vld [vmem:[%s4610_s1 + $0x3f0] ss:$8 sps:$4 sm:$0xff]  }
  0xcc   : > { %1333 = vmatpush1.bf16.msra.mxu1 %v3573_v44  ;;  %v3660_v44 = vld [vmem:[%s4610_s1 + $0x7f0] ss:$8 sps:$4 sm:$0xff]  }
  0xcd   : > { %2424 = vmatpush1.bf16.msra.mxu0 %v3576_v45  ;;  %1334 = vmatprep.subr.bf16.mxu1 %v3581_v46  ;;  %v322_v45 = vld [vmem:[%s3872_s22 + $0x78] sm:$0xff] }
  0xce   : > { %2425 = vmatprep.subr.bf16.mxu0 %v3584_v47  ;;  %v2914_v46 = vld [vmem:[%s3872_s22 + $0x98] sm:$0xff]  ;;  %v2761_v47 = vcombine.low %v4402_v50, %v4405_v51 }
  0xcf   : > { %1320 = vmatmul.mubr.bf16.gmra.mrb[4].mxu1 %v2767_v48  ;;  %v3049_v48 = vcombine.low %v4405_v51, %v4408_v52  ;;  %v2506_v51 = vld [vmem:[%s4611_s2] sm:$0x3] }
  0xd0   : > { %2411 = vmatmul.mubr.bf16.gmra.mrb[4].mxu0 %v3055_v49  ;;  %1335 = vmatpush1.bf16.msra.mxu1 %v3579_v53  ;;  %v2770_v49 = vcombine.high %v4408_v52, %v322_v45  ;;  %v3058_v53 = vcombine.high %v322_v45, %v2914_v46 }
  0xd1   : > { %2426 = vmatpush1.bf16.msra.mxu0 %v3582_v54  ;;  %1336 = vmatprep.subr.bf16.mxu1 %v3587_v39  ;;  %v2769_v54 = vcombine.low %v4408_v52, %v322_v45  ;;  %v3057_v39 = vcombine.low %v322_v45, %v2914_v46 }
  0xd2   : > { %2427 = vmatprep.subr.bf16.mxu0 %v3590_v55  ;;  %1362 = vmatprep.mubr.bf16.mxu1 %v2762_v56  ;;  %v2508_v55 = vlaneseq }
  0xd3   : > { %2453 = vmatprep.mubr.bf16.mxu0 %v3050_v57 }
  0xd4   : > { %1337 = vmatpush1.bf16.msra.mxu1 %v3585_v58  ;;  %v2509_v56 = vshrl.u32 %v2508_v55, 7  ;;  %v2526_v58 = vld [vmem:[%s4612_s3] sm:$0x3] }
  0xd5   : > { %2428 = vmatpush1.bf16.msra.mxu0 %v3588_v59  ;;  %1338 = vmatprep.subr.bf16.mxu1 %v3593_v60 }
  0xd6   : > { %2429 = vmatprep.subr.bf16.mxu0 %v3596_v61  ;;  %v2510_v50 = vsub.s32 0, %v2509_v56  ;;  %v2514_v57 = vsub.s32 1, %v2509_v56 }
  0xd8   : > { %1339 = vmatpush1.bf16.msra.mxu1 %v3591_v62  ;;  %v2511_v59 = vrot.slane %v2506_v51, %v2510_v50  ;;  %v2515_v62 = vrot.slane %v2506_v51, %v2514_v57 }
  0xd9   : > { %2430 = vmatpush1.bf16.msra.mxu0 %v3594_v63  ;;  %1340 = vmatprep.subr.bf16.mxu1 %v3599_v0  ;;  %v2531_v63 = vrot.slane %v2526_v58, %v2510_v50 }
  0xda   : > { %2431 = vmatprep.subr.bf16.mxu0 %v3602_v1 }
  0xdc   : > { %1341 = vmatpush1.bf16.msra.mxu1 %v3597_v2 }
  0xdd   : > { %2432 = vmatpush1.bf16.msra.mxu0 %v3600_v3  ;;  %1342 = vmatprep.subr.bf16.mxu1 %v3605_v4  ;;  %v2535_v3 = vrot.slane %v2526_v58, %v2514_v57 }
  0xde   : > { %2433 = vmatprep.subr.bf16.mxu0 %v3608_v5 }
  0xe0   : > { %1343 = vmatpush1.bf16.msra.mxu1 %v3603_v6 }
  0xe1   : > { %2434 = vmatpush1.bf16.msra.mxu0 %v3606_v7  ;;  %1344 = vmatprep.subr.bf16.mxu1 %v3611_v8 }
  0xe2   : > { %2435 = vmatprep.subr.bf16.mxu0 %v3614_v9 }
  0xe4   : > { %1345 = vmatpush1.bf16.msra.mxu1 %v3609_v10 }
  0xe5   : > { %2436 = vmatpush1.bf16.msra.mxu0 %v3612_v11  ;;  %1346 = vmatprep.subr.bf16.mxu1 %v3617_v12 }
  0xe6   : > { %2437 = vmatprep.subr.bf16.mxu0 %v3620_v13 }
  0xe8   : > { %1347 = vmatpush1.bf16.msra.mxu1 %v3615_v14 }
  0xe9   : > { %2438 = vmatpush1.bf16.msra.mxu0 %v3618_v15  ;;  %1348 = vmatprep.subr.bf16.mxu1 %v3623_v16 }
  0xea   : > { %2439 = vmatprep.subr.bf16.mxu0 %v3626_v17 }
  0xec   : > { %1349 = vmatpush1.bf16.msra.mxu1 %v3621_v18 }
  0xed   : > { %2440 = vmatpush1.bf16.msra.mxu0 %v3624_v19  ;;  %1350 = vmatprep.subr.bf16.mxu1 %v3629_v20 }
  0xee   : > { %2441 = vmatprep.subr.bf16.mxu0 %v3632_v21 }
  0xf0   : > { %1351 = vmatpush1.bf16.msra.mxu1 %v3627_v22 }
  0xf1   : > { %2442 = vmatpush1.bf16.msra.mxu0 %v3630_v23  ;;  %1352 = vmatprep.subr.bf16.mxu1 %v3635_v24 }
  0xf2   : > { %2443 = vmatprep.subr.bf16.mxu0 %v3638_v25 }
  0xf4   : > { %1353 = vmatpush1.bf16.msra.mxu1 %v3633_v26 }
  0xf5   : > { %2444 = vmatpush1.bf16.msra.mxu0 %v3636_v27  ;;  %1354 = vmatprep.subr.bf16.mxu1 %v3641_v28 }
  0xf6   : > { %2445 = vmatprep.subr.bf16.mxu0 %v3644_v29 }
  0xf8   : > { %1355 = vmatpush1.bf16.msra.mxu1 %v3639_v30 }
  0xf9   : > { %2446 = vmatpush1.bf16.msra.mxu0 %v3642_v31  ;;  %1356 = vmatprep.subr.bf16.mxu1 %v3647_v32 }
  0xfa   : > { %2447 = vmatprep.subr.bf16.mxu0 %v3650_v33 }
  0xfc   : > { %1357 = vmatpush1.bf16.msra.mxu1 %v3645_v34 }
  0xfd   : > { %2448 = vmatpush1.bf16.msra.mxu0 %v3648_v37  ;;  %1358 = vmatprep.subr.bf16.mxu1 %v3653_v38 }
  0xfe   : > { %2449 = vmatprep.subr.bf16.mxu0 %v3656_v40 }
 0x100   : > { %1359 = vmatpush1.bf16.msra.mxu1 %v3651_v41 }
 0x101   : > { %2450 = vmatpush1.bf16.msra.mxu0 %v3654_v35  ;;  %1360 = vmatprep.subr.bf16.mxu1 %v3659_v36 }
 0x102   : > { %2451 = vmatprep.subr.bf16.mxu0 %v3662_v42 }
 0x104   : > { %1361 = vmatpush1.bf16.msra.mxu1 %v3657_v43 }
 0x105   : > { %2452 = vmatpush1.bf16.msra.mxu0 %v3660_v44 }
 0x107   : > { %1363 = vmatmul.mubr.bf16.vlgmr.msra.gmra.mrb[0].mxu1 %v2761_v47 }
 0x108   : > { %2454 = vmatmul.mubr.bf16.vlgmr.msra.gmra.mrb[0].mxu0 %v3049_v48  ;;  %1372 = vmatprep.mubr.bf16.mxu1 %v2770_v49 }
 0x109   : > { %2463 = vmatprep.mubr.bf16.mxu0 %v3058_v53 }
 0x10f   : > { %1373 = vmatmul.mubr.bf16.gmra.mrb[4].mxu1 %v2769_v54 }
 0x110   : > { %2464 = vmatmul.mubr.bf16.gmra.mrb[4].mxu0 %v3057_v39 }
 0x1da   : > { %v1364_v60 = vpop.f32.mrb[0].mxu1 }
 0x1db   : > { %v2455_v61 = vpop.f32.mrb[0].mxu0  ;;  %v1366_v0 = vpop.f32.mrb[1].mxu1 }
 0x1dc   : > { %v3198_v52 = vadd.f32 %v2455_v61, %v1364_v60  ;;  %v2457_v1 = vpop.f32.mrb[1].mxu0  ;;  %v1368_v4 = vpop.f32.mrb[2].mxu1 }
 0x1dd   : > { %v3199_v2 = vadd.f32 %v2457_v1, %v1366_v0  ;;  %v2459_v5 = vpop.f32.mrb[2].mxu0  ;;  %v1370_v8 = vpop.f32.mrb[3].mxu1 }
 0x1de   : > { %v2518_v6 = vmul.f32 %v3198_v52, %v2511_v59  ;;  %v3200_v7 = vadd.f32 %v2459_v5, %v1368_v4  ;;  %v2461_v9 = vpop.f32.mrb[3].mxu0 }
 0x1df   : > { %v2519_v10 = vmul.f32 %v3199_v2, %v2515_v62  ;;  %v3201_v11 = vadd.f32 %v2461_v9, %v1370_v8 }
 0x1e0   : > { %v2538_v12 = vadd.f32 %v2531_v63, %v2518_v6  ;;  %v2520_v13 = vmul.f32 %v3200_v7, %v2511_v59 }
 0x1e1   : > { %v2539_v14 = vadd.f32 %v2535_v3, %v2519_v10  ;;  %v2521_v15 = vmul.f32 %v3201_v11, %v2515_v62 }
 0x1e2   : > { %vm2546_vm0 = vcmp.ge.f32.partialorder %v2538_v12, 0.0  ;;  %v2554_v16 = vmul.f32 0.2, %v2538_v12  ;;  %v2540_v17 = vadd.f32 %v2531_v63, %v2520_v13  ;;  %v1374_v20 = vpop.f32.mrb[4].mxu1 }
 0x1e3   : > { %vm2547_vm1 = vcmp.ge.f32.partialorder %v2539_v14, 0.0  ;;  %v2555_v18 = vmul.f32 0.2, %v2539_v14  ;;  %v2541_v19 = vadd.f32 %v2535_v3, %v2521_v15  ;;  %v2465_v21 = vpop.f32.mrb[4].mxu0  ;;  %v1376_v25 = vpop.f32.mrb[5].mxu1 }
 0x1e4   : > { %v2562_v22 = vsel %vm2546_vm0, %v2538_v12, %v2554_v16  ;;  %vm2548_vm2 = vcmp.ge.f32.partialorder %v2540_v17, 0.0  ;;  %v2556_v23 = vmul.f32 0.2, %v2540_v17  ;;  %v3202_v24 = vadd.f32 %v2465_v21, %v1374_v20  ;;  %v2467_v26 = vpop.f32.mrb[5].mxu0  ;;  %v1378_v30 = vpop.f32.mrb[6].mxu1 }
 0x1e5   : > { %v2563_v27 = vsel %vm2547_vm1, %v2539_v14, %v2555_v18  ;;  %vm2549_vm3 = vcmp.ge.f32.partialorder %v2541_v19, 0.0  ;;  %v2557_v28 = vmul.f32 0.2, %v2541_v19  ;;  %v3203_v29 = vadd.f32 %v2467_v26, %v1376_v25  ;;  %v2469_v31 = vpop.f32.mrb[6].mxu0  ;;  %v1380_v38 = vpop.f32.mrb[7].mxu1 }
 0x1e6   : > { %v3194_v32 = vpack.c.bf16 %v2563_v27, %v2562_v22  ;;  %v2564_v33 = vsel %vm2548_vm2, %v2540_v17, %v2556_v23  ;;  %v2522_v34 = vmul.f32 %v3202_v24, %v2511_v59  ;;  %v3204_v37 = vadd.f32 %v2469_v31, %v1378_v30  ;;  %v2471_v40 = vpop.f32.mrb[7].mxu0 }
 0x1e7   : > { %v2565_v41 = vsel %vm2549_vm3, %v2541_v19, %v2557_v28  ;;  %v2523_v35 = vmul.f32 %v3203_v29, %v2515_v62  ;;  %v3205_v36 = vadd.f32 %v2471_v40, %v1380_v38 }
 0x1e8   : > { %2594 = vst [vmem:[%s4594_s7] sm:$0xff] %v3194_v32  ;;  %v3195_v42 = vpack.c.bf16 %v2565_v41, %v2564_v33  ;;  %v2542_v43 = vadd.f32 %v2531_v63, %v2522_v34  ;;  %v2524_v44 = vmul.f32 %v3204_v37, %v2511_v59 }
 0x1e9   : > { %v2543_v45 = vadd.f32 %v2535_v3, %v2523_v35  ;;  %v2525_v46 = vmul.f32 %v3205_v36, %v2515_v62 }
 0x1ea   : > { %2595 = vst [vmem:[%s4594_s7 + $0x8] sm:$0xff] %v3195_v42  ;;  %vm2550_vm4 = vcmp.ge.f32.partialorder %v2542_v43, 0.0  ;;  %v2558_v47 = vmul.f32 0.2, %v2542_v43  ;;  %v2544_v48 = vadd.f32 %v2531_v63, %v2524_v44 }
 0x1eb   : > { %vm2551_vm5 = vcmp.ge.f32.partialorder %v2543_v45, 0.0  ;;  %v2559_v49 = vmul.f32 0.2, %v2543_v45  ;;  %v2545_v53 = vadd.f32 %v2535_v3, %v2525_v46 }
 0x1ec   : > { %v2566_v54 = vsel %vm2550_vm4, %v2542_v43, %v2558_v47  ;;  %vm2552_vm6 = vcmp.ge.f32.partialorder %v2544_v48, 0.0  ;;  %v2560_v39 = vmul.f32 0.2, %v2544_v48 }
 0x1ed   : > { %v2567_v55 = vsel %vm2551_vm5, %v2543_v45, %v2559_v49  ;;  %vm2553_vm7 = vcmp.ge.f32.partialorder %v2545_v53, 0.0  ;;  %v2561_v56 = vmul.f32 0.2, %v2545_v53 }
 0x1ee   : > { %v3196_v50 = vpack.c.bf16 %v2567_v55, %v2566_v54  ;;  %v2568_v51 = vsel %vm2552_vm6, %v2544_v48, %v2560_v39 }
 0x1ef   : > { %v2569_v57 = vsel %vm2553_vm7, %v2545_v53, %v2561_v56 }
 0x1f0   : > { %2596 = vst [vmem:[%s4594_s7 + $0x10] sm:$0xff] %v3196_v50  ;;  %v3197_v58 = vpack.c.bf16 %v2569_v57, %v2568_v51 }
 0x1f2   : > { %2597 = vst [vmem:[%s4594_s7 + $0x18] sm:$0xff] %v3197_v58 }
 0x1f3 PF: > { %s14_s17 = sadd.s32 1, %s3685_s17   ;;  %s4614_s15 = smov %s3681_s16 }
 0x1f4   : > { %p11_p5 = scmp.ge.s32.totalorder %s14_s17, 4   ;;  %s4615_s16 = smov %s4617_s18 }
 0x1f6   :  { %13 = sbr.rel (!%p11_p5) target bundleno = 2 (0x2), region = 78 }

// kernel: _lambda_.7
= control target key start
LH: loop header
LB: loop body
LE: loop exit
PB: predicated region body
PF: predicated region fallthrough
CT: control target
= control target key end

     0   :  { %s11107_s15 = smov 0   ;;  %s11109_s16 = smov 0   ;;  %s12973_s0 = inlined_call_operand.vmem [shape: bf16[2,48,1024], index: 0, kind: input, shape index: {}]   ;;  %s12974_s1 = inlined_call_operand.vmem [shape: bf16[4,1024,512], index: 1, kind: input, shape index: {}]   ;;  %s12975_s2 = inlined_call_operand.vmem [shape: f32[1,512], index: 2, kind: input, shape index: {}]   ;;  %s12976_s3 = inlined_call_operand.vmem [shape: f32[1,512], index: 3, kind: input, shape index: {}]   ;;  %s12977_s4 = inlined_call_operand.vmem [shape: bf16[2,24,512], index: 4, kind: output, shape index: {}]  }
   0x1   :  { %s11111_s17 = smov 0   ;;  %s11113_s18 = smov 0  }
   0x2   :  { %s11115_s19 = smov 0   ;;  %s11117_s20 = smov 0  }
   0x3   :  { %s11119_s21 = smov 0   ;;  %s11121_s22 = smov 0  }
   0x4   :  { %s11123_s23 = smov 0  }
   0x5 LB: > { %s8998_s24 = sadd.s32 4294967295, %s11080_s23   ;;  %s29_s25 = sadd.s32 1, %s11072_s21  ;;  %s11080_s23 = sphi %s11123_s23, %s14_s23   ;;  %s11076_s22 = sphi %s11121_s22, %s12986_s22   ;;  %s11072_s21 = sphi %s11119_s21, %s12985_s21   ;;  %s11068_s20 = sphi %s11117_s20, %s12984_s20   ;;  %s11064_s19 = sphi %s11115_s19, %s12983_s19   ;;  %s11060_s18 = sphi %s11113_s18, %s12982_s18   ;;  %s11056_s17 = sphi %s11111_s17, %s12981_s17   ;;  %s11052_s16 = sphi %s11109_s16, %s12980_s16   ;;  %s11048_s15 = sphi %s11107_s15, %s12979_s15  }
   0x6   : > { %p31_p0 = scmp.ge.s32.totalorder %s29_s25, 2  ;;  %s33_s26 = sadd.s32 1, %s11076_s22 }
   0x7   : > { %s66_s27 = sadd.s32 1, %s11060_s18  ;;  %p73_p1 = scmp.ne.s32.totalorder %s11060_s18, %s11056_s17 }
   0x8   : > { %s12988_s25 = smov (%p31_p0, %s29_s25), 0  ;;  %s12990_s26 = smov (!%p31_p0, %s33_s26), %s11076_s22 }
   0x9   : > { %s63_s28 = ssub.s32 %s11072_s21, %s12988_s25  ;;  %p74_p2 = scmp.eq.s32.totalorder %s11080_s23, 0 }
   0xa   : > { %p35_p3 = scmp.ge.s32.totalorder %s12990_s26, 2  ;;  %p64_p4 = scmp.eq.s32.totalorder %s63_s28, 0 }
   0xb   : > { %p75_p5 = por %p74_p2, %p73_p1  ;;  %s148_s29 = sadd.s32 1, %s11052_s16 }
   0xc   : > { %s12992_s26 = smov (%p35_p3, %s12990_s26), 0  ;;  %p158_p6 = scmp.ne.s32.totalorder %s11052_s16, %s11048_s15 }
   0xd   : > { %s11168_s30 = scalar_select %p64_p4, %s11060_s18, %s66_s27  }
   0xe   : > { %s141_s5 = ssub.s32 %s11076_s22, %s12992_s26  ;;  %p159_p7 = scmp.eq.s32.totalorder %s8998_s24, 3 }
   0xf   : > { %s145_s6 = sor.u32 %s141_s5, %s63_s28  ;;  %p9001_p10 = scmp.ge.s32.totalorder %s11080_s23, 4 }
  0x10   : > { %p146_p8 = scmp.eq.s32.totalorder %s145_s6, 0  ;;  %p11174_p9 = por %p159_p7, %p158_p6 }
  0x11   : > { %181 = sbr.rel (%p9001_p10) target bundleno = 284 (0x11c), region = 16 }
  0x12   : > { %s11179_s8 = scalar_select %p146_p8, %s11052_s16, %s148_s29  }
  0x18   : > { %192 = sbr.rel (!%p75_p5) target bundleno = 284 (0x11c), region = 24  ;;  %s194_s9 = sand.u32 (%p75_p5), 1, %s11060_s18  }
  0x19   : > { %s10013_s10 = sshll.u32 (%p75_p5), %s11072_s21, 3  ;;  %s9002_s11 = sshll.u32 (%p75_p5), %s194_s9, 12 }
  0x1a   : > { %s11187_s14 = scalar_lea.vmem (%p75_p5), %s12974_s1, %s10013_s10  ;;  %s11192_s24 = scalar_lea.vmem (%p75_p5), [#allocation3], %s9002_s11 }
  0x1b   : > { %v1252_v0 = vld [vmem:[%s11187_s14] sm:$0xff] (%p75_p5)  ;;  %v1254_v1 = vld [vmem:[%s11187_s14 + $0x10] sm:$0xff] (%p75_p5) }
  0x1c   : > { %v1256_v2 = vld [vmem:[%s11187_s14 + $0x20] sm:$0xff] (%p75_p5)  ;;  %1253 = vst [vmem:[%s11192_s24] sm:$0xff] (%p75_p5), %v1252_v0  ;;  %1255 = vst [vmem:[%s11192_s24 + $0x8] sm:$0xff] (%p75_p5), %v1254_v1  ;;  %v1258_v3 = vld [vmem:[%s11187_s14 + $0x30] sm:$0xff] (%p75_p5) }
  0x1d   : > { %1257 = vst [vmem:[%s11192_s24 + $0x10] sm:$0xff] (%p75_p5), %v1256_v2  ;;  %v1260_v4 = vld [vmem:[%s11187_s14 + $0x40] sm:$0xff] (%p75_p5)  ;;  %v1262_v5 = vld [vmem:[%s11187_s14 + $0x50] sm:$0xff] (%p75_p5)  ;;  %1259 = vst [vmem:[%s11192_s24 + $0x18] sm:$0xff] (%p75_p5), %v1258_v3 }
  0x1e   : > { %1261 = vst [vmem:[%s11192_s24 + $0x20] sm:$0xff] (%p75_p5), %v1260_v4  ;;  %1263 = vst [vmem:[%s11192_s24 + $0x28] sm:$0xff] (%p75_p5), %v1262_v5  ;;  %v1264_v6 = vld [vmem:[%s11187_s14 + $0x60] sm:$0xff] (%p75_p5)  ;;  %v1266_v7 = vld [vmem:[%s11187_s14 + $0x70] sm:$0xff] (%p75_p5) }
  0x1f   : > { %v1268_v8 = vld [vmem:[%s11187_s14 + $0x80] sm:$0xff]  ;;  %1265 = vst [vmem:[%s11192_s24 + $0x30] sm:$0xff] %v1264_v6  ;;  %1267 = vst [vmem:[%s11192_s24 + $0x38] sm:$0xff] %v1266_v7  ;;  %v1270_v9 = vld [vmem:[%s11187_s14 + $0x90] sm:$0xff] }
  0x20   : > { %1269 = vst [vmem:[%s11192_s24 + $0x40] sm:$0xff] %v1268_v8  ;;  %v1272_v10 = vld [vmem:[%s11187_s14 + $0xa0] sm:$0xff]  ;;  %v1274_v11 = vld [vmem:[%s11187_s14 + $0xb0] sm:$0xff]  ;;  %1271 = vst [vmem:[%s11192_s24 + $0x48] sm:$0xff] %v1270_v9 }
  0x21   : > { %1273 = vst [vmem:[%s11192_s24 + $0x50] sm:$0xff] %v1272_v10  ;;  %1275 = vst [vmem:[%s11192_s24 + $0x58] sm:$0xff] %v1274_v11  ;;  %v1276_v12 = vld [vmem:[%s11187_s14 + $0xc0] sm:$0xff]  ;;  %v1278_v13 = vld [vmem:[%s11187_s14 + $0xd0] sm:$0xff] }
  0x22   : > { %v1280_v14 = vld [vmem:[%s11187_s14 + $0xe0] sm:$0xff]  ;;  %1277 = vst [vmem:[%s11192_s24 + $0x60] sm:$0xff] %v1276_v12  ;;  %1279 = vst [vmem:[%s11192_s24 + $0x68] sm:$0xff] %v1278_v13  ;;  %v1282_v15 = vld [vmem:[%s11187_s14 + $0xf0] sm:$0xff] }
  0x23   : > { %1281 = vst [vmem:[%s11192_s24 + $0x70] sm:$0xff] %v1280_v14  ;;  %v1284_v16 = vld [vmem:[%s11187_s14 + $0x100] sm:$0xff]  ;;  %v1286_v17 = vld [vmem:[%s11187_s14 + $0x110] sm:$0xff]  ;;  %1283 = vst [vmem:[%s11192_s24 + $0x78] sm:$0xff] %v1282_v15 }
  0x24   : > { %1285 = vst [vmem:[%s11192_s24 + $0x80] sm:$0xff] %v1284_v16  ;;  %1287 = vst [vmem:[%s11192_s24 + $0x88] sm:$0xff] %v1286_v17  ;;  %v1288_v18 = vld [vmem:[%s11187_s14 + $0x120] sm:$0xff]  ;;  %v1290_v19 = vld [vmem:[%s11187_s14 + $0x130] sm:$0xff] }
  0x25   : > { %v1292_v20 = vld [vmem:[%s11187_s14 + $0x140] sm:$0xff]  ;;  %1289 = vst [vmem:[%s11192_s24 + $0x90] sm:$0xff] %v1288_v18  ;;  %1291 = vst [vmem:[%s11192_s24 + $0x98] sm:$0xff] %v1290_v19  ;;  %v1294_v21 = vld [vmem:[%s11187_s14 + $0x150] sm:$0xff] }
  0x26   : > { %1293 = vst [vmem:[%s11192_s24 + $0xa0] sm:$0xff] %v1292_v20  ;;  %v1296_v22 = vld [vmem:[%s11187_s14 + $0x160] sm:$0xff]  ;;  %v1298_v23 = vld [vmem:[%s11187_s14 + $0x170] sm:$0xff]  ;;  %1295 = vst [vmem:[%s11192_s24 + $0xa8] sm:$0xff] %v1294_v21 }
  0x27   : > { %1297 = vst [vmem:[%s11192_s24 + $0xb0] sm:$0xff] %v1296_v22  ;;  %1299 = vst [vmem:[%s11192_s24 + $0xb8] sm:$0xff] %v1298_v23  ;;  %v1300_v24 = vld [vmem:[%s11187_s14 + $0x180] sm:$0xff]  ;;  %v1302_v25 = vld [vmem:[%s11187_s14 + $0x190] sm:$0xff] }
  0x28   : > { %v1304_v26 = vld [vmem:[%s11187_s14 + $0x1a0] sm:$0xff]  ;;  %1301 = vst [vmem:[%s11192_s24 + $0xc0] sm:$0xff] %v1300_v24  ;;  %1303 = vst [vmem:[%s11192_s24 + $0xc8] sm:$0xff] %v1302_v25  ;;  %v1306_v27 = vld [vmem:[%s11187_s14 + $0x1b0] sm:$0xff] }
  0x29   : > { %1305 = vst [vmem:[%s11192_s24 + $0xd0] sm:$0xff] %v1304_v26  ;;  %v1308_v28 = vld [vmem:[%s11187_s14 + $0x1c0] sm:$0xff]  ;;  %v1310_v29 = vld [vmem:[%s11187_s14 + $0x1d0] sm:$0xff]  ;;  %1307 = vst [vmem:[%s11192_s24 + $0xd8] sm:$0xff] %v1306_v27 }
  0x2a   : > { %1309 = vst [vmem:[%s11192_s24 + $0xe0] sm:$0xff] %v1308_v28  ;;  %1311 = vst [vmem:[%s11192_s24 + $0xe8] sm:$0xff] %v1310_v29  ;;  %v1312_v30 = vld [vmem:[%s11187_s14 + $0x1e0] sm:$0xff]  ;;  %v1314_v31 = vld [vmem:[%s11187_s14 + $0x1f0] sm:$0xff] }
  0x2b   : > { %v1316_v32 = vld [vmem:[%s11187_s14 + $0x200] sm:$0xff]  ;;  %1313 = vst [vmem:[%s11192_s24 + $0xf0] sm:$0xff] %v1312_v30  ;;  %1315 = vst [vmem:[%s11192_s24 + $0xf8] sm:$0xff] %v1314_v31  ;;  %v1318_v33 = vld [vmem:[%s11187_s14 + $0x210] sm:$0xff] }
  0x2c   : > { %1317 = vst [vmem:[%s11192_s24 + $0x100] sm:$0xff] %v1316_v32  ;;  %v1320_v34 = vld [vmem:[%s11187_s14 + $0x220] sm:$0xff]  ;;  %v1322_v35 = vld [vmem:[%s11187_s14 + $0x230] sm:$0xff]  ;;  %1319 = vst [vmem:[%s11192_s24 + $0x108] sm:$0xff] %v1318_v33 }
  0x2d   : > { %1321 = vst [vmem:[%s11192_s24 + $0x110] sm:$0xff] %v1320_v34  ;;  %1323 = vst [vmem:[%s11192_s24 + $0x118] sm:$0xff] %v1322_v35  ;;  %v1324_v36 = vld [vmem:[%s11187_s14 + $0x240] sm:$0xff]  ;;  %v1326_v37 = vld [vmem:[%s11187_s14 + $0x250] sm:$0xff] }
  0x2e   : > { %v1328_v38 = vld [vmem:[%s11187_s14 + $0x260] sm:$0xff]  ;;  %1325 = vst [vmem:[%s11192_s24 + $0x120] sm:$0xff] %v1324_v36  ;;  %1327 = vst [vmem:[%s11192_s24 + $0x128] sm:$0xff] %v1326_v37  ;;  %v1330_v39 = vld [vmem:[%s11187_s14 + $0x270] sm:$0xff] }
  0x2f   : > { %1329 = vst [vmem:[%s11192_s24 + $0x130] sm:$0xff] %v1328_v38  ;;  %v1332_v40 = vld [vmem:[%s11187_s14 + $0x280] sm:$0xff]  ;;  %v1334_v41 = vld [vmem:[%s11187_s14 + $0x290] sm:$0xff]  ;;  %1331 = vst [vmem:[%s11192_s24 + $0x138] sm:$0xff] %v1330_v39 }
  0x30   : > { %1333 = vst [vmem:[%s11192_s24 + $0x140] sm:$0xff] %v1332_v40  ;;  %1335 = vst [vmem:[%s11192_s24 + $0x148] sm:$0xff] %v1334_v41  ;;  %v1336_v42 = vld [vmem:[%s11187_s14 + $0x2a0] sm:$0xff]  ;;  %v1338_v43 = vld [vmem:[%s11187_s14 + $0x2b0] sm:$0xff] }
  0x31   : > { %v1340_v44 = vld [vmem:[%s11187_s14 + $0x2c0] sm:$0xff]  ;;  %1337 = vst [vmem:[%s11192_s24 + $0x150] sm:$0xff] %v1336_v42  ;;  %1339 = vst [vmem:[%s11192_s24 + $0x158] sm:$0xff] %v1338_v43  ;;  %v1342_v45 = vld [vmem:[%s11187_s14 + $0x2d0] sm:$0xff] }
  0x32   : > { %1341 = vst [vmem:[%s11192_s24 + $0x160] sm:$0xff] %v1340_v44  ;;  %v1344_v46 = vld [vmem:[%s11187_s14 + $0x2e0] sm:$0xff]  ;;  %v1346_v47 = vld [vmem:[%s11187_s14 + $0x2f0] sm:$0xff]  ;;  %1343 = vst [vmem:[%s11192_s24 + $0x168] sm:$0xff] %v1342_v45 }
  0x33   : > { %1345 = vst [vmem:[%s11192_s24 + $0x170] sm:$0xff] %v1344_v46  ;;  %1347 = vst [vmem:[%s11192_s24 + $0x178] sm:$0xff] %v1346_v47  ;;  %v1348_v48 = vld [vmem:[%s11187_s14 + $0x300] sm:$0xff]  ;;  %v1350_v49 = vld [vmem:[%s11187_s14 + $0x310] sm:$0xff] }
  0x34   : > { %v1352_v50 = vld [vmem:[%s11187_s14 + $0x320] sm:$0xff]  ;;  %1349 = vst [vmem:[%s11192_s24 + $0x180] sm:$0xff] %v1348_v48  ;;  %1351 = vst [vmem:[%s11192_s24 + $0x188] sm:$0xff] %v1350_v49  ;;  %v1354_v51 = vld [vmem:[%s11187_s14 + $0x330] sm:$0xff] }
  0x35   : > { %1353 = vst [vmem:[%s11192_s24 + $0x190] sm:$0xff] %v1352_v50  ;;  %v1356_v52 = vld [vmem:[%s11187_s14 + $0x340] sm:$0xff]  ;;  %v1358_v53 = vld [vmem:[%s11187_s14 + $0x350] sm:$0xff]  ;;  %1355 = vst [vmem:[%s11192_s24 + $0x198] sm:$0xff] %v1354_v51 }
  0x36   : > { %1357 = vst [vmem:[%s11192_s24 + $0x1a0] sm:$0xff] %v1356_v52  ;;  %1359 = vst [vmem:[%s11192_s24 + $0x1a8] sm:$0xff] %v1358_v53  ;;  %v1360_v54 = vld [vmem:[%s11187_s14 + $0x360] sm:$0xff]  ;;  %v1362_v55 = vld [vmem:[%s11187_s14 + $0x370] sm:$0xff] }
  0x37   : > { %v1364_v56 = vld [vmem:[%s11187_s14 + $0x380] sm:$0xff]  ;;  %1361 = vst [vmem:[%s11192_s24 + $0x1b0] sm:$0xff] %v1360_v54  ;;  %1363 = vst [vmem:[%s11192_s24 + $0x1b8] sm:$0xff] %v1362_v55  ;;  %v1366_v57 = vld [vmem:[%s11187_s14 + $0x390] sm:$0xff] }
  0x38   : > { %1365 = vst [vmem:[%s11192_s24 + $0x1c0] sm:$0xff] %v1364_v56  ;;  %v1368_v58 = vld [vmem:[%s11187_s14 + $0x3a0] sm:$0xff]  ;;  %v1370_v59 = vld [vmem:[%s11187_s14 + $0x3b0] sm:$0xff]  ;;  %1367 = vst [vmem:[%s11192_s24 + $0x1c8] sm:$0xff] %v1366_v57 }
  0x39   : > { %1369 = vst [vmem:[%s11192_s24 + $0x1d0] sm:$0xff] %v1368_v58  ;;  %1371 = vst [vmem:[%s11192_s24 + $0x1d8] sm:$0xff] %v1370_v59  ;;  %v1372_v60 = vld [vmem:[%s11187_s14 + $0x3c0] sm:$0xff]  ;;  %v1374_v61 = vld [vmem:[%s11187_s14 + $0x3d0] sm:$0xff] }
  0x3a   : > { %v1376_v62 = vld [vmem:[%s11187_s14 + $0x3e0] sm:$0xff]  ;;  %1373 = vst [vmem:[%s11192_s24 + $0x1e0] sm:$0xff] %v1372_v60  ;;  %1375 = vst [vmem:[%s11192_s24 + $0x1e8] sm:$0xff] %v1374_v61  ;;  %v1378_v63 = vld [vmem:[%s11187_s14 + $0x3f0] sm:$0xff] }
  0x3b   : > { %1377 = vst [vmem:[%s11192_s24 + $0x1f0] sm:$0xff] %v1376_v62  ;;  %v1380_v0 = vld [vmem:[%s11187_s14 + $0x400] sm:$0xff]  ;;  %v1382_v1 = vld [vmem:[%s11187_s14 + $0x410] sm:$0xff]  ;;  %1379 = vst [vmem:[%s11192_s24 + $0x1f8] sm:$0xff] %v1378_v63 }
  0x3c   : > { %1381 = vst [vmem:[%s11192_s24 + $0x200] sm:$0xff] %v1380_v0  ;;  %1383 = vst [vmem:[%s11192_s24 + $0x208] sm:$0xff] %v1382_v1  ;;  %v1384_v2 = vld [vmem:[%s11187_s14 + $0x420] sm:$0xff]  ;;  %v1386_v3 = vld [vmem:[%s11187_s14 + $0x430] sm:$0xff] }
  0x3d   : > { %v1388_v4 = vld [vmem:[%s11187_s14 + $0x440] sm:$0xff]  ;;  %1385 = vst [vmem:[%s11192_s24 + $0x210] sm:$0xff] %v1384_v2  ;;  %1387 = vst [vmem:[%s11192_s24 + $0x218] sm:$0xff] %v1386_v3  ;;  %v1390_v5 = vld [vmem:[%s11187_s14 + $0x450] sm:$0xff] }
  0x3e   : > { %1389 = vst [vmem:[%s11192_s24 + $0x220] sm:$0xff] %v1388_v4  ;;  %v1392_v6 = vld [vmem:[%s11187_s14 + $0x460] sm:$0xff]  ;;  %v1394_v7 = vld [vmem:[%s11187_s14 + $0x470] sm:$0xff]  ;;  %1391 = vst [vmem:[%s11192_s24 + $0x228] sm:$0xff] %v1390_v5 }
  0x3f   : > { %1393 = vst [vmem:[%s11192_s24 + $0x230] sm:$0xff] %v1392_v6  ;;  %1395 = vst [vmem:[%s11192_s24 + $0x238] sm:$0xff] %v1394_v7  ;;  %v1396_v8 = vld [vmem:[%s11187_s14 + $0x480] sm:$0xff]  ;;  %v1398_v9 = vld [vmem:[%s11187_s14 + $0x490] sm:$0xff] }
  0x40   : > { %v1400_v10 = vld [vmem:[%s11187_s14 + $0x4a0] sm:$0xff]  ;;  %1397 = vst [vmem:[%s11192_s24 + $0x240] sm:$0xff] %v1396_v8  ;;  %1399 = vst [vmem:[%s11192_s24 + $0x248] sm:$0xff] %v1398_v9  ;;  %v1402_v11 = vld [vmem:[%s11187_s14 + $0x4b0] sm:$0xff] }
  0x41   : > { %1401 = vst [vmem:[%s11192_s24 + $0x250] sm:$0xff] %v1400_v10  ;;  %v1404_v12 = vld [vmem:[%s11187_s14 + $0x4c0] sm:$0xff]  ;;  %v1406_v13 = vld [vmem:[%s11187_s14 + $0x4d0] sm:$0xff]  ;;  %1403 = vst [vmem:[%s11192_s24 + $0x258] sm:$0xff] %v1402_v11 }
  0x42   : > { %1405 = vst [vmem:[%s11192_s24 + $0x260] sm:$0xff] %v1404_v12  ;;  %1407 = vst [vmem:[%s11192_s24 + $0x268] sm:$0xff] %v1406_v13  ;;  %v1408_v14 = vld [vmem:[%s11187_s14 + $0x4e0] sm:$0xff]  ;;  %v1410_v15 = vld [vmem:[%s11187_s14 + $0x4f0] sm:$0xff] }
  0x43   : > { %v1412_v16 = vld [vmem:[%s11187_s14 + $0x500] sm:$0xff]  ;;  %1409 = vst [vmem:[%s11192_s24 + $0x270] sm:$0xff] %v1408_v14  ;;  %1411 = vst [vmem:[%s11192_s24 + $0x278] sm:$0xff] %v1410_v15  ;;  %v1414_v17 = vld [vmem:[%s11187_s14 + $0x510] sm:$0xff] }
  0x44   : > { %1413 = vst [vmem:[%s11192_s24 + $0x280] sm:$0xff] %v1412_v16  ;;  %v1416_v18 = vld [vmem:[%s11187_s14 + $0x520] sm:$0xff]  ;;  %v1418_v19 = vld [vmem:[%s11187_s14 + $0x530] sm:$0xff]  ;;  %1415 = vst [vmem:[%s11192_s24 + $0x288] sm:$0xff] %v1414_v17 }
  0x45   : > { %1417 = vst [vmem:[%s11192_s24 + $0x290] sm:$0xff] %v1416_v18  ;;  %1419 = vst [vmem:[%s11192_s24 + $0x298] sm:$0xff] %v1418_v19  ;;  %v1420_v20 = vld [vmem:[%s11187_s14 + $0x540] sm:$0xff]  ;;  %v1422_v21 = vld [vmem:[%s11187_s14 + $0x550] sm:$0xff] }
  0x46   : > { %v1424_v22 = vld [vmem:[%s11187_s14 + $0x560] sm:$0xff]  ;;  %1421 = vst [vmem:[%s11192_s24 + $0x2a0] sm:$0xff] %v1420_v20  ;;  %1423 = vst [vmem:[%s11192_s24 + $0x2a8] sm:$0xff] %v1422_v21  ;;  %v1426_v23 = vld [vmem:[%s11187_s14 + $0x570] sm:$0xff] }
  0x47   : > { %1425 = vst [vmem:[%s11192_s24 + $0x2b0] sm:$0xff] %v1424_v22  ;;  %v1428_v24 = vld [vmem:[%s11187_s14 + $0x580] sm:$0xff]  ;;  %v1430_v25 = vld [vmem:[%s11187_s14 + $0x590] sm:$0xff]  ;;  %1427 = vst [vmem:[%s11192_s24 + $0x2b8] sm:$0xff] %v1426_v23 }
  0x48   : > { %1429 = vst [vmem:[%s11192_s24 + $0x2c0] sm:$0xff] %v1428_v24  ;;  %1431 = vst [vmem:[%s11192_s24 + $0x2c8] sm:$0xff] %v1430_v25  ;;  %v1432_v26 = vld [vmem:[%s11187_s14 + $0x5a0] sm:$0xff]  ;;  %v1434_v27 = vld [vmem:[%s11187_s14 + $0x5b0] sm:$0xff] }
  0x49   : > { %v1436_v28 = vld [vmem:[%s11187_s14 + $0x5c0] sm:$0xff]  ;;  %1433 = vst [vmem:[%s11192_s24 + $0x2d0] sm:$0xff] %v1432_v26  ;;  %1435 = vst [vmem:[%s11192_s24 + $0x2d8] sm:$0xff] %v1434_v27  ;;  %v1438_v29 = vld [vmem:[%s11187_s14 + $0x5d0] sm:$0xff] }
  0x4a   : > { %1437 = vst [vmem:[%s11192_s24 + $0x2e0] sm:$0xff] %v1436_v28  ;;  %v1440_v30 = vld [vmem:[%s11187_s14 + $0x5e0] sm:$0xff]  ;;  %v1442_v31 = vld [vmem:[%s11187_s14 + $0x5f0] sm:$0xff]  ;;  %1439 = vst [vmem:[%s11192_s24 + $0x2e8] sm:$0xff] %v1438_v29 }
  0x4b   : > { %1441 = vst [vmem:[%s11192_s24 + $0x2f0] sm:$0xff] %v1440_v30  ;;  %1443 = vst [vmem:[%s11192_s24 + $0x2f8] sm:$0xff] %v1442_v31  ;;  %v1444_v32 = vld [vmem:[%s11187_s14 + $0x600] sm:$0xff]  ;;  %v1446_v33 = vld [vmem:[%s11187_s14 + $0x610] sm:$0xff] }
  0x4c   : > { %v1448_v34 = vld [vmem:[%s11187_s14 + $0x620] sm:$0xff]  ;;  %1445 = vst [vmem:[%s11192_s24 + $0x300] sm:$0xff] %v1444_v32  ;;  %1447 = vst [vmem:[%s11192_s24 + $0x308] sm:$0xff] %v1446_v33  ;;  %v1450_v35 = vld [vmem:[%s11187_s14 + $0x630] sm:$0xff] }
  0x4d   : > { %1449 = vst [vmem:[%s11192_s24 + $0x310] sm:$0xff] %v1448_v34  ;;  %v1452_v36 = vld [vmem:[%s11187_s14 + $0x640] sm:$0xff]  ;;  %v1454_v37 = vld [vmem:[%s11187_s14 + $0x650] sm:$0xff]  ;;  %1451 = vst [vmem:[%s11192_s24 + $0x318] sm:$0xff] %v1450_v35 }
  0x4e   : > { %1453 = vst [vmem:[%s11192_s24 + $0x320] sm:$0xff] %v1452_v36  ;;  %1455 = vst [vmem:[%s11192_s24 + $0x328] sm:$0xff] %v1454_v37  ;;  %v1456_v38 = vld [vmem:[%s11187_s14 + $0x660] sm:$0xff]  ;;  %v1458_v39 = vld [vmem:[%s11187_s14 + $0x670] sm:$0xff] }
  0x4f   : > { %v1460_v40 = vld [vmem:[%s11187_s14 + $0x680] sm:$0xff]  ;;  %1457 = vst [vmem:[%s11192_s24 + $0x330] sm:$0xff] %v1456_v38  ;;  %1459 = vst [vmem:[%s11192_s24 + $0x338] sm:$0xff] %v1458_v39  ;;  %v1462_v41 = vld [vmem:[%s11187_s14 + $0x690] sm:$0xff] }
  0x50   : > { %1461 = vst [vmem:[%s11192_s24 + $0x340] sm:$0xff] %v1460_v40  ;;  %v1464_v42 = vld [vmem:[%s11187_s14 + $0x6a0] sm:$0xff]  ;;  %v1466_v43 = vld [vmem:[%s11187_s14 + $0x6b0] sm:$0xff]  ;;  %1463 = vst [vmem:[%s11192_s24 + $0x348] sm:$0xff] %v1462_v41 }
  0x51   : > { %1465 = vst [vmem:[%s11192_s24 + $0x350] sm:$0xff] %v1464_v42  ;;  %1467 = vst [vmem:[%s11192_s24 + $0x358] sm:$0xff] %v1466_v43  ;;  %v1468_v44 = vld [vmem:[%s11187_s14 + $0x6c0] sm:$0xff]  ;;  %v1470_v45 = vld [vmem:[%s11187_s14 + $0x6d0] sm:$0xff] }
  0x52   : > { %v1472_v46 = vld [vmem:[%s11187_s14 + $0x6e0] sm:$0xff]  ;;  %1469 = vst [vmem:[%s11192_s24 + $0x360] sm:$0xff] %v1468_v44  ;;  %1471 = vst [vmem:[%s11192_s24 + $0x368] sm:$0xff] %v1470_v45  ;;  %v1474_v47 = vld [vmem:[%s11187_s14 + $0x6f0] sm:$0xff] }
  0x53   : > { %1473 = vst [vmem:[%s11192_s24 + $0x370] sm:$0xff] %v1472_v46  ;;  %v1476_v48 = vld [vmem:[%s11187_s14 + $0x700] sm:$0xff]  ;;  %v1478_v49 = vld [vmem:[%s11187_s14 + $0x710] sm:$0xff]  ;;  %1475 = vst [vmem:[%s11192_s24 + $0x378] sm:$0xff] %v1474_v47 }
  0x54   : > { %1477 = vst [vmem:[%s11192_s24 + $0x380] sm:$0xff] %v1476_v48  ;;  %1479 = vst [vmem:[%s11192_s24 + $0x388] sm:$0xff] %v1478_v49  ;;  %v1480_v50 = vld [vmem:[%s11187_s14 + $0x720] sm:$0xff]  ;;  %v1482_v51 = vld [vmem:[%s11187_s14 + $0x730] sm:$0xff] }
  0x55   : > { %v1484_v52 = vld [vmem:[%s11187_s14 + $0x740] sm:$0xff]  ;;  %1481 = vst [vmem:[%s11192_s24 + $0x390] sm:$0xff] %v1480_v50  ;;  %1483 = vst [vmem:[%s11192_s24 + $0x398] sm:$0xff] %v1482_v51  ;;  %v1486_v53 = vld [vmem:[%s11187_s14 + $0x750] sm:$0xff] }
  0x56   : > { %1485 = vst [vmem:[%s11192_s24 + $0x3a0] sm:$0xff] %v1484_v52  ;;  %v1488_v54 = vld [vmem:[%s11187_s14 + $0x760] sm:$0xff]  ;;  %v1490_v55 = vld [vmem:[%s11187_s14 + $0x770] sm:$0xff]  ;;  %1487 = vst [vmem:[%s11192_s24 + $0x3a8] sm:$0xff] %v1486_v53 }
  0x57   : > { %1489 = vst [vmem:[%s11192_s24 + $0x3b0] sm:$0xff] %v1488_v54  ;;  %1491 = vst [vmem:[%s11192_s24 + $0x3b8] sm:$0xff] %v1490_v55  ;;  %v1492_v56 = vld [vmem:[%s11187_s14 + $0x780] sm:$0xff]  ;;  %v1494_v57 = vld [vmem:[%s11187_s14 + $0x790] sm:$0xff] }
  0x58   : > { %v1496_v58 = vld [vmem:[%s11187_s14 + $0x7a0] sm:$0xff]  ;;  %1493 = vst [vmem:[%s11192_s24 + $0x3c0] sm:$0xff] %v1492_v56  ;;  %1495 = vst [vmem:[%s11192_s24 + $0x3c8] sm:$0xff] %v1494_v57  ;;  %v1498_v59 = vld [vmem:[%s11187_s14 + $0x7b0] sm:$0xff] }
  0x59   : > { %1497 = vst [vmem:[%s11192_s24 + $0x3d0] sm:$0xff] %v1496_v58  ;;  %v1500_v60 = vld [vmem:[%s11187_s14 + $0x7c0] sm:$0xff]  ;;  %v1502_v61 = vld [vmem:[%s11187_s14 + $0x7d0] sm:$0xff]  ;;  %1499 = vst [vmem:[%s11192_s24 + $0x3d8] sm:$0xff] %v1498_v59 }
  0x5a   : > { %1501 = vst [vmem:[%s11192_s24 + $0x3e0] sm:$0xff] %v1500_v60  ;;  %1503 = vst [vmem:[%s11192_s24 + $0x3e8] sm:$0xff] %v1502_v61  ;;  %v1504_v62 = vld [vmem:[%s11187_s14 + $0x7e0] sm:$0xff]  ;;  %v1506_v63 = vld [vmem:[%s11187_s14 + $0x7f0] sm:$0xff] }
  0x5b   : > { %v1508_v0 = vld [vmem:[%s11187_s14 + $0x800] sm:$0xff]  ;;  %1505 = vst [vmem:[%s11192_s24 + $0x3f0] sm:$0xff] %v1504_v62  ;;  %1507 = vst [vmem:[%s11192_s24 + $0x3f8] sm:$0xff] %v1506_v63  ;;  %v1510_v1 = vld [vmem:[%s11187_s14 + $0x810] sm:$0xff] }
  0x5c   : > { %1509 = vst [vmem:[%s11192_s24 + $0x400] sm:$0xff] %v1508_v0  ;;  %v1512_v2 = vld [vmem:[%s11187_s14 + $0x820] sm:$0xff]  ;;  %v1514_v3 = vld [vmem:[%s11187_s14 + $0x830] sm:$0xff]  ;;  %1511 = vst [vmem:[%s11192_s24 + $0x408] sm:$0xff] %v1510_v1 }
  0x5d   : > { %1513 = vst [vmem:[%s11192_s24 + $0x410] sm:$0xff] %v1512_v2  ;;  %1515 = vst [vmem:[%s11192_s24 + $0x418] sm:$0xff] %v1514_v3  ;;  %v1516_v4 = vld [vmem:[%s11187_s14 + $0x840] sm:$0xff]  ;;  %v1518_v5 = vld [vmem:[%s11187_s14 + $0x850] sm:$0xff] }
  0x5e   : > { %v1520_v6 = vld [vmem:[%s11187_s14 + $0x860] sm:$0xff]  ;;  %1517 = vst [vmem:[%s11192_s24 + $0x420] sm:$0xff] %v1516_v4  ;;  %1519 = vst [vmem:[%s11192_s24 + $0x428] sm:$0xff] %v1518_v5  ;;  %v1522_v7 = vld [vmem:[%s11187_s14 + $0x870] sm:$0xff] }
  0x5f   : > { %1521 = vst [vmem:[%s11192_s24 + $0x430] sm:$0xff] %v1520_v6  ;;  %v1524_v8 = vld [vmem:[%s11187_s14 + $0x880] sm:$0xff]  ;;  %v1526_v9 = vld [vmem:[%s11187_s14 + $0x890] sm:$0xff]  ;;  %1523 = vst [vmem:[%s11192_s24 + $0x438] sm:$0xff] %v1522_v7 }
  0x60   : > { %1525 = vst [vmem:[%s11192_s24 + $0x440] sm:$0xff] %v1524_v8  ;;  %1527 = vst [vmem:[%s11192_s24 + $0x448] sm:$0xff] %v1526_v9  ;;  %v1528_v10 = vld [vmem:[%s11187_s14 + $0x8a0] sm:$0xff]  ;;  %v1530_v11 = vld [vmem:[%s11187_s14 + $0x8b0] sm:$0xff] }
  0x61   : > { %v1532_v12 = vld [vmem:[%s11187_s14 + $0x8c0] sm:$0xff]  ;;  %1529 = vst [vmem:[%s11192_s24 + $0x450] sm:$0xff] %v1528_v10  ;;  %1531 = vst [vmem:[%s11192_s24 + $0x458] sm:$0xff] %v1530_v11  ;;  %v1534_v13 = vld [vmem:[%s11187_s14 + $0x8d0] sm:$0xff] }
  0x62   : > { %1533 = vst [vmem:[%s11192_s24 + $0x460] sm:$0xff] %v1532_v12  ;;  %v1536_v14 = vld [vmem:[%s11187_s14 + $0x8e0] sm:$0xff]  ;;  %v1538_v15 = vld [vmem:[%s11187_s14 + $0x8f0] sm:$0xff]  ;;  %1535 = vst [vmem:[%s11192_s24 + $0x468] sm:$0xff] %v1534_v13 }
  0x63   : > { %1537 = vst [vmem:[%s11192_s24 + $0x470] sm:$0xff] %v1536_v14  ;;  %1539 = vst [vmem:[%s11192_s24 + $0x478] sm:$0xff] %v1538_v15  ;;  %v1540_v16 = vld [vmem:[%s11187_s14 + $0x900] sm:$0xff]  ;;  %v1542_v17 = vld [vmem:[%s11187_s14 + $0x910] sm:$0xff] }
  0x64   : > { %v1544_v18 = vld [vmem:[%s11187_s14 + $0x920] sm:$0xff]  ;;  %1541 = vst [vmem:[%s11192_s24 + $0x480] sm:$0xff] %v1540_v16  ;;  %1543 = vst [vmem:[%s11192_s24 + $0x488] sm:$0xff] %v1542_v17  ;;  %v1546_v19 = vld [vmem:[%s11187_s14 + $0x930] sm:$0xff] }
  0x65   : > { %1545 = vst [vmem:[%s11192_s24 + $0x490] sm:$0xff] %v1544_v18  ;;  %v1548_v20 = vld [vmem:[%s11187_s14 + $0x940] sm:$0xff]  ;;  %v1550_v21 = vld [vmem:[%s11187_s14 + $0x950] sm:$0xff]  ;;  %1547 = vst [vmem:[%s11192_s24 + $0x498] sm:$0xff] %v1546_v19 }
  0x66   : > { %1549 = vst [vmem:[%s11192_s24 + $0x4a0] sm:$0xff] %v1548_v20  ;;  %1551 = vst [vmem:[%s11192_s24 + $0x4a8] sm:$0xff] %v1550_v21  ;;  %v1552_v22 = vld [vmem:[%s11187_s14 + $0x960] sm:$0xff]  ;;  %v1554_v23 = vld [vmem:[%s11187_s14 + $0x970] sm:$0xff] }
  0x67   : > { %v1556_v24 = vld [vmem:[%s11187_s14 + $0x980] sm:$0xff]  ;;  %1553 = vst [vmem:[%s11192_s24 + $0x4b0] sm:$0xff] %v1552_v22  ;;  %1555 = vst [vmem:[%s11192_s24 + $0x4b8] sm:$0xff] %v1554_v23  ;;  %v1558_v25 = vld [vmem:[%s11187_s14 + $0x990] sm:$0xff] }
  0x68   : > { %1557 = vst [vmem:[%s11192_s24 + $0x4c0] sm:$0xff] %v1556_v24  ;;  %v1560_v26 = vld [vmem:[%s11187_s14 + $0x9a0] sm:$0xff]  ;;  %v1562_v27 = vld [vmem:[%s11187_s14 + $0x9b0] sm:$0xff]  ;;  %1559 = vst [vmem:[%s11192_s24 + $0x4c8] sm:$0xff] %v1558_v25 }
  0x69   : > { %1561 = vst [vmem:[%s11192_s24 + $0x4d0] sm:$0xff] %v1560_v26  ;;  %1563 = vst [vmem:[%s11192_s24 + $0x4d8] sm:$0xff] %v1562_v27  ;;  %v1564_v28 = vld [vmem:[%s11187_s14 + $0x9c0] sm:$0xff]  ;;  %v1566_v29 = vld [vmem:[%s11187_s14 + $0x9d0] sm:$0xff] }
  0x6a   : > { %v1568_v30 = vld [vmem:[%s11187_s14 + $0x9e0] sm:$0xff]  ;;  %1565 = vst [vmem:[%s11192_s24 + $0x4e0] sm:$0xff] %v1564_v28  ;;  %1567 = vst [vmem:[%s11192_s24 + $0x4e8] sm:$0xff] %v1566_v29  ;;  %v1570_v31 = vld [vmem:[%s11187_s14 + $0x9f0] sm:$0xff] }
  0x6b   : > { %1569 = vst [vmem:[%s11192_s24 + $0x4f0] sm:$0xff] %v1568_v30  ;;  %v1572_v32 = vld [vmem:[%s11187_s14 + $0xa00] sm:$0xff]  ;;  %v1574_v33 = vld [vmem:[%s11187_s14 + $0xa10] sm:$0xff]  ;;  %1571 = vst [vmem:[%s11192_s24 + $0x4f8] sm:$0xff] %v1570_v31 }
  0x6c   : > { %1573 = vst [vmem:[%s11192_s24 + $0x500] sm:$0xff] %v1572_v32  ;;  %1575 = vst [vmem:[%s11192_s24 + $0x508] sm:$0xff] %v1574_v33  ;;  %v1576_v34 = vld [vmem:[%s11187_s14 + $0xa20] sm:$0xff]  ;;  %v1578_v35 = vld [vmem:[%s11187_s14 + $0xa30] sm:$0xff] }
  0x6d   : > { %v1580_v36 = vld [vmem:[%s11187_s14 + $0xa40] sm:$0xff]  ;;  %1577 = vst [vmem:[%s11192_s24 + $0x510] sm:$0xff] %v1576_v34  ;;  %1579 = vst [vmem:[%s11192_s24 + $0x518] sm:$0xff] %v1578_v35  ;;  %v1582_v37 = vld [vmem:[%s11187_s14 + $0xa50] sm:$0xff] }
  0x6e   : > { %1581 = vst [vmem:[%s11192_s24 + $0x520] sm:$0xff] %v1580_v36  ;;  %v1584_v38 = vld [vmem:[%s11187_s14 + $0xa60] sm:$0xff]  ;;  %v1586_v39 = vld [vmem:[%s11187_s14 + $0xa70] sm:$0xff]  ;;  %1583 = vst [vmem:[%s11192_s24 + $0x528] sm:$0xff] %v1582_v37 }
  0x6f   : > { %1585 = vst [vmem:[%s11192_s24 + $0x530] sm:$0xff] %v1584_v38  ;;  %1587 = vst [vmem:[%s11192_s24 + $0x538] sm:$0xff] %v1586_v39  ;;  %v1588_v40 = vld [vmem:[%s11187_s14 + $0xa80] sm:$0xff]  ;;  %v1590_v41 = vld [vmem:[%s11187_s14 + $0xa90] sm:$0xff] }
  0x70   : > { %v1592_v42 = vld [vmem:[%s11187_s14 + $0xaa0] sm:$0xff]  ;;  %1589 = vst [vmem:[%s11192_s24 + $0x540] sm:$0xff] %v1588_v40  ;;  %1591 = vst [vmem:[%s11192_s24 + $0x548] sm:$0xff] %v1590_v41  ;;  %v1594_v43 = vld [vmem:[%s11187_s14 + $0xab0] sm:$0xff] }
  0x71   : > { %1593 = vst [vmem:[%s11192_s24 + $0x550] sm:$0xff] %v1592_v42  ;;  %v1596_v44 = vld [vmem:[%s11187_s14 + $0xac0] sm:$0xff]  ;;  %v1598_v45 = vld [vmem:[%s11187_s14 + $0xad0] sm:$0xff]  ;;  %1595 = vst [vmem:[%s11192_s24 + $0x558] sm:$0xff] %v1594_v43 }
  0x72   : > { %1597 = vst [vmem:[%s11192_s24 + $0x560] sm:$0xff] %v1596_v44  ;;  %1599 = vst [vmem:[%s11192_s24 + $0x568] sm:$0xff] %v1598_v45  ;;  %v1600_v46 = vld [vmem:[%s11187_s14 + $0xae0] sm:$0xff]  ;;  %v1602_v47 = vld [vmem:[%s11187_s14 + $0xaf0] sm:$0xff] }
  0x73   : > { %v1604_v48 = vld [vmem:[%s11187_s14 + $0xb00] sm:$0xff]  ;;  %1601 = vst [vmem:[%s11192_s24 + $0x570] sm:$0xff] %v1600_v46  ;;  %1603 = vst [vmem:[%s11192_s24 + $0x578] sm:$0xff] %v1602_v47  ;;  %v1606_v49 = vld [vmem:[%s11187_s14 + $0xb10] sm:$0xff] }
  0x74   : > { %1605 = vst [vmem:[%s11192_s24 + $0x580] sm:$0xff] %v1604_v48  ;;  %v1608_v50 = vld [vmem:[%s11187_s14 + $0xb20] sm:$0xff]  ;;  %v1610_v51 = vld [vmem:[%s11187_s14 + $0xb30] sm:$0xff]  ;;  %1607 = vst [vmem:[%s11192_s24 + $0x588] sm:$0xff] %v1606_v49 }
  0x75   : > { %1609 = vst [vmem:[%s11192_s24 + $0x590] sm:$0xff] %v1608_v50  ;;  %1611 = vst [vmem:[%s11192_s24 + $0x598] sm:$0xff] %v1610_v51  ;;  %v1612_v52 = vld [vmem:[%s11187_s14 + $0xb40] sm:$0xff]  ;;  %v1614_v53 = vld [vmem:[%s11187_s14 + $0xb50] sm:$0xff] }
  0x76   : > { %v1616_v54 = vld [vmem:[%s11187_s14 + $0xb60] sm:$0xff]  ;;  %1613 = vst [vmem:[%s11192_s24 + $0x5a0] sm:$0xff] %v1612_v52  ;;  %1615 = vst [vmem:[%s11192_s24 + $0x5a8] sm:$0xff] %v1614_v53  ;;  %v1618_v55 = vld [vmem:[%s11187_s14 + $0xb70] sm:$0xff] }
  0x77   : > { %1617 = vst [vmem:[%s11192_s24 + $0x5b0] sm:$0xff] %v1616_v54  ;;  %v1620_v56 = vld [vmem:[%s11187_s14 + $0xb80] sm:$0xff]  ;;  %v1622_v57 = vld [vmem:[%s11187_s14 + $0xb90] sm:$0xff]  ;;  %1619 = vst [vmem:[%s11192_s24 + $0x5b8] sm:$0xff] %v1618_v55 }
  0x78   : > { %1621 = vst [vmem:[%s11192_s24 + $0x5c0] sm:$0xff] %v1620_v56  ;;  %1623 = vst [vmem:[%s11192_s24 + $0x5c8] sm:$0xff] %v1622_v57  ;;  %v1624_v58 = vld [vmem:[%s11187_s14 + $0xba0] sm:$0xff]  ;;  %v1626_v59 = vld [vmem:[%s11187_s14 + $0xbb0] sm:$0xff] }
  0x79   : > { %v1628_v60 = vld [vmem:[%s11187_s14 + $0xbc0] sm:$0xff]  ;;  %1625 = vst [vmem:[%s11192_s24 + $0x5d0] sm:$0xff] %v1624_v58  ;;  %1627 = vst [vmem:[%s11192_s24 + $0x5d8] sm:$0xff] %v1626_v59  ;;  %v1630_v61 = vld [vmem:[%s11187_s14 + $0xbd0] sm:$0xff] }
  0x7a   : > { %1629 = vst [vmem:[%s11192_s24 + $0x5e0] sm:$0xff] %v1628_v60  ;;  %v1632_v62 = vld [vmem:[%s11187_s14 + $0xbe0] sm:$0xff]  ;;  %v1634_v63 = vld [vmem:[%s11187_s14 + $0xbf0] sm:$0xff]  ;;  %1631 = vst [vmem:[%s11192_s24 + $0x5e8] sm:$0xff] %v1630_v61 }
  0x7b   : > { %1633 = vst [vmem:[%s11192_s24 + $0x5f0] sm:$0xff] %v1632_v62  ;;  %1635 = vst [vmem:[%s11192_s24 + $0x5f8] sm:$0xff] %v1634_v63  ;;  %v1636_v0 = vld [vmem:[%s11187_s14 + $0xc00] sm:$0xff]  ;;  %v1638_v1 = vld [vmem:[%s11187_s14 + $0xc10] sm:$0xff] }
  0x7c   : > { %v1640_v2 = vld [vmem:[%s11187_s14 + $0xc20] sm:$0xff]  ;;  %1637 = vst [vmem:[%s11192_s24 + $0x600] sm:$0xff] %v1636_v0  ;;  %1639 = vst [vmem:[%s11192_s24 + $0x608] sm:$0xff] %v1638_v1  ;;  %v1642_v3 = vld [vmem:[%s11187_s14 + $0xc30] sm:$0xff] }
  0x7d   : > { %1641 = vst [vmem:[%s11192_s24 + $0x610] sm:$0xff] %v1640_v2  ;;  %v1644_v4 = vld [vmem:[%s11187_s14 + $0xc40] sm:$0xff]  ;;  %v1646_v5 = vld [vmem:[%s11187_s14 + $0xc50] sm:$0xff]  ;;  %1643 = vst [vmem:[%s11192_s24 + $0x618] sm:$0xff] %v1642_v3 }
  0x7e   : > { %1645 = vst [vmem:[%s11192_s24 + $0x620] sm:$0xff] %v1644_v4  ;;  %1647 = vst [vmem:[%s11192_s24 + $0x628] sm:$0xff] %v1646_v5  ;;  %v1648_v6 = vld [vmem:[%s11187_s14 + $0xc60] sm:$0xff]  ;;  %v1650_v7 = vld [vmem:[%s11187_s14 + $0xc70] sm:$0xff] }
  0x7f   : > { %v1652_v8 = vld [vmem:[%s11187_s14 + $0xc80] sm:$0xff]  ;;  %1649 = vst [vmem:[%s11192_s24 + $0x630] sm:$0xff] %v1648_v6  ;;  %1651 = vst [vmem:[%s11192_s24 + $0x638] sm:$0xff] %v1650_v7  ;;  %v1654_v9 = vld [vmem:[%s11187_s14 + $0xc90] sm:$0xff] }
  0x80   : > { %1653 = vst [vmem:[%s11192_s24 + $0x640] sm:$0xff] %v1652_v8  ;;  %v1656_v10 = vld [vmem:[%s11187_s14 + $0xca0] sm:$0xff]  ;;  %v1658_v11 = vld [vmem:[%s11187_s14 + $0xcb0] sm:$0xff]  ;;  %1655 = vst [vmem:[%s11192_s24 + $0x648] sm:$0xff] %v1654_v9 }
  0x81   : > { %1657 = vst [vmem:[%s11192_s24 + $0x650] sm:$0xff] %v1656_v10  ;;  %1659 = vst [vmem:[%s11192_s24 + $0x658] sm:$0xff] %v1658_v11  ;;  %v1660_v12 = vld [vmem:[%s11187_s14 + $0xcc0] sm:$0xff]  ;;  %v1662_v13 = vld [vmem:[%s11187_s14 + $0xcd0] sm:$0xff] }
  0x82   : > { %v1664_v14 = vld [vmem:[%s11187_s14 + $0xce0] sm:$0xff]  ;;  %1661 = vst [vmem:[%s11192_s24 + $0x660] sm:$0xff] %v1660_v12  ;;  %1663 = vst [vmem:[%s11192_s24 + $0x668] sm:$0xff] %v1662_v13  ;;  %v1666_v15 = vld [vmem:[%s11187_s14 + $0xcf0] sm:$0xff] }
  0x83   : > { %1665 = vst [vmem:[%s11192_s24 + $0x670] sm:$0xff] %v1664_v14  ;;  %v1668_v16 = vld [vmem:[%s11187_s14 + $0xd00] sm:$0xff]  ;;  %v1670_v17 = vld [vmem:[%s11187_s14 + $0xd10] sm:$0xff]  ;;  %1667 = vst [vmem:[%s11192_s24 + $0x678] sm:$0xff] %v1666_v15 }
  0x84   : > { %1669 = vst [vmem:[%s11192_s24 + $0x680] sm:$0xff] %v1668_v16  ;;  %1671 = vst [vmem:[%s11192_s24 + $0x688] sm:$0xff] %v1670_v17  ;;  %v1672_v18 = vld [vmem:[%s11187_s14 + $0xd20] sm:$0xff]  ;;  %v1674_v19 = vld [vmem:[%s11187_s14 + $0xd30] sm:$0xff] }
  0x85   : > { %v1676_v20 = vld [vmem:[%s11187_s14 + $0xd40] sm:$0xff]  ;;  %1673 = vst [vmem:[%s11192_s24 + $0x690] sm:$0xff] %v1672_v18  ;;  %1675 = vst [vmem:[%s11192_s24 + $0x698] sm:$0xff] %v1674_v19  ;;  %v1678_v21 = vld [vmem:[%s11187_s14 + $0xd50] sm:$0xff] }
  0x86   : > { %1677 = vst [vmem:[%s11192_s24 + $0x6a0] sm:$0xff] %v1676_v20  ;;  %v1680_v22 = vld [vmem:[%s11187_s14 + $0xd60] sm:$0xff]  ;;  %v1682_v23 = vld [vmem:[%s11187_s14 + $0xd70] sm:$0xff]  ;;  %1679 = vst [vmem:[%s11192_s24 + $0x6a8] sm:$0xff] %v1678_v21 }
  0x87   : > { %1681 = vst [vmem:[%s11192_s24 + $0x6b0] sm:$0xff] %v1680_v22  ;;  %1683 = vst [vmem:[%s11192_s24 + $0x6b8] sm:$0xff] %v1682_v23  ;;  %v1684_v24 = vld [vmem:[%s11187_s14 + $0xd80] sm:$0xff]  ;;  %v1686_v25 = vld [vmem:[%s11187_s14 + $0xd90] sm:$0xff] }
  0x88   : > { %v1688_v26 = vld [vmem:[%s11187_s14 + $0xda0] sm:$0xff]  ;;  %1685 = vst [vmem:[%s11192_s24 + $0x6c0] sm:$0xff] %v1684_v24  ;;  %1687 = vst [vmem:[%s11192_s24 + $0x6c8] sm:$0xff] %v1686_v25  ;;  %v1690_v27 = vld [vmem:[%s11187_s14 + $0xdb0] sm:$0xff] }
  0x89   : > { %1689 = vst [vmem:[%s11192_s24 + $0x6d0] sm:$0xff] %v1688_v26  ;;  %v1692_v28 = vld [vmem:[%s11187_s14 + $0xdc0] sm:$0xff]  ;;  %v1694_v29 = vld [vmem:[%s11187_s14 + $0xdd0] sm:$0xff]  ;;  %1691 = vst [vmem:[%s11192_s24 + $0x6d8] sm:$0xff] %v1690_v27 }
  0x8a   : > { %1693 = vst [vmem:[%s11192_s24 + $0x6e0] sm:$0xff] %v1692_v28  ;;  %1695 = vst [vmem:[%s11192_s24 + $0x6e8] sm:$0xff] %v1694_v29  ;;  %v1696_v30 = vld [vmem:[%s11187_s14 + $0xde0] sm:$0xff]  ;;  %v1698_v31 = vld [vmem:[%s11187_s14 + $0xdf0] sm:$0xff] }
  0x8b   : > { %v1700_v32 = vld [vmem:[%s11187_s14 + $0xe00] sm:$0xff]  ;;  %1697 = vst [vmem:[%s11192_s24 + $0x6f0] sm:$0xff] %v1696_v30  ;;  %1699 = vst [vmem:[%s11192_s24 + $0x6f8] sm:$0xff] %v1698_v31  ;;  %v1702_v33 = vld [vmem:[%s11187_s14 + $0xe10] sm:$0xff] }
  0x8c   : > { %1701 = vst [vmem:[%s11192_s24 + $0x700] sm:$0xff] %v1700_v32  ;;  %v1704_v34 = vld [vmem:[%s11187_s14 + $0xe20] sm:$0xff]  ;;  %v1706_v35 = vld [vmem:[%s11187_s14 + $0xe30] sm:$0xff]  ;;  %1703 = vst [vmem:[%s11192_s24 + $0x708] sm:$0xff] %v1702_v33 }
  0x8d   : > { %1705 = vst [vmem:[%s11192_s24 + $0x710] sm:$0xff] %v1704_v34  ;;  %1707 = vst [vmem:[%s11192_s24 + $0x718] sm:$0xff] %v1706_v35  ;;  %v1708_v36 = vld [vmem:[%s11187_s14 + $0xe40] sm:$0xff]  ;;  %v1710_v37 = vld [vmem:[%s11187_s14 + $0xe50] sm:$0xff] }
  0x8e   : > { %v1712_v38 = vld [vmem:[%s11187_s14 + $0xe60] sm:$0xff]  ;;  %1709 = vst [vmem:[%s11192_s24 + $0x720] sm:$0xff] %v1708_v36  ;;  %1711 = vst [vmem:[%s11192_s24 + $0x728] sm:$0xff] %v1710_v37  ;;  %v1714_v39 = vld [vmem:[%s11187_s14 + $0xe70] sm:$0xff] }
  0x8f   : > { %1713 = vst [vmem:[%s11192_s24 + $0x730] sm:$0xff] %v1712_v38  ;;  %v1716_v40 = vld [vmem:[%s11187_s14 + $0xe80] sm:$0xff]  ;;  %v1718_v41 = vld [vmem:[%s11187_s14 + $0xe90] sm:$0xff]  ;;  %1715 = vst [vmem:[%s11192_s24 + $0x738] sm:$0xff] %v1714_v39 }
  0x90   : > { %1717 = vst [vmem:[%s11192_s24 + $0x740] sm:$0xff] %v1716_v40  ;;  %1719 = vst [vmem:[%s11192_s24 + $0x748] sm:$0xff] %v1718_v41  ;;  %v1720_v42 = vld [vmem:[%s11187_s14 + $0xea0] sm:$0xff]  ;;  %v1722_v43 = vld [vmem:[%s11187_s14 + $0xeb0] sm:$0xff] }
  0x91   : > { %v1724_v44 = vld [vmem:[%s11187_s14 + $0xec0] sm:$0xff]  ;;  %1721 = vst [vmem:[%s11192_s24 + $0x750] sm:$0xff] %v1720_v42  ;;  %1723 = vst [vmem:[%s11192_s24 + $0x758] sm:$0xff] %v1722_v43  ;;  %v1726_v45 = vld [vmem:[%s11187_s14 + $0xed0] sm:$0xff] }
  0x92   : > { %1725 = vst [vmem:[%s11192_s24 + $0x760] sm:$0xff] %v1724_v44  ;;  %v1728_v46 = vld [vmem:[%s11187_s14 + $0xee0] sm:$0xff]  ;;  %v1730_v47 = vld [vmem:[%s11187_s14 + $0xef0] sm:$0xff]  ;;  %1727 = vst [vmem:[%s11192_s24 + $0x768] sm:$0xff] %v1726_v45 }
  0x93   : > { %1729 = vst [vmem:[%s11192_s24 + $0x770] sm:$0xff] %v1728_v46  ;;  %1731 = vst [vmem:[%s11192_s24 + $0x778] sm:$0xff] %v1730_v47  ;;  %v1732_v48 = vld [vmem:[%s11187_s14 + $0xf00] sm:$0xff]  ;;  %v1734_v49 = vld [vmem:[%s11187_s14 + $0xf10] sm:$0xff] }
  0x94   : > { %v1736_v50 = vld [vmem:[%s11187_s14 + $0xf20] sm:$0xff]  ;;  %1733 = vst [vmem:[%s11192_s24 + $0x780] sm:$0xff] %v1732_v48  ;;  %1735 = vst [vmem:[%s11192_s24 + $0x788] sm:$0xff] %v1734_v49  ;;  %v1738_v51 = vld [vmem:[%s11187_s14 + $0xf30] sm:$0xff] }
  0x95   : > { %1737 = vst [vmem:[%s11192_s24 + $0x790] sm:$0xff] %v1736_v50  ;;  %v1740_v52 = vld [vmem:[%s11187_s14 + $0xf40] sm:$0xff]  ;;  %v1742_v53 = vld [vmem:[%s11187_s14 + $0xf50] sm:$0xff]  ;;  %1739 = vst [vmem:[%s11192_s24 + $0x798] sm:$0xff] %v1738_v51 }
  0x96   : > { %1741 = vst [vmem:[%s11192_s24 + $0x7a0] sm:$0xff] %v1740_v52  ;;  %1743 = vst [vmem:[%s11192_s24 + $0x7a8] sm:$0xff] %v1742_v53  ;;  %v1744_v54 = vld [vmem:[%s11187_s14 + $0xf60] sm:$0xff]  ;;  %v1746_v55 = vld [vmem:[%s11187_s14 + $0xf70] sm:$0xff] }
  0x97   : > { %v1748_v56 = vld [vmem:[%s11187_s14 + $0xf80] sm:$0xff]  ;;  %1745 = vst [vmem:[%s11192_s24 + $0x7b0] sm:$0xff] %v1744_v54  ;;  %1747 = vst [vmem:[%s11192_s24 + $0x7b8] sm:$0xff] %v1746_v55  ;;  %v1750_v57 = vld [vmem:[%s11187_s14 + $0xf90] sm:$0xff] }
  0x98   : > { %1749 = vst [vmem:[%s11192_s24 + $0x7c0] sm:$0xff] %v1748_v56  ;;  %v1752_v58 = vld [vmem:[%s11187_s14 + $0xfa0] sm:$0xff]  ;;  %v1754_v59 = vld [vmem:[%s11187_s14 + $0xfb0] sm:$0xff]  ;;  %1751 = vst [vmem:[%s11192_s24 + $0x7c8] sm:$0xff] %v1750_v57 }
  0x99   : > { %1753 = vst [vmem:[%s11192_s24 + $0x7d0] sm:$0xff] %v1752_v58  ;;  %1755 = vst [vmem:[%s11192_s24 + $0x7d8] sm:$0xff] %v1754_v59  ;;  %v1756_v60 = vld [vmem:[%s11187_s14 + $0xfc0] sm:$0xff]  ;;  %v1758_v61 = vld [vmem:[%s11187_s14 + $0xfd0] sm:$0xff] }
  0x9a   : > { %v1760_v62 = vld [vmem:[%s11187_s14 + $0xfe0] sm:$0xff]  ;;  %1757 = vst [vmem:[%s11192_s24 + $0x7e0] sm:$0xff] %v1756_v60  ;;  %1759 = vst [vmem:[%s11192_s24 + $0x7e8] sm:$0xff] %v1758_v61  ;;  %v1762_v63 = vld [vmem:[%s11187_s14 + $0xff0] sm:$0xff] }
  0x9b   : > { %1761 = vst [vmem:[%s11192_s24 + $0x7f0] sm:$0xff] %v1760_v62  ;;  %v1764_v0 = vld [vmem:[%s11187_s14 + $0x1000] sm:$0xff]  ;;  %v1766_v1 = vld [vmem:[%s11187_s14 + $0x1010] sm:$0xff]  ;;  %1763 = vst [vmem:[%s11192_s24 + $0x7f8] sm:$0xff] %v1762_v63 }
  0x9c   : > { %1765 = vst [vmem:[%s11192_s24 + $0x800] sm:$0xff] %v1764_v0  ;;  %1767 = vst [vmem:[%s11192_s24 + $0x808] sm:$0xff] %v1766_v1  ;;  %v1768_v2 = vld [vmem:[%s11187_s14 + $0x1020] sm:$0xff]  ;;  %v1770_v3 = vld [vmem:[%s11187_s14 + $0x1030] sm:$0xff] }
  0x9d   : > { %v1772_v4 = vld [vmem:[%s11187_s14 + $0x1040] sm:$0xff]  ;;  %1769 = vst [vmem:[%s11192_s24 + $0x810] sm:$0xff] %v1768_v2  ;;  %1771 = vst [vmem:[%s11192_s24 + $0x818] sm:$0xff] %v1770_v3  ;;  %v1774_v5 = vld [vmem:[%s11187_s14 + $0x1050] sm:$0xff] }
  0x9e   : > { %1773 = vst [vmem:[%s11192_s24 + $0x820] sm:$0xff] %v1772_v4  ;;  %v1776_v6 = vld [vmem:[%s11187_s14 + $0x1060] sm:$0xff]  ;;  %v1778_v7 = vld [vmem:[%s11187_s14 + $0x1070] sm:$0xff]  ;;  %1775 = vst [vmem:[%s11192_s24 + $0x828] sm:$0xff] %v1774_v5 }
  0x9f   : > { %1777 = vst [vmem:[%s11192_s24 + $0x830] sm:$0xff] %v1776_v6  ;;  %1779 = vst [vmem:[%s11192_s24 + $0x838] sm:$0xff] %v1778_v7  ;;  %v1780_v8 = vld [vmem:[%s11187_s14 + $0x1080] sm:$0xff]  ;;  %v1782_v9 = vld [vmem:[%s11187_s14 + $0x1090] sm:$0xff] }
  0xa0   : > { %v1784_v10 = vld [vmem:[%s11187_s14 + $0x10a0] sm:$0xff]  ;;  %1781 = vst [vmem:[%s11192_s24 + $0x840] sm:$0xff] %v1780_v8  ;;  %1783 = vst [vmem:[%s11192_s24 + $0x848] sm:$0xff] %v1782_v9  ;;  %v1786_v11 = vld [vmem:[%s11187_s14 + $0x10b0] sm:$0xff] }
  0xa1   : > { %1785 = vst [vmem:[%s11192_s24 + $0x850] sm:$0xff] %v1784_v10  ;;  %v1788_v12 = vld [vmem:[%s11187_s14 + $0x10c0] sm:$0xff]  ;;  %v1790_v13 = vld [vmem:[%s11187_s14 + $0x10d0] sm:$0xff]  ;;  %1787 = vst [vmem:[%s11192_s24 + $0x858] sm:$0xff] %v1786_v11 }
  0xa2   : > { %1789 = vst [vmem:[%s11192_s24 + $0x860] sm:$0xff] %v1788_v12  ;;  %1791 = vst [vmem:[%s11192_s24 + $0x868] sm:$0xff] %v1790_v13  ;;  %v1792_v14 = vld [vmem:[%s11187_s14 + $0x10e0] sm:$0xff]  ;;  %v1794_v15 = vld [vmem:[%s11187_s14 + $0x10f0] sm:$0xff] }
  0xa3   : > { %v1796_v16 = vld [vmem:[%s11187_s14 + $0x1100] sm:$0xff]  ;;  %1793 = vst [vmem:[%s11192_s24 + $0x870] sm:$0xff] %v1792_v14  ;;  %1795 = vst [vmem:[%s11192_s24 + $0x878] sm:$0xff] %v1794_v15  ;;  %v1798_v17 = vld [vmem:[%s11187_s14 + $0x1110] sm:$0xff] }
  0xa4   : > { %1797 = vst [vmem:[%s11192_s24 + $0x880] sm:$0xff] %v1796_v16  ;;  %v1800_v18 = vld [vmem:[%s11187_s14 + $0x1120] sm:$0xff]  ;;  %v1802_v19 = vld [vmem:[%s11187_s14 + $0x1130] sm:$0xff]  ;;  %1799 = vst [vmem:[%s11192_s24 + $0x888] sm:$0xff] %v1798_v17 }
  0xa5   : > { %1801 = vst [vmem:[%s11192_s24 + $0x890] sm:$0xff] %v1800_v18  ;;  %1803 = vst [vmem:[%s11192_s24 + $0x898] sm:$0xff] %v1802_v19  ;;  %v1804_v20 = vld [vmem:[%s11187_s14 + $0x1140] sm:$0xff]  ;;  %v1806_v21 = vld [vmem:[%s11187_s14 + $0x1150] sm:$0xff] }
  0xa6   : > { %v1808_v22 = vld [vmem:[%s11187_s14 + $0x1160] sm:$0xff]  ;;  %1805 = vst [vmem:[%s11192_s24 + $0x8a0] sm:$0xff] %v1804_v20  ;;  %1807 = vst [vmem:[%s11192_s24 + $0x8a8] sm:$0xff] %v1806_v21  ;;  %v1810_v23 = vld [vmem:[%s11187_s14 + $0x1170] sm:$0xff] }
  0xa7   : > { %1809 = vst [vmem:[%s11192_s24 + $0x8b0] sm:$0xff] %v1808_v22  ;;  %v1812_v24 = vld [vmem:[%s11187_s14 + $0x1180] sm:$0xff]  ;;  %v1814_v25 = vld [vmem:[%s11187_s14 + $0x1190] sm:$0xff]  ;;  %1811 = vst [vmem:[%s11192_s24 + $0x8b8] sm:$0xff] %v1810_v23 }
  0xa8   : > { %1813 = vst [vmem:[%s11192_s24 + $0x8c0] sm:$0xff] %v1812_v24  ;;  %1815 = vst [vmem:[%s11192_s24 + $0x8c8] sm:$0xff] %v1814_v25  ;;  %v1816_v26 = vld [vmem:[%s11187_s14 + $0x11a0] sm:$0xff]  ;;  %v1818_v27 = vld [vmem:[%s11187_s14 + $0x11b0] sm:$0xff] }
  0xa9   : > { %v1820_v28 = vld [vmem:[%s11187_s14 + $0x11c0] sm:$0xff]  ;;  %1817 = vst [vmem:[%s11192_s24 + $0x8d0] sm:$0xff] %v1816_v26  ;;  %1819 = vst [vmem:[%s11192_s24 + $0x8d8] sm:$0xff] %v1818_v27  ;;  %v1822_v29 = vld [vmem:[%s11187_s14 + $0x11d0] sm:$0xff] }
  0xaa   : > { %1821 = vst [vmem:[%s11192_s24 + $0x8e0] sm:$0xff] %v1820_v28  ;;  %v1824_v30 = vld [vmem:[%s11187_s14 + $0x11e0] sm:$0xff]  ;;  %v1826_v31 = vld [vmem:[%s11187_s14 + $0x11f0] sm:$0xff]  ;;  %1823 = vst [vmem:[%s11192_s24 + $0x8e8] sm:$0xff] %v1822_v29 }
  0xab   : > { %1825 = vst [vmem:[%s11192_s24 + $0x8f0] sm:$0xff] %v1824_v30  ;;  %1827 = vst [vmem:[%s11192_s24 + $0x8f8] sm:$0xff] %v1826_v31  ;;  %v1828_v32 = vld [vmem:[%s11187_s14 + $0x1200] sm:$0xff]  ;;  %v1830_v33 = vld [vmem:[%s11187_s14 + $0x1210] sm:$0xff] }
  0xac   : > { %v1832_v34 = vld [vmem:[%s11187_s14 + $0x1220] sm:$0xff]  ;;  %1829 = vst [vmem:[%s11192_s24 + $0x900] sm:$0xff] %v1828_v32  ;;  %1831 = vst [vmem:[%s11192_s24 + $0x908] sm:$0xff] %v1830_v33  ;;  %v1834_v35 = vld [vmem:[%s11187_s14 + $0x1230] sm:$0xff] }
  0xad   : > { %1833 = vst [vmem:[%s11192_s24 + $0x910] sm:$0xff] %v1832_v34  ;;  %v1836_v36 = vld [vmem:[%s11187_s14 + $0x1240] sm:$0xff]  ;;  %v1838_v37 = vld [vmem:[%s11187_s14 + $0x1250] sm:$0xff]  ;;  %1835 = vst [vmem:[%s11192_s24 + $0x918] sm:$0xff] %v1834_v35 }
  0xae   : > { %1837 = vst [vmem:[%s11192_s24 + $0x920] sm:$0xff] %v1836_v36  ;;  %1839 = vst [vmem:[%s11192_s24 + $0x928] sm:$0xff] %v1838_v37  ;;  %v1840_v38 = vld [vmem:[%s11187_s14 + $0x1260] sm:$0xff]  ;;  %v1842_v39 = vld [vmem:[%s11187_s14 + $0x1270] sm:$0xff] }
  0xaf   : > { %v1844_v40 = vld [vmem:[%s11187_s14 + $0x1280] sm:$0xff]  ;;  %1841 = vst [vmem:[%s11192_s24 + $0x930] sm:$0xff] %v1840_v38  ;;  %1843 = vst [vmem:[%s11192_s24 + $0x938] sm:$0xff] %v1842_v39  ;;  %v1846_v41 = vld [vmem:[%s11187_s14 + $0x1290] sm:$0xff] }
  0xb0   : > { %1845 = vst [vmem:[%s11192_s24 + $0x940] sm:$0xff] %v1844_v40  ;;  %v1848_v42 = vld [vmem:[%s11187_s14 + $0x12a0] sm:$0xff]  ;;  %v1850_v43 = vld [vmem:[%s11187_s14 + $0x12b0] sm:$0xff]  ;;  %1847 = vst [vmem:[%s11192_s24 + $0x948] sm:$0xff] %v1846_v41 }
  0xb1   : > { %1849 = vst [vmem:[%s11192_s24 + $0x950] sm:$0xff] %v1848_v42  ;;  %1851 = vst [vmem:[%s11192_s24 + $0x958] sm:$0xff] %v1850_v43  ;;  %v1852_v44 = vld [vmem:[%s11187_s14 + $0x12c0] sm:$0xff]  ;;  %v1854_v45 = vld [vmem:[%s11187_s14 + $0x12d0] sm:$0xff] }
  0xb2   : > { %v1856_v46 = vld [vmem:[%s11187_s14 + $0x12e0] sm:$0xff]  ;;  %1853 = vst [vmem:[%s11192_s24 + $0x960] sm:$0xff] %v1852_v44  ;;  %1855 = vst [vmem:[%s11192_s24 + $0x968] sm:$0xff] %v1854_v45  ;;  %v1858_v47 = vld [vmem:[%s11187_s14 + $0x12f0] sm:$0xff] }
  0xb3   : > { %1857 = vst [vmem:[%s11192_s24 + $0x970] sm:$0xff] %v1856_v46  ;;  %v1860_v48 = vld [vmem:[%s11187_s14 + $0x1300] sm:$0xff]  ;;  %v1862_v49 = vld [vmem:[%s11187_s14 + $0x1310] sm:$0xff]  ;;  %1859 = vst [vmem:[%s11192_s24 + $0x978] sm:$0xff] %v1858_v47 }
  0xb4   : > { %1861 = vst [vmem:[%s11192_s24 + $0x980] sm:$0xff] %v1860_v48  ;;  %1863 = vst [vmem:[%s11192_s24 + $0x988] sm:$0xff] %v1862_v49  ;;  %v1864_v50 = vld [vmem:[%s11187_s14 + $0x1320] sm:$0xff]  ;;  %v1866_v51 = vld [vmem:[%s11187_s14 + $0x1330] sm:$0xff] }
  0xb5   : > { %v1868_v52 = vld [vmem:[%s11187_s14 + $0x1340] sm:$0xff]  ;;  %1865 = vst [vmem:[%s11192_s24 + $0x990] sm:$0xff] %v1864_v50  ;;  %1867 = vst [vmem:[%s11192_s24 + $0x998] sm:$0xff] %v1866_v51  ;;  %v1870_v53 = vld [vmem:[%s11187_s14 + $0x1350] sm:$0xff] }
  0xb6   : > { %1869 = vst [vmem:[%s11192_s24 + $0x9a0] sm:$0xff] %v1868_v52  ;;  %v1872_v54 = vld [vmem:[%s11187_s14 + $0x1360] sm:$0xff]  ;;  %v1874_v55 = vld [vmem:[%s11187_s14 + $0x1370] sm:$0xff]  ;;  %1871 = vst [vmem:[%s11192_s24 + $0x9a8] sm:$0xff] %v1870_v53 }
  0xb7   : > { %1873 = vst [vmem:[%s11192_s24 + $0x9b0] sm:$0xff] %v1872_v54  ;;  %1875 = vst [vmem:[%s11192_s24 + $0x9b8] sm:$0xff] %v1874_v55  ;;  %v1876_v56 = vld [vmem:[%s11187_s14 + $0x1380] sm:$0xff]  ;;  %v1878_v57 = vld [vmem:[%s11187_s14 + $0x1390] sm:$0xff] }
  0xb8   : > { %v1880_v58 = vld [vmem:[%s11187_s14 + $0x13a0] sm:$0xff]  ;;  %1877 = vst [vmem:[%s11192_s24 + $0x9c0] sm:$0xff] %v1876_v56  ;;  %1879 = vst [vmem:[%s11192_s24 + $0x9c8] sm:$0xff] %v1878_v57  ;;  %v1882_v59 = vld [vmem:[%s11187_s14 + $0x13b0] sm:$0xff] }
  0xb9   : > { %1881 = vst [vmem:[%s11192_s24 + $0x9d0] sm:$0xff] %v1880_v58  ;;  %v1884_v60 = vld [vmem:[%s11187_s14 + $0x13c0] sm:$0xff]  ;;  %v1886_v61 = vld [vmem:[%s11187_s14 + $0x13d0] sm:$0xff]  ;;  %1883 = vst [vmem:[%s11192_s24 + $0x9d8] sm:$0xff] %v1882_v59 }
  0xba   : > { %1885 = vst [vmem:[%s11192_s24 + $0x9e0] sm:$0xff] %v1884_v60  ;;  %1887 = vst [vmem:[%s11192_s24 + $0x9e8] sm:$0xff] %v1886_v61  ;;  %v1888_v62 = vld [vmem:[%s11187_s14 + $0x13e0] sm:$0xff]  ;;  %v1890_v63 = vld [vmem:[%s11187_s14 + $0x13f0] sm:$0xff] }
  0xbb   : > { %v1892_v0 = vld [vmem:[%s11187_s14 + $0x1400] sm:$0xff]  ;;  %1889 = vst [vmem:[%s11192_s24 + $0x9f0] sm:$0xff] %v1888_v62  ;;  %1891 = vst [vmem:[%s11192_s24 + $0x9f8] sm:$0xff] %v1890_v63  ;;  %v1894_v1 = vld [vmem:[%s11187_s14 + $0x1410] sm:$0xff] }
  0xbc   : > { %1893 = vst [vmem:[%s11192_s24 + $0xa00] sm:$0xff] %v1892_v0  ;;  %v1896_v2 = vld [vmem:[%s11187_s14 + $0x1420] sm:$0xff]  ;;  %v1898_v3 = vld [vmem:[%s11187_s14 + $0x1430] sm:$0xff]  ;;  %1895 = vst [vmem:[%s11192_s24 + $0xa08] sm:$0xff] %v1894_v1 }
  0xbd   : > { %1897 = vst [vmem:[%s11192_s24 + $0xa10] sm:$0xff] %v1896_v2  ;;  %1899 = vst [vmem:[%s11192_s24 + $0xa18] sm:$0xff] %v1898_v3  ;;  %v1900_v4 = vld [vmem:[%s11187_s14 + $0x1440] sm:$0xff]  ;;  %v1902_v5 = vld [vmem:[%s11187_s14 + $0x1450] sm:$0xff] }
  0xbe   : > { %v1904_v6 = vld [vmem:[%s11187_s14 + $0x1460] sm:$0xff]  ;;  %1901 = vst [vmem:[%s11192_s24 + $0xa20] sm:$0xff] %v1900_v4  ;;  %1903 = vst [vmem:[%s11192_s24 + $0xa28] sm:$0xff] %v1902_v5  ;;  %v1906_v7 = vld [vmem:[%s11187_s14 + $0x1470] sm:$0xff] }
  0xbf   : > { %1905 = vst [vmem:[%s11192_s24 + $0xa30] sm:$0xff] %v1904_v6  ;;  %v1908_v8 = vld [vmem:[%s11187_s14 + $0x1480] sm:$0xff]  ;;  %v1910_v9 = vld [vmem:[%s11187_s14 + $0x1490] sm:$0xff]  ;;  %1907 = vst [vmem:[%s11192_s24 + $0xa38] sm:$0xff] %v1906_v7 }
  0xc0   : > { %1909 = vst [vmem:[%s11192_s24 + $0xa40] sm:$0xff] %v1908_v8  ;;  %1911 = vst [vmem:[%s11192_s24 + $0xa48] sm:$0xff] %v1910_v9  ;;  %v1912_v10 = vld [vmem:[%s11187_s14 + $0x14a0] sm:$0xff]  ;;  %v1914_v11 = vld [vmem:[%s11187_s14 + $0x14b0] sm:$0xff] }
  0xc1   : > { %v1916_v12 = vld [vmem:[%s11187_s14 + $0x14c0] sm:$0xff]  ;;  %1913 = vst [vmem:[%s11192_s24 + $0xa50] sm:$0xff] %v1912_v10  ;;  %1915 = vst [vmem:[%s11192_s24 + $0xa58] sm:$0xff] %v1914_v11  ;;  %v1918_v13 = vld [vmem:[%s11187_s14 + $0x14d0] sm:$0xff] }
  0xc2   : > { %1917 = vst [vmem:[%s11192_s24 + $0xa60] sm:$0xff] %v1916_v12  ;;  %v1920_v14 = vld [vmem:[%s11187_s14 + $0x14e0] sm:$0xff]  ;;  %v1922_v15 = vld [vmem:[%s11187_s14 + $0x14f0] sm:$0xff]  ;;  %1919 = vst [vmem:[%s11192_s24 + $0xa68] sm:$0xff] %v1918_v13 }
  0xc3   : > { %1921 = vst [vmem:[%s11192_s24 + $0xa70] sm:$0xff] %v1920_v14  ;;  %1923 = vst [vmem:[%s11192_s24 + $0xa78] sm:$0xff] %v1922_v15  ;;  %v1924_v16 = vld [vmem:[%s11187_s14 + $0x1500] sm:$0xff]  ;;  %v1926_v17 = vld [vmem:[%s11187_s14 + $0x1510] sm:$0xff] }
  0xc4   : > { %v1928_v18 = vld [vmem:[%s11187_s14 + $0x1520] sm:$0xff]  ;;  %1925 = vst [vmem:[%s11192_s24 + $0xa80] sm:$0xff] %v1924_v16  ;;  %1927 = vst [vmem:[%s11192_s24 + $0xa88] sm:$0xff] %v1926_v17  ;;  %v1930_v19 = vld [vmem:[%s11187_s14 + $0x1530] sm:$0xff] }
  0xc5   : > { %1929 = vst [vmem:[%s11192_s24 + $0xa90] sm:$0xff] %v1928_v18  ;;  %v1932_v20 = vld [vmem:[%s11187_s14 + $0x1540] sm:$0xff]  ;;  %v1934_v21 = vld [vmem:[%s11187_s14 + $0x1550] sm:$0xff]  ;;  %1931 = vst [vmem:[%s11192_s24 + $0xa98] sm:$0xff] %v1930_v19 }
  0xc6   : > { %1933 = vst [vmem:[%s11192_s24 + $0xaa0] sm:$0xff] %v1932_v20  ;;  %1935 = vst [vmem:[%s11192_s24 + $0xaa8] sm:$0xff] %v1934_v21  ;;  %v1936_v22 = vld [vmem:[%s11187_s14 + $0x1560] sm:$0xff]  ;;  %v1938_v23 = vld [vmem:[%s11187_s14 + $0x1570] sm:$0xff] }
  0xc7   : > { %v1940_v24 = vld [vmem:[%s11187_s14 + $0x1580] sm:$0xff]  ;;  %1937 = vst [vmem:[%s11192_s24 + $0xab0] sm:$0xff] %v1936_v22  ;;  %1939 = vst [vmem:[%s11192_s24 + $0xab8] sm:$0xff] %v1938_v23  ;;  %v1942_v25 = vld [vmem:[%s11187_s14 + $0x1590] sm:$0xff] }
  0xc8   : > { %1941 = vst [vmem:[%s11192_s24 + $0xac0] sm:$0xff] %v1940_v24  ;;  %v1944_v26 = vld [vmem:[%s11187_s14 + $0x15a0] sm:$0xff]  ;;  %v1946_v27 = vld [vmem:[%s11187_s14 + $0x15b0] sm:$0xff]  ;;  %1943 = vst [vmem:[%s11192_s24 + $0xac8] sm:$0xff] %v1942_v25 }
  0xc9   : > { %1945 = vst [vmem:[%s11192_s24 + $0xad0] sm:$0xff] %v1944_v26  ;;  %1947 = vst [vmem:[%s11192_s24 + $0xad8] sm:$0xff] %v1946_v27  ;;  %v1948_v28 = vld [vmem:[%s11187_s14 + $0x15c0] sm:$0xff]  ;;  %v1950_v29 = vld [vmem:[%s11187_s14 + $0x15d0] sm:$0xff] }
  0xca   : > { %v1952_v30 = vld [vmem:[%s11187_s14 + $0x15e0] sm:$0xff]  ;;  %1949 = vst [vmem:[%s11192_s24 + $0xae0] sm:$0xff] %v1948_v28  ;;  %1951 = vst [vmem:[%s11192_s24 + $0xae8] sm:$0xff] %v1950_v29  ;;  %v1954_v31 = vld [vmem:[%s11187_s14 + $0x15f0] sm:$0xff] }
  0xcb   : > { %1953 = vst [vmem:[%s11192_s24 + $0xaf0] sm:$0xff] %v1952_v30  ;;  %v1956_v32 = vld [vmem:[%s11187_s14 + $0x1600] sm:$0xff]  ;;  %v1958_v33 = vld [vmem:[%s11187_s14 + $0x1610] sm:$0xff]  ;;  %1955 = vst [vmem:[%s11192_s24 + $0xaf8] sm:$0xff] %v1954_v31 }
  0xcc   : > { %1957 = vst [vmem:[%s11192_s24 + $0xb00] sm:$0xff] %v1956_v32  ;;  %1959 = vst [vmem:[%s11192_s24 + $0xb08] sm:$0xff] %v1958_v33  ;;  %v1960_v34 = vld [vmem:[%s11187_s14 + $0x1620] sm:$0xff]  ;;  %v1962_v35 = vld [vmem:[%s11187_s14 + $0x1630] sm:$0xff] }
  0xcd   : > { %v1964_v36 = vld [vmem:[%s11187_s14 + $0x1640] sm:$0xff]  ;;  %1961 = vst [vmem:[%s11192_s24 + $0xb10] sm:$0xff] %v1960_v34  ;;  %1963 = vst [vmem:[%s11192_s24 + $0xb18] sm:$0xff] %v1962_v35  ;;  %v1966_v37 = vld [vmem:[%s11187_s14 + $0x1650] sm:$0xff] }
  0xce   : > { %1965 = vst [vmem:[%s11192_s24 + $0xb20] sm:$0xff] %v1964_v36  ;;  %v1968_v38 = vld [vmem:[%s11187_s14 + $0x1660] sm:$0xff]  ;;  %v1970_v39 = vld [vmem:[%s11187_s14 + $0x1670] sm:$0xff]  ;;  %1967 = vst [vmem:[%s11192_s24 + $0xb28] sm:$0xff] %v1966_v37 }
  0xcf   : > { %1969 = vst [vmem:[%s11192_s24 + $0xb30] sm:$0xff] %v1968_v38  ;;  %1971 = vst [vmem:[%s11192_s24 + $0xb38] sm:$0xff] %v1970_v39  ;;  %v1972_v40 = vld [vmem:[%s11187_s14 + $0x1680] sm:$0xff]  ;;  %v1974_v41 = vld [vmem:[%s11187_s14 + $0x1690] sm:$0xff] }
  0xd0   : > { %v1976_v42 = vld [vmem:[%s11187_s14 + $0x16a0] sm:$0xff]  ;;  %1973 = vst [vmem:[%s11192_s24 + $0xb40] sm:$0xff] %v1972_v40  ;;  %1975 = vst [vmem:[%s11192_s24 + $0xb48] sm:$0xff] %v1974_v41  ;;  %v1978_v43 = vld [vmem:[%s11187_s14 + $0x16b0] sm:$0xff] }
  0xd1   : > { %1977 = vst [vmem:[%s11192_s24 + $0xb50] sm:$0xff] %v1976_v42  ;;  %v1980_v44 = vld [vmem:[%s11187_s14 + $0x16c0] sm:$0xff]  ;;  %v1982_v45 = vld [vmem:[%s11187_s14 + $0x16d0] sm:$0xff]  ;;  %1979 = vst [vmem:[%s11192_s24 + $0xb58] sm:$0xff] %v1978_v43 }
  0xd2   : > { %1981 = vst [vmem:[%s11192_s24 + $0xb60] sm:$0xff] %v1980_v44  ;;  %1983 = vst [vmem:[%s11192_s24 + $0xb68] sm:$0xff] %v1982_v45  ;;  %v1984_v46 = vld [vmem:[%s11187_s14 + $0x16e0] sm:$0xff]  ;;  %v1986_v47 = vld [vmem:[%s11187_s14 + $0x16f0] sm:$0xff] }
  0xd3   : > { %v1988_v48 = vld [vmem:[%s11187_s14 + $0x1700] sm:$0xff]  ;;  %1985 = vst [vmem:[%s11192_s24 + $0xb70] sm:$0xff] %v1984_v46  ;;  %1987 = vst [vmem:[%s11192_s24 + $0xb78] sm:$0xff] %v1986_v47  ;;  %v1990_v49 = vld [vmem:[%s11187_s14 + $0x1710] sm:$0xff] }
  0xd4   : > { %1989 = vst [vmem:[%s11192_s24 + $0xb80] sm:$0xff] %v1988_v48  ;;  %v1992_v50 = vld [vmem:[%s11187_s14 + $0x1720] sm:$0xff]  ;;  %v1994_v51 = vld [vmem:[%s11187_s14 + $0x1730] sm:$0xff]  ;;  %1991 = vst [vmem:[%s11192_s24 + $0xb88] sm:$0xff] %v1990_v49 }
  0xd5   : > { %1993 = vst [vmem:[%s11192_s24 + $0xb90] sm:$0xff] %v1992_v50  ;;  %1995 = vst [vmem:[%s11192_s24 + $0xb98] sm:$0xff] %v1994_v51  ;;  %v1996_v52 = vld [vmem:[%s11187_s14 + $0x1740] sm:$0xff]  ;;  %v1998_v53 = vld [vmem:[%s11187_s14 + $0x1750] sm:$0xff] }
  0xd6   : > { %v2000_v54 = vld [vmem:[%s11187_s14 + $0x1760] sm:$0xff]  ;;  %1997 = vst [vmem:[%s11192_s24 + $0xba0] sm:$0xff] %v1996_v52  ;;  %1999 = vst [vmem:[%s11192_s24 + $0xba8] sm:$0xff] %v1998_v53  ;;  %v2002_v55 = vld [vmem:[%s11187_s14 + $0x1770] sm:$0xff] }
  0xd7   : > { %2001 = vst [vmem:[%s11192_s24 + $0xbb0] sm:$0xff] %v2000_v54  ;;  %v2004_v56 = vld [vmem:[%s11187_s14 + $0x1780] sm:$0xff]  ;;  %v2006_v57 = vld [vmem:[%s11187_s14 + $0x1790] sm:$0xff]  ;;  %2003 = vst [vmem:[%s11192_s24 + $0xbb8] sm:$0xff] %v2002_v55 }
  0xd8   : > { %2005 = vst [vmem:[%s11192_s24 + $0xbc0] sm:$0xff] %v2004_v56  ;;  %2007 = vst [vmem:[%s11192_s24 + $0xbc8] sm:$0xff] %v2006_v57  ;;  %v2008_v58 = vld [vmem:[%s11187_s14 + $0x17a0] sm:$0xff]  ;;  %v2010_v59 = vld [vmem:[%s11187_s14 + $0x17b0] sm:$0xff] }
  0xd9   : > { %v2012_v60 = vld [vmem:[%s11187_s14 + $0x17c0] sm:$0xff]  ;;  %2009 = vst [vmem:[%s11192_s24 + $0xbd0] sm:$0xff] %v2008_v58  ;;  %2011 = vst [vmem:[%s11192_s24 + $0xbd8] sm:$0xff] %v2010_v59  ;;  %v2014_v61 = vld [vmem:[%s11187_s14 + $0x17d0] sm:$0xff] }
  0xda   : > { %2013 = vst [vmem:[%s11192_s24 + $0xbe0] sm:$0xff] %v2012_v60  ;;  %v2016_v62 = vld [vmem:[%s11187_s14 + $0x17e0] sm:$0xff]  ;;  %v2018_v63 = vld [vmem:[%s11187_s14 + $0x17f0] sm:$0xff]  ;;  %2015 = vst [vmem:[%s11192_s24 + $0xbe8] sm:$0xff] %v2014_v61 }
  0xdb   : > { %2017 = vst [vmem:[%s11192_s24 + $0xbf0] sm:$0xff] %v2016_v62  ;;  %2019 = vst [vmem:[%s11192_s24 + $0xbf8] sm:$0xff] %v2018_v63  ;;  %v2020_v0 = vld [vmem:[%s11187_s14 + $0x1800] sm:$0xff]  ;;  %v2022_v1 = vld [vmem:[%s11187_s14 + $0x1810] sm:$0xff] }
  0xdc   : > { %v2024_v2 = vld [vmem:[%s11187_s14 + $0x1820] sm:$0xff]  ;;  %2021 = vst [vmem:[%s11192_s24 + $0xc00] sm:$0xff] %v2020_v0  ;;  %2023 = vst [vmem:[%s11192_s24 + $0xc08] sm:$0xff] %v2022_v1  ;;  %v2026_v3 = vld [vmem:[%s11187_s14 + $0x1830] sm:$0xff] }
  0xdd   : > { %2025 = vst [vmem:[%s11192_s24 + $0xc10] sm:$0xff] %v2024_v2  ;;  %v2028_v4 = vld [vmem:[%s11187_s14 + $0x1840] sm:$0xff]  ;;  %v2030_v5 = vld [vmem:[%s11187_s14 + $0x1850] sm:$0xff]  ;;  %2027 = vst [vmem:[%s11192_s24 + $0xc18] sm:$0xff] %v2026_v3 }
  0xde   : > { %2029 = vst [vmem:[%s11192_s24 + $0xc20] sm:$0xff] %v2028_v4  ;;  %2031 = vst [vmem:[%s11192_s24 + $0xc28] sm:$0xff] %v2030_v5  ;;  %v2032_v6 = vld [vmem:[%s11187_s14 + $0x1860] sm:$0xff]  ;;  %v2034_v7 = vld [vmem:[%s11187_s14 + $0x1870] sm:$0xff] }
  0xdf   : > { %v2036_v8 = vld [vmem:[%s11187_s14 + $0x1880] sm:$0xff]  ;;  %2033 = vst [vmem:[%s11192_s24 + $0xc30] sm:$0xff] %v2032_v6  ;;  %2035 = vst [vmem:[%s11192_s24 + $0xc38] sm:$0xff] %v2034_v7  ;;  %v2038_v9 = vld [vmem:[%s11187_s14 + $0x1890] sm:$0xff] }
  0xe0   : > { %2037 = vst [vmem:[%s11192_s24 + $0xc40] sm:$0xff] %v2036_v8  ;;  %v2040_v10 = vld [vmem:[%s11187_s14 + $0x18a0] sm:$0xff]  ;;  %v2042_v11 = vld [vmem:[%s11187_s14 + $0x18b0] sm:$0xff]  ;;  %2039 = vst [vmem:[%s11192_s24 + $0xc48] sm:$0xff] %v2038_v9 }
  0xe1   : > { %2041 = vst [vmem:[%s11192_s24 + $0xc50] sm:$0xff] %v2040_v10  ;;  %2043 = vst [vmem:[%s11192_s24 + $0xc58] sm:$0xff] %v2042_v11  ;;  %v2044_v12 = vld [vmem:[%s11187_s14 + $0x18c0] sm:$0xff]  ;;  %v2046_v13 = vld [vmem:[%s11187_s14 + $0x18d0] sm:$0xff] }
  0xe2   : > { %v2048_v14 = vld [vmem:[%s11187_s14 + $0x18e0] sm:$0xff]  ;;  %2045 = vst [vmem:[%s11192_s24 + $0xc60] sm:$0xff] %v2044_v12  ;;  %2047 = vst [vmem:[%s11192_s24 + $0xc68] sm:$0xff] %v2046_v13  ;;  %v2050_v15 = vld [vmem:[%s11187_s14 + $0x18f0] sm:$0xff] }
  0xe3   : > { %2049 = vst [vmem:[%s11192_s24 + $0xc70] sm:$0xff] %v2048_v14  ;;  %v2052_v16 = vld [vmem:[%s11187_s14 + $0x1900] sm:$0xff]  ;;  %v2054_v17 = vld [vmem:[%s11187_s14 + $0x1910] sm:$0xff]  ;;  %2051 = vst [vmem:[%s11192_s24 + $0xc78] sm:$0xff] %v2050_v15 }
  0xe4   : > { %2053 = vst [vmem:[%s11192_s24 + $0xc80] sm:$0xff] %v2052_v16  ;;  %2055 = vst [vmem:[%s11192_s24 + $0xc88] sm:$0xff] %v2054_v17  ;;  %v2056_v18 = vld [vmem:[%s11187_s14 + $0x1920] sm:$0xff]  ;;  %v2058_v19 = vld [vmem:[%s11187_s14 + $0x1930] sm:$0xff] }
  0xe5   : > { %v2060_v20 = vld [vmem:[%s11187_s14 + $0x1940] sm:$0xff]  ;;  %2057 = vst [vmem:[%s11192_s24 + $0xc90] sm:$0xff] %v2056_v18  ;;  %2059 = vst [vmem:[%s11192_s24 + $0xc98] sm:$0xff] %v2058_v19  ;;  %v2062_v21 = vld [vmem:[%s11187_s14 + $0x1950] sm:$0xff] }
  0xe6   : > { %2061 = vst [vmem:[%s11192_s24 + $0xca0] sm:$0xff] %v2060_v20  ;;  %v2064_v22 = vld [vmem:[%s11187_s14 + $0x1960] sm:$0xff]  ;;  %v2066_v23 = vld [vmem:[%s11187_s14 + $0x1970] sm:$0xff]  ;;  %2063 = vst [vmem:[%s11192_s24 + $0xca8] sm:$0xff] %v2062_v21 }
  0xe7   : > { %2065 = vst [vmem:[%s11192_s24 + $0xcb0] sm:$0xff] %v2064_v22  ;;  %2067 = vst [vmem:[%s11192_s24 + $0xcb8] sm:$0xff] %v2066_v23  ;;  %v2068_v24 = vld [vmem:[%s11187_s14 + $0x1980] sm:$0xff]  ;;  %v2070_v25 = vld [vmem:[%s11187_s14 + $0x1990] sm:$0xff] }
  0xe8   : > { %v2072_v26 = vld [vmem:[%s11187_s14 + $0x19a0] sm:$0xff]  ;;  %2069 = vst [vmem:[%s11192_s24 + $0xcc0] sm:$0xff] %v2068_v24  ;;  %2071 = vst [vmem:[%s11192_s24 + $0xcc8] sm:$0xff] %v2070_v25  ;;  %v2074_v27 = vld [vmem:[%s11187_s14 + $0x19b0] sm:$0xff] }
  0xe9   : > { %2073 = vst [vmem:[%s11192_s24 + $0xcd0] sm:$0xff] %v2072_v26  ;;  %v2076_v28 = vld [vmem:[%s11187_s14 + $0x19c0] sm:$0xff]  ;;  %v2078_v29 = vld [vmem:[%s11187_s14 + $0x19d0] sm:$0xff]  ;;  %2075 = vst [vmem:[%s11192_s24 + $0xcd8] sm:$0xff] %v2074_v27 }
  0xea   : > { %2077 = vst [vmem:[%s11192_s24 + $0xce0] sm:$0xff] %v2076_v28  ;;  %2079 = vst [vmem:[%s11192_s24 + $0xce8] sm:$0xff] %v2078_v29  ;;  %v2080_v30 = vld [vmem:[%s11187_s14 + $0x19e0] sm:$0xff]  ;;  %v2082_v31 = vld [vmem:[%s11187_s14 + $0x19f0] sm:$0xff] }
  0xeb   : > { %v2084_v32 = vld [vmem:[%s11187_s14 + $0x1a00] sm:$0xff]  ;;  %2081 = vst [vmem:[%s11192_s24 + $0xcf0] sm:$0xff] %v2080_v30  ;;  %2083 = vst [vmem:[%s11192_s24 + $0xcf8] sm:$0xff] %v2082_v31  ;;  %v2086_v33 = vld [vmem:[%s11187_s14 + $0x1a10] sm:$0xff] }
  0xec   : > { %2085 = vst [vmem:[%s11192_s24 + $0xd00] sm:$0xff] %v2084_v32  ;;  %v2088_v34 = vld [vmem:[%s11187_s14 + $0x1a20] sm:$0xff]  ;;  %v2090_v35 = vld [vmem:[%s11187_s14 + $0x1a30] sm:$0xff]  ;;  %2087 = vst [vmem:[%s11192_s24 + $0xd08] sm:$0xff] %v2086_v33 }
  0xed   : > { %2089 = vst [vmem:[%s11192_s24 + $0xd10] sm:$0xff] %v2088_v34  ;;  %2091 = vst [vmem:[%s11192_s24 + $0xd18] sm:$0xff] %v2090_v35  ;;  %v2092_v36 = vld [vmem:[%s11187_s14 + $0x1a40] sm:$0xff]  ;;  %v2094_v37 = vld [vmem:[%s11187_s14 + $0x1a50] sm:$0xff] }
  0xee   : > { %v2096_v38 = vld [vmem:[%s11187_s14 + $0x1a60] sm:$0xff]  ;;  %2093 = vst [vmem:[%s11192_s24 + $0xd20] sm:$0xff] %v2092_v36  ;;  %2095 = vst [vmem:[%s11192_s24 + $0xd28] sm:$0xff] %v2094_v37  ;;  %v2098_v39 = vld [vmem:[%s11187_s14 + $0x1a70] sm:$0xff] }
  0xef   : > { %2097 = vst [vmem:[%s11192_s24 + $0xd30] sm:$0xff] %v2096_v38  ;;  %v2100_v40 = vld [vmem:[%s11187_s14 + $0x1a80] sm:$0xff]  ;;  %v2102_v41 = vld [vmem:[%s11187_s14 + $0x1a90] sm:$0xff]  ;;  %2099 = vst [vmem:[%s11192_s24 + $0xd38] sm:$0xff] %v2098_v39 }
  0xf0   : > { %2101 = vst [vmem:[%s11192_s24 + $0xd40] sm:$0xff] %v2100_v40  ;;  %2103 = vst [vmem:[%s11192_s24 + $0xd48] sm:$0xff] %v2102_v41  ;;  %v2104_v42 = vld [vmem:[%s11187_s14 + $0x1aa0] sm:$0xff]  ;;  %v2106_v43 = vld [vmem:[%s11187_s14 + $0x1ab0] sm:$0xff] }
  0xf1   : > { %v2108_v44 = vld [vmem:[%s11187_s14 + $0x1ac0] sm:$0xff]  ;;  %2105 = vst [vmem:[%s11192_s24 + $0xd50] sm:$0xff] %v2104_v42  ;;  %2107 = vst [vmem:[%s11192_s24 + $0xd58] sm:$0xff] %v2106_v43  ;;  %v2110_v45 = vld [vmem:[%s11187_s14 + $0x1ad0] sm:$0xff] }
  0xf2   : > { %2109 = vst [vmem:[%s11192_s24 + $0xd60] sm:$0xff] %v2108_v44  ;;  %v2112_v46 = vld [vmem:[%s11187_s14 + $0x1ae0] sm:$0xff]  ;;  %v2114_v47 = vld [vmem:[%s11187_s14 + $0x1af0] sm:$0xff]  ;;  %2111 = vst [vmem:[%s11192_s24 + $0xd68] sm:$0xff] %v2110_v45 }
  0xf3   : > { %2113 = vst [vmem:[%s11192_s24 + $0xd70] sm:$0xff] %v2112_v46  ;;  %2115 = vst [vmem:[%s11192_s24 + $0xd78] sm:$0xff] %v2114_v47  ;;  %v2116_v48 = vld [vmem:[%s11187_s14 + $0x1b00] sm:$0xff]  ;;  %v2118_v49 = vld [vmem:[%s11187_s14 + $0x1b10] sm:$0xff] }
  0xf4   : > { %v2120_v50 = vld [vmem:[%s11187_s14 + $0x1b20] sm:$0xff]  ;;  %2117 = vst [vmem:[%s11192_s24 + $0xd80] sm:$0xff] %v2116_v48  ;;  %2119 = vst [vmem:[%s11192_s24 + $0xd88] sm:$0xff] %v2118_v49  ;;  %v2122_v51 = vld [vmem:[%s11187_s14 + $0x1b30] sm:$0xff] }
  0xf5   : > { %2121 = vst [vmem:[%s11192_s24 + $0xd90] sm:$0xff] %v2120_v50  ;;  %v2124_v52 = vld [vmem:[%s11187_s14 + $0x1b40] sm:$0xff]  ;;  %v2126_v53 = vld [vmem:[%s11187_s14 + $0x1b50] sm:$0xff]  ;;  %2123 = vst [vmem:[%s11192_s24 + $0xd98] sm:$0xff] %v2122_v51 }
  0xf6   : > { %2125 = vst [vmem:[%s11192_s24 + $0xda0] sm:$0xff] %v2124_v52  ;;  %2127 = vst [vmem:[%s11192_s24 + $0xda8] sm:$0xff] %v2126_v53  ;;  %v2128_v54 = vld [vmem:[%s11187_s14 + $0x1b60] sm:$0xff]  ;;  %v2130_v55 = vld [vmem:[%s11187_s14 + $0x1b70] sm:$0xff] }
  0xf7   : > { %v2132_v56 = vld [vmem:[%s11187_s14 + $0x1b80] sm:$0xff]  ;;  %2129 = vst [vmem:[%s11192_s24 + $0xdb0] sm:$0xff] %v2128_v54  ;;  %2131 = vst [vmem:[%s11192_s24 + $0xdb8] sm:$0xff] %v2130_v55  ;;  %v2134_v57 = vld [vmem:[%s11187_s14 + $0x1b90] sm:$0xff] }
  0xf8   : > { %2133 = vst [vmem:[%s11192_s24 + $0xdc0] sm:$0xff] %v2132_v56  ;;  %v2136_v58 = vld [vmem:[%s11187_s14 + $0x1ba0] sm:$0xff]  ;;  %v2138_v59 = vld [vmem:[%s11187_s14 + $0x1bb0] sm:$0xff]  ;;  %2135 = vst [vmem:[%s11192_s24 + $0xdc8] sm:$0xff] %v2134_v57 }
  0xf9   : > { %2137 = vst [vmem:[%s11192_s24 + $0xdd0] sm:$0xff] %v2136_v58  ;;  %2139 = vst [vmem:[%s11192_s24 + $0xdd8] sm:$0xff] %v2138_v59  ;;  %v2140_v60 = vld [vmem:[%s11187_s14 + $0x1bc0] sm:$0xff]  ;;  %v2142_v61 = vld [vmem:[%s11187_s14 + $0x1bd0] sm:$0xff] }
  0xfa   : > { %v2144_v62 = vld [vmem:[%s11187_s14 + $0x1be0] sm:$0xff]  ;;  %2141 = vst [vmem:[%s11192_s24 + $0xde0] sm:$0xff] %v2140_v60  ;;  %2143 = vst [vmem:[%s11192_s24 + $0xde8] sm:$0xff] %v2142_v61  ;;  %v2146_v63 = vld [vmem:[%s11187_s14 + $0x1bf0] sm:$0xff] }
  0xfb   : > { %2145 = vst [vmem:[%s11192_s24 + $0xdf0] sm:$0xff] %v2144_v62  ;;  %v2148_v0 = vld [vmem:[%s11187_s14 + $0x1c00] sm:$0xff]  ;;  %v2150_v1 = vld [vmem:[%s11187_s14 + $0x1c10] sm:$0xff]  ;;  %2147 = vst [vmem:[%s11192_s24 + $0xdf8] sm:$0xff] %v2146_v63 }
  0xfc   : > { %2149 = vst [vmem:[%s11192_s24 + $0xe00] sm:$0xff] %v2148_v0  ;;  %2151 = vst [vmem:[%s11192_s24 + $0xe08] sm:$0xff] %v2150_v1  ;;  %v2152_v2 = vld [vmem:[%s11187_s14 + $0x1c20] sm:$0xff]  ;;  %v2154_v3 = vld [vmem:[%s11187_s14 + $0x1c30] sm:$0xff] }
  0xfd   : > { %v2156_v4 = vld [vmem:[%s11187_s14 + $0x1c40] sm:$0xff]  ;;  %2153 = vst [vmem:[%s11192_s24 + $0xe10] sm:$0xff] %v2152_v2  ;;  %2155 = vst [vmem:[%s11192_s24 + $0xe18] sm:$0xff] %v2154_v3  ;;  %v2158_v5 = vld [vmem:[%s11187_s14 + $0x1c50] sm:$0xff] }
  0xfe   : > { %2157 = vst [vmem:[%s11192_s24 + $0xe20] sm:$0xff] %v2156_v4  ;;  %v2160_v6 = vld [vmem:[%s11187_s14 + $0x1c60] sm:$0xff]  ;;  %v2162_v7 = vld [vmem:[%s11187_s14 + $0x1c70] sm:$0xff]  ;;  %2159 = vst [vmem:[%s11192_s24 + $0xe28] sm:$0xff] %v2158_v5 }
  0xff   : > { %2161 = vst [vmem:[%s11192_s24 + $0xe30] sm:$0xff] %v2160_v6  ;;  %2163 = vst [vmem:[%s11192_s24 + $0xe38] sm:$0xff] %v2162_v7  ;;  %v2164_v8 = vld [vmem:[%s11187_s14 + $0x1c80] sm:$0xff]  ;;  %v2166_v9 = vld [vmem:[%s11187_s14 + $0x1c90] sm:$0xff] }
 0x100   : > { %v2168_v10 = vld [vmem:[%s11187_s14 + $0x1ca0] sm:$0xff]  ;;  %2165 = vst [vmem:[%s11192_s24 + $0xe40] sm:$0xff] %v2164_v8  ;;  %2167 = vst [vmem:[%s11192_s24 + $0xe48] sm:$0xff] %v2166_v9  ;;  %v2170_v11 = vld [vmem:[%s11187_s14 + $0x1cb0] sm:$0xff] }
 0x101   : > { %2169 = vst [vmem:[%s11192_s24 + $0xe50] sm:$0xff] %v2168_v10  ;;  %v2172_v12 = vld [vmem:[%s11187_s14 + $0x1cc0] sm:$0xff]  ;;  %v2174_v13 = vld [vmem:[%s11187_s14 + $0x1cd0] sm:$0xff]  ;;  %2171 = vst [vmem:[%s11192_s24 + $0xe58] sm:$0xff] %v2170_v11 }
 0x102   : > { %2173 = vst [vmem:[%s11192_s24 + $0xe60] sm:$0xff] %v2172_v12  ;;  %2175 = vst [vmem:[%s11192_s24 + $0xe68] sm:$0xff] %v2174_v13  ;;  %v2176_v14 = vld [vmem:[%s11187_s14 + $0x1ce0] sm:$0xff]  ;;  %v2178_v15 = vld [vmem:[%s11187_s14 + $0x1cf0] sm:$0xff] }
 0x103   : > { %v2180_v16 = vld [vmem:[%s11187_s14 + $0x1d00] sm:$0xff]  ;;  %2177 = vst [vmem:[%s11192_s24 + $0xe70] sm:$0xff] %v2176_v14  ;;  %2179 = vst [vmem:[%s11192_s24 + $0xe78] sm:$0xff] %v2178_v15  ;;  %v2182_v17 = vld [vmem:[%s11187_s14 + $0x1d10] sm:$0xff] }
 0x104   : > { %2181 = vst [vmem:[%s11192_s24 + $0xe80] sm:$0xff] %v2180_v16  ;;  %v2184_v18 = vld [vmem:[%s11187_s14 + $0x1d20] sm:$0xff]  ;;  %v2186_v19 = vld [vmem:[%s11187_s14 + $0x1d30] sm:$0xff]  ;;  %2183 = vst [vmem:[%s11192_s24 + $0xe88] sm:$0xff] %v2182_v17 }
 0x105   : > { %2185 = vst [vmem:[%s11192_s24 + $0xe90] sm:$0xff] %v2184_v18  ;;  %2187 = vst [vmem:[%s11192_s24 + $0xe98] sm:$0xff] %v2186_v19  ;;  %v2188_v20 = vld [vmem:[%s11187_s14 + $0x1d40] sm:$0xff]  ;;  %v2190_v21 = vld [vmem:[%s11187_s14 + $0x1d50] sm:$0xff] }
 0x106   : > { %v2192_v22 = vld [vmem:[%s11187_s14 + $0x1d60] sm:$0xff]  ;;  %2189 = vst [vmem:[%s11192_s24 + $0xea0] sm:$0xff] %v2188_v20  ;;  %2191 = vst [vmem:[%s11192_s24 + $0xea8] sm:$0xff] %v2190_v21  ;;  %v2194_v23 = vld [vmem:[%s11187_s14 + $0x1d70] sm:$0xff] }
 0x107   : > { %2193 = vst [vmem:[%s11192_s24 + $0xeb0] sm:$0xff] %v2192_v22  ;;  %v2196_v24 = vld [vmem:[%s11187_s14 + $0x1d80] sm:$0xff]  ;;  %v2198_v25 = vld [vmem:[%s11187_s14 + $0x1d90] sm:$0xff]  ;;  %2195 = vst [vmem:[%s11192_s24 + $0xeb8] sm:$0xff] %v2194_v23 }
 0x108   : > { %2197 = vst [vmem:[%s11192_s24 + $0xec0] sm:$0xff] %v2196_v24  ;;  %2199 = vst [vmem:[%s11192_s24 + $0xec8] sm:$0xff] %v2198_v25  ;;  %v2200_v26 = vld [vmem:[%s11187_s14 + $0x1da0] sm:$0xff]  ;;  %v2202_v27 = vld [vmem:[%s11187_s14 + $0x1db0] sm:$0xff] }
 0x109   : > { %v2204_v28 = vld [vmem:[%s11187_s14 + $0x1dc0] sm:$0xff]  ;;  %2201 = vst [vmem:[%s11192_s24 + $0xed0] sm:$0xff] %v2200_v26  ;;  %2203 = vst [vmem:[%s11192_s24 + $0xed8] sm:$0xff] %v2202_v27  ;;  %v2206_v29 = vld [vmem:[%s11187_s14 + $0x1dd0] sm:$0xff] }
 0x10a   : > { %2205 = vst [vmem:[%s11192_s24 + $0xee0] sm:$0xff] %v2204_v28  ;;  %v2208_v30 = vld [vmem:[%s11187_s14 + $0x1de0] sm:$0xff]  ;;  %v2210_v31 = vld [vmem:[%s11187_s14 + $0x1df0] sm:$0xff]  ;;  %2207 = vst [vmem:[%s11192_s24 + $0xee8] sm:$0xff] %v2206_v29 }
 0x10b   : > { %2209 = vst [vmem:[%s11192_s24 + $0xef0] sm:$0xff] %v2208_v30  ;;  %2211 = vst [vmem:[%s11192_s24 + $0xef8] sm:$0xff] %v2210_v31  ;;  %v2212_v32 = vld [vmem:[%s11187_s14 + $0x1e00] sm:$0xff]  ;;  %v2214_v33 = vld [vmem:[%s11187_s14 + $0x1e10] sm:$0xff] }
 0x10c   : > { %v2216_v34 = vld [vmem:[%s11187_s14 + $0x1e20] sm:$0xff]  ;;  %2213 = vst [vmem:[%s11192_s24 + $0xf00] sm:$0xff] %v2212_v32  ;;  %2215 = vst [vmem:[%s11192_s24 + $0xf08] sm:$0xff] %v2214_v33  ;;  %v2218_v35 = vld [vmem:[%s11187_s14 + $0x1e30] sm:$0xff] }
 0x10d   : > { %2217 = vst [vmem:[%s11192_s24 + $0xf10] sm:$0xff] %v2216_v34  ;;  %v2220_v36 = vld [vmem:[%s11187_s14 + $0x1e40] sm:$0xff]  ;;  %v2222_v37 = vld [vmem:[%s11187_s14 + $0x1e50] sm:$0xff]  ;;  %2219 = vst [vmem:[%s11192_s24 + $0xf18] sm:$0xff] %v2218_v35 }
 0x10e   : > { %2221 = vst [vmem:[%s11192_s24 + $0xf20] sm:$0xff] %v2220_v36  ;;  %2223 = vst [vmem:[%s11192_s24 + $0xf28] sm:$0xff] %v2222_v37  ;;  %v2224_v38 = vld [vmem:[%s11187_s14 + $0x1e60] sm:$0xff]  ;;  %v2226_v39 = vld [vmem:[%s11187_s14 + $0x1e70] sm:$0xff] }
 0x10f   : > { %v2228_v40 = vld [vmem:[%s11187_s14 + $0x1e80] sm:$0xff]  ;;  %2225 = vst [vmem:[%s11192_s24 + $0xf30] sm:$0xff] %v2224_v38  ;;  %2227 = vst [vmem:[%s11192_s24 + $0xf38] sm:$0xff] %v2226_v39  ;;  %v2230_v41 = vld [vmem:[%s11187_s14 + $0x1e90] sm:$0xff] }
 0x110   : > { %2229 = vst [vmem:[%s11192_s24 + $0xf40] sm:$0xff] %v2228_v40  ;;  %v2232_v42 = vld [vmem:[%s11187_s14 + $0x1ea0] sm:$0xff]  ;;  %v2234_v43 = vld [vmem:[%s11187_s14 + $0x1eb0] sm:$0xff]  ;;  %2231 = vst [vmem:[%s11192_s24 + $0xf48] sm:$0xff] %v2230_v41 }
 0x111   : > { %2233 = vst [vmem:[%s11192_s24 + $0xf50] sm:$0xff] %v2232_v42  ;;  %2235 = vst [vmem:[%s11192_s24 + $0xf58] sm:$0xff] %v2234_v43  ;;  %v2236_v44 = vld [vmem:[%s11187_s14 + $0x1ec0] sm:$0xff]  ;;  %v2238_v45 = vld [vmem:[%s11187_s14 + $0x1ed0] sm:$0xff] }
 0x112   : > { %v2240_v46 = vld [vmem:[%s11187_s14 + $0x1ee0] sm:$0xff]  ;;  %2237 = vst [vmem:[%s11192_s24 + $0xf60] sm:$0xff] %v2236_v44  ;;  %2239 = vst [vmem:[%s11192_s24 + $0xf68] sm:$0xff] %v2238_v45  ;;  %v2242_v47 = vld [vmem:[%s11187_s14 + $0x1ef0] sm:$0xff] }
 0x113   : > { %2241 = vst [vmem:[%s11192_s24 + $0xf70] sm:$0xff] %v2240_v46  ;;  %v2244_v48 = vld [vmem:[%s11187_s14 + $0x1f00] sm:$0xff]  ;;  %v2246_v49 = vld [vmem:[%s11187_s14 + $0x1f10] sm:$0xff]  ;;  %2243 = vst [vmem:[%s11192_s24 + $0xf78] sm:$0xff] %v2242_v47 }
 0x114   : > { %2245 = vst [vmem:[%s11192_s24 + $0xf80] sm:$0xff] %v2244_v48  ;;  %2247 = vst [vmem:[%s11192_s24 + $0xf88] sm:$0xff] %v2246_v49  ;;  %v2248_v50 = vld [vmem:[%s11187_s14 + $0x1f20] sm:$0xff]  ;;  %v2250_v51 = vld [vmem:[%s11187_s14 + $0x1f30] sm:$0xff] }
 0x115   : > { %v2252_v52 = vld [vmem:[%s11187_s14 + $0x1f40] sm:$0xff]  ;;  %2249 = vst [vmem:[%s11192_s24 + $0xf90] sm:$0xff] %v2248_v50  ;;  %2251 = vst [vmem:[%s11192_s24 + $0xf98] sm:$0xff] %v2250_v51  ;;  %v2254_v53 = vld [vmem:[%s11187_s14 + $0x1f50] sm:$0xff] }
 0x116   : > { %2253 = vst [vmem:[%s11192_s24 + $0xfa0] sm:$0xff] %v2252_v52  ;;  %v2256_v54 = vld [vmem:[%s11187_s14 + $0x1f60] sm:$0xff]  ;;  %v2258_v55 = vld [vmem:[%s11187_s14 + $0x1f70] sm:$0xff]  ;;  %2255 = vst [vmem:[%s11192_s24 + $0xfa8] sm:$0xff] %v2254_v53 }
 0x117   : > { %2257 = vst [vmem:[%s11192_s24 + $0xfb0] sm:$0xff] %v2256_v54  ;;  %2259 = vst [vmem:[%s11192_s24 + $0xfb8] sm:$0xff] %v2258_v55  ;;  %v2260_v56 = vld [vmem:[%s11187_s14 + $0x1f80] sm:$0xff]  ;;  %v2262_v57 = vld [vmem:[%s11187_s14 + $0x1f90] sm:$0xff] }
 0x118   : > { %v2264_v58 = vld [vmem:[%s11187_s14 + $0x1fa0] sm:$0xff]  ;;  %2261 = vst [vmem:[%s11192_s24 + $0xfc0] sm:$0xff] %v2260_v56  ;;  %2263 = vst [vmem:[%s11192_s24 + $0xfc8] sm:$0xff] %v2262_v57  ;;  %v2266_v59 = vld [vmem:[%s11187_s14 + $0x1fb0] sm:$0xff] }
 0x119   : > { %2265 = vst [vmem:[%s11192_s24 + $0xfd0] sm:$0xff] %v2264_v58  ;;  %v2268_v60 = vld [vmem:[%s11187_s14 + $0x1fc0] sm:$0xff]  ;;  %v2270_v61 = vld [vmem:[%s11187_s14 + $0x1fd0] sm:$0xff]  ;;  %2267 = vst [vmem:[%s11192_s24 + $0xfd8] sm:$0xff] %v2266_v59 }
 0x11a   : > { %2269 = vst [vmem:[%s11192_s24 + $0xfe0] sm:$0xff] %v2268_v60  ;;  %2271 = vst [vmem:[%s11192_s24 + $0xfe8] sm:$0xff] %v2270_v61  ;;  %v2272_v62 = vld [vmem:[%s11187_s14 + $0x1fe0] sm:$0xff]  ;;  %v2274_v63 = vld [vmem:[%s11187_s14 + $0x1ff0] sm:$0xff] }
 0x11b   : > { %2273 = vst [vmem:[%s11192_s24 + $0xff0] sm:$0xff] %v2272_v62  ;;  %2275 = vst [vmem:[%s11192_s24 + $0xff8] sm:$0xff] %v2274_v63 }
 0x11c PF: > { %p9005_p11 = scmp.ge.s32.totalorder %s11080_s23, 1  ;;  %p4380_p12 = scmp.lt.s32.totalorder %s11080_s23, 5 }
 0x11e   : > { %p4381_p13 = pnand %p9005_p11, %p4380_p12 }
 0x11f   : > { %s4387_s27 = sand.u32 (!%p4381_p13), 1, %s11056_s17   ;;  %p4424_p0 = scmp.lt.s32.totalorder (!%p4381_p13), %s11068_s20, 1 }
 0x120   : > { %4384 = sbr.rel (%p4381_p13) target bundleno = 1045 (0x415), region = 84  ;;  %s9006_s28 = sshll.u32 (!%p4381_p13), %s4387_s27, 12 }
 0x121   : > { %s12218_s29 = scalar_lea.vmem (!%p4381_p13), [#allocation3], %s9006_s28  ;;  %s12928_s11 = sshll.u32 (!%p4381_p13), %s11064_s19, 1 }
 0x122   : > { %v10210_v0 = vld [vmem:[%s12218_s29 + $0x4] ss:$8 sps:$4 sm:$0xff] (!%p4381_p13)   ;;  %v10214_v2 = vld [vmem:[%s12218_s29] ss:$8 sps:$4 sm:$0xff] (!%p4381_p13)   ;;  %v10216_v4 = vld [vmem:[%s12218_s29 + $0x14] ss:$8 sps:$4 sm:$0xff] (!%p4381_p13)  }
 0x123   : > { %v10212_v1 = vld [vmem:[%s12218_s29 + $0x804] ss:$8 sps:$4 sm:$0xff] (!%p4381_p13)   ;;  %5296 = vmatprep.subr.bf16.mxu1 (!%p4381_p13), %v10210_v0  ;;  %v10215_v3 = vld [vmem:[%s12218_s29 + $0x800] ss:$8 sps:$4 sm:$0xff] (!%p4381_p13)   ;;  %v10218_v5 = vld [vmem:[%s12218_s29 + $0x814] ss:$8 sps:$4 sm:$0xff] (!%p4381_p13)  }
 0x124   : > { %7438 = vmatprep.subr.bf16.mxu0 (!%p4381_p13), %v10212_v1  ;;  %5297 = vmatpush1.bf16.msra.mxu1 (!%p4381_p13), %v10214_v2  ;;  %v10220_v6 = vld [vmem:[%s12218_s29 + $0x10] ss:$8 sps:$4 sm:$0xff] (!%p4381_p13)   ;;  %v10222_v8 = vld [vmem:[%s12218_s29 + $0x24] ss:$8 sps:$4 sm:$0xff] (!%p4381_p13)   ;;  %v10226_v10 = vld [vmem:[%s12218_s29 + $0x20] ss:$8 sps:$4 sm:$0xff] (!%p4381_p13)  }
 0x125   : > { %7439 = vmatpush1.bf16.msra.mxu0 (!%p4381_p13), %v10215_v3  ;;  %5298 = vmatprep.subr.bf16.mxu1 (!%p4381_p13), %v10216_v4  ;;  %v10221_v7 = vld [vmem:[%s12218_s29 + $0x810] ss:$8 sps:$4 sm:$0xff] (!%p4381_p13)   ;;  %v10224_v9 = vld [vmem:[%s12218_s29 + $0x824] ss:$8 sps:$4 sm:$0xff] (!%p4381_p13)   ;;  %v10227_v11 = vld [vmem:[%s12218_s29 + $0x820] ss:$8 sps:$4 sm:$0xff] (!%p4381_p13)  }
 0x126   : > { %7440 = vmatprep.subr.bf16.mxu0 (!%p4381_p13), %v10218_v5  ;;  %v10228_v12 = vld [vmem:[%s12218_s29 + $0x34] ss:$8 sps:$4 sm:$0xff] (!%p4381_p13)   ;;  %v10232_v14 = vld [vmem:[%s12218_s29 + $0x30] ss:$8 sps:$4 sm:$0xff] (!%p4381_p13)   ;;  %v10234_v16 = vld [vmem:[%s12218_s29 + $0x44] ss:$8 sps:$4 sm:$0xff] (!%p4381_p13)  }
 0x127   : > { %v10230_v13 = vld [vmem:[%s12218_s29 + $0x834] ss:$8 sps:$4 sm:$0xff]   ;;  %v10233_v15 = vld [vmem:[%s12218_s29 + $0x830] ss:$8 sps:$4 sm:$0xff]   ;;  %v10236_v17 = vld [vmem:[%s12218_s29 + $0x844] ss:$8 sps:$4 sm:$0xff]  }
 0x128   : > { %5299 = vmatpush1.bf16.msra.mxu1 %v10220_v6  ;;  %v10238_v18 = vld [vmem:[%s12218_s29 + $0x40] ss:$8 sps:$4 sm:$0xff]   ;;  %v10240_v20 = vld [vmem:[%s12218_s29 + $0x54] ss:$8 sps:$4 sm:$0xff]   ;;  %v10244_v22 = vld [vmem:[%s12218_s29 + $0x50] ss:$8 sps:$4 sm:$0xff]  }
 0x129   : > { %7441 = vmatpush1.bf16.msra.mxu0 %v10221_v7  ;;  %5300 = vmatprep.subr.bf16.mxu1 %v10222_v8  ;;  %v10239_v19 = vld [vmem:[%s12218_s29 + $0x840] ss:$8 sps:$4 sm:$0xff]   ;;  %v10242_v21 = vld [vmem:[%s12218_s29 + $0x854] ss:$8 sps:$4 sm:$0xff]   ;;  %v10245_v23 = vld [vmem:[%s12218_s29 + $0x850] ss:$8 sps:$4 sm:$0xff]  }
 0x12a   : > { %7442 = vmatprep.subr.bf16.mxu0 %v10224_v9  ;;  %v10246_v24 = vld [vmem:[%s12218_s29 + $0x64] ss:$8 sps:$4 sm:$0xff]   ;;  %v10250_v26 = vld [vmem:[%s12218_s29 + $0x60] ss:$8 sps:$4 sm:$0xff]   ;;  %v10252_v28 = vld [vmem:[%s12218_s29 + $0x74] ss:$8 sps:$4 sm:$0xff]  }
 0x12b   : > { %v10248_v25 = vld [vmem:[%s12218_s29 + $0x864] ss:$8 sps:$4 sm:$0xff]   ;;  %v10251_v27 = vld [vmem:[%s12218_s29 + $0x860] ss:$8 sps:$4 sm:$0xff]   ;;  %v10254_v29 = vld [vmem:[%s12218_s29 + $0x874] ss:$8 sps:$4 sm:$0xff]  }
 0x12c   : > { %5301 = vmatpush1.bf16.msra.mxu1 %v10226_v10  ;;  %v10256_v30 = vld [vmem:[%s12218_s29 + $0x70] ss:$8 sps:$4 sm:$0xff]   ;;  %v10258_v32 = vld [vmem:[%s12218_s29 + $0x84] ss:$8 sps:$4 sm:$0xff]   ;;  %v10262_v34 = vld [vmem:[%s12218_s29 + $0x80] ss:$8 sps:$4 sm:$0xff]  }
 0x12d   : > { %7443 = vmatpush1.bf16.msra.mxu0 %v10227_v11  ;;  %5302 = vmatprep.subr.bf16.mxu1 %v10228_v12  ;;  %v10257_v31 = vld [vmem:[%s12218_s29 + $0x870] ss:$8 sps:$4 sm:$0xff]   ;;  %v10260_v33 = vld [vmem:[%s12218_s29 + $0x884] ss:$8 sps:$4 sm:$0xff]   ;;  %v10263_v35 = vld [vmem:[%s12218_s29 + $0x880] ss:$8 sps:$4 sm:$0xff]  }
 0x12e   : > { %7444 = vmatprep.subr.bf16.mxu0 %v10230_v13  ;;  %s4425_s17 = scalar_select %p4424_p0, %s11068_s20, 1  ;;  %v10264_v36 = vld [vmem:[%s12218_s29 + $0x94] ss:$8 sps:$4 sm:$0xff]   ;;  %v10268_v38 = vld [vmem:[%s12218_s29 + $0x90] ss:$8 sps:$4 sm:$0xff]  }
 0x12f   : > { %v10266_v37 = vld [vmem:[%s12218_s29 + $0x894] ss:$8 sps:$4 sm:$0xff]   ;;  %v10269_v39 = vld [vmem:[%s12218_s29 + $0x890] ss:$8 sps:$4 sm:$0xff]   ;;  %v10270_v40 = vld [vmem:[%s12218_s29 + $0xa4] ss:$8 sps:$4 sm:$0xff]  }
 0x130   : > { %5303 = vmatpush1.bf16.msra.mxu1 %v10232_v14  ;;  %s10136_s5 = smul.u32 192, %s4425_s17  ;;  %v10272_v41 = vld [vmem:[%s12218_s29 + $0x8a4] ss:$8 sps:$4 sm:$0xff]   ;;  %v10274_v42 = vld [vmem:[%s12218_s29 + $0xa0] ss:$8 sps:$4 sm:$0xff]   ;;  %p4431_p1 = scmp.lt.s32.totalorder %s12928_s11, 3 }
 0x131   : > { %7445 = vmatpush1.bf16.msra.mxu0 %v10233_v15  ;;  %5304 = vmatprep.subr.bf16.mxu1 %v10234_v16  ;;  %v10275_v43 = vld [vmem:[%s12218_s29 + $0x8a0] ss:$8 sps:$4 sm:$0xff]   ;;  %v10276_v44 = vld [vmem:[%s12218_s29 + $0xb4] ss:$8 sps:$4 sm:$0xff]   ;;  %v10280_v46 = vld [vmem:[%s12218_s29 + $0xb0] ss:$8 sps:$4 sm:$0xff]  }
 0x132   : > { %7446 = vmatprep.subr.bf16.mxu0 %v10236_v17  ;;  %s12269_s10 = scalar_lea.vmem %s12973_s0, %s10136_s5  ;;  %v10278_v45 = vld [vmem:[%s12218_s29 + $0x8b4] ss:$8 sps:$4 sm:$0xff]   ;;  %v10281_v47 = vld [vmem:[%s12218_s29 + $0x8b0] ss:$8 sps:$4 sm:$0xff]   ;;  %v10282_v50 = vld [vmem:[%s12218_s29 + $0xc4] ss:$8 sps:$4 sm:$0xff]  }
 0x133   : > { %v4448_v48 = vld [vmem:[%s12269_s10] sm:$0xff]  ;;  %v10288_v58 = vld [vmem:[%s12218_s29 + $0xd4] ss:$8 sps:$4 sm:$0xff]   ;;  %v10292_v60 = vld [vmem:[%s12218_s29 + $0xd0] ss:$8 sps:$4 sm:$0xff]   ;;  %s4432_s12 = scalar_select %p4431_p1, %s12928_s11, 3 }
 0x134   : > { %5305 = vmatpush1.bf16.msra.mxu1 %v10238_v18  ;;  %v4452_v49 = vld [vmem:[%s12269_s10 + $0x20] sm:$0xff]  ;;  %v10290_v59 = vld [vmem:[%s12218_s29 + $0x8d4] ss:$8 sps:$4 sm:$0xff]   ;;  %v10293_v61 = vld [vmem:[%s12218_s29 + $0x8d0] ss:$8 sps:$4 sm:$0xff]   ;;  %s4421_s19 = sand.u32 1, %s11048_s15  }
 0x135   : > { %7447 = vmatpush1.bf16.msra.mxu0 %v10239_v19  ;;  %5306 = vmatprep.subr.bf16.mxu1 %v10240_v20  ;;  %v10284_v51 = vld [vmem:[%s12218_s29 + $0x8c4] ss:$8 sps:$4 sm:$0xff]   ;;  %v9011_v52 = vcombine.high %v4448_v48, %v4452_v49  ;;  %v10286_v56 = vld [vmem:[%s12218_s29 + $0xc0] ss:$8 sps:$4 sm:$0xff]   ;;  %v10300_v2 = vld [vmem:[%s12218_s29 + $0xf4] ss:$8 sps:$4 sm:$0xff]   ;;  %v9010_v8 = vcombine.low %v4448_v48, %v4452_v49  ;;  %s4433_s24 = scalar_lea.vmem %s12975_s2, %s4432_s12 }
 0x136   : > { %7448 = vmatprep.subr.bf16.mxu0 %v10242_v21  ;;  %v12280_v53 = vld [vmem:[%s12269_s10 + $0x40] sm:$0xff]  ;;  %v10302_v3 = vld [vmem:[%s12218_s29 + $0x8f4] ss:$8 sps:$4 sm:$0xff]   ;;  %v10304_v4 = vld [vmem:[%s12218_s29 + $0xf0] ss:$8 sps:$4 sm:$0xff]   ;;  %s10135_s17 = smul.u32 24, %s4421_s19 }
 0x137   : > { %v9442_v54 = vld [vmem:[%s12269_s10 + $0x60] sm:$0xff]  ;;  %5328 = vmatprep.mubr.bf16.mxu1 %v9011_v52  ;;  %v10305_v5 = vld [vmem:[%s12218_s29 + $0x8f0] ss:$8 sps:$4 sm:$0xff]   ;;  %v10314_v12 = vld [vmem:[%s12218_s29 + $0x114] ss:$8 sps:$4 sm:$0xff]   ;;  %v9019_v14 = vcombine.high %v12280_v53, %v12280_v53  ;;  %v9018_v21 = vcombine.low %v12280_v53, %v12280_v53  ;;  %s10137_s5 = smul.u32 (%p11174_p9), 12, %s11068_s20 }
 0x138   : > { %5307 = vmatpush1.bf16.msra.mxu1 %v10244_v22  ;;  %v9579_v55 = vcombine.high %v12280_v53, %v9442_v54  ;;  %v10287_v57 = vld [vmem:[%s12218_s29 + $0x8c0] ss:$8 sps:$4 sm:$0xff]   ;;  %v10294_v62 = vld [vmem:[%s12218_s29 + $0xe4] ss:$8 sps:$4 sm:$0xff]   ;;  %v9578_v10 = vcombine.low %v12280_v53, %v9442_v54  ;;  %v10317_v13 = vld [vmem:[%s12218_s29 + $0x914] ss:$8 sps:$4 sm:$0xff]  }
 0x139   : > { %7449 = vmatpush1.bf16.msra.mxu0 %v10245_v23  ;;  %5308 = vmatprep.subr.bf16.mxu1 %v10246_v24  ;;  %v10296_v63 = vld [vmem:[%s12218_s29 + $0x8e4] ss:$8 sps:$4 sm:$0xff]   ;;  %v10298_v0 = vld [vmem:[%s12218_s29 + $0xe0] ss:$8 sps:$4 sm:$0xff]   ;;  %v10312_v15 = vld [vmem:[%s12218_s29 + $0x110] ss:$8 sps:$4 sm:$0xff]   ;;  %s8832_s6 = sadd.s32 (%p11174_p9), %s10137_s5, %s12928_s11 }
 0x13a   : > { %7450 = vmatprep.subr.bf16.mxu0 %v10248_v25  ;;  %7470 = vmatprep.mubr.bf16.mxu0 %v9579_v55  ;;  %v10299_v1 = vld [vmem:[%s12218_s29 + $0x8e0] ss:$8 sps:$4 sm:$0xff]   ;;  %v10308_v6 = vld [vmem:[%s12218_s29 + $0x104] ss:$8 sps:$4 sm:$0xff]   ;;  %v10315_v16 = vld [vmem:[%s12218_s29 + $0x910] ss:$8 sps:$4 sm:$0xff]  }
 0x13b   : > { %v10311_v7 = vld [vmem:[%s12218_s29 + $0x904] ss:$8 sps:$4 sm:$0xff]   ;;  %v10306_v9 = vld [vmem:[%s12218_s29 + $0x100] ss:$8 sps:$4 sm:$0xff]   ;;  %v10326_v22 = vld [vmem:[%s12218_s29 + $0x134] ss:$8 sps:$4 sm:$0xff]  }
 0x13c   : > { %5309 = vmatpush1.bf16.msra.mxu1 %v10250_v26  ;;  %v10309_v11 = vld [vmem:[%s12218_s29 + $0x900] ss:$8 sps:$4 sm:$0xff]   ;;  %v10320_v17 = vld [vmem:[%s12218_s29 + $0x124] ss:$8 sps:$4 sm:$0xff]   ;;  %v10329_v23 = vld [vmem:[%s12218_s29 + $0x934] ss:$8 sps:$4 sm:$0xff]  }
 0x13d   : > { %7451 = vmatpush1.bf16.msra.mxu0 %v10251_v27  ;;  %5310 = vmatprep.subr.bf16.mxu1 %v10252_v28  ;;  %v10323_v18 = vld [vmem:[%s12218_s29 + $0x924] ss:$8 sps:$4 sm:$0xff]   ;;  %v10318_v19 = vld [vmem:[%s12218_s29 + $0x120] ss:$8 sps:$4 sm:$0xff]   ;;  %v10324_v24 = vld [vmem:[%s12218_s29 + $0x130] ss:$8 sps:$4 sm:$0xff]  }
 0x13e   : > { %7452 = vmatprep.subr.bf16.mxu0 %v10254_v29  ;;  %v10321_v20 = vld [vmem:[%s12218_s29 + $0x920] ss:$8 sps:$4 sm:$0xff]   ;;  %v10327_v25 = vld [vmem:[%s12218_s29 + $0x930] ss:$8 sps:$4 sm:$0xff]   ;;  %v10332_v26 = vld [vmem:[%s12218_s29 + $0x144] ss:$8 sps:$4 sm:$0xff]  }
 0x13f   : > { %v10335_v27 = vld [vmem:[%s12218_s29 + $0x944] ss:$8 sps:$4 sm:$0xff]   ;;  %v10330_v28 = vld [vmem:[%s12218_s29 + $0x140] ss:$8 sps:$4 sm:$0xff]   ;;  %v10348_v49 = vld [vmem:[%s12218_s29 + $0x170] ss:$8 sps:$4 sm:$0xff]  }
 0x140   : > { %5311 = vmatpush1.bf16.msra.mxu1 %v10256_v30  ;;  %v10333_v29 = vld [vmem:[%s12218_s29 + $0x940] ss:$8 sps:$4 sm:$0xff]   ;;  %v10338_v30 = vld [vmem:[%s12218_s29 + $0x154] ss:$8 sps:$4 sm:$0xff]   ;;  %v10359_v52 = vld [vmem:[%s12218_s29 + $0x984] ss:$8 sps:$4 sm:$0xff]  }
 0x141   : > { %7453 = vmatpush1.bf16.msra.mxu0 %v10257_v31  ;;  %5312 = vmatprep.subr.bf16.mxu1 %v10258_v32  ;;  %v10341_v31 = vld [vmem:[%s12218_s29 + $0x954] ss:$8 sps:$4 sm:$0xff]   ;;  %v9446_v32 = vld [vmem:[%s12269_s10 + $0x80] sm:$0xff]  ;;  %s4423_s15 = scalar_lea.vmem [#allocation4], %s10135_s17  ;;  %s10010_s9 = sshll.u32 (%p11174_p9), %s8832_s6, 2 }
 0x142   : > { %7454 = vmatprep.subr.bf16.mxu0 %v10260_v33  ;;  %v10336_v33 = vld [vmem:[%s12218_s29 + $0x150] ss:$8 sps:$4 sm:$0xff]   ;;  %v10354_v53 = vld [vmem:[%s12218_s29 + $0x180] ss:$8 sps:$4 sm:$0xff]   ;;  %v10362_v55 = vld [vmem:[%s12218_s29 + $0x194] ss:$8 sps:$4 sm:$0xff]   ;;  %s8834_s13 = scalar_lea.vmem (%p11174_p9), %s12977_s4, %s10010_s9 }
 0x143   : > { %v10357_v54 = vld [vmem:[%s12218_s29 + $0x980] ss:$8 sps:$4 sm:$0xff]  }
 0x144   : > { %5313 = vmatpush1.bf16.msra.mxu1 %v10262_v34  ;;  %v9587_v34 = vcombine.high %v9446_v32, %v9446_v32 }
 0x145   : > { %7455 = vmatpush1.bf16.msra.mxu0 %v10263_v35  ;;  %5314 = vmatprep.subr.bf16.mxu1 %v10264_v36  ;;  %v9586_v35 = vcombine.low %v9446_v32, %v9446_v32  ;;  %v10339_v36 = vld [vmem:[%s12218_s29 + $0x950] ss:$8 sps:$4 sm:$0xff]   ;;  %v10420_v32 = vld [vmem:[%s12218_s29 + $0x224] ss:$8 sps:$4 sm:$0xff]  }
 0x146   : > { %7456 = vmatprep.subr.bf16.mxu0 %v10266_v37  ;;  %v10344_v37 = vld [vmem:[%s12218_s29 + $0x164] ss:$8 sps:$4 sm:$0xff]  }
 0x148   : > { %5315 = vmatpush1.bf16.msra.mxu1 %v10268_v38  ;;  %v10347_v38 = vld [vmem:[%s12218_s29 + $0x964] ss:$8 sps:$4 sm:$0xff]  }
 0x149   : > { %7457 = vmatpush1.bf16.msra.mxu0 %v10269_v39  ;;  %5316 = vmatprep.subr.bf16.mxu1 %v10270_v40  ;;  %v10342_v39 = vld [vmem:[%s12218_s29 + $0x160] ss:$8 sps:$4 sm:$0xff]  }
 0x14a   : > { %7458 = vmatprep.subr.bf16.mxu0 %v10272_v41  ;;  %v10345_v40 = vld [vmem:[%s12218_s29 + $0x960] ss:$8 sps:$4 sm:$0xff]  }
 0x14b   : > { %v12333_v41 = vld [vmem:[%s12269_s10 + $0x8] sm:$0xff] }
 0x14c   : > { %5317 = vmatpush1.bf16.msra.mxu1 %v10274_v42  ;;  %v12336_v42 = vld [vmem:[%s12269_s10 + $0x28] sm:$0xff] }
 0x14d   : > { %7459 = vmatpush1.bf16.msra.mxu0 %v10275_v43  ;;  %5318 = vmatprep.subr.bf16.mxu1 %v10276_v44  ;;  %v10350_v43 = vld [vmem:[%s12218_s29 + $0x174] ss:$8 sps:$4 sm:$0xff]  }
 0x14e   : > { %7460 = vmatprep.subr.bf16.mxu0 %v10278_v45  ;;  %v10353_v44 = vld [vmem:[%s12218_s29 + $0x974] ss:$8 sps:$4 sm:$0xff]   ;;  %v9013_v45 = vcombine.high %v12333_v41, %v12336_v42 }
 0x150   : > { %5319 = vmatpush1.bf16.msra.mxu1 %v10280_v46  ;;  %v12343_v46 = vld [vmem:[%s12269_s10 + $0x48] sm:$0xff] }
 0x151   : > { %7461 = vmatpush1.bf16.msra.mxu0 %v10281_v47  ;;  %5320 = vmatprep.subr.bf16.mxu1 %v10282_v50  ;;  %v12346_v47 = vld [vmem:[%s12269_s10 + $0x68] sm:$0xff]  ;;  %v10351_v50 = vld [vmem:[%s12218_s29 + $0x970] ss:$8 sps:$4 sm:$0xff]  }
 0x152   : > { %7462 = vmatprep.subr.bf16.mxu0 %v10284_v51  ;;  %v9581_v48 = vcombine.high %v12343_v46, %v12346_v47  ;;  %v10356_v51 = vld [vmem:[%s12218_s29 + $0x184] ss:$8 sps:$4 sm:$0xff]  }
 0x154   : > { %5321 = vmatpush1.bf16.msra.mxu1 %v10286_v56  ;;  %v10365_v56 = vld [vmem:[%s12218_s29 + $0x994] ss:$8 sps:$4 sm:$0xff]  }
 0x155   : > { %7463 = vmatpush1.bf16.msra.mxu0 %v10287_v57  ;;  %5322 = vmatprep.subr.bf16.mxu1 %v10288_v58  ;;  %v10360_v57 = vld [vmem:[%s12218_s29 + $0x190] ss:$8 sps:$4 sm:$0xff]  }
 0x156   : > { %7464 = vmatprep.subr.bf16.mxu0 %v10290_v59  ;;  %v10363_v58 = vld [vmem:[%s12218_s29 + $0x990] ss:$8 sps:$4 sm:$0xff]   ;;  %v10368_v59 = vld [vmem:[%s12218_s29 + $0x1a4] ss:$8 sps:$4 sm:$0xff]  }
 0x158   : > { %5323 = vmatpush1.bf16.msra.mxu1 %v10292_v60  ;;  %v10371_v60 = vld [vmem:[%s12218_s29 + $0x9a4] ss:$8 sps:$4 sm:$0xff]  }
 0x159   : > { %7465 = vmatpush1.bf16.msra.mxu0 %v10293_v61  ;;  %5324 = vmatprep.subr.bf16.mxu1 %v10294_v62  ;;  %v10366_v61 = vld [vmem:[%s12218_s29 + $0x1a0] ss:$8 sps:$4 sm:$0xff]  }
 0x15a   : > { %7466 = vmatprep.subr.bf16.mxu0 %v10296_v63  ;;  %v10369_v62 = vld [vmem:[%s12218_s29 + $0x9a0] ss:$8 sps:$4 sm:$0xff]   ;;  %v10374_v63 = vld [vmem:[%s12218_s29 + $0x1b4] ss:$8 sps:$4 sm:$0xff]  }
 0x15c   : > { %5325 = vmatpush1.bf16.msra.mxu1 %v10298_v0  ;;  %v10377_v0 = vld [vmem:[%s12218_s29 + $0x9b4] ss:$8 sps:$4 sm:$0xff]  }
 0x15d   : > { %7467 = vmatpush1.bf16.msra.mxu0 %v10299_v1  ;;  %5326 = vmatprep.subr.bf16.mxu1 %v10300_v2  ;;  %v10372_v1 = vld [vmem:[%s12218_s29 + $0x1b0] ss:$8 sps:$4 sm:$0xff]  }
 0x15e   : > { %7468 = vmatprep.subr.bf16.mxu0 %v10302_v3  ;;  %v10375_v2 = vld [vmem:[%s12218_s29 + $0x9b0] ss:$8 sps:$4 sm:$0xff]   ;;  %v10380_v3 = vld [vmem:[%s12218_s29 + $0x1c4] ss:$8 sps:$4 sm:$0xff]  }
 0x160   : > { %5327 = vmatpush1.bf16.msra.mxu1 %v10304_v4  ;;  %v10383_v4 = vld [vmem:[%s12218_s29 + $0x9c4] ss:$8 sps:$4 sm:$0xff]  }
 0x161   : > { %7469 = vmatpush1.bf16.msra.mxu0 %v10305_v5  ;;  %5347 = vmatprep.subr.bf16.mxu1 %v10308_v6  ;;  %v10378_v5 = vld [vmem:[%s12218_s29 + $0x1c0] ss:$8 sps:$4 sm:$0xff]  }
 0x162   : > { %7489 = vmatprep.subr.bf16.mxu0 %v10311_v7  ;;  %v10381_v6 = vld [vmem:[%s12218_s29 + $0x9c0] ss:$8 sps:$4 sm:$0xff]   ;;  %v10386_v7 = vld [vmem:[%s12218_s29 + $0x1d4] ss:$8 sps:$4 sm:$0xff]  }
 0x163   : > { %5329 = vmatmul.mubr.bf16.vlgmr.msra.gmra.mrb[0].mxu1 %v9010_v8  ;;  %v10389_v8 = vld [vmem:[%s12218_s29 + $0x9d4] ss:$8 sps:$4 sm:$0xff]  }
 0x164   : > { %7471 = vmatmul.mubr.bf16.vlgmr.msra.gmra.mrb[0].mxu0 %v9578_v10  ;;  %5348 = vmatpush1.bf16.msra.mxu1 %v10306_v9  ;;  %v10384_v9 = vld [vmem:[%s12218_s29 + $0x1d0] ss:$8 sps:$4 sm:$0xff]  }
 0x165   : > { %7490 = vmatpush1.bf16.msra.mxu0 %v10309_v11  ;;  %5349 = vmatprep.subr.bf16.mxu1 %v10314_v12  ;;  %v10387_v10 = vld [vmem:[%s12218_s29 + $0x9d0] ss:$8 sps:$4 sm:$0xff]   ;;  %v10393_v11 = vld [vmem:[%s12218_s29 + $0x1e4] ss:$8 sps:$4 sm:$0xff]  }
 0x166   : > { %7491 = vmatprep.subr.bf16.mxu0 %v10317_v13  ;;  %5338 = vmatprep.mubr.bf16.mxu1 %v9019_v14  ;;  %v10397_v12 = vld [vmem:[%s12218_s29 + $0x9e4] ss:$8 sps:$4 sm:$0xff]   ;;  %v10391_v13 = vld [vmem:[%s12218_s29 + $0x1e0] ss:$8 sps:$4 sm:$0xff]  }
 0x167   : > { %7480 = vmatprep.mubr.bf16.mxu0 %v9587_v34  ;;  %v10395_v14 = vld [vmem:[%s12218_s29 + $0x9e0] ss:$8 sps:$4 sm:$0xff]   ;;  %v12402_v34 = vld [vmem:[%s12269_s10 + $0x10] sm:$0xff] }
 0x168   : > { %5350 = vmatpush1.bf16.msra.mxu1 %v10312_v15  ;;  %v10402_v15 = vld [vmem:[%s12218_s29 + $0x1f4] ss:$8 sps:$4 sm:$0xff]  }
 0x169   : > { %7492 = vmatpush1.bf16.msra.mxu0 %v10315_v16  ;;  %5351 = vmatprep.subr.bf16.mxu1 %v10320_v17  ;;  %v10405_v16 = vld [vmem:[%s12218_s29 + $0x9f4] ss:$8 sps:$4 sm:$0xff]   ;;  %v10400_v17 = vld [vmem:[%s12218_s29 + $0x1f0] ss:$8 sps:$4 sm:$0xff]  }
 0x16a   : > { %7493 = vmatprep.subr.bf16.mxu0 %v10323_v18  ;;  %v10403_v18 = vld [vmem:[%s12218_s29 + $0x9f0] ss:$8 sps:$4 sm:$0xff]  }
 0x16b   : > { %5339 = vmatmul.mubr.bf16.gmra.mrb[4].mxu1 %v9018_v21  ;;  %v9012_v21 = vcombine.low %v12333_v41, %v12336_v42  ;;  %v10421_v41 = vld [vmem:[%s12218_s29 + $0xa20] ss:$8 sps:$4 sm:$0xff]   ;;  %v10426_v42 = vld [vmem:[%s12218_s29 + $0x234] ss:$8 sps:$4 sm:$0xff]  }
 0x16c   : > { %5352 = vmatpush1.bf16.msra.mxu1 %v10318_v19  ;;  %7481 = vmatmul.mubr.bf16.gmra.mrb[4].mxu0 %v9586_v35  ;;  %v10408_v19 = vld [vmem:[%s12218_s29 + $0x204] ss:$8 sps:$4 sm:$0xff]   ;;  %v12405_v35 = vld [vmem:[%s12269_s10 + $0x30] sm:$0xff] }
 0x16d   : > { %7494 = vmatpush1.bf16.msra.mxu0 %v10321_v20  ;;  %5353 = vmatprep.subr.bf16.mxu1 %v10326_v22  ;;  %v10411_v20 = vld [vmem:[%s12218_s29 + $0xa04] ss:$8 sps:$4 sm:$0xff]   ;;  %v9580_v22 = vcombine.low %v12343_v46, %v12346_v47  ;;  %v10427_v47 = vld [vmem:[%s12218_s29 + $0xa30] ss:$8 sps:$4 sm:$0xff]  }
 0x16e   : > { %7495 = vmatprep.subr.bf16.mxu0 %v10329_v23  ;;  %5379 = vmatprep.mubr.bf16.mxu1 %v9013_v45  ;;  %v9447_v23 = vld [vmem:[%s12269_s10 + $0x88] sm:$0xff] }
 0x16f   : > { %7521 = vmatprep.mubr.bf16.mxu0 %v9581_v48  ;;  %v10432_v48 = vld [vmem:[%s12218_s29 + $0x244] ss:$8 sps:$4 sm:$0xff]  }
 0x170   : > { %5354 = vmatpush1.bf16.msra.mxu1 %v10324_v24  ;;  %v10406_v24 = vld [vmem:[%s12218_s29 + $0x200] ss:$8 sps:$4 sm:$0xff]  }
 0x171   : > { %7496 = vmatpush1.bf16.msra.mxu0 %v10327_v25  ;;  %5355 = vmatprep.subr.bf16.mxu1 %v10332_v26  ;;  %v10409_v25 = vld [vmem:[%s12218_s29 + $0xa00] ss:$8 sps:$4 sm:$0xff]   ;;  %v10414_v26 = vld [vmem:[%s12218_s29 + $0x214] ss:$8 sps:$4 sm:$0xff]  }
 0x172   : > { %7497 = vmatprep.subr.bf16.mxu0 %v10335_v27  ;;  %v10417_v27 = vld [vmem:[%s12218_s29 + $0xa14] ss:$8 sps:$4 sm:$0xff]  }
 0x174   : > { %5356 = vmatpush1.bf16.msra.mxu1 %v10330_v28  ;;  %v9021_v28 = vcombine.high %v12343_v46, %v12343_v46 }
 0x175   : > { %7498 = vmatpush1.bf16.msra.mxu0 %v10333_v29  ;;  %5357 = vmatprep.subr.bf16.mxu1 %v10338_v30  ;;  %v9589_v29 = vcombine.high %v9447_v23, %v9447_v23  ;;  %v10412_v30 = vld [vmem:[%s12218_s29 + $0x210] ss:$8 sps:$4 sm:$0xff]  }
 0x176   : > { %7499 = vmatprep.subr.bf16.mxu0 %v10341_v31  ;;  %v10415_v31 = vld [vmem:[%s12218_s29 + $0xa10] ss:$8 sps:$4 sm:$0xff]  }
 0x178   : > { %5358 = vmatpush1.bf16.msra.mxu1 %v10336_v33  ;;  %v10423_v33 = vld [vmem:[%s12218_s29 + $0xa24] ss:$8 sps:$4 sm:$0xff]  }
 0x179   : > { %7500 = vmatpush1.bf16.msra.mxu0 %v10339_v36  ;;  %5359 = vmatprep.subr.bf16.mxu1 %v10344_v37  ;;  %v12408_v36 = vld [vmem:[%s12269_s10 + $0x50] sm:$0xff]  ;;  %v9020_v37 = vcombine.low %v12343_v46, %v12343_v46 }
 0x17a   : > { %7501 = vmatprep.subr.bf16.mxu0 %v10347_v38  ;;  %v9588_v38 = vcombine.low %v9447_v23, %v9447_v23  ;;  %v10424_v46 = vld [vmem:[%s12218_s29 + $0x230] ss:$8 sps:$4 sm:$0xff]  }
 0x17b   : > { %v10487_v23 = vld [vmem:[%s12218_s29 + $0xad0] ss:$8 sps:$4 sm:$0xff]  }
 0x17c   : > { %5360 = vmatpush1.bf16.msra.mxu1 %v10342_v39  ;;  %v12413_v39 = vld [vmem:[%s12269_s10 + $0x70] sm:$0xff] }
 0x17d   : > { %7502 = vmatpush1.bf16.msra.mxu0 %v10345_v40  ;;  %5361 = vmatprep.subr.bf16.mxu1 %v10350_v43  ;;  %v10418_v40 = vld [vmem:[%s12218_s29 + $0x220] ss:$8 sps:$4 sm:$0xff]   ;;  %v10429_v43 = vld [vmem:[%s12218_s29 + $0xa34] ss:$8 sps:$4 sm:$0xff]   ;;  %v9583_v45 = vcombine.high %v12408_v36, %v12413_v39 }
 0x17e   : > { %7503 = vmatprep.subr.bf16.mxu0 %v10353_v44  ;;  %v9015_v44 = vcombine.high %v12402_v34, %v12405_v35 }
 0x180   : > { %5362 = vmatpush1.bf16.msra.mxu1 %v10348_v49  ;;  %v10435_v49 = vld [vmem:[%s12218_s29 + $0xa44] ss:$8 sps:$4 sm:$0xff]  }
 0x181   : > { %7504 = vmatpush1.bf16.msra.mxu0 %v10351_v50  ;;  %5363 = vmatprep.subr.bf16.mxu1 %v10356_v51  ;;  %v10430_v50 = vld [vmem:[%s12218_s29 + $0x240] ss:$8 sps:$4 sm:$0xff]  }
 0x182   : > { %7505 = vmatprep.subr.bf16.mxu0 %v10359_v52  ;;  %v10433_v51 = vld [vmem:[%s12218_s29 + $0xa40] ss:$8 sps:$4 sm:$0xff]   ;;  %v10438_v52 = vld [vmem:[%s12218_s29 + $0x254] ss:$8 sps:$4 sm:$0xff]  }
 0x184   : > { %5364 = vmatpush1.bf16.msra.mxu1 %v10354_v53  ;;  %v10441_v53 = vld [vmem:[%s12218_s29 + $0xa54] ss:$8 sps:$4 sm:$0xff]  }
 0x185   : > { %7506 = vmatpush1.bf16.msra.mxu0 %v10357_v54  ;;  %5365 = vmatprep.subr.bf16.mxu1 %v10362_v55  ;;  %v10436_v54 = vld [vmem:[%s12218_s29 + $0x250] ss:$8 sps:$4 sm:$0xff]  }
 0x186   : > { %7507 = vmatprep.subr.bf16.mxu0 %v10365_v56  ;;  %v10439_v55 = vld [vmem:[%s12218_s29 + $0xa50] ss:$8 sps:$4 sm:$0xff]   ;;  %v10444_v56 = vld [vmem:[%s12218_s29 + $0x264] ss:$8 sps:$4 sm:$0xff]  }
 0x188   : > { %5366 = vmatpush1.bf16.msra.mxu1 %v10360_v57  ;;  %v10447_v57 = vld [vmem:[%s12218_s29 + $0xa64] ss:$8 sps:$4 sm:$0xff]  }
 0x189   : > { %7508 = vmatpush1.bf16.msra.mxu0 %v10363_v58  ;;  %5367 = vmatprep.subr.bf16.mxu1 %v10368_v59  ;;  %v10442_v58 = vld [vmem:[%s12218_s29 + $0x260] ss:$8 sps:$4 sm:$0xff]  }
 0x18a   : > { %7509 = vmatprep.subr.bf16.mxu0 %v10371_v60  ;;  %v10445_v59 = vld [vmem:[%s12218_s29 + $0xa60] ss:$8 sps:$4 sm:$0xff]   ;;  %v10450_v60 = vld [vmem:[%s12218_s29 + $0x274] ss:$8 sps:$4 sm:$0xff]  }
 0x18c   : > { %5368 = vmatpush1.bf16.msra.mxu1 %v10366_v61  ;;  %v10453_v61 = vld [vmem:[%s12218_s29 + $0xa74] ss:$8 sps:$4 sm:$0xff]  }
 0x18d   : > { %7510 = vmatpush1.bf16.msra.mxu0 %v10369_v62  ;;  %5369 = vmatprep.subr.bf16.mxu1 %v10374_v63  ;;  %v10448_v62 = vld [vmem:[%s12218_s29 + $0x270] ss:$8 sps:$4 sm:$0xff]  }
 0x18e   : > { %7511 = vmatprep.subr.bf16.mxu0 %v10377_v0  ;;  %v10451_v63 = vld [vmem:[%s12218_s29 + $0xa70] ss:$8 sps:$4 sm:$0xff]   ;;  %v10456_v0 = vld [vmem:[%s12218_s29 + $0x284] ss:$8 sps:$4 sm:$0xff]  }
 0x190   : > { %5370 = vmatpush1.bf16.msra.mxu1 %v10372_v1  ;;  %v10459_v1 = vld [vmem:[%s12218_s29 + $0xa84] ss:$8 sps:$4 sm:$0xff]  }
 0x191   : > { %7512 = vmatpush1.bf16.msra.mxu0 %v10375_v2  ;;  %5371 = vmatprep.subr.bf16.mxu1 %v10380_v3  ;;  %v10454_v2 = vld [vmem:[%s12218_s29 + $0x280] ss:$8 sps:$4 sm:$0xff]  }
 0x192   : > { %7513 = vmatprep.subr.bf16.mxu0 %v10383_v4  ;;  %v10457_v3 = vld [vmem:[%s12218_s29 + $0xa80] ss:$8 sps:$4 sm:$0xff]   ;;  %v10462_v4 = vld [vmem:[%s12218_s29 + $0x294] ss:$8 sps:$4 sm:$0xff]  }
 0x194   : > { %5372 = vmatpush1.bf16.msra.mxu1 %v10378_v5  ;;  %v10465_v5 = vld [vmem:[%s12218_s29 + $0xa94] ss:$8 sps:$4 sm:$0xff]  }
 0x195   : > { %7514 = vmatpush1.bf16.msra.mxu0 %v10381_v6  ;;  %5373 = vmatprep.subr.bf16.mxu1 %v10386_v7  ;;  %v10460_v6 = vld [vmem:[%s12218_s29 + $0x290] ss:$8 sps:$4 sm:$0xff]  }
 0x196   : > { %7515 = vmatprep.subr.bf16.mxu0 %v10389_v8  ;;  %v10463_v7 = vld [vmem:[%s12218_s29 + $0xa90] ss:$8 sps:$4 sm:$0xff]   ;;  %v10468_v8 = vld [vmem:[%s12218_s29 + $0x2a4] ss:$8 sps:$4 sm:$0xff]  }
 0x198   : > { %5374 = vmatpush1.bf16.msra.mxu1 %v10384_v9  ;;  %v10471_v9 = vld [vmem:[%s12218_s29 + $0xaa4] ss:$8 sps:$4 sm:$0xff]  }
 0x199   : > { %7516 = vmatpush1.bf16.msra.mxu0 %v10387_v10  ;;  %5375 = vmatprep.subr.bf16.mxu1 %v10393_v11  ;;  %v10466_v10 = vld [vmem:[%s12218_s29 + $0x2a0] ss:$8 sps:$4 sm:$0xff]  }
 0x19a   : > { %7517 = vmatprep.subr.bf16.mxu0 %v10397_v12  ;;  %v10469_v11 = vld [vmem:[%s12218_s29 + $0xaa0] ss:$8 sps:$4 sm:$0xff]   ;;  %v10474_v12 = vld [vmem:[%s12218_s29 + $0x2b4] ss:$8 sps:$4 sm:$0xff]  }
 0x19c   : > { %5376 = vmatpush1.bf16.msra.mxu1 %v10391_v13  ;;  %v10477_v13 = vld [vmem:[%s12218_s29 + $0xab4] ss:$8 sps:$4 sm:$0xff]  }
 0x19d   : > { %7518 = vmatpush1.bf16.msra.mxu0 %v10395_v14  ;;  %5377 = vmatprep.subr.bf16.mxu1 %v10402_v15  ;;  %v10472_v14 = vld [vmem:[%s12218_s29 + $0x2b0] ss:$8 sps:$4 sm:$0xff]  }
 0x19e   : > { %7519 = vmatprep.subr.bf16.mxu0 %v10405_v16  ;;  %v10475_v15 = vld [vmem:[%s12218_s29 + $0xab0] ss:$8 sps:$4 sm:$0xff]   ;;  %v10480_v16 = vld [vmem:[%s12218_s29 + $0x2c4] ss:$8 sps:$4 sm:$0xff]  }
 0x1a0   : > { %5378 = vmatpush1.bf16.msra.mxu1 %v10400_v17  ;;  %v10483_v17 = vld [vmem:[%s12218_s29 + $0xac4] ss:$8 sps:$4 sm:$0xff]  }
 0x1a1   : > { %7520 = vmatpush1.bf16.msra.mxu0 %v10403_v18  ;;  %5398 = vmatprep.subr.bf16.mxu1 %v10408_v19  ;;  %v10478_v18 = vld [vmem:[%s12218_s29 + $0x2c0] ss:$8 sps:$4 sm:$0xff]  }
 0x1a2   : > { %7540 = vmatprep.subr.bf16.mxu0 %v10411_v20  ;;  %v10481_v19 = vld [vmem:[%s12218_s29 + $0xac0] ss:$8 sps:$4 sm:$0xff]   ;;  %v10486_v20 = vld [vmem:[%s12218_s29 + $0x2d4] ss:$8 sps:$4 sm:$0xff]  }
 0x1a3   : > { %5380 = vmatmul.mubr.bf16.vlgmr.msra.gmra.mrb[0].mxu1 %v9012_v21  ;;  %v10489_v21 = vld [vmem:[%s12218_s29 + $0xad4] ss:$8 sps:$4 sm:$0xff]  }
 0x1a4   : > { %7522 = vmatmul.mubr.bf16.vlgmr.msra.gmra.mrb[0].mxu0 %v9580_v22  ;;  %5399 = vmatpush1.bf16.msra.mxu1 %v10406_v24  ;;  %v10484_v22 = vld [vmem:[%s12218_s29 + $0x2d0] ss:$8 sps:$4 sm:$0xff]   ;;  %v10493_v24 = vld [vmem:[%s12218_s29 + $0x2e4] ss:$8 sps:$4 sm:$0xff]  }
 0x1a5   : > { %7541 = vmatpush1.bf16.msra.mxu0 %v10409_v25  ;;  %5400 = vmatprep.subr.bf16.mxu1 %v10414_v26  ;;  %v10497_v25 = vld [vmem:[%s12218_s29 + $0xae4] ss:$8 sps:$4 sm:$0xff]   ;;  %v10491_v26 = vld [vmem:[%s12218_s29 + $0x2e0] ss:$8 sps:$4 sm:$0xff]  }
 0x1a6   : > { %7542 = vmatprep.subr.bf16.mxu0 %v10417_v27  ;;  %5389 = vmatprep.mubr.bf16.mxu1 %v9021_v28  ;;  %v10495_v27 = vld [vmem:[%s12218_s29 + $0xae0] ss:$8 sps:$4 sm:$0xff]   ;;  %v10502_v28 = vld [vmem:[%s12218_s29 + $0x2f4] ss:$8 sps:$4 sm:$0xff]  }
 0x1a7   : > { %7531 = vmatprep.mubr.bf16.mxu0 %v9589_v29  ;;  %v10505_v29 = vld [vmem:[%s12218_s29 + $0xaf4] ss:$8 sps:$4 sm:$0xff]  }
 0x1a8   : > { %5401 = vmatpush1.bf16.msra.mxu1 %v10412_v30  ;;  %v10500_v30 = vld [vmem:[%s12218_s29 + $0x2f0] ss:$8 sps:$4 sm:$0xff]  }
 0x1a9   : > { %7543 = vmatpush1.bf16.msra.mxu0 %v10415_v31  ;;  %5402 = vmatprep.subr.bf16.mxu1 %v10420_v32  ;;  %v10503_v31 = vld [vmem:[%s12218_s29 + $0xaf0] ss:$8 sps:$4 sm:$0xff]   ;;  %v10508_v32 = vld [vmem:[%s12218_s29 + $0x304] ss:$8 sps:$4 sm:$0xff]  }
 0x1aa   : > { %7544 = vmatprep.subr.bf16.mxu0 %v10423_v33  ;;  %v10511_v33 = vld [vmem:[%s12218_s29 + $0xb04] ss:$8 sps:$4 sm:$0xff]  }
 0x1ab   : > { %5390 = vmatmul.mubr.bf16.gmra.mrb[4].mxu1 %v9020_v37  ;;  %v9014_v37 = vcombine.low %v12402_v34, %v12405_v35  ;;  %v9023_v34 = vcombine.high %v12408_v36, %v12408_v36 }
 0x1ac   : > { %7532 = vmatmul.mubr.bf16.gmra.mrb[4].mxu0 %v9588_v38  ;;  %5403 = vmatpush1.bf16.msra.mxu1 %v10418_v40  ;;  %v10506_v38 = vld [vmem:[%s12218_s29 + $0x300] ss:$8 sps:$4 sm:$0xff]   ;;  %v9582_v40 = vcombine.low %v12408_v36, %v12413_v39  ;;  %v10512_v39 = vld [vmem:[%s12218_s29 + $0x310] ss:$8 sps:$4 sm:$0xff]  }
 0x1ad   : > { %7545 = vmatpush1.bf16.msra.mxu0 %v10421_v41  ;;  %5404 = vmatprep.subr.bf16.mxu1 %v10426_v42  ;;  %v9448_v41 = vld [vmem:[%s12269_s10 + $0x90] sm:$0xff]  ;;  %v10509_v42 = vld [vmem:[%s12218_s29 + $0xb00] ss:$8 sps:$4 sm:$0xff]  }
 0x1ae   : > { %7546 = vmatprep.subr.bf16.mxu0 %v10429_v43  ;;  %5430 = vmatprep.mubr.bf16.mxu1 %v9015_v44  ;;  %v10514_v43 = vld [vmem:[%s12218_s29 + $0x314] ss:$8 sps:$4 sm:$0xff]   ;;  %v9591_v35 = vcombine.high %v9448_v41, %v9448_v41 }
 0x1af   : > { %7572 = vmatprep.mubr.bf16.mxu0 %v9583_v45  ;;  %v10517_v44 = vld [vmem:[%s12218_s29 + $0xb14] ss:$8 sps:$4 sm:$0xff]   ;;  %v10515_v45 = vld [vmem:[%s12218_s29 + $0xb10] ss:$8 sps:$4 sm:$0xff]  }
 0x1b0   : > { %5405 = vmatpush1.bf16.msra.mxu1 %v10424_v46  ;;  %v10520_v46 = vld [vmem:[%s12218_s29 + $0x324] ss:$8 sps:$4 sm:$0xff]  }
 0x1b1   : > { %7547 = vmatpush1.bf16.msra.mxu0 %v10427_v47  ;;  %5406 = vmatprep.subr.bf16.mxu1 %v10432_v48  ;;  %v10523_v47 = vld [vmem:[%s12218_s29 + $0xb24] ss:$8 sps:$4 sm:$0xff]   ;;  %v12491_v48 = vld [vmem:[%s12269_s10 + $0x18] sm:$0xff] }
 0x1b2   : > { %7548 = vmatprep.subr.bf16.mxu0 %v10435_v49  ;;  %v10518_v49 = vld [vmem:[%s12218_s29 + $0x320] ss:$8 sps:$4 sm:$0xff]  }
 0x1b4   : > { %5407 = vmatpush1.bf16.msra.mxu1 %v10430_v50  ;;  %v12495_v50 = vld [vmem:[%s12269_s10 + $0x38] sm:$0xff] }
 0x1b5   : > { %7549 = vmatpush1.bf16.msra.mxu0 %v10433_v51  ;;  %5408 = vmatprep.subr.bf16.mxu1 %v10438_v52  ;;  %v9022_v51 = vcombine.low %v12408_v36, %v12408_v36  ;;  %v9590_v52 = vcombine.low %v9448_v41, %v9448_v41  ;;  %v10593_v41 = vld [vmem:[%s12218_s29 + $0x3e4] ss:$8 sps:$4 sm:$0xff]  }
 0x1b6   : > { %7550 = vmatprep.subr.bf16.mxu0 %v10441_v53  ;;  %v12500_v53 = vld [vmem:[%s12269_s10 + $0x58] sm:$0xff] }
 0x1b8   : > { %5409 = vmatpush1.bf16.msra.mxu1 %v10436_v54  ;;  %v12503_v54 = vld [vmem:[%s12269_s10 + $0x78] sm:$0xff] }
 0x1b9   : > { %7551 = vmatpush1.bf16.msra.mxu0 %v10439_v55  ;;  %5410 = vmatprep.subr.bf16.mxu1 %v10444_v56  ;;  %v10521_v55 = vld [vmem:[%s12218_s29 + $0xb20] ss:$8 sps:$4 sm:$0xff]   ;;  %v10526_v56 = vld [vmem:[%s12218_s29 + $0x334] ss:$8 sps:$4 sm:$0xff]   ;;  %v9585_v36 = vcombine.high %v12500_v53, %v12503_v54 }
 0x1ba   : > { %7552 = vmatprep.subr.bf16.mxu0 %v10447_v57  ;;  %v10529_v57 = vld [vmem:[%s12218_s29 + $0xb34] ss:$8 sps:$4 sm:$0xff]  }
 0x1bc   : > { %5411 = vmatpush1.bf16.msra.mxu1 %v10442_v58  ;;  %v9017_v58 = vcombine.high %v12491_v48, %v12495_v50 }
 0x1bd   : > { %7553 = vmatpush1.bf16.msra.mxu0 %v10445_v59  ;;  %5412 = vmatprep.subr.bf16.mxu1 %v10450_v60  ;;  %v10524_v59 = vld [vmem:[%s12218_s29 + $0x330] ss:$8 sps:$4 sm:$0xff]  }
 0x1be   : > { %7554 = vmatprep.subr.bf16.mxu0 %v10453_v61  ;;  %v10527_v60 = vld [vmem:[%s12218_s29 + $0xb30] ss:$8 sps:$4 sm:$0xff]   ;;  %v10532_v61 = vld [vmem:[%s12218_s29 + $0x344] ss:$8 sps:$4 sm:$0xff]  }
 0x1c0   : > { %5413 = vmatpush1.bf16.msra.mxu1 %v10448_v62  ;;  %v10535_v62 = vld [vmem:[%s12218_s29 + $0xb44] ss:$8 sps:$4 sm:$0xff]  }
 0x1c1   : > { %7555 = vmatpush1.bf16.msra.mxu0 %v10451_v63  ;;  %5414 = vmatprep.subr.bf16.mxu1 %v10456_v0  ;;  %v10530_v63 = vld [vmem:[%s12218_s29 + $0x340] ss:$8 sps:$4 sm:$0xff]  }
 0x1c2   : > { %7556 = vmatprep.subr.bf16.mxu0 %v10459_v1  ;;  %v10533_v0 = vld [vmem:[%s12218_s29 + $0xb40] ss:$8 sps:$4 sm:$0xff]   ;;  %v10538_v1 = vld [vmem:[%s12218_s29 + $0x354] ss:$8 sps:$4 sm:$0xff]  }
 0x1c4   : > { %5415 = vmatpush1.bf16.msra.mxu1 %v10454_v2  ;;  %v10541_v2 = vld [vmem:[%s12218_s29 + $0xb54] ss:$8 sps:$4 sm:$0xff]  }
 0x1c5   : > { %7557 = vmatpush1.bf16.msra.mxu0 %v10457_v3  ;;  %5416 = vmatprep.subr.bf16.mxu1 %v10462_v4  ;;  %v10536_v3 = vld [vmem:[%s12218_s29 + $0x350] ss:$8 sps:$4 sm:$0xff]  }
 0x1c6   : > { %7558 = vmatprep.subr.bf16.mxu0 %v10465_v5  ;;  %v10539_v4 = vld [vmem:[%s12218_s29 + $0xb50] ss:$8 sps:$4 sm:$0xff]   ;;  %v10544_v5 = vld [vmem:[%s12218_s29 + $0x364] ss:$8 sps:$4 sm:$0xff]  }
 0x1c8   : > { %5417 = vmatpush1.bf16.msra.mxu1 %v10460_v6  ;;  %v10547_v6 = vld [vmem:[%s12218_s29 + $0xb64] ss:$8 sps:$4 sm:$0xff]  }
 0x1c9   : > { %7559 = vmatpush1.bf16.msra.mxu0 %v10463_v7  ;;  %5418 = vmatprep.subr.bf16.mxu1 %v10468_v8  ;;  %v10542_v7 = vld [vmem:[%s12218_s29 + $0x360] ss:$8 sps:$4 sm:$0xff]  }
 0x1ca   : > { %7560 = vmatprep.subr.bf16.mxu0 %v10471_v9  ;;  %v10545_v8 = vld [vmem:[%s12218_s29 + $0xb60] ss:$8 sps:$4 sm:$0xff]   ;;  %v10550_v9 = vld [vmem:[%s12218_s29 + $0x374] ss:$8 sps:$4 sm:$0xff]  }
 0x1cc   : > { %5419 = vmatpush1.bf16.msra.mxu1 %v10466_v10  ;;  %v10553_v10 = vld [vmem:[%s12218_s29 + $0xb74] ss:$8 sps:$4 sm:$0xff]  }
 0x1cd   : > { %7561 = vmatpush1.bf16.msra.mxu0 %v10469_v11  ;;  %5420 = vmatprep.subr.bf16.mxu1 %v10474_v12  ;;  %v10548_v11 = vld [vmem:[%s12218_s29 + $0x370] ss:$8 sps:$4 sm:$0xff]  }
 0x1ce   : > { %7562 = vmatprep.subr.bf16.mxu0 %v10477_v13  ;;  %v10551_v12 = vld [vmem:[%s12218_s29 + $0xb70] ss:$8 sps:$4 sm:$0xff]   ;;  %v10556_v13 = vld [vmem:[%s12218_s29 + $0x384] ss:$8 sps:$4 sm:$0xff]  }
 0x1d0   : > { %5421 = vmatpush1.bf16.msra.mxu1 %v10472_v14  ;;  %v10559_v14 = vld [vmem:[%s12218_s29 + $0xb84] ss:$8 sps:$4 sm:$0xff]  }
 0x1d1   : > { %7563 = vmatpush1.bf16.msra.mxu0 %v10475_v15  ;;  %5422 = vmatprep.subr.bf16.mxu1 %v10480_v16  ;;  %v10554_v15 = vld [vmem:[%s12218_s29 + $0x380] ss:$8 sps:$4 sm:$0xff]  }
 0x1d2   : > { %7564 = vmatprep.subr.bf16.mxu0 %v10483_v17  ;;  %v10557_v16 = vld [vmem:[%s12218_s29 + $0xb80] ss:$8 sps:$4 sm:$0xff]   ;;  %v10562_v17 = vld [vmem:[%s12218_s29 + $0x394] ss:$8 sps:$4 sm:$0xff]  }
 0x1d4   : > { %5423 = vmatpush1.bf16.msra.mxu1 %v10478_v18  ;;  %v10565_v18 = vld [vmem:[%s12218_s29 + $0xb94] ss:$8 sps:$4 sm:$0xff]  }
 0x1d5   : > { %7565 = vmatpush1.bf16.msra.mxu0 %v10481_v19  ;;  %5424 = vmatprep.subr.bf16.mxu1 %v10486_v20  ;;  %v10560_v19 = vld [vmem:[%s12218_s29 + $0x390] ss:$8 sps:$4 sm:$0xff]  }
 0x1d6   : > { %7566 = vmatprep.subr.bf16.mxu0 %v10489_v21  ;;  %v10563_v20 = vld [vmem:[%s12218_s29 + $0xb90] ss:$8 sps:$4 sm:$0xff]   ;;  %v10568_v21 = vld [vmem:[%s12218_s29 + $0x3a4] ss:$8 sps:$4 sm:$0xff]  }
 0x1d8   : > { %5425 = vmatpush1.bf16.msra.mxu1 %v10484_v22  ;;  %v10571_v22 = vld [vmem:[%s12218_s29 + $0xba4] ss:$8 sps:$4 sm:$0xff]  }
 0x1d9   : > { %7567 = vmatpush1.bf16.msra.mxu0 %v10487_v23  ;;  %5426 = vmatprep.subr.bf16.mxu1 %v10493_v24  ;;  %v10566_v23 = vld [vmem:[%s12218_s29 + $0x3a0] ss:$8 sps:$4 sm:$0xff]  }
 0x1da   : > { %7568 = vmatprep.subr.bf16.mxu0 %v10497_v25  ;;  %v10569_v24 = vld [vmem:[%s12218_s29 + $0xba0] ss:$8 sps:$4 sm:$0xff]   ;;  %v10574_v25 = vld [vmem:[%s12218_s29 + $0x3b4] ss:$8 sps:$4 sm:$0xff]  }
 0x1dc   : > { %5427 = vmatpush1.bf16.msra.mxu1 %v10491_v26  ;;  %v10577_v26 = vld [vmem:[%s12218_s29 + $0xbb4] ss:$8 sps:$4 sm:$0xff]  }
 0x1dd   : > { %7569 = vmatpush1.bf16.msra.mxu0 %v10495_v27  ;;  %5428 = vmatprep.subr.bf16.mxu1 %v10502_v28  ;;  %v10572_v27 = vld [vmem:[%s12218_s29 + $0x3b0] ss:$8 sps:$4 sm:$0xff]  }
 0x1de   : > { %7570 = vmatprep.subr.bf16.mxu0 %v10505_v29  ;;  %v10575_v28 = vld [vmem:[%s12218_s29 + $0xbb0] ss:$8 sps:$4 sm:$0xff]   ;;  %v10580_v29 = vld [vmem:[%s12218_s29 + $0x3c4] ss:$8 sps:$4 sm:$0xff]  }
 0x1e0   : > { %5429 = vmatpush1.bf16.msra.mxu1 %v10500_v30  ;;  %v10583_v30 = vld [vmem:[%s12218_s29 + $0xbc4] ss:$8 sps:$4 sm:$0xff]  }
 0x1e1   : > { %7571 = vmatpush1.bf16.msra.mxu0 %v10503_v31  ;;  %5449 = vmatprep.subr.bf16.mxu1 %v10508_v32  ;;  %v10578_v31 = vld [vmem:[%s12218_s29 + $0x3c0] ss:$8 sps:$4 sm:$0xff]  }
 0x1e2   : > { %7591 = vmatprep.subr.bf16.mxu0 %v10511_v33  ;;  %v10581_v32 = vld [vmem:[%s12218_s29 + $0xbc0] ss:$8 sps:$4 sm:$0xff]   ;;  %v10586_v33 = vld [vmem:[%s12218_s29 + $0x3d4] ss:$8 sps:$4 sm:$0xff]  }
 0x1e3   : > { %5431 = vmatmul.mubr.bf16.vlgmr.msra.gmra.mrb[0].mxu1 %v9014_v37  ;;  %v10589_v37 = vld [vmem:[%s12218_s29 + $0xbd4] ss:$8 sps:$4 sm:$0xff]  }
 0x1e4   : > { %7573 = vmatmul.mubr.bf16.vlgmr.msra.gmra.mrb[0].mxu0 %v9582_v40  ;;  %5450 = vmatpush1.bf16.msra.mxu1 %v10506_v38  ;;  %v10584_v38 = vld [vmem:[%s12218_s29 + $0x3d0] ss:$8 sps:$4 sm:$0xff]  }
 0x1e5   : > { %7592 = vmatpush1.bf16.msra.mxu0 %v10509_v42  ;;  %5451 = vmatprep.subr.bf16.mxu1 %v10514_v43  ;;  %v10587_v40 = vld [vmem:[%s12218_s29 + $0xbd0] ss:$8 sps:$4 sm:$0xff]   ;;  %v10597_v42 = vld [vmem:[%s12218_s29 + $0xbe4] ss:$8 sps:$4 sm:$0xff]   ;;  %v10591_v43 = vld [vmem:[%s12218_s29 + $0x3e0] ss:$8 sps:$4 sm:$0xff]  }
 0x1e6   : > { %7593 = vmatprep.subr.bf16.mxu0 %v10517_v44  ;;  %5440 = vmatprep.mubr.bf16.mxu1 %v9023_v34  ;;  %v10595_v44 = vld [vmem:[%s12218_s29 + $0xbe0] ss:$8 sps:$4 sm:$0xff]   ;;  %v10602_v34 = vld [vmem:[%s12218_s29 + $0x3f4] ss:$8 sps:$4 sm:$0xff]  }
 0x1e7   : > { %7582 = vmatprep.mubr.bf16.mxu0 %v9591_v35  ;;  %v10605_v35 = vld [vmem:[%s12218_s29 + $0xbf4] ss:$8 sps:$4 sm:$0xff]  }
 0x1e8   : > { %5452 = vmatpush1.bf16.msra.mxu1 %v10512_v39  ;;  %v10600_v39 = vld [vmem:[%s12218_s29 + $0x3f0] ss:$8 sps:$4 sm:$0xff]  }
 0x1e9   : > { %7594 = vmatpush1.bf16.msra.mxu0 %v10515_v45  ;;  %5453 = vmatprep.subr.bf16.mxu1 %v10520_v46  ;;  %v10603_v45 = vld [vmem:[%s12218_s29 + $0xbf0] ss:$8 sps:$4 sm:$0xff]   ;;  %v10608_v46 = vld [vmem:[%s12218_s29 + $0x404] ss:$8 sps:$4 sm:$0xff]  }
 0x1ea   : > { %7595 = vmatprep.subr.bf16.mxu0 %v10523_v47  ;;  %v10611_v47 = vld [vmem:[%s12218_s29 + $0xc04] ss:$8 sps:$4 sm:$0xff]  }
 0x1eb   : > { %5441 = vmatmul.mubr.bf16.gmra.mrb[4].mxu1 %v9022_v51  ;;  %v9016_v51 = vcombine.low %v12491_v48, %v12495_v50  ;;  %v10612_v50 = vld [vmem:[%s12218_s29 + $0x410] ss:$8 sps:$4 sm:$0xff]  }
 0x1ec   : > { %7583 = vmatmul.mubr.bf16.gmra.mrb[4].mxu0 %v9590_v52  ;;  %5454 = vmatpush1.bf16.msra.mxu1 %v10518_v49  ;;  %v10606_v49 = vld [vmem:[%s12218_s29 + $0x400] ss:$8 sps:$4 sm:$0xff]   ;;  %v9584_v52 = vcombine.low %v12500_v53, %v12503_v54  ;;  %v10615_v54 = vld [vmem:[%s12218_s29 + $0xc10] ss:$8 sps:$4 sm:$0xff]  }
 0x1ed   : > { %7596 = vmatpush1.bf16.msra.mxu0 %v10521_v55  ;;  %5455 = vmatprep.subr.bf16.mxu1 %v10526_v56  ;;  %v10609_v55 = vld [vmem:[%s12218_s29 + $0xc00] ss:$8 sps:$4 sm:$0xff]   ;;  %v9449_v56 = vld [vmem:[%s12269_s10 + $0x98] sm:$0xff] }
 0x1ee   : > { %7597 = vmatprep.subr.bf16.mxu0 %v10529_v57  ;;  %5481 = vmatprep.mubr.bf16.mxu1 %v9017_v58  ;;  %v10614_v57 = vld [vmem:[%s12218_s29 + $0x414] ss:$8 sps:$4 sm:$0xff]   ;;  %v9593_v48 = vcombine.high %v9449_v56, %v9449_v56 }
 0x1ef   : > { %7623 = vmatprep.mubr.bf16.mxu0 %v9585_v36  ;;  %v10617_v58 = vld [vmem:[%s12218_s29 + $0xc14] ss:$8 sps:$4 sm:$0xff]   ;;  %v9025_v36 = vcombine.high %v12500_v53, %v12500_v53 }
 0x1f0   : > { %5456 = vmatpush1.bf16.msra.mxu1 %v10524_v59  ;;  %v10620_v59 = vld [vmem:[%s12218_s29 + $0x424] ss:$8 sps:$4 sm:$0xff]  }
 0x1f1   : > { %7598 = vmatpush1.bf16.msra.mxu0 %v10527_v60  ;;  %5457 = vmatprep.subr.bf16.mxu1 %v10532_v61  ;;  %v10623_v60 = vld [vmem:[%s12218_s29 + $0xc24] ss:$8 sps:$4 sm:$0xff]  }
 0x1f2   : > { %7599 = vmatprep.subr.bf16.mxu0 %v10535_v62  ;;  %v12580_v61 = vld [vmem:[%s12269_s10 + $0x20] sm:$0xff] }
 0x1f3   : > { %v12583_v62 = vld [vmem:[%s12269_s10 + $0x40] sm:$0xff] }
 0x1f4   : > { %5458 = vmatpush1.bf16.msra.mxu1 %v10530_v63  ;;  %v12586_v63 = vld [vmem:[%s12269_s10 + $0x60] sm:$0xff] }
 0x1f5   : > { %7600 = vmatpush1.bf16.msra.mxu0 %v10533_v0  ;;  %5459 = vmatprep.subr.bf16.mxu1 %v10538_v1  ;;  %v9024_v0 = vcombine.low %v12500_v53, %v12500_v53  ;;  %v9592_v1 = vcombine.low %v9449_v56, %v9449_v56  ;;  %v10697_v56 = vld [vmem:[%s12218_s29 + $0xce4] ss:$8 sps:$4 sm:$0xff]  }
 0x1f6   : > { %7601 = vmatprep.subr.bf16.mxu0 %v10541_v2  ;;  %v12591_v2 = vld [vmem:[%s12269_s10 + $0x80] sm:$0xff] }
 0x1f7   : > { %v9863_v53 = vcombine.high %v12586_v63, %v12591_v2 }
 0x1f8   : > { %5460 = vmatpush1.bf16.msra.mxu1 %v10536_v3  ;;  %v10618_v3 = vld [vmem:[%s12218_s29 + $0x420] ss:$8 sps:$4 sm:$0xff]  }
 0x1f9   : > { %7602 = vmatpush1.bf16.msra.mxu0 %v10539_v4  ;;  %5461 = vmatprep.subr.bf16.mxu1 %v10544_v5  ;;  %v10621_v4 = vld [vmem:[%s12218_s29 + $0xc20] ss:$8 sps:$4 sm:$0xff]   ;;  %v10626_v5 = vld [vmem:[%s12218_s29 + $0x434] ss:$8 sps:$4 sm:$0xff]  }
 0x1fa   : > { %7603 = vmatprep.subr.bf16.mxu0 %v10547_v6  ;;  %v10629_v6 = vld [vmem:[%s12218_s29 + $0xc34] ss:$8 sps:$4 sm:$0xff]  }
 0x1fc   : > { %5462 = vmatpush1.bf16.msra.mxu1 %v10542_v7  ;;  %v9295_v7 = vcombine.high %v12580_v61, %v12583_v62 }
 0x1fd   : > { %7604 = vmatpush1.bf16.msra.mxu0 %v10545_v8  ;;  %5463 = vmatprep.subr.bf16.mxu1 %v10550_v9  ;;  %v10624_v8 = vld [vmem:[%s12218_s29 + $0x430] ss:$8 sps:$4 sm:$0xff]  }
 0x1fe   : > { %7605 = vmatprep.subr.bf16.mxu0 %v10553_v10  ;;  %v10627_v9 = vld [vmem:[%s12218_s29 + $0xc30] ss:$8 sps:$4 sm:$0xff]   ;;  %v10632_v10 = vld [vmem:[%s12218_s29 + $0x444] ss:$8 sps:$4 sm:$0xff]  }
 0x200   : > { %5464 = vmatpush1.bf16.msra.mxu1 %v10548_v11  ;;  %v10635_v11 = vld [vmem:[%s12218_s29 + $0xc44] ss:$8 sps:$4 sm:$0xff]  }
 0x201   : > { %7606 = vmatpush1.bf16.msra.mxu0 %v10551_v12  ;;  %5465 = vmatprep.subr.bf16.mxu1 %v10556_v13  ;;  %v10630_v12 = vld [vmem:[%s12218_s29 + $0x440] ss:$8 sps:$4 sm:$0xff]  }
 0x202   : > { %7607 = vmatprep.subr.bf16.mxu0 %v10559_v14  ;;  %v10633_v13 = vld [vmem:[%s12218_s29 + $0xc40] ss:$8 sps:$4 sm:$0xff]   ;;  %v10638_v14 = vld [vmem:[%s12218_s29 + $0x454] ss:$8 sps:$4 sm:$0xff]  }
 0x204   : > { %5466 = vmatpush1.bf16.msra.mxu1 %v10554_v15  ;;  %v10641_v15 = vld [vmem:[%s12218_s29 + $0xc54] ss:$8 sps:$4 sm:$0xff]  }
 0x205   : > { %7608 = vmatpush1.bf16.msra.mxu0 %v10557_v16  ;;  %5467 = vmatprep.subr.bf16.mxu1 %v10562_v17  ;;  %v10636_v16 = vld [vmem:[%s12218_s29 + $0x450] ss:$8 sps:$4 sm:$0xff]  }
 0x206   : > { %7609 = vmatprep.subr.bf16.mxu0 %v10565_v18  ;;  %v10639_v17 = vld [vmem:[%s12218_s29 + $0xc50] ss:$8 sps:$4 sm:$0xff]   ;;  %v10644_v18 = vld [vmem:[%s12218_s29 + $0x464] ss:$8 sps:$4 sm:$0xff]  }
 0x208   : > { %5468 = vmatpush1.bf16.msra.mxu1 %v10560_v19  ;;  %v10647_v19 = vld [vmem:[%s12218_s29 + $0xc64] ss:$8 sps:$4 sm:$0xff]  }
 0x209   : > { %7610 = vmatpush1.bf16.msra.mxu0 %v10563_v20  ;;  %5469 = vmatprep.subr.bf16.mxu1 %v10568_v21  ;;  %v10642_v20 = vld [vmem:[%s12218_s29 + $0x460] ss:$8 sps:$4 sm:$0xff]  }
 0x20a   : > { %7611 = vmatprep.subr.bf16.mxu0 %v10571_v22  ;;  %v10645_v21 = vld [vmem:[%s12218_s29 + $0xc60] ss:$8 sps:$4 sm:$0xff]   ;;  %v10650_v22 = vld [vmem:[%s12218_s29 + $0x474] ss:$8 sps:$4 sm:$0xff]  }
 0x20c   : > { %5470 = vmatpush1.bf16.msra.mxu1 %v10566_v23  ;;  %v10653_v23 = vld [vmem:[%s12218_s29 + $0xc74] ss:$8 sps:$4 sm:$0xff]  }
 0x20d   : > { %7612 = vmatpush1.bf16.msra.mxu0 %v10569_v24  ;;  %5471 = vmatprep.subr.bf16.mxu1 %v10574_v25  ;;  %v10648_v24 = vld [vmem:[%s12218_s29 + $0x470] ss:$8 sps:$4 sm:$0xff]  }
 0x20e   : > { %7613 = vmatprep.subr.bf16.mxu0 %v10577_v26  ;;  %v10651_v25 = vld [vmem:[%s12218_s29 + $0xc70] ss:$8 sps:$4 sm:$0xff]   ;;  %v10656_v26 = vld [vmem:[%s12218_s29 + $0x484] ss:$8 sps:$4 sm:$0xff]  }
 0x210   : > { %5472 = vmatpush1.bf16.msra.mxu1 %v10572_v27  ;;  %v10659_v27 = vld [vmem:[%s12218_s29 + $0xc84] ss:$8 sps:$4 sm:$0xff]  }
 0x211   : > { %7614 = vmatpush1.bf16.msra.mxu0 %v10575_v28  ;;  %5473 = vmatprep.subr.bf16.mxu1 %v10580_v29  ;;  %v10654_v28 = vld [vmem:[%s12218_s29 + $0x480] ss:$8 sps:$4 sm:$0xff]  }
 0x212   : > { %7615 = vmatprep.subr.bf16.mxu0 %v10583_v30  ;;  %v10657_v29 = vld [vmem:[%s12218_s29 + $0xc80] ss:$8 sps:$4 sm:$0xff]   ;;  %v10662_v30 = vld [vmem:[%s12218_s29 + $0x494] ss:$8 sps:$4 sm:$0xff]  }
 0x214   : > { %5474 = vmatpush1.bf16.msra.mxu1 %v10578_v31  ;;  %v10665_v31 = vld [vmem:[%s12218_s29 + $0xc94] ss:$8 sps:$4 sm:$0xff]  }
 0x215   : > { %7616 = vmatpush1.bf16.msra.mxu0 %v10581_v32  ;;  %5475 = vmatprep.subr.bf16.mxu1 %v10586_v33  ;;  %v10660_v32 = vld [vmem:[%s12218_s29 + $0x490] ss:$8 sps:$4 sm:$0xff]  }
 0x216   : > { %7617 = vmatprep.subr.bf16.mxu0 %v10589_v37  ;;  %v10663_v33 = vld [vmem:[%s12218_s29 + $0xc90] ss:$8 sps:$4 sm:$0xff]   ;;  %v10668_v37 = vld [vmem:[%s12218_s29 + $0x4a4] ss:$8 sps:$4 sm:$0xff]  }
 0x218   : > { %5476 = vmatpush1.bf16.msra.mxu1 %v10584_v38  ;;  %v10671_v38 = vld [vmem:[%s12218_s29 + $0xca4] ss:$8 sps:$4 sm:$0xff]  }
 0x219   : > { %7618 = vmatpush1.bf16.msra.mxu0 %v10587_v40  ;;  %5477 = vmatprep.subr.bf16.mxu1 %v10593_v41  ;;  %v10666_v40 = vld [vmem:[%s12218_s29 + $0x4a0] ss:$8 sps:$4 sm:$0xff]  }
 0x21a   : > { %7619 = vmatprep.subr.bf16.mxu0 %v10597_v42  ;;  %v10669_v41 = vld [vmem:[%s12218_s29 + $0xca0] ss:$8 sps:$4 sm:$0xff]   ;;  %v10674_v42 = vld [vmem:[%s12218_s29 + $0x4b4] ss:$8 sps:$4 sm:$0xff]  }
 0x21c   : > { %5478 = vmatpush1.bf16.msra.mxu1 %v10591_v43  ;;  %v10677_v43 = vld [vmem:[%s12218_s29 + $0xcb4] ss:$8 sps:$4 sm:$0xff]  }
 0x21d   : > { %7620 = vmatpush1.bf16.msra.mxu0 %v10595_v44  ;;  %5479 = vmatprep.subr.bf16.mxu1 %v10602_v34  ;;  %v10672_v44 = vld [vmem:[%s12218_s29 + $0x4b0] ss:$8 sps:$4 sm:$0xff]  }
 0x21e   : > { %7621 = vmatprep.subr.bf16.mxu0 %v10605_v35  ;;  %v10675_v34 = vld [vmem:[%s12218_s29 + $0xcb0] ss:$8 sps:$4 sm:$0xff]   ;;  %v10680_v35 = vld [vmem:[%s12218_s29 + $0x4c4] ss:$8 sps:$4 sm:$0xff]  }
 0x220   : > { %5480 = vmatpush1.bf16.msra.mxu1 %v10600_v39  ;;  %v10683_v39 = vld [vmem:[%s12218_s29 + $0xcc4] ss:$8 sps:$4 sm:$0xff]  }
 0x221   : > { %7622 = vmatpush1.bf16.msra.mxu0 %v10603_v45  ;;  %6361 = vmatprep.subr.bf16.mxu1 %v10608_v46  ;;  %v10678_v45 = vld [vmem:[%s12218_s29 + $0x4c0] ss:$8 sps:$4 sm:$0xff]  }
 0x222   : > { %8515 = vmatprep.subr.bf16.mxu0 %v10611_v47  ;;  %v10681_v46 = vld [vmem:[%s12218_s29 + $0xcc0] ss:$8 sps:$4 sm:$0xff]   ;;  %v10686_v47 = vld [vmem:[%s12218_s29 + $0x4d4] ss:$8 sps:$4 sm:$0xff]  }
 0x223   : > { %5482 = vmatmul.mubr.bf16.vlgmr.msra.gmra.mrb[0].mxu1 %v9016_v51  ;;  %v10684_v51 = vld [vmem:[%s12218_s29 + $0x4d0] ss:$8 sps:$4 sm:$0xff]  }
 0x224   : > { %7624 = vmatmul.mubr.bf16.vlgmr.msra.gmra.mrb[0].mxu0 %v9584_v52  ;;  %6362 = vmatpush1.bf16.msra.mxu1 %v10606_v49  ;;  %v10689_v49 = vld [vmem:[%s12218_s29 + $0xcd4] ss:$8 sps:$4 sm:$0xff]   ;;  %v10687_v52 = vld [vmem:[%s12218_s29 + $0xcd0] ss:$8 sps:$4 sm:$0xff]  }
 0x225   : > { %8516 = vmatpush1.bf16.msra.mxu0 %v10609_v55  ;;  %6363 = vmatprep.subr.bf16.mxu1 %v10614_v57  ;;  %v10693_v55 = vld [vmem:[%s12218_s29 + $0x4e4] ss:$8 sps:$4 sm:$0xff]   ;;  %v10691_v57 = vld [vmem:[%s12218_s29 + $0x4e0] ss:$8 sps:$4 sm:$0xff]  }
 0x226   : > { %8517 = vmatprep.subr.bf16.mxu0 %v10617_v58  ;;  %5491 = vmatprep.mubr.bf16.mxu1 %v9025_v36  ;;  %v10695_v58 = vld [vmem:[%s12218_s29 + $0xce0] ss:$8 sps:$4 sm:$0xff]   ;;  %v10702_v36 = vld [vmem:[%s12218_s29 + $0x4f4] ss:$8 sps:$4 sm:$0xff]  }
 0x227   : > { %7633 = vmatprep.mubr.bf16.mxu0 %v9593_v48  ;;  %v10705_v48 = vld [vmem:[%s12218_s29 + $0xcf4] ss:$8 sps:$4 sm:$0xff]  }
 0x228   : > { %6364 = vmatpush1.bf16.msra.mxu1 %v10612_v50  ;;  %v10700_v50 = vld [vmem:[%s12218_s29 + $0x4f0] ss:$8 sps:$4 sm:$0xff]  }
 0x229   : > { %8518 = vmatpush1.bf16.msra.mxu0 %v10615_v54  ;;  %6365 = vmatprep.subr.bf16.mxu1 %v10620_v59  ;;  %v10703_v54 = vld [vmem:[%s12218_s29 + $0xcf0] ss:$8 sps:$4 sm:$0xff]   ;;  %v10708_v59 = vld [vmem:[%s12218_s29 + $0x504] ss:$8 sps:$4 sm:$0xff]  }
 0x22a   : > { %8519 = vmatprep.subr.bf16.mxu0 %v10623_v60  ;;  %v10711_v60 = vld [vmem:[%s12218_s29 + $0xd04] ss:$8 sps:$4 sm:$0xff]  }
 0x22b   : > { %5492 = vmatmul.mubr.bf16.gmra.mrb[4].mxu1 %v9024_v0  ;;  %v9730_v0 = vld [vmem:[%s12269_s10 + $0xa0] sm:$0xff] }
 0x22c   : > { %7634 = vmatmul.mubr.bf16.gmra.mrb[4].mxu0 %v9592_v1  ;;  %6366 = vmatpush1.bf16.msra.mxu1 %v10618_v3  ;;  %v9294_v1 = vcombine.low %v12580_v61, %v12583_v62  ;;  %v9862_v3 = vcombine.low %v12586_v63, %v12591_v2  ;;  %v9303_v61 = vcombine.high %v12586_v63, %v12586_v63  ;;  %v10720_v2 = vld [vmem:[%s12218_s29 + $0x524] ss:$8 sps:$4 sm:$0xff]  }
 0x22d   : > { %8520 = vmatpush1.bf16.msra.mxu0 %v10621_v4  ;;  %6367 = vmatprep.subr.bf16.mxu1 %v10626_v5  ;;  %v10706_v4 = vld [vmem:[%s12218_s29 + $0x500] ss:$8 sps:$4 sm:$0xff]   ;;  %v9871_v62 = vcombine.high %v9730_v0, %v9730_v0 }
 0x22e   : > { %8521 = vmatprep.subr.bf16.mxu0 %v10629_v6  ;;  %6393 = vmatprep.mubr.bf16.mxu1 %v9295_v7  ;;  %v10709_v5 = vld [vmem:[%s12218_s29 + $0xd00] ss:$8 sps:$4 sm:$0xff]   ;;  %v10714_v6 = vld [vmem:[%s12218_s29 + $0x514] ss:$8 sps:$4 sm:$0xff]  }
 0x22f   : > { %8547 = vmatprep.mubr.bf16.mxu0 %v9863_v53  ;;  %v10717_v7 = vld [vmem:[%s12218_s29 + $0xd14] ss:$8 sps:$4 sm:$0xff]   ;;  %v10712_v53 = vld [vmem:[%s12218_s29 + $0x510] ss:$8 sps:$4 sm:$0xff]  }
 0x230   : > { %6368 = vmatpush1.bf16.msra.mxu1 %v10624_v8  ;;  %v10715_v8 = vld [vmem:[%s12218_s29 + $0xd10] ss:$8 sps:$4 sm:$0xff]  }
 0x231   : > { %8522 = vmatpush1.bf16.msra.mxu0 %v10627_v9  ;;  %6369 = vmatprep.subr.bf16.mxu1 %v10632_v10  ;;  %v10723_v9 = vld [vmem:[%s12218_s29 + $0xd24] ss:$8 sps:$4 sm:$0xff]  }
 0x232   : > { %8523 = vmatprep.subr.bf16.mxu0 %v10635_v11  ;;  %v12669_v10 = vld [vmem:[%s12269_s10 + $0x28] sm:$0xff] }
 0x233   : > { %v12672_v11 = vld [vmem:[%s12269_s10 + $0x48] sm:$0xff] }
 0x234   : > { %6370 = vmatpush1.bf16.msra.mxu1 %v10630_v12  ;;  %v12675_v12 = vld [vmem:[%s12269_s10 + $0x68] sm:$0xff] }
 0x235   : > { %8524 = vmatpush1.bf16.msra.mxu0 %v10633_v13  ;;  %6371 = vmatprep.subr.bf16.mxu1 %v10638_v14  ;;  %v12678_v13 = vld [vmem:[%s12269_s10 + $0x88] sm:$0xff]  ;;  %v9302_v14 = vcombine.low %v12586_v63, %v12586_v63 }
 0x236   : > { %8525 = vmatprep.subr.bf16.mxu0 %v10641_v15  ;;  %v9870_v15 = vcombine.low %v9730_v0, %v9730_v0  ;;  %v9865_v63 = vcombine.high %v12675_v12, %v12678_v13  ;;  %v10789_v0 = vld [vmem:[%s12218_s29 + $0xdd4] ss:$8 sps:$4 sm:$0xff]  }
 0x238   : > { %6372 = vmatpush1.bf16.msra.mxu1 %v10636_v16  ;;  %v10718_v16 = vld [vmem:[%s12218_s29 + $0x520] ss:$8 sps:$4 sm:$0xff]  }
 0x239   : > { %8526 = vmatpush1.bf16.msra.mxu0 %v10639_v17  ;;  %6373 = vmatprep.subr.bf16.mxu1 %v10644_v18  ;;  %v10721_v17 = vld [vmem:[%s12218_s29 + $0xd20] ss:$8 sps:$4 sm:$0xff]   ;;  %v10726_v18 = vld [vmem:[%s12218_s29 + $0x534] ss:$8 sps:$4 sm:$0xff]  }
 0x23a   : > { %8527 = vmatprep.subr.bf16.mxu0 %v10647_v19  ;;  %v10729_v19 = vld [vmem:[%s12218_s29 + $0xd34] ss:$8 sps:$4 sm:$0xff]  }
 0x23c   : > { %6374 = vmatpush1.bf16.msra.mxu1 %v10642_v20  ;;  %v9297_v20 = vcombine.high %v12669_v10, %v12672_v11 }
 0x23d   : > { %8528 = vmatpush1.bf16.msra.mxu0 %v10645_v21  ;;  %6375 = vmatprep.subr.bf16.mxu1 %v10650_v22  ;;  %v10724_v21 = vld [vmem:[%s12218_s29 + $0x530] ss:$8 sps:$4 sm:$0xff]  }
 0x23e   : > { %8529 = vmatprep.subr.bf16.mxu0 %v10653_v23  ;;  %v10727_v22 = vld [vmem:[%s12218_s29 + $0xd30] ss:$8 sps:$4 sm:$0xff]   ;;  %v10732_v23 = vld [vmem:[%s12218_s29 + $0x544] ss:$8 sps:$4 sm:$0xff]  }
 0x240   : > { %6376 = vmatpush1.bf16.msra.mxu1 %v10648_v24  ;;  %v10735_v24 = vld [vmem:[%s12218_s29 + $0xd44] ss:$8 sps:$4 sm:$0xff]  }
 0x241   : > { %8530 = vmatpush1.bf16.msra.mxu0 %v10651_v25  ;;  %6377 = vmatprep.subr.bf16.mxu1 %v10656_v26  ;;  %v10730_v25 = vld [vmem:[%s12218_s29 + $0x540] ss:$8 sps:$4 sm:$0xff]  }
 0x242   : > { %8531 = vmatprep.subr.bf16.mxu0 %v10659_v27  ;;  %v10733_v26 = vld [vmem:[%s12218_s29 + $0xd40] ss:$8 sps:$4 sm:$0xff]   ;;  %v10738_v27 = vld [vmem:[%s12218_s29 + $0x554] ss:$8 sps:$4 sm:$0xff]  }
 0x244   : > { %6378 = vmatpush1.bf16.msra.mxu1 %v10654_v28  ;;  %v10741_v28 = vld [vmem:[%s12218_s29 + $0xd54] ss:$8 sps:$4 sm:$0xff]  }
 0x245   : > { %8532 = vmatpush1.bf16.msra.mxu0 %v10657_v29  ;;  %6379 = vmatprep.subr.bf16.mxu1 %v10662_v30  ;;  %v10736_v29 = vld [vmem:[%s12218_s29 + $0x550] ss:$8 sps:$4 sm:$0xff]  }
 0x246   : > { %8533 = vmatprep.subr.bf16.mxu0 %v10665_v31  ;;  %v10739_v30 = vld [vmem:[%s12218_s29 + $0xd50] ss:$8 sps:$4 sm:$0xff]   ;;  %v10744_v31 = vld [vmem:[%s12218_s29 + $0x564] ss:$8 sps:$4 sm:$0xff]  }
 0x248   : > { %6380 = vmatpush1.bf16.msra.mxu1 %v10660_v32  ;;  %v10747_v32 = vld [vmem:[%s12218_s29 + $0xd64] ss:$8 sps:$4 sm:$0xff]  }
 0x249   : > { %8534 = vmatpush1.bf16.msra.mxu0 %v10663_v33  ;;  %6381 = vmatprep.subr.bf16.mxu1 %v10668_v37  ;;  %v10742_v33 = vld [vmem:[%s12218_s29 + $0x560] ss:$8 sps:$4 sm:$0xff]  }
 0x24a   : > { %8535 = vmatprep.subr.bf16.mxu0 %v10671_v38  ;;  %v10745_v37 = vld [vmem:[%s12218_s29 + $0xd60] ss:$8 sps:$4 sm:$0xff]   ;;  %v10750_v38 = vld [vmem:[%s12218_s29 + $0x574] ss:$8 sps:$4 sm:$0xff]  }
 0x24c   : > { %6382 = vmatpush1.bf16.msra.mxu1 %v10666_v40  ;;  %v10753_v40 = vld [vmem:[%s12218_s29 + $0xd74] ss:$8 sps:$4 sm:$0xff]  }
 0x24d   : > { %8536 = vmatpush1.bf16.msra.mxu0 %v10669_v41  ;;  %6383 = vmatprep.subr.bf16.mxu1 %v10674_v42  ;;  %v10748_v41 = vld [vmem:[%s12218_s29 + $0x570] ss:$8 sps:$4 sm:$0xff]  }
 0x24e   : > { %8537 = vmatprep.subr.bf16.mxu0 %v10677_v43  ;;  %v10751_v42 = vld [vmem:[%s12218_s29 + $0xd70] ss:$8 sps:$4 sm:$0xff]   ;;  %v10756_v43 = vld [vmem:[%s12218_s29 + $0x584] ss:$8 sps:$4 sm:$0xff]  }
 0x250   : > { %6384 = vmatpush1.bf16.msra.mxu1 %v10672_v44  ;;  %v10759_v44 = vld [vmem:[%s12218_s29 + $0xd84] ss:$8 sps:$4 sm:$0xff]  }
 0x251   : > { %8538 = vmatpush1.bf16.msra.mxu0 %v10675_v34  ;;  %6385 = vmatprep.subr.bf16.mxu1 %v10680_v35  ;;  %v10754_v34 = vld [vmem:[%s12218_s29 + $0x580] ss:$8 sps:$4 sm:$0xff]  }
 0x252   : > { %8539 = vmatprep.subr.bf16.mxu0 %v10683_v39  ;;  %v10757_v35 = vld [vmem:[%s12218_s29 + $0xd80] ss:$8 sps:$4 sm:$0xff]   ;;  %v10762_v39 = vld [vmem:[%s12218_s29 + $0x594] ss:$8 sps:$4 sm:$0xff]  }
 0x254   : > { %6386 = vmatpush1.bf16.msra.mxu1 %v10678_v45  ;;  %v10765_v45 = vld [vmem:[%s12218_s29 + $0xd94] ss:$8 sps:$4 sm:$0xff]  }
 0x255   : > { %8540 = vmatpush1.bf16.msra.mxu0 %v10681_v46  ;;  %6387 = vmatprep.subr.bf16.mxu1 %v10686_v47  ;;  %v10760_v46 = vld [vmem:[%s12218_s29 + $0x590] ss:$8 sps:$4 sm:$0xff]  }
 0x256   : > { %8541 = vmatprep.subr.bf16.mxu0 %v10689_v49  ;;  %v10763_v47 = vld [vmem:[%s12218_s29 + $0xd90] ss:$8 sps:$4 sm:$0xff]   ;;  %v10768_v49 = vld [vmem:[%s12218_s29 + $0x5a4] ss:$8 sps:$4 sm:$0xff]  }
 0x258   : > { %6388 = vmatpush1.bf16.msra.mxu1 %v10684_v51  ;;  %v10771_v51 = vld [vmem:[%s12218_s29 + $0xda4] ss:$8 sps:$4 sm:$0xff]  }
 0x259   : > { %8542 = vmatpush1.bf16.msra.mxu0 %v10687_v52  ;;  %6389 = vmatprep.subr.bf16.mxu1 %v10693_v55  ;;  %v10766_v52 = vld [vmem:[%s12218_s29 + $0x5a0] ss:$8 sps:$4 sm:$0xff]  }
 0x25a   : > { %8543 = vmatprep.subr.bf16.mxu0 %v10697_v56  ;;  %v10769_v55 = vld [vmem:[%s12218_s29 + $0xda0] ss:$8 sps:$4 sm:$0xff]   ;;  %v10774_v56 = vld [vmem:[%s12218_s29 + $0x5b4] ss:$8 sps:$4 sm:$0xff]  }
 0x25c   : > { %6390 = vmatpush1.bf16.msra.mxu1 %v10691_v57  ;;  %v10777_v57 = vld [vmem:[%s12218_s29 + $0xdb4] ss:$8 sps:$4 sm:$0xff]  }
 0x25d   : > { %8544 = vmatpush1.bf16.msra.mxu0 %v10695_v58  ;;  %6391 = vmatprep.subr.bf16.mxu1 %v10702_v36  ;;  %v10772_v58 = vld [vmem:[%s12218_s29 + $0x5b0] ss:$8 sps:$4 sm:$0xff]  }
 0x25e   : > { %8545 = vmatprep.subr.bf16.mxu0 %v10705_v48  ;;  %v10775_v36 = vld [vmem:[%s12218_s29 + $0xdb0] ss:$8 sps:$4 sm:$0xff]   ;;  %v10780_v48 = vld [vmem:[%s12218_s29 + $0x5c4] ss:$8 sps:$4 sm:$0xff]  }
 0x260   : > { %6392 = vmatpush1.bf16.msra.mxu1 %v10700_v50  ;;  %v10783_v50 = vld [vmem:[%s12218_s29 + $0xdc4] ss:$8 sps:$4 sm:$0xff]  }
 0x261   : > { %8546 = vmatpush1.bf16.msra.mxu0 %v10703_v54  ;;  %6412 = vmatprep.subr.bf16.mxu1 %v10708_v59  ;;  %v10778_v54 = vld [vmem:[%s12218_s29 + $0x5c0] ss:$8 sps:$4 sm:$0xff]  }
 0x262   : > { %8566 = vmatprep.subr.bf16.mxu0 %v10711_v60  ;;  %v10781_v59 = vld [vmem:[%s12218_s29 + $0xdc0] ss:$8 sps:$4 sm:$0xff]   ;;  %v10786_v60 = vld [vmem:[%s12218_s29 + $0x5d4] ss:$8 sps:$4 sm:$0xff]  }
 0x263   : > { %6394 = vmatmul.mubr.bf16.vlgmr.msra.gmra.mrb[0].mxu1 %v9294_v1  ;;  %v10784_v1 = vld [vmem:[%s12218_s29 + $0x5d0] ss:$8 sps:$4 sm:$0xff]  }
 0x264   : > { %8548 = vmatmul.mubr.bf16.vlgmr.msra.gmra.mrb[0].mxu0 %v9862_v3  ;;  %6413 = vmatpush1.bf16.msra.mxu1 %v10706_v4  ;;  %v10787_v3 = vld [vmem:[%s12218_s29 + $0xdd0] ss:$8 sps:$4 sm:$0xff]   ;;  %v10793_v4 = vld [vmem:[%s12218_s29 + $0x5e4] ss:$8 sps:$4 sm:$0xff]  }
 0x265   : > { %8567 = vmatpush1.bf16.msra.mxu0 %v10709_v5  ;;  %6414 = vmatprep.subr.bf16.mxu1 %v10714_v6  ;;  %v10797_v5 = vld [vmem:[%s12218_s29 + $0xde4] ss:$8 sps:$4 sm:$0xff]   ;;  %v10791_v6 = vld [vmem:[%s12218_s29 + $0x5e0] ss:$8 sps:$4 sm:$0xff]  }
 0x266   : > { %8568 = vmatprep.subr.bf16.mxu0 %v10717_v7  ;;  %6403 = vmatprep.mubr.bf16.mxu1 %v9303_v61  ;;  %v10795_v7 = vld [vmem:[%s12218_s29 + $0xde0] ss:$8 sps:$4 sm:$0xff]   ;;  %v10800_v61 = vld [vmem:[%s12218_s29 + $0x5f0] ss:$8 sps:$4 sm:$0xff]  }
 0x267   : > { %8557 = vmatprep.mubr.bf16.mxu0 %v9871_v62  ;;  %v10803_v62 = vld [vmem:[%s12218_s29 + $0xdf0] ss:$8 sps:$4 sm:$0xff]  }
 0x268   : > { %6415 = vmatpush1.bf16.msra.mxu1 %v10712_v53  ;;  %v10802_v53 = vld [vmem:[%s12218_s29 + $0x5f4] ss:$8 sps:$4 sm:$0xff]  }
 0x269   : > { %8569 = vmatpush1.bf16.msra.mxu0 %v10715_v8  ;;  %6416 = vmatprep.subr.bf16.mxu1 %v10720_v2  ;;  %v10805_v8 = vld [vmem:[%s12218_s29 + $0xdf4] ss:$8 sps:$4 sm:$0xff]   ;;  %v10808_v2 = vld [vmem:[%s12218_s29 + $0x604] ss:$8 sps:$4 sm:$0xff]  }
 0x26a   : > { %8570 = vmatprep.subr.bf16.mxu0 %v10723_v9  ;;  %v10811_v9 = vld [vmem:[%s12218_s29 + $0xe04] ss:$8 sps:$4 sm:$0xff]  }
 0x26b   : > { %6404 = vmatmul.mubr.bf16.gmra.mrb[4].mxu1 %v9302_v14  ;;  %v9296_v14 = vcombine.low %v12669_v10, %v12672_v11  ;;  %v9305_v10 = vcombine.high %v12675_v12, %v12675_v12 }
 0x26c   : > { %8558 = vmatmul.mubr.bf16.gmra.mrb[4].mxu0 %v9870_v15  ;;  %6417 = vmatpush1.bf16.msra.mxu1 %v10718_v16  ;;  %v9864_v15 = vcombine.low %v12675_v12, %v12678_v13  ;;  %v9731_v16 = vld [vmem:[%s12269_s10 + $0xa8] sm:$0xff]  ;;  %v10812_v13 = vld [vmem:[%s12218_s29 + $0x610] ss:$8 sps:$4 sm:$0xff]  }
 0x26d   : > { %8571 = vmatpush1.bf16.msra.mxu0 %v10721_v17  ;;  %6418 = vmatprep.subr.bf16.mxu1 %v10726_v18  ;;  %v10806_v17 = vld [vmem:[%s12218_s29 + $0x600] ss:$8 sps:$4 sm:$0xff]   ;;  %v9873_v11 = vcombine.high %v9731_v16, %v9731_v16 }
 0x26e   : > { %8572 = vmatprep.subr.bf16.mxu0 %v10729_v19  ;;  %6444 = vmatprep.mubr.bf16.mxu1 %v9297_v20  ;;  %v10809_v18 = vld [vmem:[%s12218_s29 + $0xe00] ss:$8 sps:$4 sm:$0xff]   ;;  %v10814_v19 = vld [vmem:[%s12218_s29 + $0x614] ss:$8 sps:$4 sm:$0xff]  }
 0x26f   : > { %8598 = vmatprep.mubr.bf16.mxu0 %v9865_v63  ;;  %v10817_v20 = vld [vmem:[%s12218_s29 + $0xe14] ss:$8 sps:$4 sm:$0xff]   ;;  %v10815_v63 = vld [vmem:[%s12218_s29 + $0xe10] ss:$8 sps:$4 sm:$0xff]  }
 0x270   : > { %6419 = vmatpush1.bf16.msra.mxu1 %v10724_v21  ;;  %v10820_v21 = vld [vmem:[%s12218_s29 + $0x624] ss:$8 sps:$4 sm:$0xff]  }
 0x271   : > { %8573 = vmatpush1.bf16.msra.mxu0 %v10727_v22  ;;  %6420 = vmatprep.subr.bf16.mxu1 %v10732_v23  ;;  %v10823_v22 = vld [vmem:[%s12218_s29 + $0xe24] ss:$8 sps:$4 sm:$0xff]   ;;  %v12758_v23 = vld [vmem:[%s12269_s10 + $0x30] sm:$0xff] }
 0x272   : > { %8574 = vmatprep.subr.bf16.mxu0 %v10735_v24  ;;  %v9304_v24 = vcombine.low %v12675_v12, %v12675_v12 }
 0x274   : > { %6421 = vmatpush1.bf16.msra.mxu1 %v10730_v25  ;;  %v9872_v25 = vcombine.low %v9731_v16, %v9731_v16  ;;  %v10887_v16 = vld [vmem:[%s12218_s29 + $0xed0] ss:$8 sps:$4 sm:$0xff]  }
 0x275   : > { %8575 = vmatpush1.bf16.msra.mxu0 %v10733_v26  ;;  %6422 = vmatprep.subr.bf16.mxu1 %v10738_v27  ;;  %v12763_v26 = vld [vmem:[%s12269_s10 + $0x50] sm:$0xff] }
 0x276   : > { %8576 = vmatprep.subr.bf16.mxu0 %v10741_v28  ;;  %v12766_v27 = vld [vmem:[%s12269_s10 + $0x70] sm:$0xff]  ;;  %v9299_v12 = vcombine.high %v12758_v23, %v12763_v26 }
 0x277   : > { %v12769_v28 = vld [vmem:[%s12269_s10 + $0x90] sm:$0xff] }
 0x278   : > { %6423 = vmatpush1.bf16.msra.mxu1 %v10736_v29  ;;  %v10818_v29 = vld [vmem:[%s12218_s29 + $0x620] ss:$8 sps:$4 sm:$0xff]  }
 0x279   : > { %8577 = vmatpush1.bf16.msra.mxu0 %v10739_v30  ;;  %6424 = vmatprep.subr.bf16.mxu1 %v10744_v31  ;;  %v10821_v30 = vld [vmem:[%s12218_s29 + $0xe20] ss:$8 sps:$4 sm:$0xff]   ;;  %v10826_v31 = vld [vmem:[%s12218_s29 + $0x634] ss:$8 sps:$4 sm:$0xff]  }
 0x27a   : > { %8578 = vmatprep.subr.bf16.mxu0 %v10747_v32  ;;  %v10829_v32 = vld [vmem:[%s12218_s29 + $0xe34] ss:$8 sps:$4 sm:$0xff]  }
 0x27c   : > { %6425 = vmatpush1.bf16.msra.mxu1 %v10742_v33  ;;  %v9867_v33 = vcombine.high %v12766_v27, %v12769_v28 }
 0x27d   : > { %8579 = vmatpush1.bf16.msra.mxu0 %v10745_v37  ;;  %6426 = vmatprep.subr.bf16.mxu1 %v10750_v38  ;;  %v10824_v37 = vld [vmem:[%s12218_s29 + $0x630] ss:$8 sps:$4 sm:$0xff]  }
 0x27e   : > { %8580 = vmatprep.subr.bf16.mxu0 %v10753_v40  ;;  %v10827_v38 = vld [vmem:[%s12218_s29 + $0xe30] ss:$8 sps:$4 sm:$0xff]   ;;  %v10832_v40 = vld [vmem:[%s12218_s29 + $0x644] ss:$8 sps:$4 sm:$0xff]  }
 0x280   : > { %6427 = vmatpush1.bf16.msra.mxu1 %v10748_v41  ;;  %v10835_v41 = vld [vmem:[%s12218_s29 + $0xe44] ss:$8 sps:$4 sm:$0xff]  }
 0x281   : > { %8581 = vmatpush1.bf16.msra.mxu0 %v10751_v42  ;;  %6428 = vmatprep.subr.bf16.mxu1 %v10756_v43  ;;  %v10830_v42 = vld [vmem:[%s12218_s29 + $0x640] ss:$8 sps:$4 sm:$0xff]  }
 0x282   : > { %8582 = vmatprep.subr.bf16.mxu0 %v10759_v44  ;;  %v10833_v43 = vld [vmem:[%s12218_s29 + $0xe40] ss:$8 sps:$4 sm:$0xff]   ;;  %v10838_v44 = vld [vmem:[%s12218_s29 + $0x654] ss:$8 sps:$4 sm:$0xff]  }
 0x284   : > { %6429 = vmatpush1.bf16.msra.mxu1 %v10754_v34  ;;  %v10841_v34 = vld [vmem:[%s12218_s29 + $0xe54] ss:$8 sps:$4 sm:$0xff]  }
 0x285   : > { %8583 = vmatpush1.bf16.msra.mxu0 %v10757_v35  ;;  %6430 = vmatprep.subr.bf16.mxu1 %v10762_v39  ;;  %v10836_v35 = vld [vmem:[%s12218_s29 + $0x650] ss:$8 sps:$4 sm:$0xff]  }
 0x286   : > { %8584 = vmatprep.subr.bf16.mxu0 %v10765_v45  ;;  %v10839_v39 = vld [vmem:[%s12218_s29 + $0xe50] ss:$8 sps:$4 sm:$0xff]   ;;  %v10844_v45 = vld [vmem:[%s12218_s29 + $0x664] ss:$8 sps:$4 sm:$0xff]  }
 0x288   : > { %6431 = vmatpush1.bf16.msra.mxu1 %v10760_v46  ;;  %v10847_v46 = vld [vmem:[%s12218_s29 + $0xe64] ss:$8 sps:$4 sm:$0xff]  }
 0x289   : > { %8585 = vmatpush1.bf16.msra.mxu0 %v10763_v47  ;;  %6432 = vmatprep.subr.bf16.mxu1 %v10768_v49  ;;  %v10842_v47 = vld [vmem:[%s12218_s29 + $0x660] ss:$8 sps:$4 sm:$0xff]  }
 0x28a   : > { %8586 = vmatprep.subr.bf16.mxu0 %v10771_v51  ;;  %v10845_v49 = vld [vmem:[%s12218_s29 + $0xe60] ss:$8 sps:$4 sm:$0xff]   ;;  %v10850_v51 = vld [vmem:[%s12218_s29 + $0x674] ss:$8 sps:$4 sm:$0xff]  }
 0x28c   : > { %6433 = vmatpush1.bf16.msra.mxu1 %v10766_v52  ;;  %v10853_v52 = vld [vmem:[%s12218_s29 + $0xe74] ss:$8 sps:$4 sm:$0xff]  }
 0x28d   : > { %8587 = vmatpush1.bf16.msra.mxu0 %v10769_v55  ;;  %6434 = vmatprep.subr.bf16.mxu1 %v10774_v56  ;;  %v10848_v55 = vld [vmem:[%s12218_s29 + $0x670] ss:$8 sps:$4 sm:$0xff]  }
 0x28e   : > { %8588 = vmatprep.subr.bf16.mxu0 %v10777_v57  ;;  %v10851_v56 = vld [vmem:[%s12218_s29 + $0xe70] ss:$8 sps:$4 sm:$0xff]   ;;  %v10856_v57 = vld [vmem:[%s12218_s29 + $0x684] ss:$8 sps:$4 sm:$0xff]  }
 0x290   : > { %6435 = vmatpush1.bf16.msra.mxu1 %v10772_v58  ;;  %v10859_v58 = vld [vmem:[%s12218_s29 + $0xe84] ss:$8 sps:$4 sm:$0xff]  }
 0x291   : > { %8589 = vmatpush1.bf16.msra.mxu0 %v10775_v36  ;;  %6436 = vmatprep.subr.bf16.mxu1 %v10780_v48  ;;  %v10854_v36 = vld [vmem:[%s12218_s29 + $0x680] ss:$8 sps:$4 sm:$0xff]  }
 0x292   : > { %8590 = vmatprep.subr.bf16.mxu0 %v10783_v50  ;;  %v10857_v48 = vld [vmem:[%s12218_s29 + $0xe80] ss:$8 sps:$4 sm:$0xff]   ;;  %v10862_v50 = vld [vmem:[%s12218_s29 + $0x694] ss:$8 sps:$4 sm:$0xff]  }
 0x294   : > { %6437 = vmatpush1.bf16.msra.mxu1 %v10778_v54  ;;  %v10865_v54 = vld [vmem:[%s12218_s29 + $0xe94] ss:$8 sps:$4 sm:$0xff]  }
 0x295   : > { %8591 = vmatpush1.bf16.msra.mxu0 %v10781_v59  ;;  %6438 = vmatprep.subr.bf16.mxu1 %v10786_v60  ;;  %v10860_v59 = vld [vmem:[%s12218_s29 + $0x690] ss:$8 sps:$4 sm:$0xff]  }
 0x296   : > { %8592 = vmatprep.subr.bf16.mxu0 %v10789_v0  ;;  %v10863_v60 = vld [vmem:[%s12218_s29 + $0xe90] ss:$8 sps:$4 sm:$0xff]   ;;  %v10868_v0 = vld [vmem:[%s12218_s29 + $0x6a4] ss:$8 sps:$4 sm:$0xff]  }
 0x298   : > { %6439 = vmatpush1.bf16.msra.mxu1 %v10784_v1  ;;  %v10871_v1 = vld [vmem:[%s12218_s29 + $0xea4] ss:$8 sps:$4 sm:$0xff]  }
 0x299   : > { %8593 = vmatpush1.bf16.msra.mxu0 %v10787_v3  ;;  %6440 = vmatprep.subr.bf16.mxu1 %v10793_v4  ;;  %v10866_v3 = vld [vmem:[%s12218_s29 + $0x6a0] ss:$8 sps:$4 sm:$0xff]  }
 0x29a   : > { %8594 = vmatprep.subr.bf16.mxu0 %v10797_v5  ;;  %v10869_v4 = vld [vmem:[%s12218_s29 + $0xea0] ss:$8 sps:$4 sm:$0xff]   ;;  %v10874_v5 = vld [vmem:[%s12218_s29 + $0x6b4] ss:$8 sps:$4 sm:$0xff]  }
 0x29c   : > { %6441 = vmatpush1.bf16.msra.mxu1 %v10791_v6  ;;  %v10877_v6 = vld [vmem:[%s12218_s29 + $0xeb4] ss:$8 sps:$4 sm:$0xff]  }
 0x29d   : > { %8595 = vmatpush1.bf16.msra.mxu0 %v10795_v7  ;;  %6442 = vmatprep.subr.bf16.mxu1 %v10802_v53  ;;  %v10872_v7 = vld [vmem:[%s12218_s29 + $0x6b0] ss:$8 sps:$4 sm:$0xff]  }
 0x29e   : > { %8596 = vmatprep.subr.bf16.mxu0 %v10805_v8  ;;  %v10875_v53 = vld [vmem:[%s12218_s29 + $0xeb0] ss:$8 sps:$4 sm:$0xff]   ;;  %v10880_v8 = vld [vmem:[%s12218_s29 + $0x6c4] ss:$8 sps:$4 sm:$0xff]  }
 0x2a0   : > { %6443 = vmatpush1.bf16.msra.mxu1 %v10800_v61  ;;  %v10883_v61 = vld [vmem:[%s12218_s29 + $0xec4] ss:$8 sps:$4 sm:$0xff]  }
 0x2a1   : > { %8597 = vmatpush1.bf16.msra.mxu0 %v10803_v62  ;;  %6463 = vmatprep.subr.bf16.mxu1 %v10808_v2  ;;  %v10878_v62 = vld [vmem:[%s12218_s29 + $0x6c0] ss:$8 sps:$4 sm:$0xff]  }
 0x2a2   : > { %8617 = vmatprep.subr.bf16.mxu0 %v10811_v9  ;;  %v10881_v2 = vld [vmem:[%s12218_s29 + $0xec0] ss:$8 sps:$4 sm:$0xff]   ;;  %v10886_v9 = vld [vmem:[%s12218_s29 + $0x6d4] ss:$8 sps:$4 sm:$0xff]  }
 0x2a3   : > { %6445 = vmatmul.mubr.bf16.vlgmr.msra.gmra.mrb[0].mxu1 %v9296_v14  ;;  %v10889_v14 = vld [vmem:[%s12218_s29 + $0xed4] ss:$8 sps:$4 sm:$0xff]  }
 0x2a4   : > { %8599 = vmatmul.mubr.bf16.vlgmr.msra.gmra.mrb[0].mxu0 %v9864_v15  ;;  %6464 = vmatpush1.bf16.msra.mxu1 %v10806_v17  ;;  %v10884_v15 = vld [vmem:[%s12218_s29 + $0x6d0] ss:$8 sps:$4 sm:$0xff]   ;;  %v10893_v17 = vld [vmem:[%s12218_s29 + $0x6e4] ss:$8 sps:$4 sm:$0xff]  }
 0x2a5   : > { %8618 = vmatpush1.bf16.msra.mxu0 %v10809_v18  ;;  %6465 = vmatprep.subr.bf16.mxu1 %v10814_v19  ;;  %v10897_v18 = vld [vmem:[%s12218_s29 + $0xee4] ss:$8 sps:$4 sm:$0xff]   ;;  %v10891_v19 = vld [vmem:[%s12218_s29 + $0x6e0] ss:$8 sps:$4 sm:$0xff]  }
 0x2a6   : > { %8619 = vmatprep.subr.bf16.mxu0 %v10817_v20  ;;  %6454 = vmatprep.mubr.bf16.mxu1 %v9305_v10  ;;  %v10895_v20 = vld [vmem:[%s12218_s29 + $0xee0] ss:$8 sps:$4 sm:$0xff]   ;;  %v10902_v10 = vld [vmem:[%s12218_s29 + $0x6f4] ss:$8 sps:$4 sm:$0xff]  }
 0x2a7   : > { %8608 = vmatprep.mubr.bf16.mxu0 %v9873_v11  ;;  %v10905_v11 = vld [vmem:[%s12218_s29 + $0xef4] ss:$8 sps:$4 sm:$0xff]  }
 0x2a8   : > { %6466 = vmatpush1.bf16.msra.mxu1 %v10812_v13  ;;  %v10900_v13 = vld [vmem:[%s12218_s29 + $0x6f0] ss:$8 sps:$4 sm:$0xff]  }
 0x2a9   : > { %8620 = vmatpush1.bf16.msra.mxu0 %v10815_v63  ;;  %6467 = vmatprep.subr.bf16.mxu1 %v10820_v21  ;;  %v10903_v63 = vld [vmem:[%s12218_s29 + $0xef0] ss:$8 sps:$4 sm:$0xff]   ;;  %v10908_v21 = vld [vmem:[%s12218_s29 + $0x704] ss:$8 sps:$4 sm:$0xff]  }
 0x2aa   : > { %8621 = vmatprep.subr.bf16.mxu0 %v10823_v22  ;;  %v10911_v22 = vld [vmem:[%s12218_s29 + $0xf04] ss:$8 sps:$4 sm:$0xff]  }
 0x2ab   : > { %6455 = vmatmul.mubr.bf16.gmra.mrb[4].mxu1 %v9304_v24  ;;  %v9298_v24 = vcombine.low %v12758_v23, %v12763_v26  ;;  %v9307_v23 = vcombine.high %v12766_v27, %v12766_v27 }
 0x2ac   : > { %8609 = vmatmul.mubr.bf16.gmra.mrb[4].mxu0 %v9872_v25  ;;  %6468 = vmatpush1.bf16.msra.mxu1 %v10818_v29  ;;  %v9866_v25 = vcombine.low %v12766_v27, %v12769_v28  ;;  %v9732_v29 = vld [vmem:[%s12269_s10 + $0xb0] sm:$0xff] }
 0x2ad   : > { %8622 = vmatpush1.bf16.msra.mxu0 %v10821_v30  ;;  %6469 = vmatprep.subr.bf16.mxu1 %v10826_v31  ;;  %v10906_v30 = vld [vmem:[%s12218_s29 + $0x700] ss:$8 sps:$4 sm:$0xff]   ;;  %v9875_v26 = vcombine.high %v9732_v29, %v9732_v29  ;;  %v10912_v28 = vld [vmem:[%s12218_s29 + $0x710] ss:$8 sps:$4 sm:$0xff]  }
 0x2ae   : > { %8623 = vmatprep.subr.bf16.mxu0 %v10829_v32  ;;  %6495 = vmatprep.mubr.bf16.mxu1 %v9299_v12  ;;  %v10909_v31 = vld [vmem:[%s12218_s29 + $0xf00] ss:$8 sps:$4 sm:$0xff]   ;;  %v10914_v32 = vld [vmem:[%s12218_s29 + $0x714] ss:$8 sps:$4 sm:$0xff]  }
 0x2af   : > { %8649 = vmatprep.mubr.bf16.mxu0 %v9867_v33  ;;  %v10917_v12 = vld [vmem:[%s12218_s29 + $0xf14] ss:$8 sps:$4 sm:$0xff]   ;;  %v10915_v33 = vld [vmem:[%s12218_s29 + $0xf10] ss:$8 sps:$4 sm:$0xff]  }
 0x2b0   : > { %6470 = vmatpush1.bf16.msra.mxu1 %v10824_v37  ;;  %v10920_v37 = vld [vmem:[%s12218_s29 + $0x724] ss:$8 sps:$4 sm:$0xff]  }
 0x2b1   : > { %8624 = vmatpush1.bf16.msra.mxu0 %v10827_v38  ;;  %6471 = vmatprep.subr.bf16.mxu1 %v10832_v40  ;;  %v10923_v38 = vld [vmem:[%s12218_s29 + $0xf24] ss:$8 sps:$4 sm:$0xff]   ;;  %v12847_v40 = vld [vmem:[%s12269_s10 + $0x38] sm:$0xff] }
 0x2b2   : > { %8625 = vmatprep.subr.bf16.mxu0 %v10835_v41  ;;  %v9306_v41 = vcombine.low %v12766_v27, %v12766_v27 }
 0x2b4   : > { %6472 = vmatpush1.bf16.msra.mxu1 %v10830_v42  ;;  %v9874_v42 = vcombine.low %v9732_v29, %v9732_v29  ;;  %v10987_v29 = vld [vmem:[%s12218_s29 + $0xfd0] ss:$8 sps:$4 sm:$0xff]  }
 0x2b5   : > { %8626 = vmatpush1.bf16.msra.mxu0 %v10833_v43  ;;  %6473 = vmatprep.subr.bf16.mxu1 %v10838_v44  ;;  %v12852_v43 = vld [vmem:[%s12269_s10 + $0x58] sm:$0xff] }
 0x2b6   : > { %8627 = vmatprep.subr.bf16.mxu0 %v10841_v34  ;;  %v12855_v44 = vld [vmem:[%s12269_s10 + $0x78] sm:$0xff]  ;;  %v9301_v27 = vcombine.high %v12847_v40, %v12852_v43 }
 0x2b7   : > { %v12858_v34 = vld [vmem:[%s12269_s10 + $0x98] sm:$0xff] }
 0x2b8   : > { %6474 = vmatpush1.bf16.msra.mxu1 %v10836_v35  ;;  %v10918_v35 = vld [vmem:[%s12218_s29 + $0x720] ss:$8 sps:$4 sm:$0xff]  }
 0x2b9   : > { %8628 = vmatpush1.bf16.msra.mxu0 %v10839_v39  ;;  %6475 = vmatprep.subr.bf16.mxu1 %v10844_v45  ;;  %v10921_v39 = vld [vmem:[%s12218_s29 + $0xf20] ss:$8 sps:$4 sm:$0xff]   ;;  %v10926_v45 = vld [vmem:[%s12218_s29 + $0x734] ss:$8 sps:$4 sm:$0xff]  }
 0x2ba   : > { %8629 = vmatprep.subr.bf16.mxu0 %v10847_v46  ;;  %v10929_v46 = vld [vmem:[%s12218_s29 + $0xf34] ss:$8 sps:$4 sm:$0xff]  }
 0x2bc   : > { %6476 = vmatpush1.bf16.msra.mxu1 %v10842_v47  ;;  %v9869_v47 = vcombine.high %v12855_v44, %v12858_v34 }
 0x2bd   : > { %8630 = vmatpush1.bf16.msra.mxu0 %v10845_v49  ;;  %6477 = vmatprep.subr.bf16.mxu1 %v10850_v51  ;;  %v10924_v49 = vld [vmem:[%s12218_s29 + $0x730] ss:$8 sps:$4 sm:$0xff]  }
 0x2be   : > { %8631 = vmatprep.subr.bf16.mxu0 %v10853_v52  ;;  %v10927_v51 = vld [vmem:[%s12218_s29 + $0xf30] ss:$8 sps:$4 sm:$0xff]   ;;  %v10932_v52 = vld [vmem:[%s12218_s29 + $0x744] ss:$8 sps:$4 sm:$0xff]  }
 0x2c0   : > { %6478 = vmatpush1.bf16.msra.mxu1 %v10848_v55  ;;  %v10935_v55 = vld [vmem:[%s12218_s29 + $0xf44] ss:$8 sps:$4 sm:$0xff]  }
 0x2c1   : > { %8632 = vmatpush1.bf16.msra.mxu0 %v10851_v56  ;;  %6479 = vmatprep.subr.bf16.mxu1 %v10856_v57  ;;  %v10930_v56 = vld [vmem:[%s12218_s29 + $0x740] ss:$8 sps:$4 sm:$0xff]  }
 0x2c2   : > { %8633 = vmatprep.subr.bf16.mxu0 %v10859_v58  ;;  %v10933_v57 = vld [vmem:[%s12218_s29 + $0xf40] ss:$8 sps:$4 sm:$0xff]   ;;  %v10938_v58 = vld [vmem:[%s12218_s29 + $0x754] ss:$8 sps:$4 sm:$0xff]  }
 0x2c4   : > { %6480 = vmatpush1.bf16.msra.mxu1 %v10854_v36  ;;  %v10941_v36 = vld [vmem:[%s12218_s29 + $0xf54] ss:$8 sps:$4 sm:$0xff]  }
 0x2c5   : > { %8634 = vmatpush1.bf16.msra.mxu0 %v10857_v48  ;;  %6481 = vmatprep.subr.bf16.mxu1 %v10862_v50  ;;  %v10936_v48 = vld [vmem:[%s12218_s29 + $0x750] ss:$8 sps:$4 sm:$0xff]  }
 0x2c6   : > { %8635 = vmatprep.subr.bf16.mxu0 %v10865_v54  ;;  %v10939_v50 = vld [vmem:[%s12218_s29 + $0xf50] ss:$8 sps:$4 sm:$0xff]   ;;  %v10944_v54 = vld [vmem:[%s12218_s29 + $0x764] ss:$8 sps:$4 sm:$0xff]  }
 0x2c8   : > { %6482 = vmatpush1.bf16.msra.mxu1 %v10860_v59  ;;  %v10947_v59 = vld [vmem:[%s12218_s29 + $0xf64] ss:$8 sps:$4 sm:$0xff]  }
 0x2c9   : > { %8636 = vmatpush1.bf16.msra.mxu0 %v10863_v60  ;;  %6483 = vmatprep.subr.bf16.mxu1 %v10868_v0  ;;  %v10942_v60 = vld [vmem:[%s12218_s29 + $0x760] ss:$8 sps:$4 sm:$0xff]  }
 0x2ca   : > { %8637 = vmatprep.subr.bf16.mxu0 %v10871_v1  ;;  %v10945_v0 = vld [vmem:[%s12218_s29 + $0xf60] ss:$8 sps:$4 sm:$0xff]   ;;  %v10950_v1 = vld [vmem:[%s12218_s29 + $0x774] ss:$8 sps:$4 sm:$0xff]  }
 0x2cc   : > { %6484 = vmatpush1.bf16.msra.mxu1 %v10866_v3  ;;  %v10953_v3 = vld [vmem:[%s12218_s29 + $0xf74] ss:$8 sps:$4 sm:$0xff]  }
 0x2cd   : > { %8638 = vmatpush1.bf16.msra.mxu0 %v10869_v4  ;;  %6485 = vmatprep.subr.bf16.mxu1 %v10874_v5  ;;  %v10948_v4 = vld [vmem:[%s12218_s29 + $0x770] ss:$8 sps:$4 sm:$0xff]  }
 0x2ce   : > { %8639 = vmatprep.subr.bf16.mxu0 %v10877_v6  ;;  %v10951_v5 = vld [vmem:[%s12218_s29 + $0xf70] ss:$8 sps:$4 sm:$0xff]   ;;  %v10956_v6 = vld [vmem:[%s12218_s29 + $0x784] ss:$8 sps:$4 sm:$0xff]  }
 0x2d0   : > { %6486 = vmatpush1.bf16.msra.mxu1 %v10872_v7  ;;  %v10959_v7 = vld [vmem:[%s12218_s29 + $0xf84] ss:$8 sps:$4 sm:$0xff]  }
 0x2d1   : > { %8640 = vmatpush1.bf16.msra.mxu0 %v10875_v53  ;;  %6487 = vmatprep.subr.bf16.mxu1 %v10880_v8  ;;  %v10954_v53 = vld [vmem:[%s12218_s29 + $0x780] ss:$8 sps:$4 sm:$0xff]  }
 0x2d2   : > { %8641 = vmatprep.subr.bf16.mxu0 %v10883_v61  ;;  %v10957_v8 = vld [vmem:[%s12218_s29 + $0xf80] ss:$8 sps:$4 sm:$0xff]   ;;  %v10962_v61 = vld [vmem:[%s12218_s29 + $0x794] ss:$8 sps:$4 sm:$0xff]  }
 0x2d4   : > { %6488 = vmatpush1.bf16.msra.mxu1 %v10878_v62  ;;  %v10965_v62 = vld [vmem:[%s12218_s29 + $0xf94] ss:$8 sps:$4 sm:$0xff]  }
 0x2d5   : > { %8642 = vmatpush1.bf16.msra.mxu0 %v10881_v2  ;;  %6489 = vmatprep.subr.bf16.mxu1 %v10886_v9  ;;  %v10960_v2 = vld [vmem:[%s12218_s29 + $0x790] ss:$8 sps:$4 sm:$0xff]  }
 0x2d6   : > { %8643 = vmatprep.subr.bf16.mxu0 %v10889_v14  ;;  %v10963_v9 = vld [vmem:[%s12218_s29 + $0xf90] ss:$8 sps:$4 sm:$0xff]   ;;  %v10968_v14 = vld [vmem:[%s12218_s29 + $0x7a4] ss:$8 sps:$4 sm:$0xff]  }
 0x2d8   : > { %6490 = vmatpush1.bf16.msra.mxu1 %v10884_v15  ;;  %v10971_v15 = vld [vmem:[%s12218_s29 + $0xfa4] ss:$8 sps:$4 sm:$0xff]  }
 0x2d9   : > { %8644 = vmatpush1.bf16.msra.mxu0 %v10887_v16  ;;  %6491 = vmatprep.subr.bf16.mxu1 %v10893_v17  ;;  %v10966_v16 = vld [vmem:[%s12218_s29 + $0x7a0] ss:$8 sps:$4 sm:$0xff]  }
 0x2da   : > { %8645 = vmatprep.subr.bf16.mxu0 %v10897_v18  ;;  %v10969_v17 = vld [vmem:[%s12218_s29 + $0xfa0] ss:$8 sps:$4 sm:$0xff]   ;;  %v10974_v18 = vld [vmem:[%s12218_s29 + $0x7b4] ss:$8 sps:$4 sm:$0xff]  }
 0x2dc   : > { %6492 = vmatpush1.bf16.msra.mxu1 %v10891_v19  ;;  %v10977_v19 = vld [vmem:[%s12218_s29 + $0xfb4] ss:$8 sps:$4 sm:$0xff]  }
 0x2dd   : > { %8646 = vmatpush1.bf16.msra.mxu0 %v10895_v20  ;;  %6493 = vmatprep.subr.bf16.mxu1 %v10902_v10  ;;  %v10972_v20 = vld [vmem:[%s12218_s29 + $0x7b0] ss:$8 sps:$4 sm:$0xff]  }
 0x2de   : > { %8647 = vmatprep.subr.bf16.mxu0 %v10905_v11  ;;  %v10975_v10 = vld [vmem:[%s12218_s29 + $0xfb0] ss:$8 sps:$4 sm:$0xff]   ;;  %v10980_v11 = vld [vmem:[%s12218_s29 + $0x7c4] ss:$8 sps:$4 sm:$0xff]  }
 0x2e0   : > { %6494 = vmatpush1.bf16.msra.mxu1 %v10900_v13  ;;  %v10983_v13 = vld [vmem:[%s12218_s29 + $0xfc4] ss:$8 sps:$4 sm:$0xff]  }
 0x2e1   : > { %8648 = vmatpush1.bf16.msra.mxu0 %v10903_v63  ;;  %6514 = vmatprep.subr.bf16.mxu1 %v10908_v21  ;;  %v10978_v63 = vld [vmem:[%s12218_s29 + $0x7c0] ss:$8 sps:$4 sm:$0xff]  }
 0x2e2   : > { %8668 = vmatprep.subr.bf16.mxu0 %v10911_v22  ;;  %v10981_v21 = vld [vmem:[%s12218_s29 + $0xfc0] ss:$8 sps:$4 sm:$0xff]   ;;  %v10986_v22 = vld [vmem:[%s12218_s29 + $0x7d4] ss:$8 sps:$4 sm:$0xff]  }
 0x2e3   : > { %6496 = vmatmul.mubr.bf16.vlgmr.msra.gmra.mrb[0].mxu1 %v9298_v24  ;;  %v10989_v24 = vld [vmem:[%s12218_s29 + $0xfd4] ss:$8 sps:$4 sm:$0xff]  }
 0x2e4   : > { %8650 = vmatmul.mubr.bf16.vlgmr.msra.gmra.mrb[0].mxu0 %v9866_v25  ;;  %6515 = vmatpush1.bf16.msra.mxu1 %v10906_v30  ;;  %v10984_v25 = vld [vmem:[%s12218_s29 + $0x7d0] ss:$8 sps:$4 sm:$0xff]   ;;  %v10995_v30 = vld [vmem:[%s12218_s29 + $0x7e4] ss:$8 sps:$4 sm:$0xff]  }
 0x2e5   : > { %8669 = vmatpush1.bf16.msra.mxu0 %v10909_v31  ;;  %6516 = vmatprep.subr.bf16.mxu1 %v10914_v32  ;;  %v10999_v31 = vld [vmem:[%s12218_s29 + $0xfe4] ss:$8 sps:$4 sm:$0xff]   ;;  %v10993_v32 = vld [vmem:[%s12218_s29 + $0x7e0] ss:$8 sps:$4 sm:$0xff]  }
 0x2e6   : > { %8670 = vmatprep.subr.bf16.mxu0 %v10917_v12  ;;  %6505 = vmatprep.mubr.bf16.mxu1 %v9307_v23  ;;  %v10997_v12 = vld [vmem:[%s12218_s29 + $0xfe0] ss:$8 sps:$4 sm:$0xff]   ;;  %v11002_v23 = vld [vmem:[%s12218_s29 + $0x7f4] ss:$8 sps:$4 sm:$0xff]  }
 0x2e7   : > { %8659 = vmatprep.mubr.bf16.mxu0 %v9875_v26  ;;  %v11005_v26 = vld [vmem:[%s12218_s29 + $0xff4] ss:$8 sps:$4 sm:$0xff]  }
 0x2e8   : > { %6517 = vmatpush1.bf16.msra.mxu1 %v10912_v28  ;;  %v11000_v28 = vld [vmem:[%s12218_s29 + $0x7f0] ss:$8 sps:$4 sm:$0xff]  }
 0x2e9   : > { %8671 = vmatpush1.bf16.msra.mxu0 %v10915_v33  ;;  %6518 = vmatprep.subr.bf16.mxu1 %v10920_v37  ;;  %v11003_v33 = vld [vmem:[%s12218_s29 + $0xff0] ss:$8 sps:$4 sm:$0xff]   ;;  %s4438_s29 = scalar_lea.vmem %s12976_s3, %s4432_s12 }
 0x2ea   : > { %8672 = vmatprep.subr.bf16.mxu0 %v10923_v38  ;;  %v9733_v37 = vld [vmem:[%s12269_s10 + $0xb8] sm:$0xff]  ;;  %v9300_v38 = vcombine.low %v12847_v40, %v12852_v43  ;;  %v8745_v40 = vlaneseq }
 0x2eb   : > { %6506 = vmatmul.mubr.bf16.gmra.mrb[4].mxu1 %v9306_v41  ;;  %v9868_v41 = vcombine.low %v12855_v44, %v12858_v34  ;;  %v8743_v34 = vld [vmem:[%s4433_s24] sm:$0x3] }
 0x2ec   : > { %8660 = vmatmul.mubr.bf16.gmra.mrb[4].mxu0 %v9874_v42  ;;  %6519 = vmatpush1.bf16.msra.mxu1 %v10918_v35  ;;  %v9309_v42 = vcombine.high %v12855_v44, %v12855_v44  ;;  %v9877_v35 = vcombine.high %v9733_v37, %v9733_v37  ;;  %v8746_v43 = vshrl.u32 %v8745_v40, 7 }
 0x2ed   : > { %8673 = vmatpush1.bf16.msra.mxu0 %v10921_v39  ;;  %6520 = vmatprep.subr.bf16.mxu1 %v10926_v45  ;;  %v9308_v39 = vcombine.low %v12855_v44, %v12855_v44  ;;  %v9876_v45 = vcombine.low %v9733_v37, %v9733_v37 }
 0x2ee   : > { %8674 = vmatprep.subr.bf16.mxu0 %v10929_v46  ;;  %6546 = vmatprep.mubr.bf16.mxu1 %v9301_v27  ;;  %v8747_v44 = vsub.s32 0, %v8746_v43  ;;  %v8751_v46 = vsub.s32 1, %v8746_v43  ;;  %v8761_v27 = vld [vmem:[%s4438_s29] sm:$0x3] }
 0x2ef   : > { %8700 = vmatprep.mubr.bf16.mxu0 %v9869_v47 }
 0x2f0   : > { %6521 = vmatpush1.bf16.msra.mxu1 %v10924_v49  ;;  %v8748_v47 = vrot.slane %v8743_v34, %v8747_v44 }
 0x2f1   : > { %8675 = vmatpush1.bf16.msra.mxu0 %v10927_v51  ;;  %6522 = vmatprep.subr.bf16.mxu1 %v10932_v52  ;;  %v8752_v52 = vrot.slane %v8743_v34, %v8751_v46 }
 0x2f2   : > { %8676 = vmatprep.subr.bf16.mxu0 %v10935_v55 }
 0x2f4   : > { %6523 = vmatpush1.bf16.msra.mxu1 %v10930_v56  ;;  %v8766_v56 = vrot.slane %v8761_v27, %v8747_v44 }
 0x2f5   : > { %8677 = vmatpush1.bf16.msra.mxu0 %v10933_v57  ;;  %6524 = vmatprep.subr.bf16.mxu1 %v10938_v58 }
 0x2f6   : > { %8678 = vmatprep.subr.bf16.mxu0 %v10941_v36 }
 0x2f8   : > { %6525 = vmatpush1.bf16.msra.mxu1 %v10936_v48  ;;  %v8770_v48 = vrot.slane %v8761_v27, %v8751_v46 }
 0x2f9   : > { %8679 = vmatpush1.bf16.msra.mxu0 %v10939_v50  ;;  %6526 = vmatprep.subr.bf16.mxu1 %v10944_v54 }
 0x2fa   : > { %8680 = vmatprep.subr.bf16.mxu0 %v10947_v59 }
 0x2fc   : > { %6527 = vmatpush1.bf16.msra.mxu1 %v10942_v60 }
 0x2fd   : > { %8681 = vmatpush1.bf16.msra.mxu0 %v10945_v0  ;;  %6528 = vmatprep.subr.bf16.mxu1 %v10950_v1 }
 0x2fe   : > { %8682 = vmatprep.subr.bf16.mxu0 %v10953_v3 }
 0x300   : > { %6529 = vmatpush1.bf16.msra.mxu1 %v10948_v4 }
 0x301   : > { %8683 = vmatpush1.bf16.msra.mxu0 %v10951_v5  ;;  %6530 = vmatprep.subr.bf16.mxu1 %v10956_v6 }
 0x302   : > { %8684 = vmatprep.subr.bf16.mxu0 %v10959_v7 }
 0x304   : > { %6531 = vmatpush1.bf16.msra.mxu1 %v10954_v53 }
 0x305   : > { %8685 = vmatpush1.bf16.msra.mxu0 %v10957_v8  ;;  %6532 = vmatprep.subr.bf16.mxu1 %v10962_v61 }
 0x306   : > { %8686 = vmatprep.subr.bf16.mxu0 %v10965_v62 }
 0x308   : > { %6533 = vmatpush1.bf16.msra.mxu1 %v10960_v2 }
 0x309   : > { %8687 = vmatpush1.bf16.msra.mxu0 %v10963_v9  ;;  %6534 = vmatprep.subr.bf16.mxu1 %v10968_v14 }
 0x30a   : > { %8688 = vmatprep.subr.bf16.mxu0 %v10971_v15 }
 0x30c   : > { %6535 = vmatpush1.bf16.msra.mxu1 %v10966_v16 }
 0x30d   : > { %8689 = vmatpush1.bf16.msra.mxu0 %v10969_v17  ;;  %6536 = vmatprep.subr.bf16.mxu1 %v10974_v18 }
 0x30e   : > { %8690 = vmatprep.subr.bf16.mxu0 %v10977_v19 }
 0x310   : > { %6537 = vmatpush1.bf16.msra.mxu1 %v10972_v20 }
 0x311   : > { %8691 = vmatpush1.bf16.msra.mxu0 %v10975_v10  ;;  %6538 = vmatprep.subr.bf16.mxu1 %v10980_v11 }
 0x312   : > { %8692 = vmatprep.subr.bf16.mxu0 %v10983_v13 }
 0x314   : > { %6539 = vmatpush1.bf16.msra.mxu1 %v10978_v63 }
 0x315   : > { %8693 = vmatpush1.bf16.msra.mxu0 %v10981_v21  ;;  %6540 = vmatprep.subr.bf16.mxu1 %v10986_v22 }
 0x316   : > { %8694 = vmatprep.subr.bf16.mxu0 %v10989_v24 }
 0x318   : > { %6541 = vmatpush1.bf16.msra.mxu1 %v10984_v25 }
 0x319   : > { %8695 = vmatpush1.bf16.msra.mxu0 %v10987_v29  ;;  %6542 = vmatprep.subr.bf16.mxu1 %v10995_v30 }
 0x31a   : > { %8696 = vmatprep.subr.bf16.mxu0 %v10999_v31 }
 0x31c   : > { %6543 = vmatpush1.bf16.msra.mxu1 %v10993_v32 }
 0x31d   : > { %8697 = vmatpush1.bf16.msra.mxu0 %v10997_v12  ;;  %6544 = vmatprep.subr.bf16.mxu1 %v11002_v23 }
 0x31e   : > { %8698 = vmatprep.subr.bf16.mxu0 %v11005_v26 }
 0x320   : > { %6545 = vmatpush1.bf16.msra.mxu1 %v11000_v28 }
 0x321   : > { %8699 = vmatpush1.bf16.msra.mxu0 %v11003_v33 }
 0x323   : > { %6547 = vmatmul.mubr.bf16.vlgmr.msra.gmra.mrb[0].mxu1 %v9300_v38 }
 0x324   : > { %8701 = vmatmul.mubr.bf16.vlgmr.msra.gmra.mrb[0].mxu0 %v9868_v41  ;;  %6556 = vmatprep.mubr.bf16.mxu1 %v9309_v42 }
 0x325   : > { %8710 = vmatprep.mubr.bf16.mxu0 %v9877_v35 }
 0x32b   : > { %6557 = vmatmul.mubr.bf16.gmra.mrb[4].mxu1 %v9308_v39 }
 0x32c   : > { %8711 = vmatmul.mubr.bf16.gmra.mrb[4].mxu0 %v9876_v45 }
 0x3f6   : > { %v6548_v49 = vpop.f32.mrb[0].mxu1 }
 0x3f7   : > { %v8702_v51 = vpop.f32.mrb[0].mxu0  ;;  %v6550_v57 = vpop.f32.mrb[1].mxu1 }
 0x3f8   : > { %v10017_v55 = vadd.f32 %v8702_v51, %v6548_v49  ;;  %v8704_v58 = vpop.f32.mrb[1].mxu0  ;;  %v6552_v50 = vpop.f32.mrb[2].mxu1 }
 0x3f9   : > { %v10018_v36 = vadd.f32 %v8704_v58, %v6550_v57  ;;  %v8706_v54 = vpop.f32.mrb[2].mxu0  ;;  %v6554_v0 = vpop.f32.mrb[3].mxu1 }
 0x3fa   : > { %v8755_v59 = vmul.f32 %v10017_v55, %v8748_v47  ;;  %v10019_v60 = vadd.f32 %v8706_v54, %v6552_v50  ;;  %v8708_v1 = vpop.f32.mrb[3].mxu0 }
 0x3fb   : > { %v8756_v3 = vmul.f32 %v10018_v36, %v8752_v52  ;;  %v10020_v4 = vadd.f32 %v8708_v1, %v6554_v0 }
 0x3fc   : > { %v8773_v5 = vadd.f32 %v8766_v56, %v8755_v59  ;;  %v8757_v6 = vmul.f32 %v10019_v60, %v8748_v47 }
 0x3fd   : > { %v8774_v7 = vadd.f32 %v8770_v48, %v8756_v3  ;;  %v8758_v53 = vmul.f32 %v10020_v4, %v8752_v52 }
 0x3fe   : > { %vm8779_vm0 = vcmp.ge.f32.partialorder %v8773_v5, 0.0  ;;  %v8785_v8 = vmul.f32 0.2, %v8773_v5  ;;  %v8775_v61 = vadd.f32 %v8766_v56, %v8757_v6  ;;  %v6558_v9 = vpop.f32.mrb[4].mxu1 }
 0x3ff   : > { %vm8780_vm1 = vcmp.ge.f32.partialorder %v8774_v7, 0.0  ;;  %v8786_v62 = vmul.f32 0.2, %v8774_v7  ;;  %v8776_v2 = vadd.f32 %v8770_v48, %v8758_v53  ;;  %v8712_v14 = vpop.f32.mrb[4].mxu0  ;;  %v6560_v18 = vpop.f32.mrb[5].mxu1 }
 0x400   : > { %v8791_v15 = vsel %vm8779_vm0, %v8773_v5, %v8785_v8  ;;  %vm8781_vm2 = vcmp.ge.f32.partialorder %v8775_v61, 0.0  ;;  %v8787_v16 = vmul.f32 0.2, %v8775_v61  ;;  %v10021_v17 = vadd.f32 %v8712_v14, %v6558_v9  ;;  %v8714_v19 = vpop.f32.mrb[5].mxu0  ;;  %v6562_v13 = vpop.f32.mrb[6].mxu1 }
 0x401   : > { %v8792_v20 = vsel %vm8780_vm1, %v8774_v7, %v8786_v62  ;;  %vm8782_vm3 = vcmp.ge.f32.partialorder %v8776_v2, 0.0  ;;  %v8788_v10 = vmul.f32 0.2, %v8776_v2  ;;  %v10022_v11 = vadd.f32 %v8714_v19, %v6560_v18  ;;  %v8716_v63 = vpop.f32.mrb[6].mxu0  ;;  %v6563_v25 = vpop.f32.mrb[7].mxu1 }
 0x402   : > { %v10014_v21 = vpack.c.bf16 %v8792_v20, %v8791_v15  ;;  %v8793_v22 = vsel %vm8781_vm2, %v8775_v61, %v8787_v16  ;;  %v8759_v24 = vmul.f32 %v10021_v17, %v8748_v47  ;;  %v8717_v29 = vpop.f32.mrb[7].mxu0 }
 0x403   : > { %v8794_v30 = vsel %vm8782_vm3, %v8776_v2, %v8788_v10  ;;  %v8760_v31 = vmul.f32 %v10022_v11, %v8752_v52 }
 0x404   : > { %8817 = vst [vmem:[%s4423_s15] sm:$0xff] %v10014_v21  ;;  %v10015_v32 = vpack.c.bf16 %v8794_v30, %v8793_v22  ;;  %v8777_v12 = vadd.f32 %v8766_v56, %v8759_v24 }
 0x405   : > { %v8778_v23 = vadd.f32 %v8770_v48, %v8760_v31 }
 0x406   : > { %8818 = vst [vmem:[%s4423_s15 + $0x8] sm:$0xff] %v10015_v32  ;;  %vm8783_vm4 = vcmp.ge.f32.partialorder %v8777_v12, 0.0  ;;  %v8789_v26 = vmul.f32 0.2, %v8777_v12  ;;  %8826 = sbr.rel (!%p11174_p9) target bundleno = 1045 (0x415), region = 92 }
 0x407   : > { %vm8784_vm5 = vcmp.ge.f32.partialorder %v8778_v23, 0.0  ;;  %v8790_v28 = vmul.f32 0.2, %v8778_v23 }
 0x408   : > { %v8795_v33 = vsel %vm8783_vm4, %v8777_v12, %v8789_v26 }
 0x409   : > { %v8796_v37 = vsel %vm8784_vm5, %v8778_v23, %v8790_v28 }
 0x40a   : > { %v10016_v38 = vpack.c.bf16 %v8796_v37, %v8795_v33 }
 0x40b   : > { %v8866_v41 = vld [vmem:[%s4423_s15] sm:$0xff] (%p11174_p9) }
 0x40c   : > { %8819 = vst [vmem:[%s4423_s15 + $0x10] sm:$0xff] %v10016_v38  ;;  %8867 = vst [vmem:[%s8834_s13] sm:$0xff] (%p11174_p9), %v8866_v41 }
 0x40d   : > { %v8868_v42 = vld [vmem:[%s4423_s15 + $0x8] sm:$0xff] }
 0x40e   : > { %8869 = vst [vmem:[%s8834_s13 + $0x10] sm:$0xff] %v8868_v42 }
 0x413   : > { %v8870_v35 = vld [vmem:[%s4423_s15 + $0x10] sm:$0xff] }
 0x414   : > { %8871 = vst [vmem:[%s8834_s13 + $0x20] sm:$0xff] %v8870_v35 }
 0x415 PF: > { %s14_s23 = sadd.s32 1, %s11080_s23   ;;  %s12979_s15 = smov %s11052_s16 }
 0x416   : > { %p11_p2 = scmp.ge.s32.totalorder %s14_s23, 6   ;;  %s12980_s16 = smov %s11179_s8 }
 0x417   : > { %s12981_s17 = smov %s11060_s18  ;;  %s12982_s18 = smov %s11168_s30 }
 0x418   : > { %s12983_s19 = smov %s11072_s21  ;;  %s12984_s20 = smov %s11076_s22 }
 0x419   : > { %s12985_s21 = smov %s12988_s25  ;;  %s12986_s22 = smov %s12992_s26 }
 0x41a   :  { %13 = sbr.rel (!%p11_p2) target bundleno = 5 (0x5), region = 183 }

</bundles_post_ra>
